<compile_context>
chip_gen: v7x
topology: tpu7x:2x2x1
jax: 0.10.0
libtpu: 0.0.40
codegen_flags: <defaults>
</compile_context>

<pallas_src>
import jax
import jax.numpy as jnp
from jax import lax
from jax.experimental import pallas as pl
from jax.experimental.pallas import tpu as pltpu

# Model geometry implied by the module (16x16 single-channel input).
H_IN = W_IN = 16
C1, C2 = 32, 64
HP = 6                        # pooled spatial size: ((16-2)-2)//2
FLAT = C2 * HP * HP           # 2304
HID = 128
NCLS = 10

# Layout constants.
PITCH = 16                    # rows per image in the (b*16 + h) row layout
WPAD = 18                     # image width padded for the 3x3 horizontal taps
K1 = 3 * WPAD                 # fused conv1 contraction                   (54)
L1 = 16 * C1                  # conv1 lanes: (w, c1)                      (512)
K2 = 3 * L1                   # fused conv2 contraction                   (1536)
L2 = 16 * C2                  # conv2 lanes: (parity, w//2, c2)           (1024)
KP = HP * C2                  # compacted pooled lanes: (wp, c2)          (384)
NFC = HP * HID                # concatenated fc1 column blocks            (768)


def _make_kernel(bt):
    rb = bt * PITCH           # pooled / selector row span
    n2 = rb + 8               # conv2 rows computed
    n1 = rb + 16              # conv1 rows computed

    def kernel(x_ref, w1_ref, b1_ref, w2_ref, b2_ref,
               wfc1_ref, bfc1_ref, sel_ref, wfc2_ref, bfc2_ref, out_ref):
        # ---- conv1: all 3 vertical taps fused along K -> one matmul ----
        acc1 = jnp.dot(x_ref[0], w1_ref[...],
                       preferred_element_type=jnp.float32)                  # (n1, 512)
        h1 = jnp.maximum(acc1 + b1_ref[...], 0.0).astype(jnp.bfloat16)

        # ---- conv2: concat the 3 kh-shifted views (lane-aligned, 512 wide
        #      each) -> one (n2, 1536) x (1536, 1024) matmul; no ReLU (spec) ----
        h1c = jnp.concatenate([h1[0:n2], h1[1:n2 + 1], h1[2:n2 + 2]], axis=1)
        acc2 = jnp.dot(h1c, w2_ref[...],
                       preferred_element_type=jnp.float32)                  # (n2, 1024)
        a2 = (acc2 + b2_ref[...]).astype(jnp.bfloat16)

        # ---- 2x2 max-pool in bf16.  w2's columns are permuted to
        #      (parity, w//2, c2), so the w-pool is a max of two 128-aligned
        #      384-lane slices and the result is already compacted to (wp, c2).
        top = jnp.maximum(a2[0:rb, 0:KP], a2[0:rb, 512:512 + KP])
        bot = jnp.maximum(a2[1:rb + 1, 0:KP], a2[1:rb + 1, 512:512 + KP])
        pooled = jnp.maximum(top, bot)                                      # (rb, 384)

        # ---- row selection BEFORE fc1: bf16 0/1 selector (exact) picks the
        #      HP*bt valid pooled rows ----
        z = jnp.dot(sel_ref[...], pooled,
                    preferred_element_type=jnp.float32)                     # (6*bt, 384)

        # ---- fc1: six (bt, 384) x (384, 128) matmuls, f32 accumulation ----
        y1 = jnp.zeros((bt, HID), jnp.float32) + bfc1_ref[...]
        for hp in range(HP):
            zb = z[hp * bt:(hp + 1) * bt, :].astype(jnp.bfloat16)
            y1 = y1 + jnp.dot(zb, wfc1_ref[:, hp * HID:(hp + 1) * HID],
                              preferred_element_type=jnp.float32)
        y1 = jnp.maximum(y1, 0.0).astype(jnp.bfloat16)                      # (bt, 128)

        # ---- shared head: fc2 + log_softmax ----
        y2 = jnp.dot(y1, wfc2_ref[...],
                     preferred_element_type=jnp.float32) + bfc2_ref[...]    # (bt, 10)
        m = jnp.max(y2, axis=-1, keepdims=True)
        e = jnp.exp(y2 - m)
        out_ref[...] = y2 - m - jnp.log(jnp.sum(e, axis=-1, keepdims=True))

    return kernel, n1, rb


def _pick_bt(batch):
    # Prefer big tiles, but keep >= 2 grid steps when the batch allows so a
    # v7x megacore can split the "parallel" grid axis across both TensorCores.
    for bt in (32, 16, 8):
        if batch >= 2 * bt:
            return bt
    return 8


def _prep_inputs(x_nchw, bt):
    B = x_nchw.shape[0]
    nb = -(-B // bt)
    b_pad = nb * bt
    rb = bt * PITCH
    n1 = rb + 16
    nx = rb + 24
    x = x_nchw[:, 0].astype(jnp.float32)                                    # (B, 16, 16)
    x = jnp.pad(x, ((0, b_pad - B), (0, 0), (0, WPAD - W_IN)))              # (b_pad, 16, 18)
    x = x.reshape(nb, rb, WPAD)
    x = jnp.pad(x, ((0, 0), (0, nx - rb), (0, 0)))                          # (nb, nx, 18)
    # Fuse the 3 vertical taps along lanes: x_cat[t, r, kh*18 + w] = x[t, r+kh, w].
    x_cat = jnp.concatenate([x[:, kh:kh + n1, :] for kh in range(3)], axis=2)
    return x_cat.astype(jnp.bfloat16), nb, b_pad                            # (nb, n1, 54)


def _prep_params(p, bt):
    f32, bf16 = jnp.float32, jnp.bfloat16
    rb = bt * PITCH

    # conv1 -> one banded (54, 512) matrix: rows (kh, w_in), cols (w, c1).
    w1_t = jnp.transpose(p["conv1_w"].astype(f32)[:, 0], (1, 2, 0))         # (kh, kw, c1)
    cols = [jnp.pad(w1_t, ((0, 0), (w, 15 - w), (0, 0))) for w in range(16)]
    w1 = jnp.stack(cols, axis=2).reshape(K1, L1)                            # (54, 512)
    b1 = jnp.tile(p["conv1_b"].astype(f32), 16).reshape(1, L1)

    # conv2 -> one banded (1536, 1024) matrix: rows (kh, w_in, c1); output
    # columns permuted to (parity, w//2, c2) so the 2x2 pool only needs
    # 128-aligned slices and lands pre-compacted.
    w2_t = jnp.transpose(p["conv2_w"].astype(f32), (2, 3, 1, 0))            # (kh, kw, c1, c2)
    cols = []
    for w in range(16):
        keep = min(3, 16 - w)
        cols.append(jnp.pad(w2_t[:, :keep],
                            ((0, 0), (w, 16 - w - keep), (0, 0), (0, 0))))
    w2 = jnp.stack(cols, axis=3)                                            # (3,16,32,wo,64)
    order = jnp.array([0, 2, 4, 6, 8, 10, 12, 14, 1, 3, 5, 7, 9, 11, 13, 15])
    w2 = w2[:, :, :, order, :].reshape(K2, L2)                              # (1536, 1024)
    b2 = jnp.tile(p["conv2_b"].astype(f32), 16).reshape(1, L2)              # wo-independent

    # fc1 -> compacted (384, 768): rows (wp, c2); six 128-wide column blocks (hp, f).
    wf = p["fc1_w"].astype(f32).reshape(HID, C2, HP, HP)                    # (f, c, hp, wp)
    wfc1 = jnp.transpose(wf, (3, 1, 2, 0)).reshape(KP, NFC)                 # (384, 768)
    bfc1 = p["fc1_b"].astype(f32).reshape(1, HID)
    wfc2 = jnp.transpose(p["fc2_w"].astype(f32), (1, 0))                    # (128, 10)
    bfc2 = p["fc2_b"].astype(f32).reshape(1, NCLS)

    # Selector: row hp*bt + b picks pooled conv-row b*16 + 2*hp (0/1, exact in bf16).
    rows = jnp.arange(HP * bt)
    tgt = (rows % bt) * PITCH + 2 * (rows // bt)
    sel = (jnp.arange(rb)[None, :] == tgt[:, None]).astype(bf16)            # (6*bt, rb)

    return (w1.astype(bf16), b1, w2.astype(bf16), b2,
            wfc1.astype(bf16), bfc1, sel, wfc2.astype(bf16), bfc2)


def netmain_forward(x_nchw, params):
    B = x_nchw.shape[0]
    bt = _pick_bt(B)
    kernel, n1, rb = _make_kernel(bt)
    x_cat, nb, b_pad = _prep_inputs(x_nchw, bt)
    (w1, b1, w2, b2, wfc1, bfc1, sel, wfc2, bfc2) = _prep_params(params, bt)
    n2 = rb + 8

    grid_spec = pltpu.PrefetchScalarGridSpec(
        num_scalar_prefetch=0,
        grid=(nb,),
        in_specs=[
            pl.BlockSpec((1, n1, K1), lambda t: (t, 0, 0)),
            # Constant-index weight blocks: fetched once by the pipeline.
            pl.BlockSpec((K1, L1), lambda t: (0, 0)),
            pl.BlockSpec((1, L1), lambda t: (0, 0)),
            pl.BlockSpec((K2, L2), lambda t: (0, 0)),
            pl.BlockSpec((1, L2), lambda t: (0, 0)),
            pl.BlockSpec((KP, NFC), lambda t: (0, 0)),
            pl.BlockSpec((1, HID), lambda t: (0, 0)),
            pl.BlockSpec((HP * bt, rb), lambda t: (0, 0)),
            pl.BlockSpec((HID, NCLS), lambda t: (0, 0)),
            pl.BlockSpec((1, NCLS), lambda t: (0, 0)),
        ],
        out_specs=pl.BlockSpec((bt, NCLS), lambda t: (t, 0)),
    )

    flops_per_tile = 2 * (n1 * K1 * L1 + n2 * K2 * L2 + HP * bt * rb * KP
                          + HP * bt * KP * HID + bt * HID * NCLS)
    cost = pl.CostEstimate(
        flops=int(flops_per_tile * nb),
        transcendentals=int(b_pad * (NCLS + 1)),
        bytes_accessed=int(x_cat.size * 2 + 2 * (w1.size + w2.size + wfc1.size
                                                 + sel.size + wfc2.size)
                           + b_pad * NCLS * 4),
    )

    out = pl.pallas_call(
        kernel,
        out_shape=jax.ShapeDtypeStruct((b_pad, NCLS), jnp.float32),
        grid_spec=grid_spec,
        compiler_params=pltpu.CompilerParams(
            dimension_semantics=("parallel",),
            vmem_limit_bytes=40 * 1024 * 1024,
        ),
        cost_estimate=cost,
    )(x_cat, w1, b1, w2, b2, wfc1, bfc1, sel, wfc2, bfc2)
    return out[:B]


def init_params(key):
    ks = jax.random.split(key, 8)

    def u(k, shape, fan_in):
        bound = 1.0 / jnp.sqrt(float(fan_in))
        return jax.random.uniform(k, shape, jnp.float32, -bound, bound)

    return {
        "conv1_w": u(ks[0], (C1, 1, 3, 3), 9),
        "conv1_b": u(ks[1], (C1,), 9),
        "conv2_w": u(ks[2], (C2, C1, 3, 3), C1 * 9),
        "conv2_b": u(ks[3], (C2,), C1 * 9),
        "fc1_w": u(ks[4], (HID, FLAT), FLAT),
        "fc1_b": u(ks[5], (HID,), FLAT),
        "fc2_w": u(ks[6], (NCLS, HID), HID),
        "fc2_b": u(ks[7], (NCLS,), HID),
    }


def reference_forward(x_nchw, p):
    # Pure-JAX reference (exactly mirrors the PyTorch forward, float32).
    y = lax.conv_general_dilated(x_nchw, p["conv1_w"], (1, 1), "VALID",
                                 dimension_numbers=("NCHW", "OIHW", "NCHW"))
    y = jnp.maximum(y + p["conv1_b"][None, :, None, None], 0.0)
    y = lax.conv_general_dilated(y, p["conv2_w"], (1, 1), "VALID",
                                 dimension_numbers=("NCHW", "OIHW", "NCHW"))
    y = y + p["conv2_b"][None, :, None, None]
    y = lax.reduce_window(y, -jnp.inf, lax.max, (1, 1, 2, 2), (1, 1, 2, 2), "VALID")
    y = y.reshape(y.shape[0], -1)
    y = jnp.maximum(y @ p["fc1_w"].T + p["fc1_b"], 0.0)
    y = y @ p["fc2_w"].T + p["fc2_b"]
    return jax.nn.log_softmax(y, axis=-1)


if __name__ == "__main__":
    key = jax.random.PRNGKey(0)
    kx, kp = jax.random.split(key)
    x = jax.random.normal(kx, (2, 1, H_IN, W_IN), jnp.float32)
    params = init_params(kp)

    out = netmain_forward(x, params)
    out = jax.block_until_ready(out)

    ref = reference_forward(x, params)
    assert out.shape == (2, NCLS)
    # bf16 MXU operands (f32 accumulation) -> slightly relaxed tolerance.
    assert jnp.allclose(out, ref, atol=5e-2, rtol=5e-2), (out, ref)
    print("KERNEL_OK")
</pallas_src>

<mosaic_0001>
module attributes {stable_mosaic.version = 11 : i64} {
  func.func @kernel(%arg0: i32, %arg1: memref<1x144x54xbf16, #tpu.memory_space<vmem>>, %arg2: memref<54x512xbf16, #tpu.memory_space<vmem>>, %arg3: memref<1x512xf32, #tpu.memory_space<vmem>>, %arg4: memref<1536x1024xbf16, #tpu.memory_space<vmem>>, %arg5: memref<1x1024xf32, #tpu.memory_space<vmem>>, %arg6: memref<384x768xbf16, #tpu.memory_space<vmem>>, %arg7: memref<1x128xf32, #tpu.memory_space<vmem>>, %arg8: memref<48x128xbf16, #tpu.memory_space<vmem>>, %arg9: memref<128x10xbf16, #tpu.memory_space<vmem>>, %arg10: memref<1x10xf32, #tpu.memory_space<vmem>>, %arg11: memref<8x10xf32, #tpu.memory_space<vmem>>) attributes {dimension_semantics = [#tpu.dimension_semantics<parallel>], iteration_bounds = array<i64: 1>, scalar_prefetch = 0 : i64, scratch_operands = 0 : i64, tpu.core_type = #tpu.core_type<tc>, window_params = [{transform_indices = @transform_0, window_bounds = array<i64: 1, 144, 54>}, {pipeline_mode = #tpu.pipeline_mode<synchronous>, transform_indices = @transform_1, window_bounds = array<i64: 54, 512>}, {pipeline_mode = #tpu.pipeline_mode<synchronous>, transform_indices = @transform_2, window_bounds = array<i64: 1, 512>}, {pipeline_mode = #tpu.pipeline_mode<synchronous>, transform_indices = @transform_3, window_bounds = array<i64: 1536, 1024>}, {pipeline_mode = #tpu.pipeline_mode<synchronous>, transform_indices = @transform_4, window_bounds = array<i64: 1, 1024>}, {pipeline_mode = #tpu.pipeline_mode<synchronous>, transform_indices = @transform_5, window_bounds = array<i64: 384, 768>}, {pipeline_mode = #tpu.pipeline_mode<synchronous>, transform_indices = @transform_6, window_bounds = array<i64: 1, 128>}, {pipeline_mode = #tpu.pipeline_mode<synchronous>, transform_indices = @transform_7, window_bounds = array<i64: 48, 128>}, {pipeline_mode = #tpu.pipeline_mode<synchronous>, transform_indices = @transform_8, window_bounds = array<i64: 128, 10>}, {pipeline_mode = #tpu.pipeline_mode<synchronous>, transform_indices = @transform_9, window_bounds = array<i64: 1, 10>}, {transform_indices = @transform_10, window_bounds = array<i64: 8, 10>}]} {
    %c0 = arith.constant 0 : index
    %c0_0 = arith.constant 0 : index
    %c0_1 = arith.constant 0 : index
    %0 = vector.load %arg1[%c0, %c0_0, %c0_1] : memref<1x144x54xbf16, #tpu.memory_space<vmem>>, vector<1x144x54xbf16>
    %1 = vector.shape_cast %0 : vector<1x144x54xbf16> to vector<144x54xbf16>
    %c0_2 = arith.constant 0 : index
    %c0_3 = arith.constant 0 : index
    %2 = vector.load %arg2[%c0_2, %c0_3] : memref<54x512xbf16, #tpu.memory_space<vmem>>, vector<54x512xbf16>
    %cst = arith.constant dense<0.000000e+00> : vector<144x512xf32>
    %3 = tpu.matmul %1, %2, %cst {dimension_numbers = #tpu.dot_dimension_numbers<[1], [0], [0], [1], [0, 0, 1, 1], [], []>} : vector<144x54xbf16>, vector<54x512xbf16>, vector<144x512xf32> -> vector<144x512xf32>
    %c0_4 = arith.constant 0 : index
    %c0_5 = arith.constant 0 : index
    %4 = vector.load %arg3[%c0_4, %c0_5] : memref<1x512xf32, #tpu.memory_space<vmem>>, vector<1x512xf32>
    %5 = vector.broadcast %4 : vector<1x512xf32> to vector<144x512xf32>
    %6 = arith.addf %3, %5 : vector<144x512xf32>
    %cst_6 = arith.constant 0.000000e+00 : f32
    %7 = vector.broadcast %cst_6 : f32 to vector<144x512xf32>
    %8 = arith.maximumf %6, %7 : vector<144x512xf32>
    %9 = arith.truncf %8 : vector<144x512xf32> to vector<144x512xbf16>
    %10 = vector.extract_strided_slice %9 {offsets = [0, 0], sizes = [136, 512], strides = [1, 1]} : vector<144x512xbf16> to vector<136x512xbf16>
    %11 = vector.extract_strided_slice %9 {offsets = [1, 0], sizes = [136, 512], strides = [1, 1]} : vector<144x512xbf16> to vector<136x512xbf16>
    %12 = vector.extract_strided_slice %9 {offsets = [2, 0], sizes = [136, 512], strides = [1, 1]} : vector<144x512xbf16> to vector<136x512xbf16>
    %13 = tpu.concatenate %10, %11, %12 in 1 : vector<136x512xbf16>, vector<136x512xbf16>, vector<136x512xbf16> -> vector<136x1536xbf16>
    %c0_7 = arith.constant 0 : index
    %c0_8 = arith.constant 0 : index
    %14 = vector.load %arg4[%c0_7, %c0_8] : memref<1536x1024xbf16, #tpu.memory_space<vmem>>, vector<1536x1024xbf16>
    %cst_9 = arith.constant dense<0.000000e+00> : vector<136x1024xf32>
    %15 = tpu.matmul %13, %14, %cst_9 {dimension_numbers = #tpu.dot_dimension_numbers<[1], [0], [0], [1], [0, 0, 1, 1], [], []>} : vector<136x1536xbf16>, vector<1536x1024xbf16>, vector<136x1024xf32> -> vector<136x1024xf32>
    %c0_10 = arith.constant 0 : index
    %c0_11 = arith.constant 0 : index
    %16 = vector.load %arg5[%c0_10, %c0_11] : memref<1x1024xf32, #tpu.memory_space<vmem>>, vector<1x1024xf32>
    %17 = vector.broadcast %16 : vector<1x1024xf32> to vector<136x1024xf32>
    %18 = arith.addf %15, %17 : vector<136x1024xf32>
    %19 = arith.truncf %18 : vector<136x1024xf32> to vector<136x1024xbf16>
    %20 = vector.extract_strided_slice %19 {offsets = [0, 0], sizes = [128, 384], strides = [1, 1]} : vector<136x1024xbf16> to vector<128x384xbf16>
    %21 = vector.extract_strided_slice %19 {offsets = [0, 512], sizes = [128, 384], strides = [1, 1]} : vector<136x1024xbf16> to vector<128x384xbf16>
    %22 = arith.maximumf %20, %21 : vector<128x384xbf16>
    %23 = vector.extract_strided_slice %19 {offsets = [1, 0], sizes = [128, 384], strides = [1, 1]} : vector<136x1024xbf16> to vector<128x384xbf16>
    %24 = vector.extract_strided_slice %19 {offsets = [1, 512], sizes = [128, 384], strides = [1, 1]} : vector<136x1024xbf16> to vector<128x384xbf16>
    %25 = arith.maximumf %23, %24 : vector<128x384xbf16>
    %26 = arith.maximumf %22, %25 : vector<128x384xbf16>
    %c0_12 = arith.constant 0 : index
    %c0_13 = arith.constant 0 : index
    %27 = vector.load %arg8[%c0_12, %c0_13] : memref<48x128xbf16, #tpu.memory_space<vmem>>, vector<48x128xbf16>
    %cst_14 = arith.constant dense<0.000000e+00> : vector<48x384xf32>
    %28 = tpu.matmul %27, %26, %cst_14 {dimension_numbers = #tpu.dot_dimension_numbers<[1], [0], [0], [1], [0, 0, 1, 1], [], []>} : vector<48x128xbf16>, vector<128x384xbf16>, vector<48x384xf32> -> vector<48x384xf32>
    %cst_15 = arith.constant 0.000000e+00 : f32
    %29 = vector.broadcast %cst_15 : f32 to vector<8x128xf32>
    %c0_16 = arith.constant 0 : index
    %c0_17 = arith.constant 0 : index
    %30 = vector.load %arg7[%c0_16, %c0_17] : memref<1x128xf32, #tpu.memory_space<vmem>>, vector<1x128xf32>
    %31 = vector.broadcast %30 : vector<1x128xf32> to vector<8x128xf32>
    %32 = arith.addf %29, %31 : vector<8x128xf32>
    %33 = vector.extract_strided_slice %28 {offsets = [0, 0], sizes = [8, 384], strides = [1, 1]} : vector<48x384xf32> to vector<8x384xf32>
    %34 = arith.truncf %33 : vector<8x384xf32> to vector<8x384xbf16>
    %c0_18 = arith.constant 0 : index
    %c0_19 = arith.constant 0 : index
    %35 = vector.load %arg6[%c0_18, %c0_19] : memref<384x768xbf16, #tpu.memory_space<vmem>>, vector<384x128xbf16>
    %cst_20 = arith.constant dense<0.000000e+00> : vector<8x128xf32>
    %36 = tpu.matmul %34, %35, %cst_20 {dimension_numbers = #tpu.dot_dimension_numbers<[1], [0], [0], [1], [0, 0, 1, 1], [], []>} : vector<8x384xbf16>, vector<384x128xbf16>, vector<8x128xf32> -> vector<8x128xf32>
    %37 = arith.addf %32, %36 : vector<8x128xf32>
    %38 = vector.extract_strided_slice %28 {offsets = [8, 0], sizes = [8, 384], strides = [1, 1]} : vector<48x384xf32> to vector<8x384xf32>
    %39 = arith.truncf %38 : vector<8x384xf32> to vector<8x384xbf16>
    %c0_21 = arith.constant 0 : index
    %c128 = arith.constant 128 : index
    %40 = vector.load %arg6[%c0_21, %c128] : memref<384x768xbf16, #tpu.memory_space<vmem>>, vector<384x128xbf16>
    %cst_22 = arith.constant dense<0.000000e+00> : vector<8x128xf32>
    %41 = tpu.matmul %39, %40, %cst_22 {dimension_numbers = #tpu.dot_dimension_numbers<[1], [0], [0], [1], [0, 0, 1, 1], [], []>} : vector<8x384xbf16>, vector<384x128xbf16>, vector<8x128xf32> -> vector<8x128xf32>
    %42 = arith.addf %37, %41 : vector<8x128xf32>
    %43 = vector.extract_strided_slice %28 {offsets = [16, 0], sizes = [8, 384], strides = [1, 1]} : vector<48x384xf32> to vector<8x384xf32>
    %44 = arith.truncf %43 : vector<8x384xf32> to vector<8x384xbf16>
    %c0_23 = arith.constant 0 : index
    %c256 = arith.constant 256 : index
    %45 = vector.load %arg6[%c0_23, %c256] : memref<384x768xbf16, #tpu.memory_space<vmem>>, vector<384x128xbf16>
    %cst_24 = arith.constant dense<0.000000e+00> : vector<8x128xf32>
    %46 = tpu.matmul %44, %45, %cst_24 {dimension_numbers = #tpu.dot_dimension_numbers<[1], [0], [0], [1], [0, 0, 1, 1], [], []>} : vector<8x384xbf16>, vector<384x128xbf16>, vector<8x128xf32> -> vector<8x128xf32>
    %47 = arith.addf %42, %46 : vector<8x128xf32>
    %48 = vector.extract_strided_slice %28 {offsets = [24, 0], sizes = [8, 384], strides = [1, 1]} : vector<48x384xf32> to vector<8x384xf32>
    %49 = arith.truncf %48 : vector<8x384xf32> to vector<8x384xbf16>
    %c0_25 = arith.constant 0 : index
    %c384 = arith.constant 384 : index
    %50 = vector.load %arg6[%c0_25, %c384] : memref<384x768xbf16, #tpu.memory_space<vmem>>, vector<384x128xbf16>
    %cst_26 = arith.constant dense<0.000000e+00> : vector<8x128xf32>
    %51 = tpu.matmul %49, %50, %cst_26 {dimension_numbers = #tpu.dot_dimension_numbers<[1], [0], [0], [1], [0, 0, 1, 1], [], []>} : vector<8x384xbf16>, vector<384x128xbf16>, vector<8x128xf32> -> vector<8x128xf32>
    %52 = arith.addf %47, %51 : vector<8x128xf32>
    %53 = vector.extract_strided_slice %28 {offsets = [32, 0], sizes = [8, 384], strides = [1, 1]} : vector<48x384xf32> to vector<8x384xf32>
    %54 = arith.truncf %53 : vector<8x384xf32> to vector<8x384xbf16>
    %c0_27 = arith.constant 0 : index
    %c512 = arith.constant 512 : index
    %55 = vector.load %arg6[%c0_27, %c512] : memref<384x768xbf16, #tpu.memory_space<vmem>>, vector<384x128xbf16>
    %cst_28 = arith.constant dense<0.000000e+00> : vector<8x128xf32>
    %56 = tpu.matmul %54, %55, %cst_28 {dimension_numbers = #tpu.dot_dimension_numbers<[1], [0], [0], [1], [0, 0, 1, 1], [], []>} : vector<8x384xbf16>, vector<384x128xbf16>, vector<8x128xf32> -> vector<8x128xf32>
    %57 = arith.addf %52, %56 : vector<8x128xf32>
    %58 = vector.extract_strided_slice %28 {offsets = [40, 0], sizes = [8, 384], strides = [1, 1]} : vector<48x384xf32> to vector<8x384xf32>
    %59 = arith.truncf %58 : vector<8x384xf32> to vector<8x384xbf16>
    %c0_29 = arith.constant 0 : index
    %c640 = arith.constant 640 : index
    %60 = vector.load %arg6[%c0_29, %c640] : memref<384x768xbf16, #tpu.memory_space<vmem>>, vector<384x128xbf16>
    %cst_30 = arith.constant dense<0.000000e+00> : vector<8x128xf32>
    %61 = tpu.matmul %59, %60, %cst_30 {dimension_numbers = #tpu.dot_dimension_numbers<[1], [0], [0], [1], [0, 0, 1, 1], [], []>} : vector<8x384xbf16>, vector<384x128xbf16>, vector<8x128xf32> -> vector<8x128xf32>
    %62 = arith.addf %57, %61 : vector<8x128xf32>
    %cst_31 = arith.constant 0.000000e+00 : f32
    %63 = vector.broadcast %cst_31 : f32 to vector<8x128xf32>
    %64 = arith.maximumf %62, %63 : vector<8x128xf32>
    %65 = arith.truncf %64 : vector<8x128xf32> to vector<8x128xbf16>
    %c0_32 = arith.constant 0 : index
    %c0_33 = arith.constant 0 : index
    %66 = vector.load %arg9[%c0_32, %c0_33] : memref<128x10xbf16, #tpu.memory_space<vmem>>, vector<128x10xbf16>
    %cst_34 = arith.constant dense<0.000000e+00> : vector<8x10xf32>
    %67 = tpu.matmul %65, %66, %cst_34 {dimension_numbers = #tpu.dot_dimension_numbers<[1], [0], [0], [1], [0, 0, 1, 1], [], []>} : vector<8x128xbf16>, vector<128x10xbf16>, vector<8x10xf32> -> vector<8x10xf32>
    %c0_35 = arith.constant 0 : index
    %c0_36 = arith.constant 0 : index
    %68 = vector.load %arg10[%c0_35, %c0_36] : memref<1x10xf32, #tpu.memory_space<vmem>>, vector<1x10xf32>
    %69 = vector.broadcast %68 : vector<1x10xf32> to vector<8x10xf32>
    %70 = arith.addf %67, %69 : vector<8x10xf32>
    %cst_37 = arith.constant dense<0xFF800000> : vector<8xf32>
    %71 = vector.multi_reduction <maximumf>, %70, %cst_37 [1] : vector<8x10xf32> to vector<8xf32>
    %72 = vector.shape_cast %71 : vector<8xf32> to vector<8x1xf32>
    %73 = vector.broadcast %72 : vector<8x1xf32> to vector<8x10xf32>
    %74 = arith.subf %70, %73 : vector<8x10xf32>
    %75 = math.exp %74 : vector<8x10xf32>
    %76 = vector.broadcast %72 : vector<8x1xf32> to vector<8x10xf32>
    %77 = arith.subf %70, %76 : vector<8x10xf32>
    %cst_38 = arith.constant dense<0.000000e+00> : vector<8xf32>
    %78 = vector.multi_reduction <add>, %75, %cst_38 [1] : vector<8x10xf32> to vector<8xf32>
    %79 = vector.shape_cast %78 : vector<8xf32> to vector<8x1xf32>
    %80 = math.log %79 : vector<8x1xf32>
    %81 = vector.broadcast %80 : vector<8x1xf32> to vector<8x10xf32>
    %82 = arith.subf %77, %81 : vector<8x10xf32>
    %c0_39 = arith.constant 0 : index
    %c0_40 = arith.constant 0 : index
    %83 = vector.load %arg11[%c0_39, %c0_40] : memref<8x10xf32, #tpu.memory_space<vmem>>, vector<8x10xf32>
    tpu.vector_store %arg11[%c0_39, %c0_40], %82 {strides = array<i32>} : memref<8x10xf32, #tpu.memory_space<vmem>>, vector<8x10xf32>,
    return
  }
  func.func @transform_0(%arg0: i32) -> (i32, i32, i32) {
    %c0_i32 = arith.constant 0 : i32
    %c0_i32_0 = arith.constant 0 : i32
    %c0_i32_1 = arith.constant 0 : i32
    return %arg0, %c0_i32, %c0_i32_0 : i32, i32, i32
  }
  func.func @transform_1(%arg0: i32) -> (i32, i32) {
    %c0_i32 = arith.constant 0 : i32
    %c0_i32_0 = arith.constant 0 : i32
    %c0_i32_1 = arith.constant 0 : i32
    return %c0_i32, %c0_i32_0 : i32, i32
  }
  func.func @transform_2(%arg0: i32) -> (i32, i32) {
    %c0_i32 = arith.constant 0 : i32
    %c0_i32_0 = arith.constant 0 : i32
    %c0_i32_1 = arith.constant 0 : i32
    return %c0_i32, %c0_i32_0 : i32, i32
  }
  func.func @transform_3(%arg0: i32) -> (i32, i32) {
    %c0_i32 = arith.constant 0 : i32
    %c0_i32_0 = arith.constant 0 : i32
    %c0_i32_1 = arith.constant 0 : i32
    return %c0_i32, %c0_i32_0 : i32, i32
  }
  func.func @transform_4(%arg0: i32) -> (i32, i32) {
    %c0_i32 = arith.constant 0 : i32
    %c0_i32_0 = arith.constant 0 : i32
    %c0_i32_1 = arith.constant 0 : i32
    return %c0_i32, %c0_i32_0 : i32, i32
  }
  func.func @transform_5(%arg0: i32) -> (i32, i32) {
    %c0_i32 = arith.constant 0 : i32
    %c0_i32_0 = arith.constant 0 : i32
    %c0_i32_1 = arith.constant 0 : i32
    return %c0_i32, %c0_i32_0 : i32, i32
  }
  func.func @transform_6(%arg0: i32) -> (i32, i32) {
    %c0_i32 = arith.constant 0 : i32
    %c0_i32_0 = arith.constant 0 : i32
    %c0_i32_1 = arith.constant 0 : i32
    return %c0_i32, %c0_i32_0 : i32, i32
  }
  func.func @transform_7(%arg0: i32) -> (i32, i32) {
    %c0_i32 = arith.constant 0 : i32
    %c0_i32_0 = arith.constant 0 : i32
    %c0_i32_1 = arith.constant 0 : i32
    return %c0_i32, %c0_i32_0 : i32, i32
  }
  func.func @transform_8(%arg0: i32) -> (i32, i32) {
    %c0_i32 = arith.constant 0 : i32
    %c0_i32_0 = arith.constant 0 : i32
    %c0_i32_1 = arith.constant 0 : i32
    return %c0_i32, %c0_i32_0 : i32, i32
  }
  func.func @transform_9(%arg0: i32) -> (i32, i32) {
    %c0_i32 = arith.constant 0 : i32
    %c0_i32_0 = arith.constant 0 : i32
    %c0_i32_1 = arith.constant 0 : i32
    return %c0_i32, %c0_i32_0 : i32, i32
  }
  func.func @transform_10(%arg0: i32) -> (i32, i32) {
    %c0_i32 = arith.constant 0 : i32
    %c0_i32_0 = arith.constant 0 : i32
    return %arg0, %c0_i32 : i32, i32
  }
}

</mosaic_0001>

<bundles_post_ra>
// kernel: tpu_custom_call.1
= control target key start
LH: loop header
LB: loop body
LE: loop exit
PB: predicated region body
PF: predicated region fallthrough
CT: control target
= control target key end

     0   :  { %15 = vsyncpa [#allocation3], 0  ;;  %s15592_s0 = inlined_call_operand.vmem [shape: bf16[1,144,54], index: 0, kind: input, shape index: {}]   ;;  %s15593_s1 = inlined_call_operand.hbm [shape: bf16[54,512], index: 1, kind: input, shape index: {}]   ;;  %s15594_s2 = inlined_call_operand.hbm [shape: f32[1,512], index: 2, kind: input, shape index: {}]   ;;  %s15595_s3 = inlined_call_operand.hbm [shape: bf16[1536,1024], index: 3, kind: input, shape index: {}]   ;;  %s15596_s4 = inlined_call_operand.hbm [shape: f32[1,1024], index: 4, kind: input, shape index: {}]   ;;  %s15597_s5 = inlined_call_operand.hbm [shape: bf16[384,768], index: 5, kind: input, shape index: {}]   ;;  %s15598_s6 = inlined_call_operand.hbm [shape: f32[1,128], index: 6, kind: input, shape index: {}]   ;;  %s15599_s7 = inlined_call_operand.hbm [shape: bf16[48,128], index: 7, kind: input, shape index: {}]   ;;  %s15600_s8 = inlined_call_operand.vmem [shape: bf16[128,10], index: 8, kind: input, shape index: {}]   ;;  %s15601_s9 = inlined_call_operand.hbm [shape: f32[1,10], index: 9, kind: input, shape index: {}]   ;;  %s15602_s10 = inlined_call_operand.hbm [shape: f32[8,10], index: 10, kind: output, shape index: {}]  }
   0x1   :  { %16 = vsyncpa [#allocation6], 0 }
   0x2   :  { %17 = vsyncpa [#allocation9], 0 }
   0x3   :  { %18 = vsyncpa [#allocation12], 0 }
   0x4   :  { %19 = vsyncpa [#allocation15], 0 }
   0x5   :  { %20 = vsyncpa [#allocation4], 0  ;;  %s13413_s13 = smov [#allocation5]   ;;  %s13414_s15 = smov [#allocation8]  }
   0x6   :  { %s41_s14 = sshll.u32 %s13413_s13, 4  ;;  %s63_s16 = sshll.u32 %s13414_s15, 4  ;;  %s42_s14 = int_to_ptr.vmem [resolvable:$true] %s41_s14  ;;  %s64_s16 = int_to_ptr.vmem [resolvable:$true] %s63_s16 }
   0x7   :  { %s13203_s19 = scalar_lea.hbm %s15594_s2, 64 }
   0x8   :  { %p13204_p0 = scmp.ne.s32.totalorder %s15594_s2, %s13203_s19  ;;  %p13207_p1 = scmp.lt.u32.totalorder %s13203_s19, %s15594_s2 }
   0xa   :  { %p13209_p2 = pnand %p13207_p1, %p13204_p0 }
   0xc   :  { %13212 = shalt.err (!%p13209_p2)
}
   0xd   :  { %s13213_s24 = scalar_lea.vmem %s42_s14, 64  ;;  %p13218_p4 = scmp.lt.s32.totalorder %s42_s14, %s42_s14 }
   0xe   :  { %p13214_p3 = scmp.ne.s32.totalorder %s42_s14, %s13213_s24  ;;  %p13219_p5 = scmp.lt.s32.totalorder %s13213_s24, %s13213_s24 }
  0x10   :  { %p13220_p6 = por %p13219_p5, %p13218_p4 }
  0x12   :  { %p13221_p7 = pnand %p13220_p6, %p13214_p3 }
  0x14   :  { %13224 = shalt.err (!%p13221_p7)
}
  0x15   :  { %44 = dma.hbm_to_vmem [thread:$0]  %s15594_s2, 64, %s42_s14, [#allocation6]  }
  0x16   :  { %s13225_s29 = scalar_lea.hbm %s15596_s4, 128 }
  0x17   :  { %p13226_p8 = scmp.ne.s32.totalorder %s15596_s4, %s13225_s29  ;;  %p13229_p9 = scmp.lt.u32.totalorder %s13225_s29, %s15596_s4 }
  0x19   :  { %p13231_p10 = pnand %p13229_p9, %p13226_p8 }
  0x1b   :  { %13234 = shalt.err (!%p13231_p10)
}
  0x1c   :  { %s13235_s15 = scalar_lea.vmem %s64_s16, 128  ;;  %p13240_p12 = scmp.lt.s32.totalorder %s64_s16, %s64_s16 }
  0x1d   :  { %p13236_p11 = scmp.ne.s32.totalorder %s64_s16, %s13235_s15  ;;  %p13241_p13 = scmp.lt.s32.totalorder %s13235_s15, %s13235_s15 }
  0x1f   :  { %p13242_p0 = por %p13241_p13, %p13240_p12 }
  0x21   :  { %p13243_p1 = pnand %p13242_p0, %p13236_p11 }
  0x23   :  { %13246 = shalt.err (!%p13243_p1)
}
  0x24   :  { %66 = dma.hbm_to_vmem [thread:$0]  %s15596_s4, 128, %s64_s16, [#allocation9]  }
  0x25   :  { %s13415_s17 = smov [#allocation11]   ;;  %s13416_s19 = smov [#allocation2]  }
  0x26   :  { %s85_s18 = sshll.u32 %s13415_s17, 4  ;;  %s28_s20 = sshll.u32 %s13416_s19, 4  ;;  %s86_s18 = int_to_ptr.vmem [resolvable:$true] %s85_s18  ;;  %s13512_s20 = int_to_ptr.vmem [resolvable:$true] %s28_s20 }
  0x27   :  { %s13247_s23 = scalar_lea.hbm %s15598_s6, 16 }
  0x28   :  { %p13248_p2 = scmp.ne.s32.totalorder %s15598_s6, %s13247_s23  ;;  %p13251_p3 = scmp.lt.u32.totalorder %s13247_s23, %s15598_s6 }
  0x2a   :  { %p13253_p4 = pnand %p13251_p3, %p13248_p2 }
  0x2c   :  { %13256 = shalt.err (!%p13253_p4)
}
  0x2d   :  { %s13257_s4 = scalar_lea.vmem %s86_s18, 16  ;;  %s13261_s16 = scalar_lea.vmem %s86_s18, 32 }
  0x2e   :  { %p13258_p5 = scmp.ne.s32.totalorder %s86_s18, %s13257_s4  ;;  %p13262_p6 = scmp.lt.s32.totalorder %s86_s18, %s86_s18 }
  0x2f   :  { %p13263_p7 = scmp.lt.s32.totalorder %s13261_s16, %s13257_s4 }
  0x31   :  { %p13264_p8 = por %p13263_p7, %p13262_p6 }
  0x33   :  { %p13265_p9 = pnand %p13264_p8, %p13258_p5 }
  0x35   :  { %13268 = shalt.err (!%p13265_p9)
}
  0x36   :  { %88 = dma.hbm_to_vmem [thread:$0]  %s15598_s6, 16, %s86_s18, [#allocation12]  }
  0x37   :  { %s13269_s12 = scalar_lea.hbm %s15593_s1, 1792 }
  0x38   :  { %p13270_p10 = scmp.ne.s32.totalorder %s15593_s1, %s13269_s12  ;;  %p13273_p11 = scmp.lt.u32.totalorder %s13269_s12, %s15593_s1 }
  0x3a   :  { %p13275_p12 = pnand %p13273_p11, %p13270_p10 }
  0x3c   :  { %13278 = shalt.err (!%p13275_p12)
}
  0x3d   :  { %s13279_s17 = scalar_lea.vmem %s13512_s20, 1792  ;;  %p13284_p0 = scmp.lt.s32.totalorder %s13512_s20, %s13512_s20 }
  0x3e   :  { %p13280_p13 = scmp.ne.s32.totalorder %s13512_s20, %s13279_s17  ;;  %p13285_p1 = scmp.lt.s32.totalorder %s13279_s17, %s13279_s17 }
  0x40   :  { %p13286_p2 = por %p13285_p1, %p13284_p0 }
  0x42   :  { %p13287_p3 = pnand %p13286_p2, %p13280_p13 }
  0x44   :  { %13290 = shalt.err (!%p13287_p3)
}
  0x45   :  { %s13417_s6 = smov 256   ;;  %s13418_s18 = smov 16  }
  0x46   :  { %34 = dma.hbm_to_vmem [thread:$0]  %s15593_s1, 1792, %s13512_s20, [#allocation3], %s13417_s6, %s13417_s6, %s13418_s18  }
  0x47   :  { %s13419_s22 = smov [#allocation7]   ;;  %s13291_s26 = scalar_lea.hbm %s15595_s3, 98304 }
  0x48   :  { %s50_s23 = sshll.u32 %s13419_s22, 4  ;;  %p13292_p4 = scmp.ne.s32.totalorder %s15595_s3, %s13291_s26  ;;  %s51_s23 = int_to_ptr.vmem [resolvable:$true] %s50_s23 }
  0x49   :  { %p13295_p5 = scmp.lt.u32.totalorder %s13291_s26, %s15595_s3 }
  0x4b   :  { %p13297_p6 = pnand %p13295_p5, %p13292_p4 }
  0x4d   :  { %13300 = shalt.err (!%p13297_p6)
}
  0x4e   :  { %s13301_s29 = scalar_lea.vmem %s51_s23, 98304  ;;  %p13306_p8 = scmp.lt.s32.totalorder %s51_s23, %s51_s23 }
  0x4f   :  { %p13302_p7 = scmp.ne.s32.totalorder %s51_s23, %s13301_s29  ;;  %p13307_p9 = scmp.lt.s32.totalorder %s13301_s29, %s13301_s29 }
  0x51   :  { %p13308_p10 = por %p13307_p9, %p13306_p8 }
  0x53   :  { %p13309_p11 = pnand %p13308_p10, %p13302_p7 }
  0x55   :  { %13312 = shalt.err (!%p13309_p11)
}
  0x56   :  { %s13420_s1 = smov 512   ;;  %s13421_s20 = smov 32  }
  0x57   :  { %56 = dma.hbm_to_vmem [thread:$0]  %s15595_s3, 98304, %s51_s23, [#allocation6], %s13420_s1, %s13420_s1, %s13421_s20  }
  0x58   :  { %s13422_s12 = smov [#allocation10]   ;;  %s13313_s14 = scalar_lea.hbm %s15597_s5, 18432 }
  0x59   :  { %s72_s13 = sshll.u32 %s13422_s12, 4  ;;  %p13314_p12 = scmp.ne.s32.totalorder %s15597_s5, %s13313_s14  ;;  %s73_s13 = int_to_ptr.vmem [resolvable:$true] %s72_s13 }
  0x5a   :  { %p13317_p13 = scmp.lt.u32.totalorder %s13313_s14, %s15597_s5 }
  0x5c   :  { %p13319_p0 = pnand %p13317_p13, %p13314_p12 }
  0x5e   :  { %13322 = shalt.err (!%p13319_p0)
}
  0x5f   :  { %s13323_s21 = scalar_lea.vmem %s73_s13, 18432  ;;  %p13328_p2 = scmp.lt.s32.totalorder %s73_s13, %s73_s13 }
  0x60   :  { %p13324_p1 = scmp.ne.s32.totalorder %s73_s13, %s13323_s21  ;;  %p13329_p3 = scmp.lt.s32.totalorder %s13323_s21, %s13323_s21 }
  0x62   :  { %p13330_p4 = por %p13329_p3, %p13328_p2 }
  0x64   :  { %p13331_p5 = pnand %p13330_p4, %p13324_p1 }
  0x66   :  { %13334 = shalt.err (!%p13331_p5)
}
  0x67   :  { %s13423_s3 = smov 384   ;;  %s13424_s22 = smov 24  }
  0x68   :  { %78 = dma.hbm_to_vmem [thread:$0]  %s15597_s5, 18432, %s73_s13, [#allocation9], %s13423_s3, %s13423_s3, %s13424_s22  }
  0x69   :  { %s13425_s25 = smov [#allocation13]   ;;  %s13335_s16 = scalar_lea.hbm %s15599_s7, 384 }
  0x6a   :  { %s94_s26 = sshll.u32 %s13425_s25, 4  ;;  %p13336_p6 = scmp.ne.s32.totalorder %s15599_s7, %s13335_s16  ;;  %s95_s26 = int_to_ptr.vmem [resolvable:$true] %s94_s26 }
  0x6b   :  { %p13339_p7 = scmp.lt.u32.totalorder %s13335_s16, %s15599_s7 }
  0x6d   :  { %p13341_p8 = pnand %p13339_p7, %p13336_p6 }
  0x6f   :  { %13344 = shalt.err (!%p13341_p8)
}
  0x70   :  { %s13345_s30 = scalar_lea.vmem %s95_s26, 384  ;;  %p13350_p10 = scmp.lt.s32.totalorder %s95_s26, %s95_s26 }
  0x71   :  { %p13346_p9 = scmp.ne.s32.totalorder %s95_s26, %s13345_s30  ;;  %p13351_p11 = scmp.lt.s32.totalorder %s13345_s30, %s13345_s30 }
  0x73   :  { %p13352_p12 = por %p13351_p11, %p13350_p10 }
  0x75   :  { %p13353_p13 = pnand %p13352_p12, %p13346_p9 }
  0x77   :  { %13356 = shalt.err (!%p13353_p13)
}
  0x78   :  { %s13426_s5 = smov 64   ;;  %s13427_s11 = smov 4  }
  0x79   :  { %100 = dma.hbm_to_vmem [thread:$0]  %s15599_s7, 384, %s95_s26, [#allocation12], %s13426_s5, %s13426_s5, %s13427_s11  }
  0x7a   :  { %s13428_s15 = smov [#allocation14]   ;;  %s13357_s6 = scalar_lea.hbm %s15601_s9, 16 }
  0x7b   :  { %s109_s2 = sshll.u32 %s13428_s15, 4  ;;  %p13358_p0 = scmp.ne.s32.totalorder %s15601_s9, %s13357_s6  ;;  %s110_s2 = int_to_ptr.vmem [resolvable:$true] %s109_s2 }
  0x7c   :  { %p13361_p1 = scmp.lt.u32.totalorder %s13357_s6, %s15601_s9 }
  0x7e   :  { %p13363_p2 = pnand %p13361_p1, %p13358_p0 }
  0x80   :  { %13366 = shalt.err (!%p13363_p2)
}
  0x81   :  { %s13367_s22 = scalar_lea.vmem %s110_s2, 16  ;;  %s13371_s7 = scalar_lea.vmem %s110_s2, 32 }
  0x82   :  { %p13368_p3 = scmp.ne.s32.totalorder %s110_s2, %s13367_s22  ;;  %p13372_p4 = scmp.lt.s32.totalorder %s110_s2, %s110_s2 }
  0x83   :  { %p13373_p5 = scmp.lt.s32.totalorder %s13371_s7, %s13367_s22 }
  0x85   :  { %p13374_p6 = por %p13373_p5, %p13372_p4 }
  0x87   :  { %p13375_p7 = pnand %p13374_p6, %p13368_p3 }
  0x89   :  { %13378 = shalt.err (!%p13375_p7)
}
  0x8a   :  { %112 = dma.hbm_to_vmem [thread:$0]  %s15601_s9, 16, %s110_s2, [#allocation15]  }
  0x8b   :  { %13401 = dma.done.wait [#allocation3], 1792  }
  0x8c   :  { %13402 = vsyncadd [#allocation3], 4294965504 }
  0x8d   :  { %13403 = dma.done.wait [#allocation6], 98368  }
  0x8e   :  { %13404 = vsyncadd [#allocation6], 4294868928 }
  0x8f   :  { %13405 = dma.done.wait [#allocation9], 18560  }
  0x90   :  { %13406 = vsyncadd [#allocation9], 4294948736 }
  0x91   :  { %13407 = dma.done.wait [#allocation12], 400  }
  0x92   :  { %13408 = vsyncadd [#allocation12], 4294966896 }
  0x93   :  { %13409 = dma.done.wait [#allocation15], 16  }
  0x94   :  { %13410 = vsyncadd [#allocation15], 4294967280  ;;  %v15603_v0 = vmov 0   ;;  %v13012_v1 = vld [vmem:[#allocation2 + $0x4] ss:$16 sps:$4 sm:$0xff]   ;;  %vm335_vm0 = vcmask 1042432  }
  0x95   :  { %380 = vmatprep.mubr.bf16.mxu0 %v15603_v0  ;;  %460 = vmatprep.mubr.bf16.mxu1 %v15603_v0  ;;  %v13014_v2 = vld [vmem:[#allocation2] ss:$16 sps:$4 sm:$0xff]   ;;  %v13015_v3 = vld [vmem:[#allocation2 + $0x24] ss:$16 sps:$4 sm:$0xff]   ;;  %v13031_v11 = vld [vmem:[#allocation2 + $0xc] ss:$16 sps:$4 sm:$0xff]  }
  0x96   :  { %348 = vmatprep.subr.bf16.mxu0 %v13012_v1  ;;  %12135 = vmatprep.subr.bf16.mxu1 %v13012_v1  ;;  %v13017_v4 = vld [vmem:[#allocation2 + $0x20] ss:$16 sps:$4 sm:$0xff]   ;;  %v13018_v5 = vld [vmem:[#allocation2 + $0x44] ss:$16 sps:$4 sm:$0xff]   ;;  %vm307_vm1 = vcmask 441344   ;;  %v13615_v26 = vld [vmem:[%s15592_s0 + $0x8] sm:$0xff]  }
  0x97   :  { %349 = vmatpush1.bf16.msra.mxu0 %v13014_v2  ;;  %12139 = vmatpush1.bf16.msra.mxu1 %v13014_v2  ;;  %v168_v6 = vld [vmem:[#allocation2 + $0x60] sm:$0x77]  ;;  %v13029_v14 = vld [vmem:[#allocation2 + $0x8] ss:$16 sps:$4 sm:$0xff]   ;;  %v13036_v15 = vld [vmem:[#allocation2 + $0x2c] ss:$16 sps:$4 sm:$0xff]  }
  0x98   :  { %350 = vmatprep.subr.bf16.mxu0 %v13015_v3  ;;  %12136 = vmatprep.subr.bf16.mxu1 %v13015_v3  ;;  %v13020_v7 = vld [vmem:[#allocation2 + $0x40] ss:$16 sps:$4 sm:$0xff]   ;;  %v10812_v8 = vcombine.low %v168_v6, %v168_v6  ;;  %v10813_v9 = vcombine.high %v168_v6, %v168_v6  ;;  %v1164_v16 = vld [vmem:[#allocation7] sm:$0xff]  ;;  %v13039_v23 = vld [vmem:[#allocation2 + $0x4c] ss:$16 sps:$4 sm:$0xff]   ;;  %vm1059_vm3 = vcmask 1046528  }
  0x99   :  { %v13599_v12 = vld [vmem:[%s15592_s0] sm:$0xff]   ;;  %v1168_v17 = vld [vmem:[#allocation7 + $0x20] sm:$0xff]  ;;  %v169_v25 = vld [vmem:[#allocation2 + $0x68] sm:$0x77]  ;;  %vm702_vm2 = vsmask.f32 7424 }
  0x9a   :  { %v337_v10 = vsel %vm335_vm0, %v10812_v8, 0  ;;  %v13604_v13 = vld [vmem:[%s15592_s0 + $0x40] sm:$0xff]   ;;  %v13034_v18 = vld [vmem:[#allocation2 + $0x28] ss:$16 sps:$4 sm:$0xff]   ;;  %v10836_v19 = vcombine.low %v1164_v16, %v1168_v17  ;;  %v10837_v20 = vcombine.high %v1164_v16, %v1168_v17  ;;  %v10815_v30 = vcombine.high %v169_v25, %v169_v25  ;;  %v13625_v41 = vld [vmem:[%s15592_s0 + $0x10] sm:$0xff]  }
  0x9b   :  { %351 = vmatpush1.bf16.msra.mxu0 %v13017_v4  ;;  %12140 = vmatpush1.bf16.msra.mxu1 %v13017_v4  ;;  %v1172_v21 = vld [vmem:[#allocation7 + $0x40] sm:$0xff]  ;;  %v10814_v31 = vcombine.low %v169_v25, %v169_v25  ;;  %v1165_v33 = vld [vmem:[#allocation7 + $0x8] sm:$0xff]  ;;  %vm13431_vm4 = vmmov 0   ;;  %vm10758_vm5 = vcmask 80896  }
  0x9c   :  { %352 = vmatprep.subr.bf16.mxu0 %v13018_v5  ;;  %12137 = vmatprep.subr.bf16.mxu1 %v13018_v5  ;;  %v1176_v22 = vld [vmem:[#allocation7 + $0x60] sm:$0xff]  ;;  %v1169_v34 = vld [vmem:[#allocation7 + $0x28] sm:$0xff] }
  0x9d   :  { %v10845_v24 = vcombine.high %v1172_v21, %v1176_v22  ;;  %v1180_v27 = vld [vmem:[#allocation7 + $0x80] sm:$0xff]  ;;  %v10844_v32 = vcombine.low %v1172_v21, %v1176_v22  ;;  %v343_v38 = vsel %vm335_vm0, %v10814_v31, 0  ;;  %v10839_v39 = vcombine.high %v1165_v33, %v1169_v34  ;;  %v1173_v42 = vld [vmem:[#allocation7 + $0x48] sm:$0xff] }
  0x9e   :  { %v1184_v28 = vld [vmem:[#allocation7 + $0xa0] sm:$0xff]  ;;  %v1177_v44 = vld [vmem:[#allocation7 + $0x68] sm:$0xff]  ;;  %v10838_v47 = vcombine.low %v1165_v33, %v1169_v34 }
  0x9f   :  { %353 = vmatpush1.bf16.msra.mxu0 %v13020_v7  ;;  %12141 = vmatpush1.bf16.msra.mxu1 %v13020_v7  ;;  %v13037_v29 = vld [vmem:[#allocation2 + $0x48] ss:$16 sps:$4 sm:$0xff]   ;;  %v10853_v35 = vcombine.high %v1180_v27, %v1184_v28  ;;  %v10852_v40 = vcombine.low %v1180_v27, %v1184_v28  ;;  %v10847_v49 = vcombine.high %v1173_v42, %v1177_v44  ;;  %v1181_v50 = vld [vmem:[#allocation7 + $0x88] sm:$0xff] }
  0xa0   :  { %10816 = vmatprep.subr.msk.bf16.mxu0 %vm335_vm0, %v10813_v9  ;;  %12138 = vmatprep.subr.msk.bf16.mxu1 %vm335_vm0, %v10813_v9  ;;  %v1188_v36 = vld [vmem:[#allocation7 + $0xc0] sm:$0xff]  ;;  %v1185_v52 = vld [vmem:[#allocation7 + $0xa8] sm:$0xff]  ;;  %v10846_v56 = vcombine.low %v1173_v42, %v1177_v44  ;;  %v13658_v27 = vld [vmem:[%s15592_s0 + $0x28] sm:$0xff]  }
  0xa1   :  { %v1192_v37 = vld [vmem:[#allocation7 + $0xe0] sm:$0xff]  ;;  %v1189_v57 = vld [vmem:[#allocation7 + $0xc8] sm:$0xff]  ;;  %v10855_v62 = vcombine.high %v1181_v50, %v1185_v52  ;;  %v10854_v1 = vcombine.low %v1181_v50, %v1185_v52 }
  0xa2   :  { %v10861_v43 = vcombine.high %v1188_v36, %v1192_v37  ;;  %v1196_v45 = vld [vmem:[#allocation7 + $0x100] sm:$0xff]  ;;  %v10860_v48 = vcombine.low %v1188_v36, %v1192_v37  ;;  %v1193_v58 = vld [vmem:[#allocation7 + $0xe8] sm:$0xff] }
  0xa3   :  { %355 = vmatpush1.bf16.msra.mxu0 %v337_v10  ;;  %12142 = vmatpush1.bf16.msra.mxu1 %v337_v10  ;;  %v1200_v46 = vld [vmem:[#allocation7 + $0x120] sm:$0xff]  ;;  %v1197_v2 = vld [vmem:[#allocation7 + $0x108] sm:$0xff]  ;;  %v10863_v7 = vcombine.high %v1189_v57, %v1193_v58  ;;  %v10862_v10 = vcombine.low %v1189_v57, %v1193_v58 }
  0xa4   :  { %471 = vmatprep.subr.bf16.mxu1 %v13031_v11  ;;  %5804 = vmatprep.subr.bf16.mxu0 %v10837_v20  ;;  %v10869_v51 = vcombine.high %v1196_v45, %v1200_v46  ;;  %v1204_v53 = vld [vmem:[#allocation7 + $0x140] sm:$0xff]  ;;  %v10868_v59 = vcombine.low %v1196_v45, %v1200_v46  ;;  %v1201_v3 = vld [vmem:[#allocation7 + $0x128] sm:$0xff] }
  0xa5   :  { %v1208_v54 = vld [vmem:[#allocation7 + $0x160] sm:$0xff]  ;;  %v13647_v9 = vld [vmem:[%s15592_s0 + $0x20] sm:$0xff]   ;;  %v10871_v17 = vcombine.high %v1197_v2, %v1201_v3 }
  0xa6   :  { %10817 = vmatmul.mubr.msk.bf16.vlgmr.msra.gmra.mrb[0].mxu0 %vm307_vm1, %v13599_v12  ;;  %10825 = vmatmul.mubr.msk.bf16.vlgmr.msra.gmra.mrb[0].mxu1 %vm307_vm1, %v13604_v13  ;;  %v13636_v55 = vld [vmem:[%s15592_s0 + $0x18] sm:$0xff]   ;;  %v10877_v63 = vcombine.high %v1204_v53, %v1208_v54  ;;  %v10876_v4 = vcombine.low %v1204_v53, %v1208_v54  ;;  %v13669_v44 = vld [vmem:[%s15592_s0 + $0x30] sm:$0xff]  }
  0xa7   :  { %390 = vmatprep.mubr.bf16.mxu0 %v15603_v0  ;;  %472 = vmatpush1.bf16.msra.mxu1 %v13029_v14  ;;  %v1212_v60 = vld [vmem:[#allocation7 + $0x180] sm:$0xff]  ;;  %v1205_v11 = vld [vmem:[#allocation7 + $0x148] sm:$0xff] }
  0xa8   :  { %473 = vmatprep.subr.bf16.mxu1 %v13036_v15  ;;  %503 = vmatprep.mubr.bf16.mxu1 %v15603_v0  ;;  %v1216_v61 = vld [vmem:[#allocation7 + $0x1a0] sm:$0xff]  ;;  %v1213_v20 = vld [vmem:[#allocation7 + $0x188] sm:$0xff] }
  0xa9   :  { %5805 = vmatpush1.bf16.msra.mxu0 %v10836_v19  ;;  %v1220_v5 = vld [vmem:[#allocation7 + $0x1c0] sm:$0xff]  ;;  %v10885_v8 = vcombine.high %v1212_v60, %v1216_v61  ;;  %v10884_v14 = vcombine.low %v1212_v60, %v1216_v61  ;;  %v10870_v19 = vcombine.low %v1197_v2, %v1201_v3  ;;  %v1217_v21 = vld [vmem:[#allocation7 + $0x1a8] sm:$0xff] }
  0xaa   :  { %5806 = vmatprep.subr.bf16.mxu0 %v10845_v24  ;;  %v1224_v6 = vld [vmem:[#allocation7 + $0x1e0] sm:$0xff]  ;;  %v10887_v34 = vcombine.high %v1213_v20, %v1217_v21  ;;  %v10886_v36 = vcombine.low %v1213_v20, %v1217_v21  ;;  %v1229_v37 = vld [vmem:[#allocation7 + $0x208] sm:$0xff] }
  0xab   :  { %474 = vmatpush1.bf16.msra.mxu1 %v13034_v18  ;;  %v1228_v15 = vld [vmem:[#allocation7 + $0x200] sm:$0xff]  ;;  %v10893_v18 = vcombine.high %v1220_v5, %v1224_v6  ;;  %v10892_v22 = vcombine.low %v1220_v5, %v1224_v6  ;;  %v1237_v46 = vld [vmem:[#allocation7 + $0x248] sm:$0xff] }
  0xac   :  { %475 = vmatprep.subr.bf16.mxu1 %v13039_v23  ;;  %v1232_v16 = vld [vmem:[#allocation7 + $0x220] sm:$0xff]  ;;  %v1245_v54 = vld [vmem:[#allocation7 + $0x288] sm:$0xff] }
  0xad   :  { %5807 = vmatpush1.bf16.msra.mxu0 %v10844_v32  ;;  %v1236_v23 = vld [vmem:[#allocation7 + $0x240] sm:$0xff]  ;;  %v10900_v31 = vcombine.low %v1228_v15, %v1232_v16  ;;  %v1261_v6 = vld [vmem:[#allocation7 + $0x308] sm:$0xff] }
  0xae   :  { %10818 = vmatmul.mubr.msk.bf16.gmra.mrb[4].mxu0 %vm307_vm1, %v13615_v26  ;;  %5808 = vmatprep.subr.bf16.mxu0 %v10853_v35  ;;  %v1240_v24 = vld [vmem:[#allocation7 + $0x260] sm:$0xff]  ;;  %v1277_v20 = vld [vmem:[#allocation7 + $0x388] sm:$0xff] }
  0xaf   :  { %400 = vmatprep.mubr.bf16.mxu0 %v15603_v0  ;;  %476 = vmatpush1.bf16.msra.mxu1 %v13037_v29  ;;  %v1221_v29 = vld [vmem:[#allocation7 + $0x1c8] sm:$0xff]  ;;  %v1244_v32 = vld [vmem:[#allocation7 + $0x280] sm:$0xff]  ;;  %v10909_v35 = vcombine.high %v1236_v23, %v1240_v24 }
  0xb0   :  { %10826 = vmatprep.subr.msk.bf16.mxu1 %vm335_vm0, %v10815_v30  ;;  %v1225_v30 = vld [vmem:[#allocation7 + $0x1e8] sm:$0xff]  ;;  %v1248_v33 = vld [vmem:[#allocation7 + $0x2a0] sm:$0xff] }
  0xb1   :  { %5809 = vmatpush1.bf16.msra.mxu0 %v10852_v40  ;;  %v1252_v40 = vld [vmem:[#allocation7 + $0x2c0] sm:$0xff]  ;;  %v10895_v42 = vcombine.high %v1221_v29, %v1225_v30  ;;  %v10894_v45 = vcombine.low %v1221_v29, %v1225_v30  ;;  %v1289_v30 = vld [vmem:[#allocation7 + $0x3e8] sm:$0xff] }
  0xb2   :  { %5810 = vmatprep.subr.bf16.mxu0 %v10861_v43  ;;  %v10917_v43 = vcombine.high %v1244_v32, %v1248_v33  ;;  %v1264_v50 = vld [vmem:[#allocation7 + $0x320] sm:$0xff] }
  0xb3   :  { %478 = vmatpush1.bf16.msra.mxu1 %v343_v38  ;;  %v1233_v38 = vld [vmem:[#allocation7 + $0x228] sm:$0xff]  ;;  %v1268_v57 = vld [vmem:[#allocation7 + $0x340] sm:$0xff] }
  0xb4   :  { %6530 = vmatprep.subr.bf16.mxu1 %v10839_v39  ;;  %v10908_v39 = vcombine.low %v1236_v23, %v1240_v24  ;;  %v10902_v53 = vcombine.low %v1229_v37, %v1233_v38  ;;  %v1272_v58 = vld [vmem:[#allocation7 + $0x360] sm:$0xff] }
  0xb5   :  { %5811 = vmatpush1.bf16.msra.mxu0 %v10860_v48  ;;  %v10916_v48 = vcombine.low %v1244_v32, %v1248_v33  ;;  %v13040_v61 = vld [vmem:[%s15592_s0 + $0x38] sm:$0xff]  }
  0xb6   :  { %10819 = vmatmul.mubr.msk.bf16.gmra.mrb[8].mxu0 %vm307_vm1, %v13625_v41  ;;  %10827 = vmatmul.mubr.msk.bf16.vlgmr.msra.gmra.mrb[4].mxu1 %vm307_vm1, %v13599_v12  ;;  %v1209_v12 = vld [vmem:[#allocation7 + $0x168] sm:$0xff]  ;;  %v13691_v33 = vld [vmem:[#allocation7 + $0x400] sm:$0xff] }
  0xb7   :  { %410 = vmatprep.mubr.bf16.mxu0 %v15603_v0  ;;  %513 = vmatprep.mubr.bf16.mxu1 %v15603_v0  ;;  %v10879_v25 = vcombine.high %v1205_v11, %v1209_v12  ;;  %v10878_v28 = vcombine.low %v1205_v11, %v1209_v12  ;;  %v1269_v11 = vld [vmem:[#allocation7 + $0x348] sm:$0xff] }
  0xb8   :  { %6531 = vmatpush1.bf16.msra.mxu1 %v10838_v47  ;;  %5812 = vmatprep.subr.bf16.mxu0 %v10869_v51  ;;  %v1241_v47 = vld [vmem:[#allocation7 + $0x268] sm:$0xff]  ;;  %v10903_v51 = vcombine.high %v1229_v37, %v1233_v38 }
  0xb9   :  { %6532 = vmatprep.subr.bf16.mxu1 %v10847_v49  ;;  %5813 = vmatpush1.bf16.msra.mxu0 %v10868_v59  ;;  %v1260_v49 = vld [vmem:[#allocation7 + $0x300] sm:$0xff]  ;;  %v10911_v59 = vcombine.high %v1237_v46, %v1241_v47  ;;  %v1273_v12 = vld [vmem:[#allocation7 + $0x368] sm:$0xff] }
  0xba   :  { %5814 = vmatprep.subr.bf16.mxu0 %v10877_v63  ;;  %v10933_v60 = vcombine.high %v1260_v49, %v1264_v50  ;;  %v1253_v63 = vld [vmem:[#allocation7 + $0x2c8] sm:$0xff]  ;;  %v10932_v2 = vcombine.low %v1260_v49, %v1264_v50 }
  0xbb   :  { %v13699_v37 = vld [vmem:[#allocation7 + $0x428] sm:$0xff] }
  0xbc   :  { %6533 = vmatpush1.bf16.msra.mxu1 %v10846_v56 }
  0xbd   :  { %6534 = vmatprep.subr.bf16.mxu1 %v10855_v62  ;;  %5815 = vmatpush1.bf16.msra.mxu0 %v10876_v4  ;;  %v10910_v62 = vcombine.low %v1237_v46, %v1241_v47  ;;  %v10941_v4 = vcombine.high %v1268_v57, %v1272_v58 }
  0xbe   :  { %10820 = vmatmul.mubr.msk.bf16.gmra.mrb[12].mxu0 %vm307_vm1, %v13636_v55  ;;  %10828 = vmatmul.mubr.msk.bf16.gmra.mrb[8].mxu1 %vm307_vm1, %v13615_v26  ;;  %v10901_v26 = vcombine.high %v1228_v15, %v1232_v16  ;;  %v10943_v16 = vcombine.high %v1269_v11, %v1273_v12 }
  0xbf   :  { %420 = vmatprep.mubr.bf16.mxu0 %v15603_v0  ;;  %523 = vmatprep.mubr.bf16.mxu1 %v15603_v0 }
  0xc0   :  { %6535 = vmatpush1.bf16.msra.mxu1 %v10854_v1  ;;  %5816 = vmatprep.subr.bf16.mxu0 %v10885_v8  ;;  %v1257_v1 = vld [vmem:[#allocation7 + $0x2e8] sm:$0xff]  ;;  %v10940_v8 = vcombine.low %v1268_v57, %v1272_v58 }
  0xc1   :  { %6536 = vmatprep.subr.bf16.mxu1 %v10863_v7  ;;  %5817 = vmatpush1.bf16.msra.mxu0 %v10884_v14  ;;  %v1265_v7 = vld [vmem:[#allocation7 + $0x328] sm:$0xff] }
  0xc2   :  { %5818 = vmatprep.subr.bf16.mxu0 %v10893_v18  ;;  %v10935_v14 = vcombine.high %v1261_v6, %v1265_v7  ;;  %v10934_v15 = vcombine.low %v1261_v6, %v1265_v7  ;;  %v1276_v18 = vld [vmem:[#allocation7 + $0x380] sm:$0xff] }
  0xc4   :  { %6537 = vmatpush1.bf16.msra.mxu1 %v10862_v10  ;;  %v10926_v10 = vcombine.low %v1253_v63, %v1257_v1 }
  0xc5   :  { %6538 = vmatprep.subr.bf16.mxu1 %v10871_v17  ;;  %5819 = vmatpush1.bf16.msra.mxu0 %v10892_v22  ;;  %v10942_v17 = vcombine.low %v1269_v11, %v1273_v12  ;;  %v1281_v22 = vld [vmem:[#allocation7 + $0x3a8] sm:$0xff] }
  0xc6   :  { %10821 = vmatmul.mubr.msk.bf16.gmra.mrb[16].mxu0 %vm307_vm1, %v13647_v9  ;;  %10829 = vmatmul.mubr.msk.bf16.gmra.mrb[12].mxu1 %vm307_vm1, %v13625_v41  ;;  %v1256_v41 = vld [vmem:[#allocation7 + $0x2e0] sm:$0xff]  ;;  %v10950_v24 = vcombine.low %v1277_v20, %v1281_v22  ;;  %v1305_v11 = vld [vmem:[#allocation7 + $0x468] sm:$0xff] }
  0xc7   :  { %430 = vmatprep.mubr.bf16.mxu0 %v15603_v0  ;;  %533 = vmatprep.mubr.bf16.mxu1 %v15603_v0  ;;  %v10925_v52 = vcombine.high %v1252_v40, %v1256_v41  ;;  %v10924_v56 = vcombine.low %v1252_v40, %v1256_v41  ;;  %v172_v41 = vlaneseq }
  0xc8   :  { %6539 = vmatpush1.bf16.msra.mxu1 %v10870_v19  ;;  %5820 = vmatprep.subr.bf16.mxu0 %v10901_v26  ;;  %v1280_v19 = vld [vmem:[#allocation7 + $0x3a0] sm:$0xff] }
  0xc9   :  { %6540 = vmatprep.subr.bf16.mxu1 %v10879_v25  ;;  %5821 = vmatpush1.bf16.msra.mxu0 %v10900_v31  ;;  %v10949_v21 = vcombine.high %v1276_v18, %v1280_v19  ;;  %v10948_v23 = vcombine.low %v1276_v18, %v1280_v19  ;;  %v10951_v25 = vcombine.high %v1277_v20, %v1281_v22  ;;  %v1284_v26 = vld [vmem:[#allocation7 + $0x3c0] sm:$0xff] }
  0xca   :  { %5822 = vmatprep.subr.bf16.mxu0 %v10909_v35  ;;  %v13695_v35 = vld [vmem:[#allocation7 + $0x408] sm:$0xff] }
  0xcb   :  { %v10967_v40 = vcombine.high %v13695_v35, %v13699_v37 }
  0xcc   :  { %6541 = vmatpush1.bf16.msra.mxu1 %v10878_v28  ;;  %v1285_v28 = vld [vmem:[#allocation7 + $0x3c8] sm:$0xff] }
  0xcd   :  { %6542 = vmatprep.subr.bf16.mxu1 %v10887_v34  ;;  %5823 = vmatpush1.bf16.msra.mxu0 %v10908_v39  ;;  %v10958_v32 = vcombine.low %v1285_v28, %v1289_v30  ;;  %v13693_v34 = vld [vmem:[#allocation7 + $0x420] sm:$0xff]  ;;  %v10966_v39 = vcombine.low %v13695_v35, %v13699_v37  ;;  %v13773_v37 = vld [vmem:[#allocation7 + $0x4c8] sm:$0xff] }
  0xce   :  { %10822 = vmatmul.mubr.msk.bf16.gmra.mrb[20].mxu0 %vm307_vm1, %v13658_v27  ;;  %10830 = vmatmul.mubr.msk.bf16.gmra.mrb[16].mxu1 %vm307_vm1, %v13636_v55  ;;  %v1249_v55 = vld [vmem:[#allocation7 + $0x2a8] sm:$0xff]  ;;  %v10964_v38 = vcombine.low %v13691_v33, %v13693_v34 }
  0xcf   :  { %440 = vmatprep.mubr.bf16.mxu0 %v15603_v0  ;;  %543 = vmatprep.mubr.bf16.mxu1 %v15603_v0  ;;  %v10919_v3 = vcombine.high %v1245_v54, %v1249_v55  ;;  %v10918_v5 = vcombine.low %v1245_v54, %v1249_v55 }
  0xd0   :  { %6543 = vmatpush1.bf16.msra.mxu1 %v10886_v36  ;;  %5824 = vmatprep.subr.bf16.mxu0 %v10917_v43  ;;  %v10965_v36 = vcombine.high %v13691_v33, %v13693_v34 }
  0xd1   :  { %6544 = vmatprep.subr.bf16.mxu1 %v10895_v42  ;;  %5825 = vmatpush1.bf16.msra.mxu0 %v10916_v48  ;;  %v13707_v42 = vshrl.u32 %v172_v41, 7 }
  0xd2   :  { %5826 = vmatprep.subr.bf16.mxu0 %v10925_v52 }
  0xd3   :  { %15770 = vst [vmem:[#allocation23_spill] sm:$0xff] %v13707_v42  ;;  %v15607_v43 = vsub.s32 0, %v13707_v42 }
  0xd4   :  { %6545 = vmatpush1.bf16.msra.mxu1 %v10894_v45  ;;  %v15605_v45 = vsub.s32 1, %v13707_v42 }
  0xd5   :  { %6546 = vmatprep.subr.bf16.mxu1 %v10903_v51  ;;  %5827 = vmatpush1.bf16.msra.mxu0 %v10924_v56 }
  0xd6   :  { %10823 = vmatmul.mubr.msk.bf16.gmra.mrb[24].mxu0 %vm307_vm1, %v13669_v44  ;;  %10831 = vmatmul.mubr.msk.bf16.gmra.mrb[20].mxu1 %vm307_vm1, %v13647_v9  ;;  %v10927_v9 = vcombine.high %v1253_v63, %v1257_v1 }
  0xd7   :  { %450 = vmatprep.mubr.bf16.mxu0 %v15603_v0  ;;  %553 = vmatprep.mubr.bf16.mxu1 %v15603_v0 }
  0xd8   :  { %6547 = vmatpush1.bf16.msra.mxu1 %v10902_v53  ;;  %5828 = vmatprep.subr.bf16.mxu0 %v10933_v60 }
  0xd9   :  { %6548 = vmatprep.subr.bf16.mxu1 %v10911_v59  ;;  %5829 = vmatpush1.bf16.msra.mxu0 %v10932_v2 }
  0xda   :  { %5830 = vmatprep.subr.bf16.mxu0 %v10941_v4 }
  0xdc   :  { %6549 = vmatpush1.bf16.msra.mxu1 %v10910_v62 }
  0xdd   :  { %6550 = vmatprep.subr.bf16.mxu1 %v10919_v3  ;;  %5831 = vmatpush1.bf16.msra.mxu0 %v10940_v8 }
  0xde   :  { %10824 = vmatmul.mubr.msk.bf16.gmra.mrb[28].mxu0 %vm307_vm1, %v13040_v61  ;;  %10832 = vmatmul.mubr.msk.bf16.gmra.mrb[24].mxu1 %vm307_vm1, %v13658_v27  ;;  %v1288_v27 = vld [vmem:[#allocation7 + $0x3e0] sm:$0xff] }
  0xdf   :  { %563 = vmatprep.mubr.bf16.mxu1 %v15603_v0  ;;  %5832 = vmatprep.subr.bf16.mxu0 %v10949_v21  ;;  %v10957_v29 = vcombine.high %v1284_v26, %v1288_v27  ;;  %v10956_v31 = vcombine.low %v1284_v26, %v1288_v27 }
  0xe0   :  { %6551 = vmatpush1.bf16.msra.mxu1 %v10918_v5  ;;  %v1300_v5 = vld [vmem:[#allocation7 + $0x440] sm:$0xff] }
  0xe1   :  { %6552 = vmatprep.subr.bf16.mxu1 %v10927_v9  ;;  %5833 = vmatpush1.bf16.msra.mxu0 %v10948_v23  ;;  %v1304_v9 = vld [vmem:[#allocation7 + $0x460] sm:$0xff] }
  0xe2   :  { %5834 = vmatprep.subr.bf16.mxu0 %v10957_v29  ;;  %v10973_v21 = vcombine.high %v1300_v5, %v1304_v9  ;;  %v13740_v23 = vld [vmem:[#allocation7 + $0x480] sm:$0xff]  ;;  %v1313_v29 = vld [vmem:[#allocation7 + $0x4a8] sm:$0xff] }
  0xe4   :  { %6553 = vmatpush1.bf16.msra.mxu1 %v10926_v10  ;;  %v1301_v10 = vld [vmem:[#allocation7 + $0x448] sm:$0xff] }
  0xe5   :  { %6554 = vmatprep.subr.bf16.mxu1 %v10935_v14  ;;  %5835 = vmatpush1.bf16.msra.mxu0 %v10956_v31  ;;  %v10975_v22 = vcombine.high %v1301_v10, %v1305_v11 }
  0xe6   :  { %10833 = vmatmul.mubr.msk.bf16.gmra.mrb[28].mxu1 %vm307_vm1, %v13669_v44  ;;  %5925 = vmatprep.subr.bf16.mxu0 %v10965_v36  ;;  %v13710_v44 = vld [vmem:[#allocation5] sm:$0xf] }
  0xe7   :  { %573 = vmatprep.mubr.bf16.mxu1 %v15603_v0  ;;  %v13716_v46 = vrot.slane %v13710_v44, %v15607_v43  ;;  %v13721_v47 = vrot.slane %v13710_v44, %v15605_v45  ;;  %v1449_v43 = vld [vmem:[#allocation7 + $0x8e8] sm:$0xff] }
  0xe8   :  { %6555 = vmatpush1.bf16.msra.mxu1 %v10934_v15 }
  0xe9   :  { %6556 = vmatprep.subr.bf16.mxu1 %v10943_v16 }
  0xec   :  { %6557 = vmatpush1.bf16.msra.mxu1 %v10942_v17 }
  0xed   :  { %6558 = vmatprep.subr.bf16.mxu1 %v10951_v25  ;;  %v15606_v25 = vsub.s32 2, %v13707_v42 }
  0xee   :  { %10834 = vmatmul.mubr.msk.bf16.gmra.mrb[32].mxu1 %vm307_vm1, %v13040_v61 }
  0xef   :  { %583 = vmatprep.mubr.bf16.mxu1 %v15603_v0  ;;  %v13771_v33 = vrot.slane %v13710_v44, %v15606_v25 }
  0xf0   :  { %6559 = vmatpush1.bf16.msra.mxu1 %v10950_v24  ;;  %v13742_v24 = vld [vmem:[#allocation7 + $0x4a0] sm:$0xff] }
  0xf1   :  { %v10981_v41 = vcombine.high %v13740_v23, %v13742_v24 }
  0xf6   :  { %10835 = vmatmul.mubr.msk.bf16.gmra.mrb[36].mxu1 %vm307_vm1, %v13604_v13  ;;  %v10959_v13 = vcombine.high %v1285_v28, %v1289_v30  ;;  %v13748_v28 = vld [vmem:[#allocation7 + $0x488] sm:$0xff]  ;;  %v186_v30 = vsub.s32 3, %v13707_v42 }
  0xf8   :  { %6560 = vmatprep.subr.bf16.mxu1 %v10959_v13  ;;  %v10972_v13 = vcombine.low %v1300_v5, %v1304_v9 }
  0xf9   :  { %6561 = vmatpush1.bf16.msra.mxu1 %v10958_v32 }
  0xfa   :  { %6634 = vmatprep.subr.bf16.mxu1 %v10967_v40  ;;  %v10974_v40 = vcombine.low %v1301_v10, %v1305_v11 }
 0x179   :  { %v382_v48 = vpop.f32.mrb[0].mxu0  ;;  %v462_v49 = vpop.f32.mrb[0].mxu1 }
 0x17a   :  { %v383_v50 = vadd.f32 %v382_v48, %v13716_v46  ;;  %v384_v51 = vpop.f32.mrb[1].mxu0  ;;  %v463_v52 = vadd.f32 %v462_v49, %v13716_v46  ;;  %v464_v53 = vpop.f32.mrb[1].mxu1 }
 0x17b   :  { %v385_v54 = vadd.f32 %v384_v51, %v13721_v47  ;;  %v386_v55 = vpop.f32.mrb[2].mxu0  ;;  %v465_v56 = vadd.f32 %v464_v53, %v13721_v47  ;;  %v466_v57 = vpop.f32.mrb[2].mxu1  ;;  %v13764_v51 = vld [vmem:[#allocation7 + $0x4c0] sm:$0xff] }
 0x17c   :  { %v387_v58 = vadd.f32 %v386_v55, %v13716_v46  ;;  %v388_v59 = vpop.f32.mrb[3].mxu0  ;;  %v658_v60 = vmax.f32 %v463_v52, 0.0  ;;  %v467_v61 = vadd.f32 %v466_v57, %v13716_v46  ;;  %v468_v62 = vpop.f32.mrb[3].mxu1  ;;  %v594_v3 = vmax.f32 %v383_v50, 0.0  ;;  %v13766_v52 = vld [vmem:[#allocation7 + $0x4e0] sm:$0xff] }
 0x17d   :  { %v389_v63 = vadd.f32 %v388_v59, %v13721_v47  ;;  %v659_v1 = vmax.f32 %v465_v56, 0.0  ;;  %v469_v2 = vadd.f32 %v468_v62, %v13721_v47  ;;  %v595_v7 = vmax.f32 %v385_v54, 0.0  ;;  %v13792_v62 = vld [vmem:[#allocation7 + $0x500] sm:$0xff] }
 0x17e   :  { %v598_v4 = vmax.f32 %v387_v58, 0.0  ;;  %v662_v6 = vmax.f32 %v467_v61, 0.0  ;;  %v10983_v50 = vcombine.high %v13748_v28, %v1313_v29  ;;  %v10980_v54 = vcombine.low %v13740_v23, %v13742_v24 }
 0x17f   :  { %v599_v8 = vmax.f32 %v389_v63, 0.0  ;;  %v663_v12 = vmax.f32 %v469_v2, 0.0  ;;  %v10982_v57 = vcombine.low %v13748_v28, %v1313_v29  ;;  %v10989_v58 = vcombine.high %v13764_v51, %v13766_v52  ;;  %v13794_v63 = vld [vmem:[#allocation7 + $0x520] sm:$0xff] }
 0x180   :  { %v13731_v14 = vpack.c.bf16 %v598_v4, %v594_v3  ;;  %v13733_v15 = vpack.c.bf16 %v662_v6, %v658_v60  ;;  %v10988_v5 = vcombine.low %v13764_v51, %v13766_v52  ;;  %v13802_v6 = vld [vmem:[#allocation7 + $0x508] sm:$0xff]  ;;  %v13819_v29 = vld [vmem:[#allocation7 + $0x540] sm:$0xff] }
 0x181   :  { %v13735_v16 = vpack.c.bf16 %v599_v8, %v595_v7  ;;  %v392_v17 = vpop.f32.mrb[4].mxu0  ;;  %v13737_v18 = vpack.c.bf16 %v663_v12, %v659_v1  ;;  %v13804_v7 = vld [vmem:[#allocation7 + $0x528] sm:$0xff] }
 0x182   :  { %15771 = vst [vmem:[#allocation24_spill] sm:$0xff] %v13731_v14  ;;  %v393_v19 = vadd.f32 %v392_v17, %v13716_v46  ;;  %v394_v20 = vpop.f32.mrb[5].mxu0  ;;  %v10999_v28 = vcombine.high %v13802_v6, %v13804_v7 }
 0x183   :  { %v395_v26 = vadd.f32 %v394_v20, %v13721_v47  ;;  %v396_v27 = vpop.f32.mrb[6].mxu0  ;;  %5836 = vmatprep.mubr.bf16.mxu0 %v13735_v16  ;;  %6562 = vmatprep.mubr.bf16.mxu1 %v13735_v16 }
 0x184   :  { %v397_v31 = vadd.f32 %v396_v27, %v13716_v46  ;;  %v398_v32 = vpop.f32.mrb[7].mxu0  ;;  %5837 = vmatmul.mubr.bf16.vlgmr.msra.gmra.mrb[32].mxu0 %v13731_v14  ;;  %6563 = vmatmul.mubr.bf16.vlgmr.msra.gmra.mrb[40].mxu1 %v13731_v14  ;;  %v602_v48 = vmax.f32 %v393_v19, 0.0 }
 0x185   :  { %v399_v36 = vadd.f32 %v398_v32, %v13721_v47  ;;  %5926 = vmatpush1.bf16.msra.mxu0 %v10964_v38  ;;  %6635 = vmatpush1.bf16.msra.mxu1 %v10966_v39  ;;  %v603_v34 = vmax.f32 %v395_v26, 0.0  ;;  %v13775_v38 = vld [vmem:[#allocation7 + $0x4e8] sm:$0xff]  ;;  %v13778_v39 = vrot.slane %v13710_v44, %v186_v30  ;;  %v13821_v30 = vld [vmem:[#allocation7 + $0x560] sm:$0xff] }
 0x186   :  { %v606_v49 = vmax.f32 %v397_v31, 0.0  ;;  %5927 = vmatprep.subr.bf16.mxu0 %v10973_v21  ;;  %6636 = vmatprep.subr.bf16.mxu1 %v10975_v22  ;;  %v10991_v61 = vcombine.high %v13773_v37, %v13775_v38  ;;  %v10990_v12 = vcombine.low %v13773_v37, %v13775_v38  ;;  %v10997_v22 = vcombine.high %v13792_v62, %v13794_v63 }
 0x187   :  { %v607_v35 = vmax.f32 %v399_v36, 0.0  ;;  %v13823_v36 = vld [vmem:[#allocation7 + $0x548] sm:$0xff] }
 0x188   :  { %v13780_v53 = vpack.c.bf16 %v606_v49, %v602_v48  ;;  %v10996_v49 = vcombine.low %v13792_v62, %v13794_v63  ;;  %v11004_v63 = vcombine.low %v13819_v29, %v13821_v30 }
 0x189   :  { %v13784_v55 = vpack.c.bf16 %v607_v35, %v603_v34  ;;  %v402_v56 = vpop.f32.mrb[8].mxu0  ;;  %5928 = vmatpush1.bf16.msra.mxu0 %v10972_v13  ;;  %6637 = vmatpush1.bf16.msra.mxu1 %v10974_v40  ;;  %v505_v59 = vpop.f32.mrb[4].mxu1  ;;  %v13825_v40 = vld [vmem:[#allocation7 + $0x568] sm:$0xff]  ;;  %v11005_v35 = vcombine.high %v13819_v29, %v13821_v30 }
 0x18a   :  { %v403_v60 = vadd.f32 %v402_v56, %v13716_v46  ;;  %v404_v44 = vpop.f32.mrb[9].mxu0  ;;  %5929 = vmatprep.subr.bf16.mxu0 %v10981_v41  ;;  %6638 = vmatprep.subr.bf16.mxu1 %v10983_v50  ;;  %v506_v1 = vadd.f32 %v505_v59, %v13771_v33  ;;  %v507_v2 = vpop.f32.mrb[5].mxu1  ;;  %v10998_v50 = vcombine.low %v13802_v6, %v13804_v7  ;;  %v13846_v59 = vld [vmem:[#allocation7 + $0x5a0] sm:$0xff]  ;;  %v13875_v29 = vld [vmem:[#allocation7 + $0x5c8] sm:$0xff] }
 0x18b   :  { %v405_v3 = vadd.f32 %v404_v44, %v13721_v47  ;;  %v406_v4 = vpop.f32.mrb[10].mxu0  ;;  %5846 = vmatprep.mubr.bf16.mxu0 %v13784_v55  ;;  %6570 = vmatprep.mubr.bf16.mxu1 %v13784_v55  ;;  %v508_v8 = vadd.f32 %v507_v2, %v13778_v39  ;;  %v509_v9 = vpop.f32.mrb[6].mxu1  ;;  %v13856_v2 = vld [vmem:[#allocation7 + $0x5a8] sm:$0xff]  ;;  %v11006_v7 = vcombine.low %v13823_v36, %v13825_v40 }
 0x18c   :  { %v407_v10 = vadd.f32 %v406_v4, %v13716_v46  ;;  %v408_v11 = vpop.f32.mrb[11].mxu0  ;;  %5847 = vmatmul.mubr.bf16.gmra.mrb[36].mxu0 %v13780_v53  ;;  %6571 = vmatmul.mubr.bf16.gmra.mrb[44].mxu1 %v13780_v53  ;;  %v596_v17 = vmax.f32 %v506_v1, 0.0  ;;  %v510_v19 = vadd.f32 %v509_v9, %v13771_v33  ;;  %v511_v20 = vpop.f32.mrb[7].mxu1  ;;  %v610_v26 = vmax.f32 %v403_v60, 0.0  ;;  %v13854_v1 = vld [vmem:[#allocation7 + $0x588] sm:$0xff] }
 0x18d   :  { %v409_v21 = vadd.f32 %v408_v11, %v13721_v47  ;;  %5930 = vmatpush1.bf16.msra.mxu0 %v10980_v54  ;;  %6639 = vmatpush1.bf16.msra.mxu1 %v10982_v57  ;;  %v597_v23 = vmax.f32 %v508_v8, 0.0  ;;  %v512_v24 = vadd.f32 %v511_v20, %v13778_v39  ;;  %v611_v32 = vmax.f32 %v405_v3, 0.0  ;;  %v13877_v30 = vld [vmem:[#allocation7 + $0x5e8] sm:$0xff] }
 0x18e   :  { %v614_v27 = vmax.f32 %v407_v10, 0.0  ;;  %5931 = vmatprep.subr.bf16.mxu0 %v10989_v58  ;;  %6640 = vmatprep.subr.bf16.mxu1 %v10991_v61  ;;  %v600_v31 = vmax.f32 %v510_v19, 0.0  ;;  %v11007_v57 = vcombine.high %v13823_v36, %v13825_v40  ;;  %v13844_v58 = vld [vmem:[#allocation7 + $0x580] sm:$0xff]  ;;  %v11014_v36 = vcombine.low %v13854_v1, %v13856_v2 }
 0x18f   :  { %v615_v13 = vmax.f32 %v409_v21, 0.0  ;;  %v601_v41 = vmax.f32 %v512_v24, 0.0  ;;  %v13873_v24 = vld [vmem:[#allocation7 + $0x5e0] sm:$0xff] }
 0x190   :  { %v13827_v48 = vpack.c.bf16 %v614_v27, %v610_v26  ;;  %v13833_v51 = vpack.c.bf16 %v600_v31, %v596_v17 }
 0x191   :  { %v13835_v52 = vpack.c.bf16 %v615_v13, %v611_v32  ;;  %v412_v34 = vpop.f32.mrb[12].mxu0  ;;  %5932 = vmatpush1.bf16.msra.mxu0 %v10988_v5  ;;  %6641 = vmatpush1.bf16.msra.mxu1 %v10990_v12  ;;  %v13839_v37 = vpack.c.bf16 %v601_v41, %v597_v23  ;;  %v515_v38 = vpop.f32.mrb[8].mxu1  ;;  %v11013_v12 = vcombine.high %v13844_v58, %v13846_v59  ;;  %v13871_v23 = vld [vmem:[#allocation7 + $0x5c0] sm:$0xff] }
 0x192   :  { %15772 = vst [vmem:[#allocation25_spill] sm:$0xff] %v13833_v51  ;;  %v413_v54 = vadd.f32 %v412_v34, %v13716_v46  ;;  %v414_v56 = vpop.f32.mrb[13].mxu0  ;;  %5933 = vmatprep.subr.bf16.mxu0 %v10997_v22  ;;  %6642 = vmatprep.subr.bf16.mxu1 %v10999_v28  ;;  %v516_v60 = vadd.f32 %v515_v38, %v13771_v33  ;;  %v517_v44 = vpop.f32.mrb[9].mxu1 }
 0x193   :  { %v415_v61 = vadd.f32 %v414_v56, %v13721_v47  ;;  %v416_v62 = vpop.f32.mrb[14].mxu0  ;;  %5856 = vmatprep.mubr.bf16.mxu0 %v13835_v52  ;;  %6578 = vmatprep.mubr.bf16.mxu1 %v13835_v52  ;;  %v518_v3 = vadd.f32 %v517_v44, %v13778_v39  ;;  %v519_v4 = vpop.f32.mrb[10].mxu1  ;;  %v11015_v22 = vcombine.high %v13854_v1, %v13856_v2  ;;  %v13908_v1 = vld [vmem:[#allocation7 + $0x628] sm:$0xff] }
 0x194   :  { %v417_v5 = vadd.f32 %v416_v62, %v13716_v46  ;;  %v418_v6 = vpop.f32.mrb[15].mxu0  ;;  %5857 = vmatmul.mubr.bf16.gmra.mrb[40].mxu0 %v13827_v48  ;;  %6579 = vmatmul.mubr.bf16.gmra.mrb[48].mxu1 %v13827_v48  ;;  %v604_v8 = vmax.f32 %v516_v60, 0.0  ;;  %v520_v9 = vadd.f32 %v519_v4, %v13771_v33  ;;  %v521_v10 = vpop.f32.mrb[11].mxu1  ;;  %v618_v20 = vmax.f32 %v413_v54, 0.0 }
 0x195   :  { %v419_v11 = vadd.f32 %v418_v6, %v13721_v47  ;;  %5934 = vmatpush1.bf16.msra.mxu0 %v10996_v49  ;;  %6643 = vmatpush1.bf16.msra.mxu1 %v10998_v50  ;;  %v605_v17 = vmax.f32 %v518_v3, 0.0  ;;  %v522_v19 = vadd.f32 %v521_v10, %v13778_v39  ;;  %v619_v27 = vmax.f32 %v415_v61, 0.0 }
 0x196   :  { %v622_v21 = vmax.f32 %v417_v5, 0.0  ;;  %5935 = vmatprep.subr.bf16.mxu0 %v11005_v35  ;;  %6644 = vmatprep.subr.bf16.mxu1 %v11007_v57  ;;  %v608_v26 = vmax.f32 %v520_v9, 0.0  ;;  %v11012_v13 = vcombine.low %v13844_v58, %v13846_v59  ;;  %v11021_v50 = vcombine.high %v13871_v23, %v13873_v24  ;;  %v13896_v57 = vld [vmem:[#allocation7 + $0x600] sm:$0xff] }
 0x197   :  { %v623_v28 = vmax.f32 %v419_v11, 0.0  ;;  %v609_v31 = vmax.f32 %v522_v19, 0.0  ;;  %v11023_v56 = vcombine.high %v13875_v29, %v13877_v30  ;;  %v13898_v58 = vld [vmem:[#allocation7 + $0x620] sm:$0xff]  ;;  %v11020_v62 = vcombine.low %v13871_v23, %v13873_v24 }
 0x198   :  { %v13879_v32 = vpack.c.bf16 %v622_v21, %v618_v20  ;;  %v13885_v40 = vpack.c.bf16 %v608_v26, %v604_v8  ;;  %v11022_v6 = vcombine.low %v13875_v29, %v13877_v30  ;;  %v11029_v11 = vcombine.high %v13896_v57, %v13898_v58  ;;  %v13925_v23 = vld [vmem:[#allocation7 + $0x660] sm:$0xff]  ;;  %v13929_v29 = vld [vmem:[#allocation7 + $0x668] sm:$0xff] }
 0x199   :  { %v13887_v41 = vpack.c.bf16 %v623_v28, %v619_v27  ;;  %v422_v49 = vpop.f32.mrb[16].mxu0  ;;  %5936 = vmatpush1.bf16.msra.mxu0 %v11004_v63  ;;  %6645 = vmatpush1.bf16.msra.mxu1 %v11006_v7  ;;  %v13891_v34 = vpack.c.bf16 %v609_v31, %v605_v17  ;;  %v525_v35 = vpop.f32.mrb[12].mxu1  ;;  %v13906_v63 = vld [vmem:[#allocation7 + $0x608] sm:$0xff] }
 0x19a   :  { %15773 = vst [vmem:[#allocation26_spill] sm:$0xff] %v13885_v40  ;;  %v423_v38 = vadd.f32 %v422_v49, %v13716_v46  ;;  %v424_v54 = vpop.f32.mrb[17].mxu0  ;;  %5937 = vmatprep.subr.bf16.mxu0 %v11013_v12  ;;  %6646 = vmatprep.subr.bf16.mxu1 %v11015_v22  ;;  %v526_v59 = vadd.f32 %v525_v35, %v13771_v33  ;;  %v527_v60 = vpop.f32.mrb[13].mxu1  ;;  %v13923_v22 = vld [vmem:[#allocation7 + $0x640] sm:$0xff]  ;;  %v13927_v28 = vld [vmem:[#allocation7 + $0x648] sm:$0xff] }
 0x19b   :  { %v425_v44 = vadd.f32 %v424_v54, %v13721_v47  ;;  %v426_v61 = vpop.f32.mrb[18].mxu0  ;;  %5866 = vmatprep.mubr.bf16.mxu0 %v13887_v41  ;;  %6586 = vmatprep.mubr.bf16.mxu1 %v13887_v41  ;;  %v528_v2 = vadd.f32 %v527_v60, %v13778_v39  ;;  %v529_v3 = vpop.f32.mrb[14].mxu1  ;;  %v11031_v21 = vcombine.high %v13906_v63, %v13908_v1 }
 0x19c   :  { %v427_v4 = vadd.f32 %v426_v61, %v13716_v46  ;;  %v428_v5 = vpop.f32.mrb[19].mxu0  ;;  %5867 = vmatmul.mubr.bf16.gmra.mrb[44].mxu0 %v13879_v32  ;;  %6587 = vmatmul.mubr.bf16.gmra.mrb[52].mxu1 %v13879_v32  ;;  %v612_v7 = vmax.f32 %v526_v59, 0.0  ;;  %v530_v8 = vadd.f32 %v529_v3, %v13771_v33  ;;  %v531_v9 = vpop.f32.mrb[15].mxu1  ;;  %v626_v19 = vmax.f32 %v423_v38, 0.0  ;;  %v13958_v3 = vld [vmem:[#allocation7 + $0x688] sm:$0xff] }
 0x19d   :  { %v429_v10 = vadd.f32 %v428_v5, %v13721_v47  ;;  %5938 = vmatpush1.bf16.msra.mxu0 %v11012_v13  ;;  %6647 = vmatpush1.bf16.msra.mxu1 %v11014_v36  ;;  %v613_v12 = vmax.f32 %v528_v2, 0.0  ;;  %v532_v17 = vadd.f32 %v531_v9, %v13778_v39  ;;  %v627_v26 = vmax.f32 %v425_v44, 0.0  ;;  %v13950_v44 = vld [vmem:[#allocation7 + $0x6a0] sm:$0xff] }
 0x19e   :  { %v630_v20 = vmax.f32 %v427_v4, 0.0  ;;  %5939 = vmatprep.subr.bf16.mxu0 %v11021_v50  ;;  %6648 = vmatprep.subr.bf16.mxu1 %v11023_v56  ;;  %v616_v24 = vmax.f32 %v530_v8, 0.0  ;;  %v11028_v13 = vcombine.low %v13896_v57, %v13898_v58  ;;  %v11030_v36 = vcombine.low %v13906_v63, %v13908_v1  ;;  %v13948_v58 = vld [vmem:[#allocation7 + $0x680] sm:$0xff]  ;;  %v13960_v4 = vld [vmem:[#allocation7 + $0x6a8] sm:$0xff] }
 0x19f   :  { %v631_v27 = vmax.f32 %v429_v10, 0.0  ;;  %v617_v30 = vmax.f32 %v532_v17, 0.0  ;;  %v11037_v38 = vcombine.high %v13923_v22, %v13925_v23  ;;  %v11039_v57 = vcombine.high %v13927_v28, %v13929_v29 }
 0x1a0   :  { %v13931_v31 = vpack.c.bf16 %v630_v20, %v626_v19  ;;  %v13937_v49 = vpack.c.bf16 %v616_v24, %v612_v7  ;;  %v11036_v2 = vcombine.low %v13923_v22, %v13925_v23  ;;  %v11038_v9 = vcombine.low %v13927_v28, %v13929_v29 }
 0x1a1   :  { %v13939_v50 = vpack.c.bf16 %v631_v27, %v627_v26  ;;  %v432_v35 = vpop.f32.mrb[20].mxu0  ;;  %5940 = vmatpush1.bf16.msra.mxu0 %v11020_v62  ;;  %6649 = vmatpush1.bf16.msra.mxu1 %v11022_v6  ;;  %v13943_v54 = vpack.c.bf16 %v617_v30, %v613_v12  ;;  %v535_v56 = vpop.f32.mrb[16].mxu1  ;;  %v11045_v19 = vcombine.high %v13948_v58, %v13950_v44  ;;  %v13975_v26 = vld [vmem:[#allocation7 + $0x6c0] sm:$0xff] }
 0x1a2   :  { %v433_v59 = vadd.f32 %v432_v35, %v13716_v46  ;;  %v434_v60 = vpop.f32.mrb[21].mxu0  ;;  %5941 = vmatprep.subr.bf16.mxu0 %v11029_v11  ;;  %6650 = vmatprep.subr.bf16.mxu1 %v11031_v21  ;;  %v536_v61 = vadd.f32 %v535_v56, %v13771_v33  ;;  %v537_v62 = vpop.f32.mrb[17].mxu1  ;;  %v11047_v24 = vcombine.high %v13958_v3, %v13960_v4  ;;  %v13977_v27 = vld [vmem:[#allocation7 + $0x6e0] sm:$0xff] }
 0x1a3   :  { %15774 = vst [vmem:[#allocation27_spill] sm:$0xff] %v13943_v54  ;;  %v435_v63 = vadd.f32 %v434_v60, %v13721_v47  ;;  %v436_v1 = vpop.f32.mrb[22].mxu0  ;;  %5876 = vmatprep.mubr.bf16.mxu0 %v13939_v50  ;;  %6594 = vmatprep.mubr.bf16.mxu1 %v13939_v50  ;;  %v538_v5 = vadd.f32 %v537_v62, %v13778_v39  ;;  %v539_v6 = vpop.f32.mrb[18].mxu1 }
 0x1a4   :  { %v437_v7 = vadd.f32 %v436_v1, %v13716_v46  ;;  %v438_v8 = vpop.f32.mrb[23].mxu0  ;;  %5877 = vmatmul.mubr.bf16.gmra.mrb[48].mxu0 %v13931_v31  ;;  %6595 = vmatmul.mubr.bf16.gmra.mrb[56].mxu1 %v13931_v31  ;;  %v620_v10 = vmax.f32 %v536_v61, 0.0  ;;  %v540_v11 = vadd.f32 %v539_v6, %v13771_v33  ;;  %v541_v12 = vpop.f32.mrb[19].mxu1  ;;  %v634_v22 = vmax.f32 %v433_v59, 0.0 }
 0x1a5   :  { %v439_v17 = vadd.f32 %v438_v8, %v13721_v47  ;;  %5942 = vmatpush1.bf16.msra.mxu0 %v11028_v13  ;;  %6651 = vmatpush1.bf16.msra.mxu1 %v11030_v36  ;;  %v621_v20 = vmax.f32 %v538_v5, 0.0  ;;  %v542_v21 = vadd.f32 %v541_v12, %v13778_v39  ;;  %v635_v29 = vmax.f32 %v435_v63, 0.0  ;;  %v13979_v13 = vld [vmem:[#allocation7 + $0x6c8] sm:$0xff] }
 0x1a6   :  { %v638_v23 = vmax.f32 %v437_v7, 0.0  ;;  %5943 = vmatprep.subr.bf16.mxu0 %v11037_v38  ;;  %6652 = vmatprep.subr.bf16.mxu1 %v11039_v57  ;;  %v624_v28 = vmax.f32 %v540_v11, 0.0  ;;  %v13981_v36 = vld [vmem:[#allocation7 + $0x6e8] sm:$0xff]  ;;  %v11044_v38 = vcombine.low %v13948_v58, %v13950_v44  ;;  %v11046_v59 = vcombine.low %v13958_v3, %v13960_v4  ;;  %v14000_v44 = vld [vmem:[#allocation7 + $0x700] sm:$0xff] }
 0x1a7   :  { %v639_v30 = vmax.f32 %v439_v17, 0.0  ;;  %v625_v35 = vmax.f32 %v542_v21, 0.0  ;;  %v11053_v62 = vcombine.high %v13975_v26, %v13977_v27  ;;  %v11055_v58 = vcombine.high %v13979_v13, %v13981_v36  ;;  %v14002_v3 = vld [vmem:[#allocation7 + $0x720] sm:$0xff]  ;;  %v14012_v11 = vld [vmem:[#allocation7 + $0x728] sm:$0xff] }
 0x1a8   :  { %v13983_v56 = vpack.c.bf16 %v638_v23, %v634_v22  ;;  %v13989_v60 = vpack.c.bf16 %v624_v28, %v620_v10  ;;  %v14010_v10 = vld [vmem:[#allocation7 + $0x708] sm:$0xff]  ;;  %v11054_v21 = vcombine.low %v13979_v13, %v13981_v36  ;;  %v14027_v36 = vld [vmem:[#allocation7 + $0x740] sm:$0xff] }
 0x1a9   :  { %v13991_v57 = vpack.c.bf16 %v639_v30, %v635_v29  ;;  %v442_v61 = vpop.f32.mrb[24].mxu0  ;;  %5944 = vmatpush1.bf16.msra.mxu0 %v11036_v2  ;;  %6653 = vmatpush1.bf16.msra.mxu1 %v11038_v9  ;;  %v13995_v63 = vpack.c.bf16 %v625_v35, %v621_v20  ;;  %v545_v1 = vpop.f32.mrb[20].mxu1  ;;  %v11052_v9 = vcombine.low %v13975_v26, %v13977_v27 }
 0x1aa   :  { %v443_v5 = vadd.f32 %v442_v61, %v13716_v46  ;;  %v444_v6 = vpop.f32.mrb[25].mxu0  ;;  %5945 = vmatprep.subr.bf16.mxu0 %v11045_v19  ;;  %6654 = vmatprep.subr.bf16.mxu1 %v11047_v24  ;;  %v546_v2 = vadd.f32 %v545_v1, %v13771_v33  ;;  %v547_v4 = vpop.f32.mrb[21].mxu1  ;;  %v11061_v27 = vcombine.high %v14000_v44, %v14002_v3  ;;  %v14029_v61 = vld [vmem:[#allocation7 + $0x760] sm:$0xff] }
 0x1ab   :  { %v445_v7 = vadd.f32 %v444_v6, %v13721_v47  ;;  %v446_v8 = vpop.f32.mrb[26].mxu0  ;;  %5886 = vmatprep.mubr.bf16.mxu0 %v13991_v57  ;;  %6602 = vmatprep.mubr.bf16.mxu1 %v13991_v57  ;;  %v548_v12 = vadd.f32 %v547_v4, %v13778_v39  ;;  %v549_v17 = vpop.f32.mrb[22].mxu1  ;;  %v11063_v13 = vcombine.high %v14010_v10, %v14012_v11  ;;  %v14031_v6 = vld [vmem:[#allocation7 + $0x748] sm:$0xff] }
 0x1ac   :  { %v447_v19 = vadd.f32 %v446_v8, %v13716_v46  ;;  %v448_v20 = vpop.f32.mrb[27].mxu0  ;;  %5887 = vmatmul.mubr.bf16.gmra.mrb[52].mxu0 %v13983_v56  ;;  %6603 = vmatmul.mubr.bf16.gmra.mrb[60].mxu1 %v13983_v56  ;;  %v628_v22 = vmax.f32 %v546_v2, 0.0  ;;  %v550_v23 = vadd.f32 %v549_v17, %v13771_v33  ;;  %v551_v24 = vpop.f32.mrb[23].mxu1  ;;  %v642_v30 = vmax.f32 %v443_v5, 0.0  ;;  %v1401_v2 = vld [vmem:[#allocation7 + $0x768] sm:$0xff] }
 0x1ad   :  { %v449_v26 = vadd.f32 %v448_v20, %v13721_v47  ;;  %5946 = vmatpush1.bf16.msra.mxu0 %v11044_v38  ;;  %6655 = vmatpush1.bf16.msra.mxu1 %v11046_v59  ;;  %v629_v28 = vmax.f32 %v548_v12, 0.0  ;;  %v552_v29 = vadd.f32 %v551_v24, %v13778_v39  ;;  %v643_v38 = vmax.f32 %v445_v7, 0.0 }
 0x1ae   :  { %v646_v35 = vmax.f32 %v447_v19, 0.0  ;;  %5947 = vmatprep.subr.bf16.mxu0 %v11053_v62  ;;  %6656 = vmatprep.subr.bf16.mxu1 %v11055_v58  ;;  %v632_v1 = vmax.f32 %v550_v23, 0.0  ;;  %v11060_v62 = vcombine.low %v14000_v44, %v14002_v3  ;;  %v11062_v5 = vcombine.low %v14010_v10, %v14012_v11  ;;  %v14049_v3 = vld [vmem:[#allocation7 + $0x780] sm:$0xff] }
 0x1af   :  { %v647_v59 = vmax.f32 %v449_v26, 0.0  ;;  %v633_v4 = vmax.f32 %v552_v29, 0.0  ;;  %v11069_v7 = vcombine.high %v14027_v36, %v14029_v61  ;;  %v11071_v44 = vcombine.high %v14031_v6, %v1401_v2  ;;  %v14051_v10 = vld [vmem:[#allocation7 + $0x7a0] sm:$0xff] }
 0x1b0   :  { %v14033_v8 = vpack.c.bf16 %v646_v35, %v642_v30  ;;  %v14039_v58 = vpack.c.bf16 %v632_v1, %v628_v22  ;;  %v11068_v26 = vcombine.low %v14027_v36, %v14029_v61  ;;  %v11070_v1 = vcombine.low %v14031_v6, %v1401_v2 }
 0x1b1   :  { %v14041_v12 = vpack.c.bf16 %v647_v59, %v643_v38  ;;  %v452_v17 = vpop.f32.mrb[28].mxu0  ;;  %5948 = vmatpush1.bf16.msra.mxu0 %v11052_v9  ;;  %6657 = vmatpush1.bf16.msra.mxu1 %v11054_v21  ;;  %v14045_v19 = vpack.c.bf16 %v633_v4, %v629_v28  ;;  %v555_v20 = vpop.f32.mrb[24].mxu1  ;;  %v14061_v28 = vld [vmem:[#allocation7 + $0x7a8] sm:$0xff]  ;;  %v11077_v4 = vcombine.high %v14049_v3, %v14051_v10 }
 0x1b2   :  { %v453_v23 = vadd.f32 %v452_v17, %v13716_v46  ;;  %v454_v24 = vpop.f32.mrb[29].mxu0  ;;  %5949 = vmatprep.subr.bf16.mxu0 %v11061_v27  ;;  %6658 = vmatprep.subr.bf16.mxu1 %v11063_v13  ;;  %v556_v9 = vadd.f32 %v555_v20, %v13771_v33  ;;  %v557_v11 = vpop.f32.mrb[25].mxu1  ;;  %v14059_v27 = vld [vmem:[#allocation7 + $0x788] sm:$0xff] }
 0x1b3   :  { %v455_v21 = vadd.f32 %v454_v24, %v13721_v47  ;;  %v456_v22 = vpop.f32.mrb[30].mxu0  ;;  %5896 = vmatprep.mubr.bf16.mxu0 %v14041_v12  ;;  %6610 = vmatprep.mubr.bf16.mxu1 %v14041_v12  ;;  %v558_v29 = vadd.f32 %v557_v11, %v13778_v39  ;;  %v559_v30 = vpop.f32.mrb[26].mxu1  ;;  %v11079_v6 = vcombine.high %v14059_v27, %v14061_v28 }
 0x1b4   :  { %v457_v35 = vadd.f32 %v456_v22, %v13716_v46  ;;  %v458_v13 = vpop.f32.mrb[31].mxu0  ;;  %5897 = vmatmul.mubr.bf16.gmra.mrb[56].mxu0 %v14033_v8  ;;  %6611 = vmatmul.mubr.bf16.gmra.mrb[64].mxu1 %v14033_v8  ;;  %v636_v38 = vmax.f32 %v556_v9, 0.0  ;;  %v560_v59 = vadd.f32 %v559_v30, %v13771_v33  ;;  %v561_v36 = vpop.f32.mrb[27].mxu1  ;;  %v650_v20 = vmax.f32 %v453_v23, 0.0  ;;  %v1412_v22 = vld [vmem:[#allocation7 + $0x7c0] sm:$0xff]  ;;  %v1413_v30 = vld [vmem:[#allocation7 + $0x7c8] sm:$0xff] }
 0x1b5   :  { %v459_v61 = vadd.f32 %v458_v13, %v13721_v47  ;;  %5950 = vmatpush1.bf16.msra.mxu0 %v11060_v62  ;;  %6659 = vmatpush1.bf16.msra.mxu1 %v11062_v5  ;;  %v637_v17 = vmax.f32 %v558_v29, 0.0  ;;  %v562_v46 = vadd.f32 %v561_v36, %v13778_v39  ;;  %v651_v9 = vmax.f32 %v455_v21, 0.0  ;;  %v1416_v5 = vld [vmem:[#allocation7 + $0x7e0] sm:$0xff]  ;;  %v1417_v13 = vld [vmem:[#allocation7 + $0x7e8] sm:$0xff] }
 0x1b6   :  { %v654_v24 = vmax.f32 %v457_v35, 0.0  ;;  %5951 = vmatprep.subr.bf16.mxu0 %v11069_v7  ;;  %6660 = vmatprep.subr.bf16.mxu1 %v11071_v44  ;;  %v640_v2 = vmax.f32 %v560_v59, 0.0  ;;  %v11076_v44 = vcombine.low %v14049_v3, %v14051_v10  ;;  %v11078_v21 = vcombine.low %v14059_v27, %v14061_v28  ;;  %v14095_v3 = vld [vmem:[#allocation7 + $0x820] sm:$0xff]  ;;  %v14097_v10 = vld [vmem:[#allocation7 + $0x808] sm:$0xff] }
 0x1b7   :  { %v655_v11 = vmax.f32 %v459_v61, 0.0  ;;  %v641_v47 = vmax.f32 %v562_v46, 0.0  ;;  %v14099_v27 = vld [vmem:[#allocation7 + $0x828] sm:$0xff] }
 0x1b8   :  { %v14075_v62 = vpack.c.bf16 %v654_v24, %v650_v20  ;;  %v14077_v29 = vpack.c.bf16 %v640_v2, %v636_v38  ;;  %v14090_v38 = vld [vmem:[#allocation7 + $0x800] sm:$0xff]  ;;  %v11086_v2 = vcombine.low %v1413_v30, %v1417_v13 }
 0x1b9   :  { %v14079_v36 = vpack.c.bf16 %v655_v11, %v651_v9  ;;  %5952 = vmatpush1.bf16.msra.mxu0 %v11068_v26  ;;  %6661 = vmatpush1.bf16.msra.mxu1 %v11070_v1  ;;  %v14081_v7 = vpack.c.bf16 %v641_v47, %v637_v17  ;;  %v565_v23 = vpop.f32.mrb[28].mxu1  ;;  %v11085_v26 = vcombine.high %v1412_v22, %v1416_v5 }
 0x1ba   :  { %5953 = vmatprep.subr.bf16.mxu0 %v11077_v4  ;;  %6662 = vmatprep.subr.bf16.mxu1 %v11079_v6  ;;  %v566_v35 = vadd.f32 %v565_v23, %v13771_v33  ;;  %v567_v59 = vpop.f32.mrb[29].mxu1  ;;  %v11087_v1 = vcombine.high %v1413_v30, %v1417_v13  ;;  %v11084_v6 = vcombine.low %v1412_v22, %v1416_v5 }
 0x1bb   :  { %5906 = vmatprep.mubr.bf16.mxu0 %v14079_v36  ;;  %6618 = vmatprep.mubr.bf16.mxu1 %v14079_v36  ;;  %v568_v61 = vadd.f32 %v567_v59, %v13778_v39  ;;  %v569_v17 = vpop.f32.mrb[30].mxu1  ;;  %v11093_v11 = vcombine.high %v14090_v38, %v14095_v3  ;;  %v11095_v47 = vcombine.high %v14097_v10, %v14099_v27 }
 0x1bc   :  { %5907 = vmatmul.mubr.bf16.gmra.mrb[60].mxu0 %v14075_v62  ;;  %6619 = vmatmul.mubr.bf16.gmra.mrb[68].mxu1 %v14075_v62  ;;  %v644_v28 = vmax.f32 %v566_v35, 0.0  ;;  %v570_v4 = vadd.f32 %v569_v17, %v13771_v33  ;;  %v571_v46 = vpop.f32.mrb[31].mxu1 }
 0x1bd   :  { %5916 = vmatprep.mubr.bf16.mxu0 %v13737_v18  ;;  %6626 = vmatprep.mubr.bf16.mxu1 %v13737_v18  ;;  %v645_v20 = vmax.f32 %v568_v61, 0.0  ;;  %v572_v24 = vadd.f32 %v571_v46, %v13778_v39 }
 0x1be   :  { %5954 = vmatpush1.bf16.msra.mxu0 %v11076_v44  ;;  %6663 = vmatpush1.bf16.msra.mxu1 %v11078_v21  ;;  %v648_v9 = vmax.f32 %v570_v4, 0.0  ;;  %v1428_v4 = vld [vmem:[#allocation7 + $0x840] sm:$0xff] }
 0x1bf   :  { %5955 = vmatprep.subr.bf16.mxu0 %v11085_v26  ;;  %6664 = vmatprep.subr.bf16.mxu1 %v11087_v1  ;;  %v649_v23 = vmax.f32 %v572_v24, 0.0  ;;  %v1429_v24 = vld [vmem:[#allocation7 + $0x848] sm:$0xff] }
 0x1c0   :  { %v14109_v35 = vpack.c.bf16 %v648_v9, %v644_v28 }
 0x1c1   :  { %v14111_v59 = vpack.c.bf16 %v649_v23, %v645_v20  ;;  %v575_v61 = vpop.f32.mrb[32].mxu1  ;;  %v1432_v20 = vld [vmem:[#allocation7 + $0x860] sm:$0xff]  ;;  %v11094_v23 = vcombine.low %v14097_v10, %v14099_v27 }
 0x1c2   :  { %5956 = vmatpush1.bf16.msra.mxu0 %v11084_v6  ;;  %6665 = vmatpush1.bf16.msra.mxu1 %v11086_v2  ;;  %v576_v22 = vadd.f32 %v575_v61, %v13771_v33  ;;  %v577_v5 = vpop.f32.mrb[33].mxu1  ;;  %v1433_v6 = vld [vmem:[#allocation7 + $0x868] sm:$0xff] }
 0x1c3   :  { %6046 = vmatprep.subr.bf16.mxu0 %v11093_v11  ;;  %6738 = vmatprep.subr.bf16.mxu1 %v11095_v47  ;;  %v578_v30 = vadd.f32 %v577_v5, %v13778_v39  ;;  %v579_v13 = vpop.f32.mrb[34].mxu1  ;;  %v11092_v47 = vcombine.low %v14090_v38, %v14095_v3  ;;  %v11101_v5 = vcombine.high %v1428_v4, %v1432_v20 }
 0x1c4   :  { %5917 = vmatmul.mubr.bf16.gmra.mrb[64].mxu0 %v13733_v15  ;;  %6627 = vmatmul.mubr.bf16.gmra.mrb[72].mxu1 %v13733_v15  ;;  %v652_v44 = vmax.f32 %v576_v22, 0.0  ;;  %v580_v21 = vadd.f32 %v579_v13, %v13771_v33  ;;  %v581_v26 = vpop.f32.mrb[35].mxu1  ;;  %v1436_v13 = vld [vmem:[#allocation7 + $0x880] sm:$0xff] }
 0x1c5   :  { %5957 = vmatprep.mubr.bf16.mxu0 %v13839_v37  ;;  %6666 = vmatprep.mubr.bf16.mxu1 %v13839_v37  ;;  %v653_v1 = vmax.f32 %v578_v30, 0.0  ;;  %v582_v17 = vadd.f32 %v581_v26, %v13778_v39  ;;  %v11103_v30 = vcombine.high %v1429_v24, %v1433_v6 }
 0x1c6   :  { %v656_v28 = vmax.f32 %v580_v21, 0.0 }
 0x1c7   :  { %v657_v46 = vmax.f32 %v582_v17, 0.0  ;;  %v1441_v17 = vld [vmem:[#allocation7 + $0x8a8] sm:$0xff] }
 0x1c8   :  { %v14121_v2 = vpack.c.bf16 %v656_v28, %v652_v44  ;;  %v1440_v44 = vld [vmem:[#allocation7 + $0x8a0] sm:$0xff] }
 0x1c9   :  { %v14123_v9 = vpack.c.bf16 %v657_v46, %v653_v1  ;;  %v585_v11 = vpop.f32.mrb[36].mxu1  ;;  %v1437_v1 = vld [vmem:[#allocation7 + $0x888] sm:$0xff]  ;;  %v11100_v46 = vcombine.low %v1428_v4, %v1432_v20  ;;  %v11109_v0 = vcombine.high %v1436_v13, %v1440_v44 }
 0x1ca   :  { %v586_v61 = vadd.f32 %v585_v11, %v13771_v33  ;;  %v587_v22 = vpop.f32.mrb[37].mxu1  ;;  %v11102_v11 = vcombine.low %v1429_v24, %v1433_v6  ;;  %v11111_v45 = vcombine.high %v1437_v1, %v1441_v17  ;;  %v1452_v24 = vld [vmem:[#allocation7 + $0x900] sm:$0xff] }
 0x1cb   :  { %v588_v21 = vadd.f32 %v587_v22, %v13778_v39  ;;  %v589_v26 = vpop.f32.mrb[38].mxu1  ;;  %v1456_v6 = vld [vmem:[#allocation7 + $0x920] sm:$0xff] }
 0x1cc   :  { %5958 = vmatmul.mubr.bf16.vlgmr.msra.gmra.mrb[32].mxu0 %v13833_v51  ;;  %6667 = vmatmul.mubr.bf16.vlgmr.msra.gmra.mrb[40].mxu1 %v13833_v51  ;;  %v660_v38 = vmax.f32 %v586_v61, 0.0  ;;  %v590_v3 = vadd.f32 %v589_v26, %v13771_v33  ;;  %v591_v10 = vpop.f32.mrb[39].mxu1  ;;  %v1444_v61 = vld [vmem:[#allocation7 + $0x8c0] sm:$0xff]  ;;  %v1445_v26 = vld [vmem:[#allocation7 + $0x8c8] sm:$0xff] }
 0x1cd   :  { %5967 = vmatprep.mubr.bf16.mxu0 %v13891_v34  ;;  %6674 = vmatprep.mubr.bf16.mxu1 %v13891_v34  ;;  %v661_v27 = vmax.f32 %v588_v21, 0.0  ;;  %v592_v28 = vadd.f32 %v591_v10, %v13778_v39  ;;  %v1448_v33 = vld [vmem:[#allocation7 + $0x8e0] sm:$0xff]  ;;  %v11108_v39 = vcombine.low %v1436_v13, %v1440_v44  ;;  %v11119_v20 = vcombine.high %v1445_v26, %v1449_v43  ;;  %v1461_v44 = vld [vmem:[#allocation7 + $0x948] sm:$0xff] }
 0x1ce   :  { %6047 = vmatpush1.bf16.msra.mxu0 %v11092_v47  ;;  %6739 = vmatpush1.bf16.msra.mxu1 %v11094_v23  ;;  %v664_v22 = vmax.f32 %v590_v3, 0.0  ;;  %v11110_v47 = vcombine.low %v1437_v1, %v1441_v17  ;;  %v11117_v4 = vcombine.high %v1444_v61, %v1448_v33  ;;  %v1453_v23 = vld [vmem:[#allocation7 + $0x908] sm:$0xff]  ;;  %v1460_v13 = vld [vmem:[#allocation7 + $0x940] sm:$0xff]  ;;  %v11124_v17 = vcombine.low %v1452_v24, %v1456_v6 }
 0x1cf   :  { %6048 = vmatprep.subr.bf16.mxu0 %v11101_v5  ;;  %6740 = vmatprep.subr.bf16.mxu1 %v11103_v30  ;;  %v665_v25 = vmax.f32 %v592_v28, 0.0  ;;  %v1457_v5 = vld [vmem:[#allocation7 + $0x928] sm:$0xff]  ;;  %v11118_v30 = vcombine.low %v1445_v26, %v1449_v43  ;;  %v1464_v21 = vld [vmem:[#allocation7 + $0x960] sm:$0xff] }
 0x1d0   :  { %v14137_v42 = vpack.c.bf16 %v664_v22, %v660_v38  ;;  %v1465_v1 = vld [vmem:[#allocation7 + $0x968] sm:$0xff]  ;;  %v11126_v38 = vcombine.low %v1453_v23, %v1457_v5  ;;  %v11133_v3 = vcombine.high %v1460_v13, %v1464_v21  ;;  %v1472_v43 = vld [vmem:[#allocation7 + $0x9a0] sm:$0xff] }
 0x1d1   :  { %v14139_v51 = vpack.c.bf16 %v665_v25, %v661_v27  ;;  %v11116_v25 = vcombine.low %v1444_v61, %v1448_v33  ;;  %v11135_v10 = vcombine.high %v1461_v44, %v1465_v1  ;;  %v1468_v27 = vld [vmem:[#allocation7 + $0x980] sm:$0xff]  ;;  %v1469_v28 = vld [vmem:[#allocation7 + $0x988] sm:$0xff]  ;;  %v11134_v22 = vcombine.low %v1461_v44, %v1465_v1 }
 0x1d2   :  { %6049 = vmatpush1.bf16.msra.mxu0 %v11100_v46  ;;  %6741 = vmatpush1.bf16.msra.mxu1 %v11102_v11  ;;  %v1473_v46 = vld [vmem:[#allocation7 + $0x9a8] sm:$0xff]  ;;  %v11132_v11 = vcombine.low %v1460_v13, %v1464_v21  ;;  %v11141_v61 = vcombine.high %v1468_v27, %v1472_v43  ;;  %v1476_v26 = vld [vmem:[#allocation7 + $0x9c0] sm:$0xff] }
 0x1d3   :  { %6050 = vmatprep.subr.bf16.mxu0 %v11109_v0  ;;  %6742 = vmatprep.subr.bf16.mxu1 %v11111_v45  ;;  %v11125_v0 = vcombine.high %v1452_v24, %v1456_v6  ;;  %v11127_v45 = vcombine.high %v1453_v23, %v1457_v5  ;;  %v11143_v33 = vcombine.high %v1469_v28, %v1473_v46  ;;  %v1484_v5 = vld [vmem:[#allocation7 + $0xa00] sm:$0xff] }
 0x1d4   :  { %5968 = vmatmul.mubr.bf16.gmra.mrb[36].mxu0 %v13885_v40  ;;  %6675 = vmatmul.mubr.bf16.gmra.mrb[44].mxu1 %v13885_v40  ;;  %v11142_v24 = vcombine.low %v1469_v28, %v1473_v46  ;;  %v1492_v1 = vld [vmem:[#allocation7 + $0xa40] sm:$0xff] }
 0x1d5   :  { %5977 = vmatprep.mubr.bf16.mxu0 %v13943_v54  ;;  %6682 = vmatprep.mubr.bf16.mxu1 %v13943_v54  ;;  %v1500_v46 = vld [vmem:[#allocation7 + $0xa80] sm:$0xff] }
 0x1d6   :  { %6051 = vmatpush1.bf16.msra.mxu0 %v11108_v39  ;;  %6743 = vmatpush1.bf16.msra.mxu1 %v11110_v47  ;;  %v1480_v39 = vld [vmem:[#allocation7 + $0x9e0] sm:$0xff]  ;;  %v1477_v47 = vld [vmem:[#allocation7 + $0x9c8] sm:$0xff] }
 0x1d7   :  { %6052 = vmatprep.subr.bf16.mxu0 %v11117_v4  ;;  %6744 = vmatprep.subr.bf16.mxu1 %v11119_v20  ;;  %v1481_v4 = vld [vmem:[#allocation7 + $0x9e8] sm:$0xff]  ;;  %v11140_v20 = vcombine.low %v1468_v27, %v1472_v43  ;;  %v11149_v6 = vcombine.high %v1476_v26, %v1480_v39 }
 0x1d8   :  { %v11151_v23 = vcombine.high %v1477_v47, %v1481_v4  ;;  %v11150_v13 = vcombine.low %v1477_v47, %v1481_v4  ;;  %v1508_v4 = vld [vmem:[#allocation7 + $0xac0] sm:$0xff] }
 0x1da   :  { %6053 = vmatpush1.bf16.msra.mxu0 %v11116_v25  ;;  %6745 = vmatpush1.bf16.msra.mxu1 %v11118_v30  ;;  %v1488_v25 = vld [vmem:[#allocation7 + $0xa20] sm:$0xff]  ;;  %v1485_v30 = vld [vmem:[#allocation7 + $0xa08] sm:$0xff] }
 0x1db   :  { %6054 = vmatprep.subr.bf16.mxu0 %v11125_v0  ;;  %6746 = vmatprep.subr.bf16.mxu1 %v11127_v45  ;;  %v1489_v0 = vld [vmem:[#allocation7 + $0xa28] sm:$0xff]  ;;  %v11148_v45 = vcombine.low %v1476_v26, %v1480_v39  ;;  %v11157_v21 = vcombine.high %v1484_v5, %v1488_v25 }
 0x1dc   :  { %5978 = vmatmul.mubr.bf16.gmra.mrb[40].mxu0 %v13937_v49  ;;  %6683 = vmatmul.mubr.bf16.gmra.mrb[48].mxu1 %v13937_v49  ;;  %v11159_v44 = vcombine.high %v1485_v30, %v1489_v0  ;;  %v11158_v27 = vcombine.low %v1485_v30, %v1489_v0  ;;  %v1516_v0 = vld [vmem:[#allocation7 + $0xb00] sm:$0xff] }
 0x1dd   :  { %5987 = vmatprep.mubr.bf16.mxu0 %v13995_v63  ;;  %6690 = vmatprep.mubr.bf16.mxu1 %v13995_v63 }
 0x1de   :  { %6055 = vmatpush1.bf16.msra.mxu0 %v11124_v17  ;;  %6747 = vmatpush1.bf16.msra.mxu1 %v11126_v38  ;;  %v1496_v17 = vld [vmem:[#allocation7 + $0xa60] sm:$0xff]  ;;  %v1493_v38 = vld [vmem:[#allocation7 + $0xa48] sm:$0xff] }
 0x1df   :  { %6056 = vmatprep.subr.bf16.mxu0 %v11133_v3  ;;  %6748 = vmatprep.subr.bf16.mxu1 %v11135_v10  ;;  %v1497_v3 = vld [vmem:[#allocation7 + $0xa68] sm:$0xff]  ;;  %v11156_v10 = vcombine.low %v1484_v5, %v1488_v25  ;;  %v11165_v43 = vcombine.high %v1492_v1, %v1496_v17 }
 0x1e0   :  { %v11167_v28 = vcombine.high %v1493_v38, %v1497_v3  ;;  %v11166_v26 = vcombine.low %v1493_v38, %v1497_v3  ;;  %v1524_v3 = vld [vmem:[#allocation7 + $0xb40] sm:$0xff] }
 0x1e2   :  { %6057 = vmatpush1.bf16.msra.mxu0 %v11132_v11  ;;  %6749 = vmatpush1.bf16.msra.mxu1 %v11134_v22  ;;  %v1504_v11 = vld [vmem:[#allocation7 + $0xaa0] sm:$0xff]  ;;  %v1501_v22 = vld [vmem:[#allocation7 + $0xa88] sm:$0xff] }
 0x1e3   :  { %6058 = vmatprep.subr.bf16.mxu0 %v11141_v61  ;;  %6750 = vmatprep.subr.bf16.mxu1 %v11143_v33  ;;  %v1505_v61 = vld [vmem:[#allocation7 + $0xaa8] sm:$0xff]  ;;  %v11164_v33 = vcombine.low %v1492_v1, %v1496_v17  ;;  %v11173_v39 = vcombine.high %v1500_v46, %v1504_v11 }
 0x1e4   :  { %5988 = vmatmul.mubr.bf16.gmra.mrb[44].mxu0 %v13989_v60  ;;  %6691 = vmatmul.mubr.bf16.gmra.mrb[52].mxu1 %v13989_v60  ;;  %v11175_v47 = vcombine.high %v1501_v22, %v1505_v61  ;;  %v11174_v5 = vcombine.low %v1501_v22, %v1505_v61  ;;  %v1532_v61 = vld [vmem:[#allocation7 + $0xb80] sm:$0xff] }
 0x1e5   :  { %5997 = vmatprep.mubr.bf16.mxu0 %v14045_v19  ;;  %6698 = vmatprep.mubr.bf16.mxu1 %v14045_v19 }
 0x1e6   :  { %6059 = vmatpush1.bf16.msra.mxu0 %v11140_v20  ;;  %6751 = vmatpush1.bf16.msra.mxu1 %v11142_v24  ;;  %v1512_v20 = vld [vmem:[#allocation7 + $0xae0] sm:$0xff]  ;;  %v1509_v24 = vld [vmem:[#allocation7 + $0xac8] sm:$0xff] }
 0x1e7   :  { %6060 = vmatprep.subr.bf16.mxu0 %v11149_v6  ;;  %6752 = vmatprep.subr.bf16.mxu1 %v11151_v23  ;;  %v1513_v6 = vld [vmem:[#allocation7 + $0xae8] sm:$0xff]  ;;  %v11172_v23 = vcombine.low %v1500_v46, %v1504_v11  ;;  %v11181_v25 = vcombine.high %v1508_v4, %v1512_v20 }
 0x1e8   :  { %v11183_v30 = vcombine.high %v1509_v24, %v1513_v6  ;;  %v11182_v1 = vcombine.low %v1509_v24, %v1513_v6  ;;  %v1540_v6 = vld [vmem:[#allocation7 + $0xbc0] sm:$0xff] }
 0x1ea   :  { %6061 = vmatpush1.bf16.msra.mxu0 %v11148_v45  ;;  %6753 = vmatpush1.bf16.msra.mxu1 %v11150_v13  ;;  %v1520_v45 = vld [vmem:[#allocation7 + $0xb20] sm:$0xff]  ;;  %v1517_v13 = vld [vmem:[#allocation7 + $0xb08] sm:$0xff] }
 0x1eb   :  { %6062 = vmatprep.subr.bf16.mxu0 %v11157_v21  ;;  %6754 = vmatprep.subr.bf16.mxu1 %v11159_v44  ;;  %v1521_v21 = vld [vmem:[#allocation7 + $0xb28] sm:$0xff]  ;;  %v11180_v44 = vcombine.low %v1508_v4, %v1512_v20  ;;  %v11189_v17 = vcombine.high %v1516_v0, %v1520_v45 }
 0x1ec   :  { %5998 = vmatmul.mubr.bf16.gmra.mrb[48].mxu0 %v14039_v58  ;;  %6699 = vmatmul.mubr.bf16.gmra.mrb[56].mxu1 %v14039_v58  ;;  %v11191_v38 = vcombine.high %v1517_v13, %v1521_v21  ;;  %v11190_v46 = vcombine.low %v1517_v13, %v1521_v21 }
 0x1ed   :  { %6007 = vmatprep.mubr.bf16.mxu0 %v14081_v7  ;;  %6706 = vmatprep.mubr.bf16.mxu1 %v14081_v7 }
 0x1ee   :  { %6063 = vmatpush1.bf16.msra.mxu0 %v11156_v10  ;;  %6755 = vmatpush1.bf16.msra.mxu1 %v11158_v27  ;;  %v1528_v10 = vld [vmem:[#allocation7 + $0xb60] sm:$0xff]  ;;  %v1525_v27 = vld [vmem:[#allocation7 + $0xb48] sm:$0xff] }
 0x1ef   :  { %6064 = vmatprep.subr.bf16.mxu0 %v11165_v43  ;;  %6756 = vmatprep.subr.bf16.mxu1 %v11167_v28  ;;  %v1529_v43 = vld [vmem:[#allocation7 + $0xb68] sm:$0xff]  ;;  %v11188_v28 = vcombine.low %v1516_v0, %v1520_v45  ;;  %v11197_v11 = vcombine.high %v1524_v3, %v1528_v10  ;;  %v718_v45 = vshll.u32 %v13735_v16, 16 }
 0x1f0   :  { %v11199_v22 = vcombine.high %v1525_v27, %v1529_v43  ;;  %v11198_v4 = vcombine.low %v1525_v27, %v1529_v43 }
 0x1f2   :  { %6065 = vmatpush1.bf16.msra.mxu0 %v11164_v33  ;;  %6757 = vmatpush1.bf16.msra.mxu1 %v11166_v26  ;;  %v1536_v33 = vld [vmem:[#allocation7 + $0xba0] sm:$0xff]  ;;  %v1533_v26 = vld [vmem:[#allocation7 + $0xb88] sm:$0xff] }
 0x1f3   :  { %6066 = vmatprep.subr.bf16.mxu0 %v11173_v39  ;;  %6758 = vmatprep.subr.bf16.mxu1 %v11175_v47  ;;  %v1537_v39 = vld [vmem:[#allocation7 + $0xba8] sm:$0xff]  ;;  %v11196_v47 = vcombine.low %v1524_v3, %v1528_v10  ;;  %v11205_v20 = vcombine.high %v1532_v61, %v1536_v33  ;;  %v720_v10 = vrot.slane %v718_v45, 1 }
 0x1f4   :  { %6008 = vmatmul.mubr.bf16.gmra.mrb[52].mxu0 %v14077_v29  ;;  %6707 = vmatmul.mubr.bf16.gmra.mrb[60].mxu1 %v14077_v29  ;;  %v11207_v24 = vcombine.high %v1533_v26, %v1537_v39  ;;  %v11206_v0 = vcombine.low %v1533_v26, %v1537_v39  ;;  %v1553_v3 = vld [vmem:[#allocation7 + $0xc28] sm:$0xff]  ;;  %v711_v26 = vshll.u32 %v13780_v53, 16 }
 0x1f5   :  { %6017 = vmatprep.mubr.bf16.mxu0 %v14111_v59  ;;  %6714 = vmatprep.mubr.bf16.mxu1 %v14111_v59 }
 0x1f6   :  { %6067 = vmatpush1.bf16.msra.mxu0 %v11172_v23  ;;  %6759 = vmatpush1.bf16.msra.mxu1 %v11174_v5  ;;  %v1544_v23 = vld [vmem:[#allocation7 + $0xbe0] sm:$0xff]  ;;  %v1541_v5 = vld [vmem:[#allocation7 + $0xbc8] sm:$0xff] }
 0x1f7   :  { %6068 = vmatprep.subr.bf16.mxu0 %v11181_v25  ;;  %6760 = vmatprep.subr.bf16.mxu1 %v11183_v30  ;;  %v1545_v25 = vld [vmem:[#allocation7 + $0xbe8] sm:$0xff]  ;;  %v11204_v30 = vcombine.low %v1532_v61, %v1536_v33  ;;  %v11213_v13 = vcombine.high %v1540_v6, %v1544_v23  ;;  %v11212_v27 = vcombine.low %v1540_v6, %v1544_v23  ;;  %v706_v61 = vshll.u32 %v13731_v14, 16  ;;  %v1556_v6 = vld [vmem:[#allocation7 + $0xc40] sm:$0xff] }
 0x1f8   :  { %v11215_v21 = vcombine.high %v1541_v5, %v1545_v25  ;;  %v11214_v43 = vcombine.low %v1541_v5, %v1545_v25  ;;  %v759_v23 = vshrl.u32 %v13784_v55, 16  ;;  %v1560_v25 = vld [vmem:[#allocation7 + $0xc60] sm:$0xff] }
 0x1fa   :  { %6069 = vmatpush1.bf16.msra.mxu0 %v11180_v44  ;;  %6761 = vmatpush1.bf16.msra.mxu1 %v11182_v1  ;;  %v1548_v44 = vld [vmem:[#allocation7 + $0xc00] sm:$0xff]  ;;  %v723_v1 = vshll.u32 %v13784_v55, 16 }
 0x1fb   :  { %6070 = vmatprep.subr.bf16.mxu0 %v11189_v17  ;;  %6762 = vmatprep.subr.bf16.mxu1 %v11191_v38  ;;  %v1552_v17 = vld [vmem:[#allocation7 + $0xc20] sm:$0xff]  ;;  %v1549_v38 = vld [vmem:[#allocation7 + $0xc08] sm:$0xff] }
 0x1fc   :  { %6018 = vmatmul.mubr.bf16.gmra.mrb[56].mxu0 %v14109_v35  ;;  %6715 = vmatmul.mubr.bf16.gmra.mrb[64].mxu1 %v14109_v35 }
 0x1fd   :  { %6027 = vmatprep.mubr.bf16.mxu0 %v14123_v9  ;;  %6722 = vmatprep.mubr.bf16.mxu1 %v14123_v9 }
 0x1fe   :  { %6071 = vmatpush1.bf16.msra.mxu0 %v11188_v28  ;;  %6763 = vmatpush1.bf16.msra.mxu1 %v11190_v46  ;;  %v11221_v28 = vcombine.high %v1548_v44, %v1552_v17  ;;  %v11223_v46 = vcombine.high %v1549_v38, %v1553_v3 }
 0x1ff   :  { %6072 = vmatprep.subr.bf16.mxu0 %v11197_v11  ;;  %6764 = vmatprep.subr.bf16.mxu1 %v11199_v22  ;;  %v716_v11 = vshrl.u32 %v13735_v16, 16  ;;  %v725_v22 = vrot.slane %v723_v1, 1  ;;  %v11222_v1 = vcombine.low %v1549_v38, %v1553_v3  ;;  %v11228_v38 = vcombine.low %v1556_v6, %v1560_v25 }
 0x201   :  { %v721_v33 = vor.u32 %v720_v10, %v716_v11 }
 0x202   :  { %6073 = vmatpush1.bf16.msra.mxu0 %v11196_v47  ;;  %6765 = vmatpush1.bf16.msra.mxu1 %v11198_v4  ;;  %v763_v47 = vshll.u32 %v13835_v52, 16  ;;  %v708_v4 = vrot.slane %v706_v61, 1  ;;  %v795_v61 = vshll.u32 %v13887_v41, 16 }
 0x203   :  { %6074 = vmatprep.subr.bf16.mxu0 %v11205_v20  ;;  %6766 = vmatprep.subr.bf16.mxu1 %v11207_v24  ;;  %v14177_v39 = vsel %vm702_vm2, %v721_v33, %v725_v22  ;;  %v704_v20 = vshrl.u32 %v13731_v14, 16  ;;  %v713_v24 = vrot.slane %v711_v26, 1  ;;  %v751_v33 = vshrl.u32 %v13780_v53, 16 }
 0x204   :  { %6028 = vmatmul.mubr.bf16.gmra.mrb[60].mxu0 %v14121_v2  ;;  %6723 = vmatmul.mubr.bf16.gmra.mrb[68].mxu1 %v14121_v2  ;;  %15775 = vst [vmem:[#allocation28_spill] sm:$0xff] %v14177_v39  ;;  %v765_v5 = vrot.slane %v763_v47, 1 }
 0x205   :  { %6037 = vmatprep.mubr.bf16.mxu0 %v14139_v51  ;;  %6730 = vmatprep.mubr.bf16.mxu1 %v14139_v51  ;;  %v709_v45 = vor.u32 %v708_v4, %v704_v20  ;;  %v1572_v20 = vld [vmem:[#allocation7 + $0xcc0] sm:$0xff]  ;;  %v753_v14 = vor.u32 %v751_v33, %v713_v24 }
 0x206   :  { %6075 = vmatpush1.bf16.msra.mxu0 %v11204_v30  ;;  %6767 = vmatpush1.bf16.msra.mxu1 %v11206_v0  ;;  %v1557_v30 = vld [vmem:[#allocation7 + $0xc48] sm:$0xff] }
 0x207   :  { %6076 = vmatprep.subr.bf16.mxu0 %v11213_v13  ;;  %6768 = vmatprep.subr.bf16.mxu1 %v11215_v21  ;;  %v1561_v0 = vld [vmem:[#allocation7 + $0xc68] sm:$0xff]  ;;  %v761_v13 = vor.u32 %v759_v23, %v725_v22  ;;  %v11220_v21 = vcombine.low %v1548_v44, %v1552_v17  ;;  %v14185_v10 = vsel %vm702_vm2, %v709_v45, %v713_v24  ;;  %v1568_v22 = vld [vmem:[#allocation7 + $0xca0] sm:$0xff]  ;;  %v791_v23 = vshrl.u32 %v13835_v52, 16 }
 0x208   :  { %15776 = vst [vmem:[#allocation29_spill] sm:$0xff] %v14185_v10  ;;  %v1565_v44 = vld [vmem:[#allocation7 + $0xc88] sm:$0xff]  ;;  %v11230_v3 = vcombine.low %v1557_v30, %v1561_v0  ;;  %v797_v45 = vrot.slane %v795_v61, 1 }
 0x209   :  { %v14191_v11 = vsel %vm702_vm2, %v761_v13, %v765_v5  ;;  %v1569_v17 = vld [vmem:[#allocation7 + $0xca8] sm:$0xff]  ;;  %v1576_v13 = vld [vmem:[#allocation7 + $0xce0] sm:$0xff] }
 0x20a   :  { %6077 = vmatpush1.bf16.msra.mxu0 %v11212_v27  ;;  %6769 = vmatpush1.bf16.msra.mxu1 %v11214_v43  ;;  %v755_v27 = vshll.u32 %v13827_v48, 16  ;;  %v11229_v43 = vcombine.high %v1556_v6, %v1560_v25  ;;  %15777 = vst [vmem:[#allocation30_spill] sm:$0xff] %v14191_v11  ;;  %v11239_v4 = vcombine.high %v1565_v44, %v1569_v17 }
 0x20b   :  { %6167 = vmatprep.subr.bf16.mxu0 %v11221_v28  ;;  %6842 = vmatprep.subr.bf16.mxu1 %v11223_v46  ;;  %v11231_v28 = vcombine.high %v1557_v30, %v1561_v0  ;;  %v1564_v46 = vld [vmem:[#allocation7 + $0xc80] sm:$0xff]  ;;  %v11238_v25 = vcombine.low %v1565_v44, %v1569_v17  ;;  %v787_v0 = vshll.u32 %v13879_v32, 16 }
 0x20c   :  { %6038 = vmatmul.mubr.bf16.gmra.mrb[64].mxu0 %v14137_v42  ;;  %6731 = vmatmul.mubr.bf16.gmra.mrb[72].mxu1 %v14137_v42  ;;  %v757_v26 = vrot.slane %v755_v27, 1  ;;  %v11237_v47 = vcombine.high %v1564_v46, %v1568_v22  ;;  %v11236_v6 = vcombine.low %v1564_v46, %v1568_v22  ;;  %v1580_v27 = vld [vmem:[#allocation7 + $0xd00] sm:$0xff]  ;;  %v11244_v46 = vcombine.low %v1572_v20, %v1576_v13 }
 0x20d   :  { %6078 = vmatprep.mubr.bf16.mxu0 %v14177_v39  ;;  %6770 = vmatprep.mubr.bf16.mxu1 %v14177_v39  ;;  %v1577_v39 = vld [vmem:[#allocation7 + $0xce8] sm:$0xff]  ;;  %v783_v22 = vshrl.u32 %v13827_v48, 16  ;;  %v789_v44 = vrot.slane %v787_v0, 1  ;;  %v1596_v0 = vld [vmem:[#allocation7 + $0xd80] sm:$0xff] }
 0x20e   :  { %v14199_v30 = vsel %vm702_vm2, %v753_v14, %v757_v26  ;;  %v1585_v14 = vld [vmem:[#allocation7 + $0xd28] sm:$0xff] }
 0x20f   :  { %15778 = vst [vmem:[#allocation31_spill] sm:$0xff] %v14199_v30 }
 0x214   :  { %6079 = vmatmul.mubr.bf16.vlgmr.msra.gmra.mrb[32].mxu0 %v14185_v10  ;;  %6771 = vmatmul.mubr.bf16.vlgmr.msra.gmra.mrb[40].mxu1 %v14185_v10  ;;  %v1573_v10 = vld [vmem:[#allocation7 + $0xcc8] sm:$0xff] }
 0x215   :  { %6088 = vmatprep.mubr.bf16.mxu0 %v14191_v11  ;;  %6778 = vmatprep.mubr.bf16.mxu1 %v14191_v11  ;;  %v793_v11 = vor.u32 %v791_v23, %v765_v5  ;;  %v827_v5 = vshll.u32 %v13939_v50, 16  ;;  %v11246_v61 = vcombine.low %v1573_v10, %v1577_v39  ;;  %v1593_v23 = vld [vmem:[#allocation7 + $0xd68] sm:$0xff] }
 0x216   :  { %6168 = vmatpush1.bf16.msra.mxu0 %v11220_v21  ;;  %6843 = vmatpush1.bf16.msra.mxu1 %v11222_v1  ;;  %v11245_v21 = vcombine.high %v1572_v20, %v1576_v13  ;;  %v11247_v1 = vcombine.high %v1573_v10, %v1577_v39  ;;  %v819_v13 = vshll.u32 %v13931_v31, 16 }
 0x217   :  { %6169 = vmatprep.subr.bf16.mxu0 %v11229_v43  ;;  %6844 = vmatprep.subr.bf16.mxu1 %v11231_v28  ;;  %v14205_v24 = vsel %vm702_vm2, %v793_v11, %v797_v45  ;;  %v1584_v43 = vld [vmem:[#allocation7 + $0xd20] sm:$0xff]  ;;  %v1581_v28 = vld [vmem:[#allocation7 + $0xd08] sm:$0xff]  ;;  %v829_v33 = vrot.slane %v827_v5, 1 }
 0x218   :  { %15779 = vst [vmem:[#allocation32_spill] sm:$0xff] %v14205_v24  ;;  %v11253_v11 = vcombine.high %v1580_v27, %v1584_v43  ;;  %v11255_v17 = vcombine.high %v1581_v28, %v1585_v14  ;;  %v11252_v20 = vcombine.low %v1580_v27, %v1584_v43  ;;  %v11254_v39 = vcombine.low %v1581_v28, %v1585_v14 }
 0x219   :  { %v815_v43 = vshrl.u32 %v13879_v32, 16  ;;  %v821_v28 = vrot.slane %v819_v13, 1  ;;  %v1612_v13 = vld [vmem:[#allocation7 + $0xe00] sm:$0xff] }
 0x21a   :  { %6170 = vmatpush1.bf16.msra.mxu0 %v11228_v38  ;;  %6845 = vmatpush1.bf16.msra.mxu1 %v11230_v3  ;;  %v1588_v38 = vld [vmem:[#allocation7 + $0xd40] sm:$0xff]  ;;  %v823_v3 = vshrl.u32 %v13887_v41, 16 }
 0x21b   :  { %6171 = vmatprep.subr.bf16.mxu0 %v11237_v47  ;;  %6846 = vmatprep.subr.bf16.mxu1 %v11239_v4  ;;  %v1592_v47 = vld [vmem:[#allocation7 + $0xd60] sm:$0xff]  ;;  %v1589_v4 = vld [vmem:[#allocation7 + $0xd48] sm:$0xff] }
 0x21c   :  { %6089 = vmatmul.mubr.bf16.gmra.mrb[36].mxu0 %v14199_v30  ;;  %6779 = vmatmul.mubr.bf16.gmra.mrb[44].mxu1 %v14199_v30  ;;  %v785_v30 = vor.u32 %v783_v22, %v757_v26  ;;  %v11260_v27 = vcombine.low %v1588_v38, %v1592_v47  ;;  %v11262_v5 = vcombine.low %v1589_v4, %v1593_v23 }
 0x21d   :  { %6098 = vmatprep.mubr.bf16.mxu0 %v14205_v24  ;;  %6786 = vmatprep.mubr.bf16.mxu1 %v14205_v24  ;;  %v825_v24 = vor.u32 %v823_v3, %v797_v45  ;;  %v859_v45 = vshll.u32 %v13991_v57, 16  ;;  %v1609_v3 = vld [vmem:[#allocation7 + $0xde8] sm:$0xff] }
 0x21e   :  { %6172 = vmatpush1.bf16.msra.mxu0 %v11236_v6  ;;  %6847 = vmatpush1.bf16.msra.mxu1 %v11238_v25  ;;  %v14213_v10 = vsel %vm702_vm2, %v785_v30, %v789_v44  ;;  %v11261_v6 = vcombine.high %v1588_v38, %v1592_v47  ;;  %v11263_v25 = vcombine.high %v1589_v4, %v1593_v23  ;;  %v1601_v30 = vld [vmem:[#allocation7 + $0xda8] sm:$0xff]  ;;  %v851_v23 = vshll.u32 %v13983_v56, 16 }
 0x21f   :  { %6173 = vmatprep.subr.bf16.mxu0 %v11245_v21  ;;  %6848 = vmatprep.subr.bf16.mxu1 %v11247_v1  ;;  %15780 = vst [vmem:[#allocation33_spill] sm:$0xff] %v14213_v10  ;;  %v14219_v26 = vsel %vm702_vm2, %v825_v24, %v829_v33  ;;  %v1600_v21 = vld [vmem:[#allocation7 + $0xda0] sm:$0xff]  ;;  %v1597_v1 = vld [vmem:[#allocation7 + $0xd88] sm:$0xff]  ;;  %v861_v22 = vrot.slane %v859_v45, 1 }
 0x220   :  { %15781 = vst [vmem:[#allocation34_spill] sm:$0xff] %v14219_v26  ;;  %v11269_v24 = vcombine.high %v1596_v0, %v1600_v21  ;;  %v11271_v14 = vcombine.high %v1597_v1, %v1601_v30  ;;  %v11268_v38 = vcombine.low %v1596_v0, %v1600_v21  ;;  %v11270_v47 = vcombine.low %v1597_v1, %v1601_v30 }
 0x221   :  { %v847_v21 = vshrl.u32 %v13931_v31, 16  ;;  %v853_v1 = vrot.slane %v851_v23, 1  ;;  %v1628_v23 = vld [vmem:[#allocation7 + $0xe80] sm:$0xff] }
 0x222   :  { %6174 = vmatpush1.bf16.msra.mxu0 %v11244_v46  ;;  %6849 = vmatpush1.bf16.msra.mxu1 %v11246_v61  ;;  %v1604_v46 = vld [vmem:[#allocation7 + $0xdc0] sm:$0xff]  ;;  %v855_v61 = vshrl.u32 %v13939_v50, 16 }
 0x223   :  { %6175 = vmatprep.subr.bf16.mxu0 %v11253_v11  ;;  %6850 = vmatprep.subr.bf16.mxu1 %v11255_v17  ;;  %v1608_v11 = vld [vmem:[#allocation7 + $0xde0] sm:$0xff]  ;;  %v1605_v17 = vld [vmem:[#allocation7 + $0xdc8] sm:$0xff] }
 0x224   :  { %6099 = vmatmul.mubr.bf16.gmra.mrb[40].mxu0 %v14213_v10  ;;  %6787 = vmatmul.mubr.bf16.gmra.mrb[48].mxu1 %v14213_v10  ;;  %v817_v10 = vor.u32 %v815_v43, %v789_v44  ;;  %v11276_v0 = vcombine.low %v1604_v46, %v1608_v11  ;;  %v11278_v45 = vcombine.low %v1605_v17, %v1609_v3 }
 0x225   :  { %6108 = vmatprep.mubr.bf16.mxu0 %v14219_v26  ;;  %6794 = vmatprep.mubr.bf16.mxu1 %v14219_v26  ;;  %v857_v26 = vor.u32 %v855_v61, %v829_v33  ;;  %v891_v33 = vshll.u32 %v14041_v12, 16  ;;  %v1625_v61 = vld [vmem:[#allocation7 + $0xe68] sm:$0xff] }
 0x226   :  { %6176 = vmatpush1.bf16.msra.mxu0 %v11252_v20  ;;  %6851 = vmatpush1.bf16.msra.mxu1 %v11254_v39  ;;  %v14227_v4 = vsel %vm702_vm2, %v817_v10, %v821_v28  ;;  %v11277_v20 = vcombine.high %v1604_v46, %v1608_v11  ;;  %v11279_v39 = vcombine.high %v1605_v17, %v1609_v3  ;;  %v1617_v10 = vld [vmem:[#allocation7 + $0xe28] sm:$0xff]  ;;  %v883_v3 = vshll.u32 %v14033_v8, 16 }
 0x227   :  { %6177 = vmatprep.subr.bf16.mxu0 %v11261_v6  ;;  %6852 = vmatprep.subr.bf16.mxu1 %v11263_v25  ;;  %15782 = vst [vmem:[#allocation35_spill] sm:$0xff] %v14227_v4  ;;  %v14233_v44 = vsel %vm702_vm2, %v857_v26, %v861_v22  ;;  %v1616_v6 = vld [vmem:[#allocation7 + $0xe20] sm:$0xff]  ;;  %v1613_v25 = vld [vmem:[#allocation7 + $0xe08] sm:$0xff]  ;;  %v893_v43 = vrot.slane %v891_v33, 1 }
 0x228   :  { %15783 = vst [vmem:[#allocation36_spill] sm:$0xff] %v14233_v44  ;;  %v11285_v26 = vcombine.high %v1612_v13, %v1616_v6  ;;  %v11287_v30 = vcombine.high %v1613_v25, %v1617_v10  ;;  %v11284_v46 = vcombine.low %v1612_v13, %v1616_v6  ;;  %v11286_v11 = vcombine.low %v1613_v25, %v1617_v10 }
 0x229   :  { %v879_v6 = vshrl.u32 %v13983_v56, 16  ;;  %v885_v25 = vrot.slane %v883_v3, 1  ;;  %v1644_v3 = vld [vmem:[#allocation7 + $0xf00] sm:$0xff] }
 0x22a   :  { %6178 = vmatpush1.bf16.msra.mxu0 %v11260_v27  ;;  %6853 = vmatpush1.bf16.msra.mxu1 %v11262_v5  ;;  %v1620_v27 = vld [vmem:[#allocation7 + $0xe40] sm:$0xff]  ;;  %v887_v5 = vshrl.u32 %v13991_v57, 16 }
 0x22b   :  { %6179 = vmatprep.subr.bf16.mxu0 %v11269_v24  ;;  %6854 = vmatprep.subr.bf16.mxu1 %v11271_v14  ;;  %v1624_v24 = vld [vmem:[#allocation7 + $0xe60] sm:$0xff]  ;;  %v1621_v14 = vld [vmem:[#allocation7 + $0xe48] sm:$0xff] }
 0x22c   :  { %6109 = vmatmul.mubr.bf16.gmra.mrb[44].mxu0 %v14227_v4  ;;  %6795 = vmatmul.mubr.bf16.gmra.mrb[52].mxu1 %v14227_v4  ;;  %v849_v4 = vor.u32 %v847_v21, %v821_v28  ;;  %v11292_v13 = vcombine.low %v1620_v27, %v1624_v24  ;;  %v11294_v33 = vcombine.low %v1621_v14, %v1625_v61 }
 0x22d   :  { %6118 = vmatprep.mubr.bf16.mxu0 %v14233_v44  ;;  %6802 = vmatprep.mubr.bf16.mxu1 %v14233_v44  ;;  %v889_v44 = vor.u32 %v887_v5, %v861_v22  ;;  %v923_v22 = vshll.u32 %v14079_v36, 16  ;;  %v1641_v5 = vld [vmem:[#allocation7 + $0xee8] sm:$0xff] }
 0x22e   :  { %6180 = vmatpush1.bf16.msra.mxu0 %v11268_v38  ;;  %6855 = vmatpush1.bf16.msra.mxu1 %v11270_v47  ;;  %v14241_v17 = vsel %vm702_vm2, %v849_v4, %v853_v1  ;;  %v11293_v38 = vcombine.high %v1620_v27, %v1624_v24  ;;  %v11295_v47 = vcombine.high %v1621_v14, %v1625_v61  ;;  %v1633_v4 = vld [vmem:[#allocation7 + $0xea8] sm:$0xff]  ;;  %v915_v61 = vshll.u32 %v14075_v62, 16 }
 0x22f   :  { %6181 = vmatprep.subr.bf16.mxu0 %v11277_v20  ;;  %6856 = vmatprep.subr.bf16.mxu1 %v11279_v39  ;;  %15784 = vst [vmem:[#allocation37_spill] sm:$0xff] %v14241_v17  ;;  %v14247_v28 = vsel %vm702_vm2, %v889_v44, %v893_v43  ;;  %v1632_v20 = vld [vmem:[#allocation7 + $0xea0] sm:$0xff]  ;;  %v1629_v39 = vld [vmem:[#allocation7 + $0xe88] sm:$0xff]  ;;  %v925_v21 = vrot.slane %v923_v22, 1 }
 0x230   :  { %15785 = vst [vmem:[#allocation38_spill] sm:$0xff] %v14247_v28  ;;  %v11301_v44 = vcombine.high %v1628_v23, %v1632_v20  ;;  %v11303_v10 = vcombine.high %v1629_v39, %v1633_v4  ;;  %v11300_v27 = vcombine.low %v1628_v23, %v1632_v20  ;;  %v11302_v24 = vcombine.low %v1629_v39, %v1633_v4 }
 0x231   :  { %v955_v23 = vshll.u32 %v13737_v18, 16  ;;  %v911_v39 = vshrl.u32 %v14033_v8, 16  ;;  %v917_v4 = vrot.slane %v915_v61, 1  ;;  %v1661_v61 = vld [vmem:[#allocation7 + $0xf88] sm:$0xff] }
 0x232   :  { %6182 = vmatpush1.bf16.msra.mxu0 %v11276_v0  ;;  %6857 = vmatpush1.bf16.msra.mxu1 %v11278_v45  ;;  %v1636_v0 = vld [vmem:[#allocation7 + $0xec0] sm:$0xff]  ;;  %v919_v45 = vshrl.u32 %v14041_v12, 16 }
 0x233   :  { %6183 = vmatprep.subr.bf16.mxu0 %v11285_v26  ;;  %6858 = vmatprep.subr.bf16.mxu1 %v11287_v30  ;;  %v1640_v26 = vld [vmem:[#allocation7 + $0xee0] sm:$0xff]  ;;  %v1637_v30 = vld [vmem:[#allocation7 + $0xec8] sm:$0xff] }
 0x234   :  { %6119 = vmatmul.mubr.bf16.gmra.mrb[48].mxu0 %v14241_v17  ;;  %6803 = vmatmul.mubr.bf16.gmra.mrb[56].mxu1 %v14241_v17  ;;  %v881_v17 = vor.u32 %v879_v6, %v853_v1  ;;  %v11308_v22 = vcombine.low %v1636_v0, %v1640_v26  ;;  %v11310_v20 = vcombine.low %v1637_v30, %v1641_v5 }
 0x235   :  { %6128 = vmatprep.mubr.bf16.mxu0 %v14247_v28  ;;  %6810 = vmatprep.mubr.bf16.mxu1 %v14247_v28  ;;  %v921_v28 = vor.u32 %v919_v45, %v893_v43  ;;  %v1648_v43 = vld [vmem:[#allocation7 + $0xf20] sm:$0xff]  ;;  %v1657_v45 = vld [vmem:[#allocation7 + $0xf68] sm:$0xff] }
 0x236   :  { %6184 = vmatpush1.bf16.msra.mxu0 %v11284_v46  ;;  %6859 = vmatpush1.bf16.msra.mxu1 %v11286_v11  ;;  %v14255_v14 = vsel %vm702_vm2, %v881_v17, %v885_v25  ;;  %v11309_v46 = vcombine.high %v1636_v0, %v1640_v26  ;;  %v11311_v11 = vcombine.high %v1637_v30, %v1641_v5  ;;  %v951_v17 = vshrl.u32 %v14079_v36, 16  ;;  %v1660_v5 = vld [vmem:[#allocation7 + $0xf80] sm:$0xff] }
 0x237   :  { %6185 = vmatprep.subr.bf16.mxu0 %v11293_v38  ;;  %6860 = vmatprep.subr.bf16.mxu1 %v11295_v47  ;;  %15786 = vst [vmem:[#allocation39_spill] sm:$0xff] %v14255_v14  ;;  %v14261_v1 = vsel %vm702_vm2, %v921_v28, %v925_v21  ;;  %v1645_v38 = vld [vmem:[#allocation7 + $0xf08] sm:$0xff]  ;;  %v11317_v28 = vcombine.high %v1644_v3, %v1648_v43 }
 0x238   :  { %15787 = vst [vmem:[#allocation40_spill] sm:$0xff] %v14261_v1  ;;  %v1649_v47 = vld [vmem:[#allocation7 + $0xf28] sm:$0xff]  ;;  %v953_v6 = vor.u32 %v951_v17, %v925_v21 }
 0x23a   :  { %6186 = vmatpush1.bf16.msra.mxu0 %v11292_v13  ;;  %6861 = vmatpush1.bf16.msra.mxu1 %v11294_v33  ;;  %v11319_v13 = vcombine.high %v1645_v38, %v1649_v47  ;;  %v1652_v33 = vld [vmem:[#allocation7 + $0xf40] sm:$0xff] }
 0x23b   :  { %6187 = vmatprep.subr.bf16.mxu0 %v11301_v44  ;;  %6862 = vmatprep.subr.bf16.mxu1 %v11303_v10  ;;  %v1656_v44 = vld [vmem:[#allocation7 + $0xf60] sm:$0xff]  ;;  %v1653_v10 = vld [vmem:[#allocation7 + $0xf48] sm:$0xff] }
 0x23c   :  { %6129 = vmatmul.mubr.bf16.gmra.mrb[52].mxu0 %v14255_v14  ;;  %6811 = vmatmul.mubr.bf16.gmra.mrb[60].mxu1 %v14255_v14  ;;  %v957_v14 = vrot.slane %v955_v23, 1  ;;  %v11325_v26 = vcombine.high %v1652_v33, %v1656_v44  ;;  %v11327_v30 = vcombine.high %v1653_v10, %v1657_v45 }
 0x23d   :  { %6138 = vmatprep.mubr.bf16.mxu0 %v14261_v1  ;;  %6818 = vmatprep.mubr.bf16.mxu1 %v14261_v1  ;;  %v913_v1 = vor.u32 %v911_v39, %v885_v25  ;;  %v1664_v25 = vld [vmem:[#allocation7 + $0xfa0] sm:$0xff] }
 0x23e   :  { %6188 = vmatpush1.bf16.msra.mxu0 %v11300_v27  ;;  %6863 = vmatpush1.bf16.msra.mxu1 %v11302_v24  ;;  %v11316_v27 = vcombine.low %v1644_v3, %v1648_v43  ;;  %v11318_v24 = vcombine.low %v1645_v38, %v1649_v47  ;;  %v14274_v21 = vsel %vm702_vm2, %v953_v6, %v957_v14  ;;  %v947_v3 = vshll.u32 %v13733_v15, 16  ;;  %v1672_v39 = vld [vmem:[#allocation7 + $0xfe0] sm:$0xff] }
 0x23f   :  { %6189 = vmatprep.subr.bf16.mxu0 %v11309_v46  ;;  %6864 = vmatprep.subr.bf16.mxu1 %v11311_v11  ;;  %v14269_v0 = vsel %vm702_vm2, %v913_v1, %v917_v4  ;;  %15789 = vst [vmem:[#allocation42_spill] sm:$0xff] %v14274_v21  ;;  %v1665_v46 = vld [vmem:[#allocation7 + $0xfa8] sm:$0xff]  ;;  %v943_v11 = vshrl.u32 %v14075_v62, 16  ;;  %v978_v1 = vshrl.u32 %v13737_v18, 16  ;;  %v11324_v43 = vcombine.low %v1652_v33, %v1656_v44 }
 0x240   :  { %15788 = vst [vmem:[#allocation41_spill] sm:$0xff] %v14269_v0  ;;  %v11326_v38 = vcombine.low %v1653_v10, %v1657_v45  ;;  %v11333_v17 = vcombine.high %v1660_v5, %v1664_v25  ;;  %v11335_v23 = vcombine.high %v1661_v61, %v1665_v46  ;;  %v949_v6 = vrot.slane %v947_v3, 1  ;;  %v14287_v10 = vld [vmem:[#allocation7 + $0x1000] sm:$0xff] }
 0x241   :  { %v945_v47 = vor.u32 %v943_v11, %v917_v4  ;;  %v15792_v3 = vld [vmem:[#allocation25_spill] sm:$0xff] }
 0x242   :  { %6190 = vmatpush1.bf16.msra.mxu0 %v11308_v22  ;;  %6865 = vmatpush1.bf16.msra.mxu1 %v11310_v20  ;;  %v1668_v22 = vld [vmem:[#allocation7 + $0xfc0] sm:$0xff]  ;;  %v742_v20 = vshll.u32 %v13839_v37, 16 }
 0x243   :  { %6191 = vmatprep.subr.bf16.mxu0 %v11317_v28  ;;  %6866 = vmatprep.subr.bf16.mxu1 %v11319_v13  ;;  %v1669_v28 = vld [vmem:[#allocation7 + $0xfc8] sm:$0xff]  ;;  %v14285_v33 = vsel %vm702_vm2, %v945_v47, %v949_v6  ;;  %v11341_v4 = vcombine.high %v1668_v22, %v1672_v39 }
 0x244   :  { %6139 = vmatmul.mubr.bf16.gmra.mrb[56].mxu0 %v14269_v0  ;;  %6819 = vmatmul.mubr.bf16.gmra.mrb[64].mxu1 %v14269_v0  ;;  %v1673_v13 = vld [vmem:[#allocation7 + $0xfe8] sm:$0xff]  ;;  %15791 = vst [vmem:[#allocation44_spill] sm:$0xff] %v14285_v33  ;;  %v744_v45 = vrot.slane %v742_v20, 1  ;;  %v728_v20 = vshrl.u32 %v15792_v3, 16  ;;  %v1704_v0 = vld [vmem:[#allocation7 + $0x10e0] sm:$0xff] }
 0x245   :  { %6148 = vmatprep.mubr.bf16.mxu0 %v14274_v21  ;;  %6826 = vmatprep.mubr.bf16.mxu1 %v14274_v21  ;;  %v14282_v21 = vor.u32 %v978_v1, %v957_v14  ;;  %v11343_v44 = vcombine.high %v1669_v28, %v1673_v13  ;;  %v740_v14 = vshrl.u32 %v13839_v37, 16  ;;  %v11342_v11 = vcombine.low %v1669_v28, %v1673_v13 }
 0x246   :  { %6192 = vmatpush1.bf16.msra.mxu0 %v11316_v27  ;;  %6867 = vmatpush1.bf16.msra.mxu1 %v11318_v24  ;;  %v11332_v27 = vcombine.low %v1660_v5, %v1664_v25  ;;  %v11334_v24 = vcombine.low %v1661_v61, %v1665_v46  ;;  %v1677_v5 = vld [vmem:[#allocation7 + $0x1008] sm:$0xff]  ;;  %v975_v61 = vshrl.u32 %v13733_v15, 16  ;;  %v11340_v46 = vcombine.low %v1668_v22, %v1672_v39 }
 0x247   :  { %6193 = vmatprep.subr.bf16.mxu0 %v11325_v26  ;;  %6868 = vmatprep.subr.bf16.mxu1 %v11327_v30  ;;  %15790 = vst [vmem:[#allocation43_spill] sm:$0xff] %v14282_v21  ;;  %v747_v26 = vshll.u32 %v13891_v34, 16  ;;  %v1680_v30 = vld [vmem:[#allocation7 + $0x1020] sm:$0xff]  ;;  %v1681_v25 = vld [vmem:[#allocation7 + $0x1028] sm:$0xff]  ;;  %v730_v1 = vshll.u32 %v15792_v3, 16  ;;  %v745_v47 = vor.u32 %v744_v45, %v740_v14  ;;  %v775_v39 = vshrl.u32 %v13891_v34, 16 }
 0x248   :  { %v779_v28 = vshll.u32 %v13943_v54, 16  ;;  %v1688_v14 = vld [vmem:[#allocation7 + $0x1060] sm:$0xff]  ;;  %v1685_v45 = vld [vmem:[#allocation7 + $0x1048] sm:$0xff] }
 0x24a   :  { %6194 = vmatpush1.bf16.msra.mxu0 %v11324_v43  ;;  %6869 = vmatpush1.bf16.msra.mxu1 %v11326_v38  ;;  %v11349_v43 = vcombine.high %v14287_v10, %v1680_v30  ;;  %v11351_v38 = vcombine.high %v1677_v5, %v1681_v25 }
 0x24b   :  { %6195 = vmatprep.subr.bf16.mxu0 %v11333_v17  ;;  %6870 = vmatprep.subr.bf16.mxu1 %v11335_v23  ;;  %v749_v17 = vrot.slane %v747_v26, 1  ;;  %v14298_v23 = vor.u32 %v975_v61, %v949_v6  ;;  %v1689_v26 = vld [vmem:[#allocation7 + $0x1068] sm:$0xff]  ;;  %v767_v61 = vshrl.u32 %v13885_v40, 16 }
 0x24c   :  { %6149 = vmatmul.mubr.bf16.gmra.mrb[60].mxu0 %v14285_v33  ;;  %6827 = vmatmul.mubr.bf16.gmra.mrb[68].mxu1 %v14285_v33 }
 0x24d   :  { %6158 = vmatprep.mubr.bf16.mxu0 %v14282_v21  ;;  %6834 = vmatprep.mubr.bf16.mxu1 %v14282_v21  ;;  %15793 = vst [vmem:[#allocation25_spill] sm:$0xff] %v14298_v23  ;;  %v732_v21 = vrot.slane %v730_v1, 1  ;;  %v14305_v22 = vsel %vm702_vm2, %v745_v47, %v749_v17  ;;  %v11359_v47 = vcombine.high %v1685_v45, %v1689_v26 }
 0x24e   :  { %6196 = vmatpush1.bf16.msra.mxu0 %v11332_v27  ;;  %6871 = vmatpush1.bf16.msra.mxu1 %v11334_v24  ;;  %v735_v27 = vshll.u32 %v13885_v40, 16  ;;  %15794 = vst [vmem:[#allocation45_spill] sm:$0xff] %v14305_v22  ;;  %v1684_v24 = vld [vmem:[#allocation7 + $0x1040] sm:$0xff]  ;;  %v1705_v40 = vld [vmem:[#allocation7 + $0x10e8] sm:$0xff] }
 0x24f   :  { %6197 = vmatprep.subr.bf16.mxu0 %v11341_v4  ;;  %6872 = vmatprep.subr.bf16.mxu1 %v11343_v44  ;;  %v733_v13 = vor.u32 %v732_v21, %v728_v20  ;;  %v777_v4 = vor.u32 %v775_v39, %v749_v17  ;;  %v781_v44 = vrot.slane %v779_v28, 1  ;;  %v1692_v21 = vld [vmem:[#allocation7 + $0x1080] sm:$0xff]  ;;  %v807_v20 = vshrl.u32 %v13943_v54, 16  ;;  %v1701_v54 = vld [vmem:[#allocation7 + $0x10c8] sm:$0xff] }
 0x250   :  { %v737_v6 = vrot.slane %v735_v27, 1  ;;  %v11356_v27 = vcombine.low %v1684_v24, %v1688_v14  ;;  %v11358_v39 = vcombine.low %v1685_v45, %v1689_v26  ;;  %v11375_v45 = vcombine.high %v1701_v54, %v1705_v40 }
 0x251   :  { %v14320_v17 = vsel %vm702_vm2, %v777_v4, %v781_v44 }
 0x252   :  { %6198 = vmatpush1.bf16.msra.mxu0 %v11340_v46  ;;  %6873 = vmatpush1.bf16.msra.mxu1 %v11342_v11  ;;  %v11348_v46 = vcombine.low %v14287_v10, %v1680_v30  ;;  %v11350_v11 = vcombine.low %v1677_v5, %v1681_v25  ;;  %v14314_v1 = vsel %vm702_vm2, %v733_v13, %v737_v6  ;;  %v811_v10 = vshll.u32 %v13995_v63, 16  ;;  %v1696_v30 = vld [vmem:[#allocation7 + $0x10a0] sm:$0xff]  ;;  %v1693_v5 = vld [vmem:[#allocation7 + $0x1088] sm:$0xff] }
 0x253   :  { %6288 = vmatprep.subr.bf16.mxu0 %v11349_v43  ;;  %6946 = vmatprep.subr.bf16.mxu1 %v11351_v38  ;;  %15795 = vst [vmem:[#allocation46_spill] sm:$0xff] %v14314_v1  ;;  %v771_v43 = vshll.u32 %v13937_v49, 16  ;;  %v11357_v38 = vcombine.high %v1684_v24, %v1688_v14  ;;  %15796 = vst [vmem:[#allocation47_spill] sm:$0xff] %v14320_v17  ;;  %v1697_v25 = vld [vmem:[#allocation7 + $0x10a8] sm:$0xff]  ;;  %v769_v28 = vor.u32 %v767_v61, %v737_v6 }
 0x254   :  { %6159 = vmatmul.mubr.bf16.gmra.mrb[64].mxu0 %v14298_v23  ;;  %6835 = vmatmul.mubr.bf16.gmra.mrb[72].mxu1 %v14298_v23  ;;  %v11365_v4 = vcombine.high %v1692_v21, %v1696_v30  ;;  %v809_v23 = vor.u32 %v807_v20, %v781_v44  ;;  %v813_v33 = vrot.slane %v811_v10, 1  ;;  %v803_v6 = vshll.u32 %v13989_v60, 16  ;;  %v1708_v44 = vld [vmem:[#allocation7 + $0x1100] sm:$0xff] }
 0x255   :  { %6199 = vmatprep.mubr.bf16.mxu0 %v14305_v22  ;;  %6874 = vmatprep.mubr.bf16.mxu1 %v14305_v22  ;;  %v773_v13 = vrot.slane %v771_v43, 1  ;;  %v1700_v22 = vld [vmem:[#allocation7 + $0x10c0] sm:$0xff]  ;;  %v839_v61 = vshrl.u32 %v13995_v63, 16  ;;  %v843_v43 = vshll.u32 %v14045_v19, 16  ;;  %v11374_v20 = vcombine.low %v1701_v54, %v1705_v40 }
 0x256   :  { %v11373_v14 = vcombine.high %v1700_v22, %v1704_v0  ;;  %v14334_v26 = vsel %vm702_vm2, %v809_v23, %v813_v33  ;;  %v835_v54 = vshll.u32 %v14039_v58, 16 }
 0x257   :  { %v14328_v24 = vsel %vm702_vm2, %v769_v28, %v773_v13  ;;  %15798 = vst [vmem:[#allocation49_spill] sm:$0xff] %v14334_v26  ;;  %v1720_v28 = vld [vmem:[#allocation7 + $0x1160] sm:$0xff] }
 0x258   :  { %15797 = vst [vmem:[#allocation48_spill] sm:$0xff] %v14328_v24 }
 0x25c   :  { %6200 = vmatmul.mubr.bf16.vlgmr.msra.gmra.mrb[32].mxu0 %v14314_v1  ;;  %6875 = vmatmul.mubr.bf16.vlgmr.msra.gmra.mrb[40].mxu1 %v14314_v1  ;;  %v11367_v1 = vcombine.high %v1693_v5, %v1697_v25 }
 0x25d   :  { %6209 = vmatprep.mubr.bf16.mxu0 %v14320_v17  ;;  %6882 = vmatprep.mubr.bf16.mxu1 %v14320_v17  ;;  %v799_v17 = vshrl.u32 %v13937_v49, 16 }
 0x25e   :  { %6289 = vmatpush1.bf16.msra.mxu0 %v11348_v46  ;;  %6947 = vmatpush1.bf16.msra.mxu1 %v11350_v11  ;;  %v11364_v46 = vcombine.low %v1692_v21, %v1696_v30  ;;  %v11366_v11 = vcombine.low %v1693_v5, %v1697_v25  ;;  %v1713_v21 = vld [vmem:[#allocation7 + $0x1128] sm:$0xff]  ;;  %v805_v30 = vrot.slane %v803_v6, 1  ;;  %v1716_v25 = vld [vmem:[#allocation7 + $0x1140] sm:$0xff]  ;;  %v875_v6 = vshll.u32 %v14081_v7, 16 }
 0x25f   :  { %6290 = vmatprep.subr.bf16.mxu0 %v11357_v38  ;;  %6948 = vmatprep.subr.bf16.mxu1 %v11359_v47  ;;  %v1712_v38 = vld [vmem:[#allocation7 + $0x1120] sm:$0xff]  ;;  %v1709_v47 = vld [vmem:[#allocation7 + $0x1108] sm:$0xff]  ;;  %v801_v10 = vor.u32 %v799_v17, %v773_v13  ;;  %v871_v13 = vshrl.u32 %v14045_v19, 16 }
 0x260   :  { %v11381_v23 = vcombine.high %v1708_v44, %v1712_v38  ;;  %v11383_v5 = vcombine.high %v1709_v47, %v1713_v21 }
 0x261   :  { %v14342_v40 = vsel %vm702_vm2, %v801_v10, %v805_v30 }
 0x262   :  { %6291 = vmatpush1.bf16.msra.mxu0 %v11356_v27  ;;  %6949 = vmatpush1.bf16.msra.mxu1 %v11358_v39  ;;  %v841_v27 = vor.u32 %v839_v61, %v813_v33  ;;  %v845_v39 = vrot.slane %v843_v43, 1  ;;  %15799 = vst [vmem:[#allocation50_spill] sm:$0xff] %v14342_v40  ;;  %v1724_v33 = vld [vmem:[#allocation7 + $0x1180] sm:$0xff]  ;;  %v11388_v61 = vcombine.low %v1716_v25, %v1720_v28 }
 0x263   :  { %6292 = vmatprep.subr.bf16.mxu0 %v11365_v4  ;;  %6950 = vmatprep.subr.bf16.mxu1 %v11367_v1  ;;  %v11372_v1 = vcombine.low %v1700_v22, %v1704_v0  ;;  %v1717_v4 = vld [vmem:[#allocation7 + $0x1148] sm:$0xff]  ;;  %v11389_v0 = vcombine.high %v1716_v25, %v1720_v28 }
 0x264   :  { %6210 = vmatmul.mubr.bf16.gmra.mrb[36].mxu0 %v14328_v24  ;;  %6883 = vmatmul.mubr.bf16.gmra.mrb[44].mxu1 %v14328_v24  ;;  %v1721_v24 = vld [vmem:[#allocation7 + $0x1168] sm:$0xff]  ;;  %v14348_v17 = vsel %vm702_vm2, %v841_v27, %v845_v39  ;;  %v873_v10 = vor.u32 %v871_v13, %v845_v39  ;;  %v1740_v39 = vld [vmem:[#allocation7 + $0x1200] sm:$0xff] }
 0x265   :  { %6219 = vmatprep.mubr.bf16.mxu0 %v14334_v26  ;;  %6890 = vmatprep.mubr.bf16.mxu1 %v14334_v26  ;;  %v831_v26 = vshrl.u32 %v13989_v60, 16  ;;  %v11391_v22 = vcombine.high %v1717_v4, %v1721_v24  ;;  %15800 = vst [vmem:[#allocation51_spill] sm:$0xff] %v14348_v17  ;;  %v11390_v43 = vcombine.low %v1717_v4, %v1721_v24  ;;  %v1733_v27 = vld [vmem:[#allocation7 + $0x11c8] sm:$0xff]  ;;  %v903_v4 = vshrl.u32 %v14081_v7, 16 }
 0x266   :  { %6293 = vmatpush1.bf16.msra.mxu0 %v11364_v46  ;;  %6951 = vmatpush1.bf16.msra.mxu1 %v11366_v11  ;;  %v11380_v46 = vcombine.low %v1708_v44, %v1712_v38  ;;  %v11382_v11 = vcombine.low %v1709_v47, %v1713_v21  ;;  %v1729_v44 = vld [vmem:[#allocation7 + $0x11a8] sm:$0xff]  ;;  %v837_v47 = vrot.slane %v835_v54, 1  ;;  %v907_v54 = vshll.u32 %v14111_v59, 16 }
 0x267   :  { %6294 = vmatprep.subr.bf16.mxu0 %v11373_v14  ;;  %6952 = vmatprep.subr.bf16.mxu1 %v11375_v45  ;;  %v1728_v14 = vld [vmem:[#allocation7 + $0x11a0] sm:$0xff]  ;;  %v1725_v45 = vld [vmem:[#allocation7 + $0x1188] sm:$0xff]  ;;  %v833_v38 = vor.u32 %v831_v26, %v805_v30  ;;  %v867_v26 = vshll.u32 %v14077_v29, 16 }
 0x268   :  { %v11397_v21 = vcombine.high %v1724_v33, %v1728_v14 }
 0x269   :  { %v14356_v24 = vsel %vm702_vm2, %v833_v38, %v837_v47 }
 0x26a   :  { %6295 = vmatpush1.bf16.msra.mxu0 %v11372_v1  ;;  %6953 = vmatpush1.bf16.msra.mxu1 %v11374_v20  ;;  %v11399_v1 = vcombine.high %v1725_v45, %v1729_v44  ;;  %v1732_v20 = vld [vmem:[#allocation7 + $0x11c0] sm:$0xff]  ;;  %15801 = vst [vmem:[#allocation52_spill] sm:$0xff] %v14356_v24 }
 0x26b   :  { %6296 = vmatprep.subr.bf16.mxu0 %v11381_v23  ;;  %6954 = vmatprep.subr.bf16.mxu1 %v11383_v5  ;;  %v877_v23 = vrot.slane %v875_v6, 1  ;;  %v1736_v5 = vld [vmem:[#allocation7 + $0x11e0] sm:$0xff] }
 0x26c   :  { %6220 = vmatmul.mubr.bf16.gmra.mrb[40].mxu0 %v14342_v40  ;;  %6891 = vmatmul.mubr.bf16.gmra.mrb[48].mxu1 %v14342_v40  ;;  %v1737_v40 = vld [vmem:[#allocation7 + $0x11e8] sm:$0xff]  ;;  %v11405_v30 = vcombine.high %v1732_v20, %v1736_v5  ;;  %v11404_v13 = vcombine.low %v1732_v20, %v1736_v5 }
 0x26d   :  { %6229 = vmatprep.mubr.bf16.mxu0 %v14348_v17  ;;  %6898 = vmatprep.mubr.bf16.mxu1 %v14348_v17  ;;  %v863_v17 = vshrl.u32 %v14039_v58, 16  ;;  %v11407_v25 = vcombine.high %v1733_v27, %v1737_v40  ;;  %v14362_v28 = vsel %vm702_vm2, %v873_v10, %v877_v23  ;;  %v11406_v6 = vcombine.low %v1733_v27, %v1737_v40  ;;  %v1749_v10 = vld [vmem:[#allocation7 + $0x1248] sm:$0xff] }
 0x26e   :  { %6297 = vmatpush1.bf16.msra.mxu0 %v11380_v46  ;;  %6955 = vmatpush1.bf16.msra.mxu1 %v11382_v11  ;;  %v11396_v46 = vcombine.low %v1724_v33, %v1728_v14  ;;  %v11398_v11 = vcombine.low %v1725_v45, %v1729_v44  ;;  %15802 = vst [vmem:[#allocation53_spill] sm:$0xff] %v14362_v28  ;;  %v1745_v33 = vld [vmem:[#allocation7 + $0x1228] sm:$0xff]  ;;  %v869_v45 = vrot.slane %v867_v26, 1  ;;  %v935_v27 = vshrl.u32 %v14111_v59, 16 }
 0x26f   :  { %6298 = vmatprep.subr.bf16.mxu0 %v11389_v0  ;;  %6956 = vmatprep.subr.bf16.mxu1 %v11391_v22  ;;  %v1744_v0 = vld [vmem:[#allocation7 + $0x1220] sm:$0xff]  ;;  %v1741_v22 = vld [vmem:[#allocation7 + $0x1208] sm:$0xff]  ;;  %v865_v14 = vor.u32 %v863_v17, %v837_v47  ;;  %v905_v38 = vor.u32 %v903_v4, %v877_v23  ;;  %v899_v17 = vshll.u32 %v14109_v35, 16  ;;  %v939_v26 = vshll.u32 %v14123_v9, 16 }
 0x270   :  { %v11413_v44 = vcombine.high %v1740_v39, %v1744_v0  ;;  %v1756_v23 = vld [vmem:[#allocation7 + $0x1280] sm:$0xff] }
 0x271   :  { %v14370_v40 = vsel %vm702_vm2, %v865_v14, %v869_v45 }
 0x272   :  { %6299 = vmatpush1.bf16.msra.mxu0 %v11388_v61  ;;  %6957 = vmatpush1.bf16.msra.mxu1 %v11390_v43  ;;  %v11415_v61 = vcombine.high %v1741_v22, %v1745_v33  ;;  %v1748_v43 = vld [vmem:[#allocation7 + $0x1240] sm:$0xff]  ;;  %15803 = vst [vmem:[#allocation54_spill] sm:$0xff] %v14370_v40 }
 0x273   :  { %6300 = vmatprep.subr.bf16.mxu0 %v11397_v21  ;;  %6958 = vmatprep.subr.bf16.mxu1 %v11399_v1  ;;  %v909_v21 = vrot.slane %v907_v54, 1  ;;  %v1752_v1 = vld [vmem:[#allocation7 + $0x1260] sm:$0xff] }
 0x274   :  { %6230 = vmatmul.mubr.bf16.gmra.mrb[44].mxu0 %v14356_v24  ;;  %6899 = vmatmul.mubr.bf16.gmra.mrb[52].mxu1 %v14356_v24  ;;  %v1753_v24 = vld [vmem:[#allocation7 + $0x1268] sm:$0xff]  ;;  %v11421_v47 = vcombine.high %v1748_v43, %v1752_v1  ;;  %v11420_v4 = vcombine.low %v1748_v43, %v1752_v1 }
 0x275   :  { %6239 = vmatprep.mubr.bf16.mxu0 %v14362_v28  ;;  %6906 = vmatprep.mubr.bf16.mxu1 %v14362_v28  ;;  %v895_v28 = vshrl.u32 %v14077_v29, 16  ;;  %v11423_v20 = vcombine.high %v1749_v10, %v1753_v24  ;;  %v14376_v5 = vsel %vm702_vm2, %v905_v38, %v909_v21  ;;  %v11422_v54 = vcombine.low %v1749_v10, %v1753_v24  ;;  %v1765_v38 = vld [vmem:[#allocation7 + $0x12c8] sm:$0xff] }
 0x276   :  { %6301 = vmatpush1.bf16.msra.mxu0 %v11396_v46  ;;  %6959 = vmatpush1.bf16.msra.mxu1 %v11398_v11  ;;  %v11412_v46 = vcombine.low %v1740_v39, %v1744_v0  ;;  %v11414_v11 = vcombine.low %v1741_v22, %v1745_v33  ;;  %15804 = vst [vmem:[#allocation55_spill] sm:$0xff] %v14376_v5  ;;  %v1761_v39 = vld [vmem:[#allocation7 + $0x12a8] sm:$0xff]  ;;  %v901_v22 = vrot.slane %v899_v17, 1  ;;  %v967_v10 = vshrl.u32 %v14123_v9, 16 }
 0x277   :  { %6302 = vmatprep.subr.bf16.mxu0 %v11405_v30  ;;  %6960 = vmatprep.subr.bf16.mxu1 %v11407_v25  ;;  %v1760_v30 = vld [vmem:[#allocation7 + $0x12a0] sm:$0xff]  ;;  %v1757_v25 = vld [vmem:[#allocation7 + $0x1288] sm:$0xff]  ;;  %v897_v0 = vor.u32 %v895_v28, %v869_v45  ;;  %v937_v14 = vor.u32 %v935_v27, %v909_v21  ;;  %v931_v28 = vshll.u32 %v14121_v2, 16  ;;  %v971_v17 = vshll.u32 %v14139_v51, 16 }
 0x278   :  { %v11429_v33 = vcombine.high %v1756_v23, %v1760_v30  ;;  %v1772_v21 = vld [vmem:[#allocation7 + $0x1300] sm:$0xff] }
 0x279   :  { %v14384_v24 = vsel %vm702_vm2, %v897_v0, %v901_v22 }
 0x27a   :  { %6303 = vmatpush1.bf16.msra.mxu0 %v11404_v13  ;;  %6961 = vmatpush1.bf16.msra.mxu1 %v11406_v6  ;;  %v11431_v13 = vcombine.high %v1757_v25, %v1761_v39  ;;  %v1764_v6 = vld [vmem:[#allocation7 + $0x12c0] sm:$0xff]  ;;  %15805 = vst [vmem:[#allocation56_spill] sm:$0xff] %v14384_v24 }
 0x27b   :  { %6304 = vmatprep.subr.bf16.mxu0 %v11413_v44  ;;  %6962 = vmatprep.subr.bf16.mxu1 %v11415_v61  ;;  %v941_v44 = vrot.slane %v939_v26, 1  ;;  %v1768_v61 = vld [vmem:[#allocation7 + $0x12e0] sm:$0xff] }
 0x27c   :  { %6240 = vmatmul.mubr.bf16.gmra.mrb[48].mxu0 %v14370_v40  ;;  %6907 = vmatmul.mubr.bf16.gmra.mrb[56].mxu1 %v14370_v40  ;;  %v1769_v40 = vld [vmem:[#allocation7 + $0x12e8] sm:$0xff]  ;;  %v11437_v45 = vcombine.high %v1764_v6, %v1768_v61  ;;  %v11436_v27 = vcombine.low %v1764_v6, %v1768_v61 }
 0x27d   :  { %6249 = vmatprep.mubr.bf16.mxu0 %v14376_v5  ;;  %6914 = vmatprep.mubr.bf16.mxu1 %v14376_v5  ;;  %v927_v5 = vshrl.u32 %v14109_v35, 16  ;;  %v11439_v43 = vcombine.high %v1765_v38, %v1769_v40  ;;  %v14390_v1 = vsel %vm702_vm2, %v937_v14, %v941_v44  ;;  %v11438_v26 = vcombine.low %v1765_v38, %v1769_v40  ;;  %v1781_v14 = vld [vmem:[#allocation7 + $0x1348] sm:$0xff] }
 0x27e   :  { %6305 = vmatpush1.bf16.msra.mxu0 %v11412_v46  ;;  %6963 = vmatpush1.bf16.msra.mxu1 %v11414_v11  ;;  %v11428_v46 = vcombine.low %v1756_v23, %v1760_v30  ;;  %v11430_v11 = vcombine.low %v1757_v25, %v1761_v39  ;;  %15806 = vst [vmem:[#allocation57_spill] sm:$0xff] %v14390_v1  ;;  %v1777_v23 = vld [vmem:[#allocation7 + $0x1328] sm:$0xff]  ;;  %v933_v25 = vrot.slane %v931_v28, 1 }
 0x27f   :  { %6306 = vmatprep.subr.bf16.mxu0 %v11421_v47  ;;  %6964 = vmatprep.subr.bf16.mxu1 %v11423_v20  ;;  %v1776_v47 = vld [vmem:[#allocation7 + $0x1320] sm:$0xff]  ;;  %v1773_v20 = vld [vmem:[#allocation7 + $0x1308] sm:$0xff]  ;;  %v929_v30 = vor.u32 %v927_v5, %v901_v22  ;;  %v969_v0 = vor.u32 %v967_v10, %v941_v44 }
 0x280   :  { %v11445_v39 = vcombine.high %v1772_v21, %v1776_v47  ;;  %v11444_v6 = vcombine.low %v1772_v21, %v1776_v47  ;;  %v11446_v40 = vcombine.low %v1773_v20, %v1777_v23  ;;  %v1788_v44 = vld [vmem:[#allocation7 + $0x1380] sm:$0xff]  ;;  %v1789_v28 = vld [vmem:[#allocation7 + $0x1388] sm:$0xff]  ;;  %v984_v47 = vshrl.u32 %v14139_v51, 16 }
 0x281   :  { %v14399_v5 = vsel %vm702_vm2, %v929_v30, %v933_v25  ;;  %v1797_v30 = vld [vmem:[#allocation7 + $0x13c8] sm:$0xff] }
 0x282   :  { %6307 = vmatpush1.bf16.msra.mxu0 %v11420_v4  ;;  %6965 = vmatpush1.bf16.msra.mxu1 %v11422_v54  ;;  %v11447_v4 = vcombine.high %v1773_v20, %v1777_v23  ;;  %v1780_v54 = vld [vmem:[#allocation7 + $0x1340] sm:$0xff] }
 0x283   :  { %6308 = vmatprep.subr.bf16.mxu0 %v11429_v33  ;;  %6966 = vmatprep.subr.bf16.mxu1 %v11431_v13  ;;  %v973_v33 = vrot.slane %v971_v17, 1  ;;  %v1784_v13 = vld [vmem:[#allocation7 + $0x1360] sm:$0xff] }
 0x284   :  { %6250 = vmatmul.mubr.bf16.gmra.mrb[52].mxu0 %v14384_v24  ;;  %6915 = vmatmul.mubr.bf16.gmra.mrb[60].mxu1 %v14384_v24  ;;  %v1785_v24 = vld [vmem:[#allocation7 + $0x1368] sm:$0xff]  ;;  %v11453_v22 = vcombine.high %v1780_v54, %v1784_v13  ;;  %v11452_v10 = vcombine.low %v1780_v54, %v1784_v13  ;;  %v1804_v13 = vld [vmem:[#allocation7 + $0x1400] sm:$0xff] }
 0x285   :  { %6259 = vmatprep.mubr.bf16.mxu0 %v14390_v1  ;;  %6922 = vmatprep.mubr.bf16.mxu1 %v14390_v1  ;;  %v959_v1 = vshrl.u32 %v14121_v2, 16  ;;  %v11455_v61 = vcombine.high %v1781_v14, %v1785_v24  ;;  %v14404_v38 = vsel %vm702_vm2, %v969_v0, %v973_v33  ;;  %v11454_v17 = vcombine.low %v1781_v14, %v1785_v24  ;;  %v1808_v14 = vld [vmem:[#allocation7 + $0x1420] sm:$0xff] }
 0x286   :  { %6309 = vmatpush1.bf16.msra.mxu0 %v11428_v46  ;;  %6967 = vmatpush1.bf16.msra.mxu1 %v11430_v11  ;;  %v963_v46 = vshll.u32 %v14137_v42, 16  ;;  %v1792_v11 = vld [vmem:[#allocation7 + $0x13a0] sm:$0xff]  ;;  %v14412_v0 = vor.u32 %v984_v47, %v973_v33 }
 0x287   :  { %6310 = vmatprep.subr.bf16.mxu0 %v11437_v45  ;;  %6968 = vmatprep.subr.bf16.mxu1 %v11439_v43  ;;  %v1793_v45 = vld [vmem:[#allocation7 + $0x13a8] sm:$0xff]  ;;  %v961_v43 = vor.u32 %v959_v1, %v933_v25  ;;  %v11461_v20 = vcombine.high %v1788_v44, %v1792_v11  ;;  %v11460_v1 = vcombine.low %v1788_v44, %v1792_v11  ;;  %v1064_v11 = vrot.slane %v13784_v55, 1  ;;  %v1816_v47 = vld [vmem:[#allocation7 + $0x1460] sm:$0xff] }
 0x288   :  { %v965_v21 = vrot.slane %v963_v46, 1  ;;  %v11463_v23 = vcombine.high %v1789_v28, %v1793_v45  ;;  %v11462_v25 = vcombine.low %v1789_v28, %v1793_v45  ;;  %15808 = vst [vmem:[#allocation59_spill] sm:$0xff] %v14412_v0  ;;  %v1805_v46 = vld [vmem:[#allocation7 + $0x1408] sm:$0xff]  ;;  %v1063_v45 = vrot.slane %v13735_v16, 1 }
 0x28a   :  { %6311 = vmatpush1.bf16.msra.mxu0 %v11436_v27  ;;  %6969 = vmatpush1.bf16.msra.mxu1 %v11438_v26  ;;  %v1796_v27 = vld [vmem:[#allocation7 + $0x13c0] sm:$0xff] }
 0x28b   :  { %6312 = vmatprep.subr.bf16.mxu0 %v11445_v39  ;;  %6970 = vmatprep.subr.bf16.mxu1 %v11447_v4  ;;  %v1800_v26 = vld [vmem:[#allocation7 + $0x13e0] sm:$0xff]  ;;  %v1801_v39 = vld [vmem:[#allocation7 + $0x13e8] sm:$0xff]  ;;  %v14410_v4 = vsel %vm702_vm2, %v961_v43, %v965_v21  ;;  %v14426_v43 = vsel %vm1059_vm3, %v1063_v45, %v1064_v11 }
 0x28c   :  { %6260 = vmatmul.mubr.bf16.gmra.mrb[56].mxu0 %v14399_v5  ;;  %6923 = vmatmul.mubr.bf16.gmra.mrb[64].mxu1 %v14399_v5  ;;  %15807 = vst [vmem:[#allocation58_spill] sm:$0xff] %v14410_v4  ;;  %v11469_v24 = vcombine.high %v1796_v27, %v1800_v26  ;;  %v11471_v54 = vcombine.high %v1797_v30, %v1801_v39  ;;  %15810 = vst [vmem:[#allocation61_spill] sm:$0xff] %v14426_v43  ;;  %v1828_v45 = vld [vmem:[#allocation7 + $0x14c0] sm:$0xff] }
 0x28d   :  { %6269 = vmatprep.mubr.bf16.mxu0 %v14404_v38  ;;  %6930 = vmatprep.mubr.bf16.mxu1 %v14404_v38  ;;  %v11468_v33 = vcombine.low %v1796_v27, %v1800_v26  ;;  %v15811_v27 = vld [vmem:[#allocation24_spill] sm:$0xff] }
 0x28e   :  { %6313 = vmatpush1.bf16.msra.mxu0 %v11444_v6  ;;  %6971 = vmatpush1.bf16.msra.mxu1 %v11446_v40  ;;  %v1809_v6 = vld [vmem:[#allocation7 + $0x1428] sm:$0xff]  ;;  %v981_v40 = vshrl.u32 %v14137_v42, 16  ;;  %v1060_v26 = vrot.slane %v15811_v27, 1 }
 0x28f   :  { %6314 = vmatprep.subr.bf16.mxu0 %v11453_v22  ;;  %6972 = vmatprep.subr.bf16.mxu1 %v11455_v61  ;;  %v11470_v22 = vcombine.low %v1797_v30, %v1801_v39  ;;  %v11477_v61 = vcombine.high %v1804_v13, %v1808_v14  ;;  %v11479_v44 = vcombine.high %v1805_v46, %v1809_v6 }
 0x290   :  { %v14420_v28 = vor.u32 %v981_v40, %v965_v21  ;;  %v1061_v21 = vrot.slane %v13780_v53, 1  ;;  %v11476_v30 = vcombine.low %v1804_v13, %v1808_v14  ;;  %v11478_v39 = vcombine.low %v1805_v46, %v1809_v6 }
 0x291   :  { %v1072_v46 = vrot.slane %v13827_v48, 1 }
 0x292   :  { %6315 = vmatpush1.bf16.msra.mxu0 %v11452_v10  ;;  %6973 = vmatpush1.bf16.msra.mxu1 %v11454_v17  ;;  %15809 = vst [vmem:[#allocation60_spill] sm:$0xff] %v14420_v28  ;;  %v1812_v10 = vld [vmem:[#allocation7 + $0x1440] sm:$0xff]  ;;  %v1074_v17 = vrot.slane %v13835_v52, 1 }
 0x293   :  { %6316 = vmatprep.subr.bf16.mxu0 %v11461_v20  ;;  %6974 = vmatprep.subr.bf16.mxu1 %v11463_v23  ;;  %v1813_v20 = vld [vmem:[#allocation7 + $0x1448] sm:$0xff]  ;;  %v11484_v13 = vcombine.low %v1812_v10, %v1816_v47 }
 0x294   :  { %6270 = vmatmul.mubr.bf16.gmra.mrb[60].mxu0 %v14410_v4  ;;  %6931 = vmatmul.mubr.bf16.gmra.mrb[68].mxu1 %v14410_v4  ;;  %v1817_v23 = vld [vmem:[#allocation7 + $0x1468] sm:$0xff]  ;;  %v14439_v40 = vsel %vm1059_vm3, %v1064_v11, %v1074_v17  ;;  %v1082_v11 = vrot.slane %v13887_v41, 1 }
 0x295   :  { %6279 = vmatprep.mubr.bf16.mxu0 %v14412_v0  ;;  %6938 = vmatprep.mubr.bf16.mxu1 %v14412_v0  ;;  %15813 = vst [vmem:[#allocation62_spill] sm:$0xff] %v14439_v40  ;;  %v11486_v14 = vcombine.low %v1813_v20, %v1817_v23  ;;  %v1195_v0 = vld [vmem:[#allocation7 + $0xf8] sm:$0xff] }
 0x296   :  { %6317 = vmatpush1.bf16.msra.mxu0 %v11460_v1  ;;  %6975 = vmatpush1.bf16.msra.mxu1 %v11462_v25  ;;  %v14434_v1 = vsel %vm1059_vm3, %v1060_v26, %v1061_v21  ;;  %v11485_v25 = vcombine.high %v1812_v10, %v1816_v47  ;;  %v1832_v26 = vld [vmem:[#allocation7 + $0x14e0] sm:$0xff] }
 0x297   :  { %6318 = vmatprep.subr.bf16.mxu0 %v11469_v24  ;;  %6976 = vmatprep.subr.bf16.mxu1 %v11471_v54  ;;  %15812 = vst [vmem:[#allocation24_spill] sm:$0xff] %v14434_v1  ;;  %v11487_v24 = vcombine.high %v1813_v20, %v1817_v23  ;;  %v1820_v54 = vld [vmem:[#allocation7 + $0x1480] sm:$0xff]  ;;  %v11501_v10 = vcombine.high %v1828_v45, %v1832_v26 }
 0x298   :  { %v1836_v20 = vld [vmem:[#allocation7 + $0x1500] sm:$0xff]  ;;  %v14451_v23 = vsel %vm1059_vm3, %v1074_v17, %v1082_v11  ;;  %v1090_v17 = vrot.slane %v13939_v50, 1 }
 0x299   :  { %15815 = vst [vmem:[#allocation64_spill] sm:$0xff] %v14451_v23 }
 0x29a   :  { %6319 = vmatpush1.bf16.msra.mxu0 %v11468_v33  ;;  %6977 = vmatpush1.bf16.msra.mxu1 %v11470_v22  ;;  %v1824_v33 = vld [vmem:[#allocation7 + $0x14a0] sm:$0xff]  ;;  %v1821_v22 = vld [vmem:[#allocation7 + $0x1488] sm:$0xff] }
 0x29b   :  { %6409 = vmatprep.subr.bf16.mxu0 %v11477_v61  ;;  %7050 = vmatprep.subr.bf16.mxu1 %v11479_v44  ;;  %v1825_v61 = vld [vmem:[#allocation7 + $0x14a8] sm:$0xff]  ;;  %v11493_v6 = vcombine.high %v1820_v54, %v1824_v33 }
 0x29c   :  { %6280 = vmatmul.mubr.bf16.gmra.mrb[64].mxu0 %v14420_v28  ;;  %6939 = vmatmul.mubr.bf16.gmra.mrb[72].mxu1 %v14420_v28  ;;  %v11495_v44 = vcombine.high %v1821_v22, %v1825_v61  ;;  %v11492_v28 = vcombine.low %v1820_v54, %v1824_v33  ;;  %v1080_v33 = vrot.slane %v13879_v32, 1 }
 0x29d   :  { %6320 = vmatprep.mubr.bf16.mxu0 %v14426_v43  ;;  %6978 = vmatprep.mubr.bf16.mxu1 %v14426_v43  ;;  %v1833_v43 = vld [vmem:[#allocation7 + $0x14e8] sm:$0xff] }
 0x2a4   :  { %6321 = vmatmul.mubr.bf16.vlgmr.msra.gmra.mrb[32].mxu0 %v14434_v1  ;;  %6979 = vmatmul.mubr.bf16.vlgmr.msra.gmra.mrb[40].mxu1 %v14434_v1  ;;  %v1829_v1 = vld [vmem:[#allocation7 + $0x14c8] sm:$0xff] }
 0x2a5   :  { %6330 = vmatprep.mubr.bf16.mxu0 %v14439_v40  ;;  %6986 = vmatprep.mubr.bf16.mxu1 %v14439_v40  ;;  %v11494_v40 = vcombine.low %v1821_v22, %v1825_v61  ;;  %v11503_v47 = vcombine.high %v1829_v1, %v1833_v43  ;;  %v11502_v54 = vcombine.low %v1829_v1, %v1833_v43 }
 0x2a6   :  { %6410 = vmatpush1.bf16.msra.mxu0 %v11476_v30  ;;  %7051 = vmatpush1.bf16.msra.mxu1 %v11478_v39  ;;  %v14446_v30 = vsel %vm1059_vm3, %v1061_v21, %v1072_v46  ;;  %v1840_v39 = vld [vmem:[#allocation7 + $0x1520] sm:$0xff]  ;;  %v11500_v21 = vcombine.low %v1828_v45, %v1832_v26  ;;  %v14463_v45 = vsel %vm1059_vm3, %v1082_v11, %v1090_v17  ;;  %v1098_v11 = vrot.slane %v13991_v57, 1 }
 0x2a7   :  { %6411 = vmatprep.subr.bf16.mxu0 %v11485_v25  ;;  %7052 = vmatprep.subr.bf16.mxu1 %v11487_v24  ;;  %15814 = vst [vmem:[#allocation63_spill] sm:$0xff] %v14446_v30  ;;  %v1837_v25 = vld [vmem:[#allocation7 + $0x1508] sm:$0xff]  ;;  %v11509_v22 = vcombine.high %v1836_v20, %v1840_v39  ;;  %15817 = vst [vmem:[#allocation66_spill] sm:$0xff] %v14463_v45  ;;  %v1856_v26 = vld [vmem:[#allocation7 + $0x15a0] sm:$0xff] }
 0x2a8   :  { %v1841_v24 = vld [vmem:[#allocation7 + $0x1528] sm:$0xff] }
 0x2a9   :  { %v11511_v61 = vcombine.high %v1837_v25, %v1841_v24 }
 0x2aa   :  { %6412 = vmatpush1.bf16.msra.mxu0 %v11484_v13  ;;  %7053 = vmatpush1.bf16.msra.mxu1 %v11486_v14  ;;  %v1844_v13 = vld [vmem:[#allocation7 + $0x1540] sm:$0xff] }
 0x2ab   :  { %6413 = vmatprep.subr.bf16.mxu0 %v11493_v6  ;;  %7054 = vmatprep.subr.bf16.mxu1 %v11495_v44  ;;  %v1848_v14 = vld [vmem:[#allocation7 + $0x1560] sm:$0xff]  ;;  %v1845_v6 = vld [vmem:[#allocation7 + $0x1548] sm:$0xff] }
 0x2ac   :  { %6331 = vmatmul.mubr.bf16.gmra.mrb[36].mxu0 %v14446_v30  ;;  %6987 = vmatmul.mubr.bf16.gmra.mrb[44].mxu1 %v14446_v30  ;;  %v1849_v44 = vld [vmem:[#allocation7 + $0x1568] sm:$0xff]  ;;  %v11508_v30 = vcombine.low %v1836_v20, %v1840_v39  ;;  %v11517_v43 = vcombine.high %v1844_v13, %v1848_v14  ;;  %v1088_v39 = vrot.slane %v13931_v31, 1 }
 0x2ad   :  { %6340 = vmatprep.mubr.bf16.mxu0 %v14451_v23  ;;  %6994 = vmatprep.mubr.bf16.mxu1 %v14451_v23  ;;  %v11510_v23 = vcombine.low %v1837_v25, %v1841_v24  ;;  %v11519_v1 = vcombine.high %v1845_v6, %v1849_v44  ;;  %v11518_v20 = vcombine.low %v1845_v6, %v1849_v44  ;;  %v1872_v44 = vld [vmem:[#allocation7 + $0x1620] sm:$0xff] }
 0x2ae   :  { %6414 = vmatpush1.bf16.msra.mxu0 %v11492_v28  ;;  %7055 = vmatpush1.bf16.msra.mxu1 %v11494_v40  ;;  %v14458_v28 = vsel %vm1059_vm3, %v1072_v46, %v1080_v33  ;;  %v1852_v40 = vld [vmem:[#allocation7 + $0x1580] sm:$0xff]  ;;  %v11516_v46 = vcombine.low %v1844_v13, %v1848_v14  ;;  %v14475_v6 = vsel %vm1059_vm3, %v1090_v17, %v1098_v11  ;;  %v1106_v17 = vrot.slane %v14041_v12, 1 }
 0x2af   :  { %6415 = vmatprep.subr.bf16.mxu0 %v11501_v10  ;;  %7056 = vmatprep.subr.bf16.mxu1 %v11503_v47  ;;  %15816 = vst [vmem:[#allocation65_spill] sm:$0xff] %v14458_v28  ;;  %v1853_v10 = vld [vmem:[#allocation7 + $0x1588] sm:$0xff]  ;;  %v11525_v25 = vcombine.high %v1852_v40, %v1856_v26  ;;  %v1868_v14 = vld [vmem:[#allocation7 + $0x1600] sm:$0xff]  ;;  %15819 = vst [vmem:[#allocation68_spill] sm:$0xff] %v14475_v6 }
 0x2b0   :  { %v1857_v47 = vld [vmem:[#allocation7 + $0x15a8] sm:$0xff] }
 0x2b1   :  { %v11527_v24 = vcombine.high %v1853_v10, %v1857_v47 }
 0x2b2   :  { %6416 = vmatpush1.bf16.msra.mxu0 %v11500_v21  ;;  %7057 = vmatpush1.bf16.msra.mxu1 %v11502_v54  ;;  %v1860_v21 = vld [vmem:[#allocation7 + $0x15c0] sm:$0xff] }
 0x2b3   :  { %6417 = vmatprep.subr.bf16.mxu0 %v11509_v22  ;;  %7058 = vmatprep.subr.bf16.mxu1 %v11511_v61  ;;  %v1864_v54 = vld [vmem:[#allocation7 + $0x15e0] sm:$0xff]  ;;  %v1861_v22 = vld [vmem:[#allocation7 + $0x15c8] sm:$0xff] }
 0x2b4   :  { %6341 = vmatmul.mubr.bf16.gmra.mrb[40].mxu0 %v14458_v28  ;;  %6995 = vmatmul.mubr.bf16.gmra.mrb[48].mxu1 %v14458_v28  ;;  %v1865_v61 = vld [vmem:[#allocation7 + $0x15e8] sm:$0xff]  ;;  %v11524_v28 = vcombine.low %v1852_v40, %v1856_v26  ;;  %v1096_v26 = vrot.slane %v13983_v56, 1 }
 0x2b5   :  { %6350 = vmatprep.mubr.bf16.mxu0 %v14463_v45  ;;  %7002 = vmatprep.mubr.bf16.mxu1 %v14463_v45  ;;  %v11526_v45 = vcombine.low %v1853_v10, %v1857_v47  ;;  %v11535_v13 = vcombine.high %v1861_v22, %v1865_v61  ;;  %v11534_v40 = vcombine.low %v1861_v22, %v1865_v61  ;;  %v1888_v61 = vld [vmem:[#allocation7 + $0x16a0] sm:$0xff] }
 0x2b6   :  { %6418 = vmatpush1.bf16.msra.mxu0 %v11508_v30  ;;  %7059 = vmatpush1.bf16.msra.mxu1 %v11510_v23  ;;  %v14470_v30 = vsel %vm1059_vm3, %v1080_v33, %v1088_v39  ;;  %v11533_v23 = vcombine.high %v1860_v21, %v1864_v54  ;;  %v11532_v33 = vcombine.low %v1860_v21, %v1864_v54  ;;  %v1884_v54 = vld [vmem:[#allocation7 + $0x1680] sm:$0xff] }
 0x2b7   :  { %6419 = vmatprep.subr.bf16.mxu0 %v11517_v43  ;;  %7060 = vmatprep.subr.bf16.mxu1 %v11519_v1  ;;  %15818 = vst [vmem:[#allocation67_spill] sm:$0xff] %v14470_v30  ;;  %v1869_v43 = vld [vmem:[#allocation7 + $0x1608] sm:$0xff]  ;;  %v11541_v10 = vcombine.high %v1868_v14, %v1872_v44  ;;  %v14487_v22 = vsel %vm1059_vm3, %v1098_v11, %v1106_v17  ;;  %v1114_v11 = vrot.slane %v14079_v36, 1 }
 0x2b8   :  { %v1873_v1 = vld [vmem:[#allocation7 + $0x1628] sm:$0xff]  ;;  %15821 = vst [vmem:[#allocation70_spill] sm:$0xff] %v14487_v22 }
 0x2b9   :  { %v11543_v47 = vcombine.high %v1869_v43, %v1873_v1 }
 0x2ba   :  { %6420 = vmatpush1.bf16.msra.mxu0 %v11516_v46  ;;  %7061 = vmatpush1.bf16.msra.mxu1 %v11518_v20  ;;  %v1876_v46 = vld [vmem:[#allocation7 + $0x1640] sm:$0xff] }
 0x2bb   :  { %6421 = vmatprep.subr.bf16.mxu0 %v11525_v25  ;;  %7062 = vmatprep.subr.bf16.mxu1 %v11527_v24  ;;  %v1880_v20 = vld [vmem:[#allocation7 + $0x1660] sm:$0xff]  ;;  %v1877_v25 = vld [vmem:[#allocation7 + $0x1648] sm:$0xff] }
 0x2bc   :  { %6351 = vmatmul.mubr.bf16.gmra.mrb[44].mxu0 %v14470_v30  ;;  %7003 = vmatmul.mubr.bf16.gmra.mrb[52].mxu1 %v14470_v30  ;;  %v1881_v24 = vld [vmem:[#allocation7 + $0x1668] sm:$0xff]  ;;  %v11540_v30 = vcombine.low %v1868_v14, %v1872_v44  ;;  %v1104_v44 = vrot.slane %v14033_v8, 1 }
 0x2bd   :  { %6360 = vmatprep.mubr.bf16.mxu0 %v14475_v6  ;;  %7010 = vmatprep.mubr.bf16.mxu1 %v14475_v6  ;;  %v11542_v6 = vcombine.low %v1869_v43, %v1873_v1  ;;  %v11551_v21 = vcombine.high %v1877_v25, %v1881_v24  ;;  %v11550_v14 = vcombine.low %v1877_v25, %v1881_v24  ;;  %v1904_v24 = vld [vmem:[#allocation7 + $0x1720] sm:$0xff] }
 0x2be   :  { %6422 = vmatpush1.bf16.msra.mxu0 %v11524_v28  ;;  %7063 = vmatpush1.bf16.msra.mxu1 %v11526_v45  ;;  %v14482_v28 = vsel %vm1059_vm3, %v1088_v39, %v1096_v26  ;;  %v11549_v45 = vcombine.high %v1876_v46, %v1880_v20  ;;  %v11548_v39 = vcombine.low %v1876_v46, %v1880_v20  ;;  %v1900_v20 = vld [vmem:[#allocation7 + $0x1700] sm:$0xff] }
 0x2bf   :  { %6423 = vmatprep.subr.bf16.mxu0 %v11533_v23  ;;  %7064 = vmatprep.subr.bf16.mxu1 %v11535_v13  ;;  %15820 = vst [vmem:[#allocation69_spill] sm:$0xff] %v14482_v28  ;;  %v1885_v23 = vld [vmem:[#allocation7 + $0x1688] sm:$0xff]  ;;  %v11557_v43 = vcombine.high %v1884_v54, %v1888_v61  ;;  %v14499_v25 = vsel %vm1059_vm3, %v1106_v17, %v1114_v11  ;;  %v1912_v17 = vld [vmem:[#allocation7 + $0x1760] sm:$0xff] }
 0x2c0   :  { %v1889_v13 = vld [vmem:[#allocation7 + $0x16a8] sm:$0xff]  ;;  %15823 = vst [vmem:[#allocation72_spill] sm:$0xff] %v14499_v25 }
 0x2c1   :  { %v11559_v1 = vcombine.high %v1885_v23, %v1889_v13 }
 0x2c2   :  { %6424 = vmatpush1.bf16.msra.mxu0 %v11532_v33  ;;  %7065 = vmatpush1.bf16.msra.mxu1 %v11534_v40  ;;  %v1892_v33 = vld [vmem:[#allocation7 + $0x16c0] sm:$0xff] }
 0x2c3   :  { %6425 = vmatprep.subr.bf16.mxu0 %v11541_v10  ;;  %7066 = vmatprep.subr.bf16.mxu1 %v11543_v47  ;;  %v1896_v40 = vld [vmem:[#allocation7 + $0x16e0] sm:$0xff]  ;;  %v1893_v10 = vld [vmem:[#allocation7 + $0x16c8] sm:$0xff] }
 0x2c4   :  { %6361 = vmatmul.mubr.bf16.gmra.mrb[48].mxu0 %v14482_v28  ;;  %7011 = vmatmul.mubr.bf16.gmra.mrb[56].mxu1 %v14482_v28  ;;  %v1897_v47 = vld [vmem:[#allocation7 + $0x16e8] sm:$0xff]  ;;  %v11556_v28 = vcombine.low %v1884_v54, %v1888_v61  ;;  %v1112_v61 = vrot.slane %v14075_v62, 1 }
 0x2c5   :  { %6370 = vmatprep.mubr.bf16.mxu0 %v14487_v22  ;;  %7018 = vmatprep.mubr.bf16.mxu1 %v14487_v22  ;;  %v11558_v22 = vcombine.low %v1885_v23, %v1889_v13  ;;  %v11567_v46 = vcombine.high %v1893_v10, %v1897_v47  ;;  %v11566_v54 = vcombine.low %v1893_v10, %v1897_v47  ;;  %v1916_v10 = vld [vmem:[#allocation7 + $0x1780] sm:$0xff] }
 0x2c6   :  { %6426 = vmatpush1.bf16.msra.mxu0 %v11540_v30  ;;  %7067 = vmatpush1.bf16.msra.mxu1 %v11542_v6  ;;  %v14494_v30 = vsel %vm1059_vm3, %v1096_v26, %v1104_v44  ;;  %v11565_v6 = vcombine.high %v1892_v33, %v1896_v40  ;;  %v11564_v26 = vcombine.low %v1892_v33, %v1896_v40 }
 0x2c7   :  { %6427 = vmatprep.subr.bf16.mxu0 %v11549_v45  ;;  %7068 = vmatprep.subr.bf16.mxu1 %v11551_v21  ;;  %15822 = vst [vmem:[#allocation71_spill] sm:$0xff] %v14494_v30  ;;  %v1901_v45 = vld [vmem:[#allocation7 + $0x1708] sm:$0xff]  ;;  %v11573_v23 = vcombine.high %v1900_v20, %v1904_v24 }
 0x2c8   :  { %v1905_v21 = vld [vmem:[#allocation7 + $0x1728] sm:$0xff] }
 0x2c9   :  { %v11575_v13 = vcombine.high %v1901_v45, %v1905_v21 }
 0x2ca   :  { %6428 = vmatpush1.bf16.msra.mxu0 %v11548_v39  ;;  %7069 = vmatpush1.bf16.msra.mxu1 %v11550_v14  ;;  %v1908_v39 = vld [vmem:[#allocation7 + $0x1740] sm:$0xff]  ;;  %v1909_v14 = vld [vmem:[#allocation7 + $0x1748] sm:$0xff] }
 0x2cb   :  { %6429 = vmatprep.subr.bf16.mxu0 %v11557_v43  ;;  %7070 = vmatprep.subr.bf16.mxu1 %v11559_v1  ;;  %v1913_v43 = vld [vmem:[#allocation7 + $0x1768] sm:$0xff]  ;;  %v14505_v1 = vrot.slane %v13737_v18, 1  ;;  %v11581_v33 = vcombine.high %v1908_v39, %v1912_v17 }
 0x2cc   :  { %6371 = vmatmul.mubr.bf16.gmra.mrb[52].mxu0 %v14494_v30  ;;  %7019 = vmatmul.mubr.bf16.gmra.mrb[60].mxu1 %v14494_v30  ;;  %v11583_v40 = vcombine.high %v1909_v14, %v1913_v43 }
 0x2cd   :  { %6380 = vmatprep.mubr.bf16.mxu0 %v14499_v25  ;;  %7026 = vmatprep.mubr.bf16.mxu1 %v14499_v25  ;;  %15824 = vst [vmem:[#allocation73_spill] sm:$0xff] %v14505_v1  ;;  %v11572_v25 = vcombine.low %v1900_v20, %v1904_v24  ;;  %v14514_v47 = vsel %vm1059_vm3, %v1114_v11, %v14505_v1  ;;  %v1921_v20 = vld [vmem:[#allocation7 + $0x17a8] sm:$0xff]  ;;  %v1924_v11 = vld [vmem:[#allocation7 + $0x17c0] sm:$0xff] }
 0x2ce   :  { %6430 = vmatpush1.bf16.msra.mxu0 %v11556_v28  ;;  %7071 = vmatpush1.bf16.msra.mxu1 %v11558_v22  ;;  %v11574_v28 = vcombine.low %v1901_v45, %v1905_v21  ;;  %v14508_v22 = vsel %vm1059_vm3, %v1104_v44, %v1112_v61  ;;  %15826 = vst [vmem:[#allocation75_spill] sm:$0xff] %v14514_v47  ;;  %v14519_v45 = vrot.slane %v13733_v15, 1 }
 0x2cf   :  { %6431 = vmatprep.subr.bf16.mxu0 %v11565_v6  ;;  %7072 = vmatprep.subr.bf16.mxu1 %v11567_v46  ;;  %15825 = vst [vmem:[#allocation74_spill] sm:$0xff] %v14508_v22  ;;  %v1920_v6 = vld [vmem:[#allocation7 + $0x17a0] sm:$0xff]  ;;  %v1917_v46 = vld [vmem:[#allocation7 + $0x1788] sm:$0xff]  ;;  %v11580_v44 = vcombine.low %v1908_v39, %v1912_v17  ;;  %v11582_v24 = vcombine.low %v1909_v14, %v1913_v43  ;;  %v1166_v14 = vld [vmem:[#allocation7 + $0x10] sm:$0xff] }
 0x2d0   :  { %15827 = vst [vmem:[#allocation76_spill] sm:$0xff] %v14519_v45  ;;  %v11589_v21 = vcombine.high %v1916_v10, %v1920_v6  ;;  %v11590_v30 = vcombine.low %v1917_v46, %v1921_v20  ;;  %v1170_v43 = vld [vmem:[#allocation7 + $0x30] sm:$0xff] }
 0x2d2   :  { %6432 = vmatpush1.bf16.msra.mxu0 %v11564_v26  ;;  %7073 = vmatpush1.bf16.msra.mxu1 %v11566_v54  ;;  %v11591_v26 = vcombine.high %v1917_v46, %v1921_v20  ;;  %v1928_v54 = vld [vmem:[#allocation7 + $0x17e0] sm:$0xff]  ;;  %v1069_v46 = vrot.slane %v13839_v37, 1  ;;  %v1070_v20 = vrot.slane %v13891_v34, 1 }
 0x2d3   :  { %6433 = vmatprep.subr.bf16.mxu0 %v11573_v23  ;;  %7074 = vmatprep.subr.bf16.mxu1 %v11575_v13  ;;  %v1925_v23 = vld [vmem:[#allocation7 + $0x17c8] sm:$0xff]  ;;  %v11597_v39 = vcombine.high %v1924_v11, %v1928_v54 }
 0x2d4   :  { %6381 = vmatmul.mubr.bf16.gmra.mrb[56].mxu0 %v14508_v22  ;;  %7027 = vmatmul.mubr.bf16.gmra.mrb[64].mxu1 %v14508_v22  ;;  %v1929_v13 = vld [vmem:[#allocation7 + $0x17e8] sm:$0xff]  ;;  %v11588_v22 = vcombine.low %v1916_v10, %v1920_v6  ;;  %v10841_v10 = vcombine.high %v1166_v14, %v1170_v43 }
 0x2d5   :  { %6390 = vmatprep.mubr.bf16.mxu0 %v14514_v47  ;;  %7034 = vmatprep.mubr.bf16.mxu1 %v14514_v47  ;;  %v11599_v17 = vcombine.high %v1925_v23, %v1929_v13  ;;  %v1191_v47 = vld [vmem:[#allocation7 + $0xd8] sm:$0xff] }
 0x2d6   :  { %6434 = vmatpush1.bf16.msra.mxu0 %v11572_v25  ;;  %7075 = vmatpush1.bf16.msra.mxu1 %v11574_v28  ;;  %v14523_v25 = vsel %vm1059_vm3, %v1112_v61, %v14519_v45  ;;  %v1167_v28 = vld [vmem:[#allocation7 + $0x18] sm:$0xff]  ;;  %v11596_v61 = vcombine.low %v1924_v11, %v1928_v54  ;;  %v1178_v54 = vld [vmem:[#allocation7 + $0x70] sm:$0xff] }
 0x2d7   :  { %6435 = vmatprep.subr.bf16.mxu0 %v11581_v33  ;;  %7076 = vmatprep.subr.bf16.mxu1 %v11583_v40  ;;  %15828 = vst [vmem:[#allocation77_spill] sm:$0xff] %v14523_v25  ;;  %v1171_v33 = vld [vmem:[#allocation7 + $0x38] sm:$0xff]  ;;  %v11598_v40 = vcombine.low %v1925_v23, %v1929_v13 }
 0x2d8   :  { %v10843_v6 = vcombine.high %v1167_v28, %v1171_v33  ;;  %v1175_v23 = vld [vmem:[#allocation7 + $0x58] sm:$0xff] }
 0x2d9   :  { %v1179_v13 = vld [vmem:[#allocation7 + $0x78] sm:$0xff] }
 0x2da   :  { %6436 = vmatpush1.bf16.msra.mxu0 %v11580_v44  ;;  %7077 = vmatpush1.bf16.msra.mxu1 %v11582_v24  ;;  %v15830_v44 = vld [vmem:[#allocation26_spill] sm:$0xff] }
 0x2db   :  { %6437 = vmatprep.subr.bf16.mxu0 %v11589_v21  ;;  %7078 = vmatprep.subr.bf16.mxu1 %v11591_v26  ;;  %v1067_v24 = vrot.slane %v15830_v44, 1  ;;  %v1174_v21 = vld [vmem:[#allocation7 + $0x50] sm:$0xff] }
 0x2dc   :  { %6391 = vmatmul.mubr.bf16.gmra.mrb[60].mxu0 %v14523_v25  ;;  %7035 = vmatmul.mubr.bf16.gmra.mrb[68].mxu1 %v14523_v25  ;;  %v15831_v26 = vld [vmem:[#allocation27_spill] sm:$0xff] }
 0x2dd   :  { %6400 = vmatprep.mubr.bf16.mxu0 %v14505_v1  ;;  %7042 = vmatprep.mubr.bf16.mxu1 %v14505_v1  ;;  %v1078_v11 = vrot.slane %v15831_v26, 1  ;;  %v1187_v1 = vld [vmem:[#allocation7 + $0xb8] sm:$0xff]  ;;  %v1194_v25 = vld [vmem:[#allocation7 + $0xf0] sm:$0xff] }
 0x2de   :  { %6438 = vmatpush1.bf16.msra.mxu0 %v11588_v22  ;;  %7079 = vmatpush1.bf16.msra.mxu1 %v11590_v30  ;;  %v14534_v30 = vsel %vm1059_vm3, %v1069_v46, %v1070_v20  ;;  %v1066_v22 = vrot.slane %v15792_v3, 1 }
 0x2df   :  { %6439 = vmatprep.subr.bf16.mxu0 %v11597_v39  ;;  %7080 = vmatprep.subr.bf16.mxu1 %v11599_v17  ;;  %15829 = vst [vmem:[#allocation78_spill] sm:$0xff] %v14534_v30  ;;  %v10840_v39 = vcombine.low %v1166_v14, %v1170_v43  ;;  %v10842_v17 = vcombine.low %v1167_v28, %v1171_v33  ;;  %v1076_v28 = vrot.slane %v13937_v49, 1 }
 0x2e0   :  { %v14547_v46 = vsel %vm1059_vm3, %v1070_v20, %v1078_v11  ;;  %v10848_v14 = vcombine.low %v1174_v21, %v1178_v54  ;;  %v10850_v43 = vcombine.low %v1175_v23, %v1179_v13  ;;  %v1086_v20 = vrot.slane %v13995_v63, 1 }
 0x2e1   :  { %15833 = vst [vmem:[#allocation27_spill] sm:$0xff] %v14547_v46 }
 0x2e2   :  { %6440 = vmatpush1.bf16.msra.mxu0 %v11596_v61  ;;  %7081 = vmatpush1.bf16.msra.mxu1 %v11598_v40  ;;  %v14542_v61 = vsel %vm1059_vm3, %v1066_v22, %v1067_v24  ;;  %v10849_v40 = vcombine.high %v1174_v21, %v1178_v54  ;;  %v10867_v54 = vcombine.high %v1191_v47, %v1195_v0 }
 0x2e3   :  { %7154 = vmatprep.subr.bf16.mxu0 %v10841_v10  ;;  %7880 = vmatprep.subr.bf16.mxu1 %v10843_v6  ;;  %15832 = vst [vmem:[#allocation26_spill] sm:$0xff] %v14542_v61  ;;  %v10851_v10 = vcombine.high %v1175_v23, %v1179_v13  ;;  %v1182_v6 = vld [vmem:[#allocation7 + $0x90] sm:$0xff]  ;;  %v14559_v13 = vsel %vm1059_vm3, %v1078_v11, %v1086_v20  ;;  %v1094_v11 = vrot.slane %v14045_v19, 1 }
 0x2e4   :  { %6401 = vmatmul.mubr.bf16.gmra.mrb[64].mxu0 %v14519_v45  ;;  %7043 = vmatmul.mubr.bf16.gmra.mrb[72].mxu1 %v14519_v45  ;;  %v1183_v45 = vld [vmem:[#allocation7 + $0x98] sm:$0xff]  ;;  %v1198_v23 = vld [vmem:[#allocation7 + $0x110] sm:$0xff]  ;;  %15835 = vst [vmem:[#allocation80_spill] sm:$0xff] %v14559_v13 }
 0x2e5   :  { %6441 = vmatprep.mubr.bf16.mxu0 %v14534_v30  ;;  %7082 = vmatprep.mubr.bf16.mxu1 %v14534_v30  ;;  %v1186_v30 = vld [vmem:[#allocation7 + $0xb0] sm:$0xff]  ;;  %v10859_v22 = vcombine.high %v1183_v45, %v1187_v1 }
 0x2e6   :  { %v10857_v33 = vcombine.high %v1182_v6, %v1186_v30  ;;  %v10856_v4 = vcombine.low %v1182_v6, %v1186_v30  ;;  %v1084_v30 = vrot.slane %v13989_v60, 1 }
 0x2ec   :  { %6442 = vmatmul.mubr.bf16.vlgmr.msra.gmra.mrb[32].mxu0 %v14542_v61  ;;  %7083 = vmatmul.mubr.bf16.vlgmr.msra.gmra.mrb[40].mxu1 %v14542_v61  ;;  %v1190_v61 = vld [vmem:[#allocation7 + $0xd0] sm:$0xff] }
 0x2ed   :  { %6451 = vmatprep.mubr.bf16.mxu0 %v14547_v46  ;;  %7090 = vmatprep.mubr.bf16.mxu1 %v14547_v46  ;;  %v10858_v46 = vcombine.low %v1183_v45, %v1187_v1  ;;  %v10865_v21 = vcombine.high %v1190_v61, %v1194_v25  ;;  %v10864_v1 = vcombine.low %v1190_v61, %v1194_v25  ;;  %v1214_v25 = vld [vmem:[#allocation7 + $0x190] sm:$0xff] }
 0x2ee   :  { %7155 = vmatpush1.bf16.msra.mxu0 %v10840_v39  ;;  %7881 = vmatpush1.bf16.msra.mxu1 %v10842_v17  ;;  %v14554_v39 = vsel %vm1059_vm3, %v1067_v24, %v1076_v28  ;;  %v1202_v17 = vld [vmem:[#allocation7 + $0x130] sm:$0xff]  ;;  %v10866_v45 = vcombine.low %v1191_v47, %v1195_v0  ;;  %v14571_v61 = vsel %vm1059_vm3, %v1086_v20, %v1094_v11  ;;  %v1102_v20 = vrot.slane %v14081_v7, 1 }
 0x2ef   :  { %7156 = vmatprep.subr.bf16.mxu0 %v10849_v40  ;;  %7882 = vmatprep.subr.bf16.mxu1 %v10851_v10  ;;  %15834 = vst [vmem:[#allocation79_spill] sm:$0xff] %v14554_v39  ;;  %v1199_v40 = vld [vmem:[#allocation7 + $0x118] sm:$0xff]  ;;  %v10873_v24 = vcombine.high %v1198_v23, %v1202_v17  ;;  %15837 = vst [vmem:[#allocation82_spill] sm:$0xff] %v14571_v61 }
 0x2f0   :  { %v1203_v10 = vld [vmem:[#allocation7 + $0x138] sm:$0xff] }
 0x2f1   :  { %v10875_v6 = vcombine.high %v1199_v40, %v1203_v10 }
 0x2f2   :  { %7157 = vmatpush1.bf16.msra.mxu0 %v10848_v14  ;;  %7883 = vmatpush1.bf16.msra.mxu1 %v10850_v43  ;;  %v1206_v14 = vld [vmem:[#allocation7 + $0x150] sm:$0xff] }
 0x2f3   :  { %7158 = vmatprep.subr.bf16.mxu0 %v10857_v33  ;;  %7884 = vmatprep.subr.bf16.mxu1 %v10859_v22  ;;  %v1210_v43 = vld [vmem:[#allocation7 + $0x170] sm:$0xff]  ;;  %v1207_v33 = vld [vmem:[#allocation7 + $0x158] sm:$0xff] }
 0x2f4   :  { %6452 = vmatmul.mubr.bf16.gmra.mrb[36].mxu0 %v14554_v39  ;;  %7091 = vmatmul.mubr.bf16.gmra.mrb[44].mxu1 %v14554_v39  ;;  %v1211_v22 = vld [vmem:[#allocation7 + $0x178] sm:$0xff]  ;;  %v10872_v39 = vcombine.low %v1198_v23, %v1202_v17  ;;  %v10881_v0 = vcombine.high %v1206_v14, %v1210_v43  ;;  %v1092_v17 = vrot.slane %v14039_v58, 1 }
 0x2f5   :  { %6461 = vmatprep.mubr.bf16.mxu0 %v14559_v13  ;;  %7098 = vmatprep.mubr.bf16.mxu1 %v14559_v13  ;;  %v10874_v13 = vcombine.low %v1199_v40, %v1203_v10  ;;  %v10883_v47 = vcombine.high %v1207_v33, %v1211_v22  ;;  %v10882_v23 = vcombine.low %v1207_v33, %v1211_v22  ;;  %v1234_v22 = vld [vmem:[#allocation7 + $0x230] sm:$0xff] }
 0x2f6   :  { %7159 = vmatpush1.bf16.msra.mxu0 %v10856_v4  ;;  %7885 = vmatpush1.bf16.msra.mxu1 %v10858_v46  ;;  %v14566_v4 = vsel %vm1059_vm3, %v1076_v28, %v1084_v30  ;;  %v1218_v46 = vld [vmem:[#allocation7 + $0x1b0] sm:$0xff]  ;;  %v10880_v28 = vcombine.low %v1206_v14, %v1210_v43  ;;  %v14583_v33 = vsel %vm1059_vm3, %v1094_v11, %v1102_v20  ;;  %v1110_v11 = vrot.slane %v14111_v59, 1 }
 0x2f7   :  { %7160 = vmatprep.subr.bf16.mxu0 %v10865_v21  ;;  %7886 = vmatprep.subr.bf16.mxu1 %v10867_v54  ;;  %15836 = vst [vmem:[#allocation81_spill] sm:$0xff] %v14566_v4  ;;  %v1215_v21 = vld [vmem:[#allocation7 + $0x198] sm:$0xff]  ;;  %v10889_v40 = vcombine.high %v1214_v25, %v1218_v46  ;;  %v1230_v43 = vld [vmem:[#allocation7 + $0x210] sm:$0xff]  ;;  %15839 = vst [vmem:[#allocation84_spill] sm:$0xff] %v14583_v33 }
 0x2f8   :  { %v1219_v54 = vld [vmem:[#allocation7 + $0x1b8] sm:$0xff] }
 0x2f9   :  { %v10891_v10 = vcombine.high %v1215_v21, %v1219_v54 }
 0x2fa   :  { %7161 = vmatpush1.bf16.msra.mxu0 %v10864_v1  ;;  %7887 = vmatpush1.bf16.msra.mxu1 %v10866_v45  ;;  %v1222_v1 = vld [vmem:[#allocation7 + $0x1d0] sm:$0xff] }
 0x2fb   :  { %7162 = vmatprep.subr.bf16.mxu0 %v10873_v24  ;;  %7888 = vmatprep.subr.bf16.mxu1 %v10875_v6  ;;  %v1226_v45 = vld [vmem:[#allocation7 + $0x1f0] sm:$0xff]  ;;  %v1223_v24 = vld [vmem:[#allocation7 + $0x1d8] sm:$0xff] }
 0x2fc   :  { %6462 = vmatmul.mubr.bf16.gmra.mrb[40].mxu0 %v14566_v4  ;;  %7099 = vmatmul.mubr.bf16.gmra.mrb[48].mxu1 %v14566_v4  ;;  %v1227_v6 = vld [vmem:[#allocation7 + $0x1f8] sm:$0xff]  ;;  %v10888_v4 = vcombine.low %v1214_v25, %v1218_v46  ;;  %v1100_v46 = vrot.slane %v14077_v29, 1 }
 0x2fd   :  { %6471 = vmatprep.mubr.bf16.mxu0 %v14571_v61  ;;  %7106 = vmatprep.mubr.bf16.mxu1 %v14571_v61  ;;  %v10890_v61 = vcombine.low %v1215_v21, %v1219_v54  ;;  %v10899_v14 = vcombine.high %v1223_v24, %v1227_v6  ;;  %v10898_v25 = vcombine.low %v1223_v24, %v1227_v6  ;;  %v1250_v6 = vld [vmem:[#allocation7 + $0x2b0] sm:$0xff] }
 0x2fe   :  { %7163 = vmatpush1.bf16.msra.mxu0 %v10872_v39  ;;  %7889 = vmatpush1.bf16.msra.mxu1 %v10874_v13  ;;  %v14578_v39 = vsel %vm1059_vm3, %v1084_v30, %v1092_v17  ;;  %v10897_v13 = vcombine.high %v1222_v1, %v1226_v45  ;;  %v10896_v30 = vcombine.low %v1222_v1, %v1226_v45  ;;  %v1246_v45 = vld [vmem:[#allocation7 + $0x290] sm:$0xff] }
 0x2ff   :  { %7164 = vmatprep.subr.bf16.mxu0 %v10881_v0  ;;  %7890 = vmatprep.subr.bf16.mxu1 %v10883_v47  ;;  %15838 = vst [vmem:[#allocation83_spill] sm:$0xff] %v14578_v39  ;;  %v1231_v0 = vld [vmem:[#allocation7 + $0x218] sm:$0xff]  ;;  %v10905_v21 = vcombine.high %v1230_v43, %v1234_v22  ;;  %v14595_v24 = vsel %vm1059_vm3, %v1102_v20, %v1110_v11  ;;  %v1118_v20 = vrot.slane %v14123_v9, 1 }
 0x300   :  { %v1235_v47 = vld [vmem:[#allocation7 + $0x238] sm:$0xff]  ;;  %15841 = vst [vmem:[#allocation86_spill] sm:$0xff] %v14595_v24 }
 0x301   :  { %v10907_v54 = vcombine.high %v1231_v0, %v1235_v47 }
 0x302   :  { %7165 = vmatpush1.bf16.msra.mxu0 %v10880_v28  ;;  %7891 = vmatpush1.bf16.msra.mxu1 %v10882_v23  ;;  %v1238_v28 = vld [vmem:[#allocation7 + $0x250] sm:$0xff] }
 0x303   :  { %7166 = vmatprep.subr.bf16.mxu0 %v10889_v40  ;;  %7892 = vmatprep.subr.bf16.mxu1 %v10891_v10  ;;  %v1242_v23 = vld [vmem:[#allocation7 + $0x270] sm:$0xff]  ;;  %v1239_v40 = vld [vmem:[#allocation7 + $0x258] sm:$0xff] }
 0x304   :  { %6472 = vmatmul.mubr.bf16.gmra.mrb[44].mxu0 %v14578_v39  ;;  %7107 = vmatmul.mubr.bf16.gmra.mrb[52].mxu1 %v14578_v39  ;;  %v1243_v10 = vld [vmem:[#allocation7 + $0x278] sm:$0xff]  ;;  %v10904_v39 = vcombine.low %v1230_v43, %v1234_v22  ;;  %v1108_v22 = vrot.slane %v14109_v35, 1 }
 0x305   :  { %6481 = vmatprep.mubr.bf16.mxu0 %v14583_v33  ;;  %7114 = vmatprep.mubr.bf16.mxu1 %v14583_v33  ;;  %v10906_v33 = vcombine.low %v1231_v0, %v1235_v47  ;;  %v10915_v1 = vcombine.high %v1239_v40, %v1243_v10  ;;  %v10914_v43 = vcombine.low %v1239_v40, %v1243_v10  ;;  %v1266_v10 = vld [vmem:[#allocation7 + $0x330] sm:$0xff] }
 0x306   :  { %7167 = vmatpush1.bf16.msra.mxu0 %v10888_v4  ;;  %7893 = vmatpush1.bf16.msra.mxu1 %v10890_v61  ;;  %v14590_v4 = vsel %vm1059_vm3, %v1092_v17, %v1100_v46  ;;  %v10913_v61 = vcombine.high %v1238_v28, %v1242_v23  ;;  %v10912_v17 = vcombine.low %v1238_v28, %v1242_v23  ;;  %v1262_v23 = vld [vmem:[#allocation7 + $0x310] sm:$0xff] }
 0x307   :  { %7168 = vmatprep.subr.bf16.mxu0 %v10897_v13  ;;  %7894 = vmatprep.subr.bf16.mxu1 %v10899_v14  ;;  %15840 = vst [vmem:[#allocation85_spill] sm:$0xff] %v14590_v4  ;;  %v1247_v13 = vld [vmem:[#allocation7 + $0x298] sm:$0xff]  ;;  %v10921_v0 = vcombine.high %v1246_v45, %v1250_v6  ;;  %v14607_v40 = vsel %vm1059_vm3, %v1110_v11, %v1118_v20  ;;  %v14613_v11 = vrot.slane %v14139_v51, 1 }
 0x308   :  { %v1251_v14 = vld [vmem:[#allocation7 + $0x2b8] sm:$0xff]  ;;  %15843 = vst [vmem:[#allocation88_spill] sm:$0xff] %v14607_v40 }
 0x309   :  { %v10923_v47 = vcombine.high %v1247_v13, %v1251_v14 }
 0x30a   :  { %7169 = vmatpush1.bf16.msra.mxu0 %v10896_v30  ;;  %7895 = vmatpush1.bf16.msra.mxu1 %v10898_v25  ;;  %v1254_v30 = vld [vmem:[#allocation7 + $0x2d0] sm:$0xff] }
 0x30b   :  { %7170 = vmatprep.subr.bf16.mxu0 %v10905_v21  ;;  %7896 = vmatprep.subr.bf16.mxu1 %v10907_v54  ;;  %v1258_v25 = vld [vmem:[#allocation7 + $0x2f0] sm:$0xff]  ;;  %v1255_v21 = vld [vmem:[#allocation7 + $0x2d8] sm:$0xff] }
 0x30c   :  { %6482 = vmatmul.mubr.bf16.gmra.mrb[48].mxu0 %v14590_v4  ;;  %7115 = vmatmul.mubr.bf16.gmra.mrb[56].mxu1 %v14590_v4  ;;  %v1259_v54 = vld [vmem:[#allocation7 + $0x2f8] sm:$0xff]  ;;  %v10920_v4 = vcombine.low %v1246_v45, %v1250_v6  ;;  %v1116_v6 = vrot.slane %v14121_v2, 1 }
 0x30d   :  { %6491 = vmatprep.mubr.bf16.mxu0 %v14595_v24  ;;  %7122 = vmatprep.mubr.bf16.mxu1 %v14595_v24  ;;  %v10922_v24 = vcombine.low %v1247_v13, %v1251_v14  ;;  %v10931_v28 = vcombine.high %v1255_v21, %v1259_v54  ;;  %v10930_v45 = vcombine.low %v1255_v21, %v1259_v54  ;;  %v1278_v21 = vld [vmem:[#allocation7 + $0x390] sm:$0xff] }
 0x30e   :  { %7171 = vmatpush1.bf16.msra.mxu0 %v10904_v39  ;;  %7897 = vmatpush1.bf16.msra.mxu1 %v10906_v33  ;;  %v14602_v39 = vsel %vm1059_vm3, %v1100_v46, %v1108_v22  ;;  %v10929_v33 = vcombine.high %v1254_v30, %v1258_v25  ;;  %v10928_v46 = vcombine.low %v1254_v30, %v1258_v25 }
 0x30f   :  { %7172 = vmatprep.subr.bf16.mxu0 %v10913_v61  ;;  %7898 = vmatprep.subr.bf16.mxu1 %v10915_v1  ;;  %15842 = vst [vmem:[#allocation87_spill] sm:$0xff] %v14602_v39  ;;  %v1263_v61 = vld [vmem:[#allocation7 + $0x318] sm:$0xff]  ;;  %v10937_v13 = vcombine.high %v1262_v23, %v1266_v10  ;;  %v14622_v54 = vsel %vm1059_vm3, %v1118_v20, %v14613_v11  ;;  %v1286_v20 = vld [vmem:[#allocation7 + $0x3d0] sm:$0xff] }
 0x310   :  { %v1267_v1 = vld [vmem:[#allocation7 + $0x338] sm:$0xff] }
 0x311   :  { %v10939_v14 = vcombine.high %v1263_v61, %v1267_v1 }
 0x312   :  { %7173 = vmatpush1.bf16.msra.mxu0 %v10912_v17  ;;  %7899 = vmatpush1.bf16.msra.mxu1 %v10914_v43  ;;  %v1270_v17 = vld [vmem:[#allocation7 + $0x350] sm:$0xff] }
 0x313   :  { %7174 = vmatprep.subr.bf16.mxu0 %v10921_v0  ;;  %7900 = vmatprep.subr.bf16.mxu1 %v10923_v47  ;;  %v1274_v43 = vld [vmem:[#allocation7 + $0x370] sm:$0xff]  ;;  %v1271_v0 = vld [vmem:[#allocation7 + $0x358] sm:$0xff] }
 0x314   :  { %6492 = vmatmul.mubr.bf16.gmra.mrb[52].mxu0 %v14602_v39  ;;  %7123 = vmatmul.mubr.bf16.gmra.mrb[60].mxu1 %v14602_v39  ;;  %v1275_v47 = vld [vmem:[#allocation7 + $0x378] sm:$0xff]  ;;  %v10945_v30 = vcombine.high %v1270_v17, %v1274_v43 }
 0x315   :  { %6501 = vmatprep.mubr.bf16.mxu0 %v14607_v40  ;;  %7130 = vmatprep.mubr.bf16.mxu1 %v14607_v40  ;;  %v10936_v40 = vcombine.low %v1262_v23, %v1266_v10  ;;  %v10947_v25 = vcombine.high %v1271_v0, %v1275_v47  ;;  %v1283_v23 = vld [vmem:[#allocation7 + $0x3b8] sm:$0xff]  ;;  %v10946_v10 = vcombine.low %v1271_v0, %v1275_v47  ;;  %v1294_v0 = vld [vmem:[#allocation7 + $0x410] sm:$0xff] }
 0x316   :  { %7175 = vmatpush1.bf16.msra.mxu0 %v10920_v4  ;;  %7901 = vmatpush1.bf16.msra.mxu1 %v10922_v24  ;;  %v10938_v4 = vcombine.low %v1263_v61, %v1267_v1  ;;  %v14616_v24 = vsel %vm1059_vm3, %v1108_v22, %v1116_v6  ;;  %v10944_v22 = vcombine.low %v1270_v17, %v1274_v43  ;;  %v14627_v61 = vrot.slane %v14137_v42, 1  ;;  %v1298_v47 = vld [vmem:[#allocation7 + $0x430] sm:$0xff] }
 0x317   :  { %7176 = vmatprep.subr.bf16.mxu0 %v10929_v33  ;;  %7902 = vmatprep.subr.bf16.mxu1 %v10931_v28  ;;  %15844 = vst [vmem:[#allocation89_spill] sm:$0xff] %v14616_v24  ;;  %v1282_v33 = vld [vmem:[#allocation7 + $0x3b0] sm:$0xff]  ;;  %v1279_v28 = vld [vmem:[#allocation7 + $0x398] sm:$0xff] }
 0x318   :  { %v10953_v1 = vcombine.high %v1278_v21, %v1282_v33  ;;  %v10954_v39 = vcombine.low %v1279_v28, %v1283_v23 }
 0x31a   :  { %7177 = vmatpush1.bf16.msra.mxu0 %v10928_v46  ;;  %7903 = vmatpush1.bf16.msra.mxu1 %v10930_v45  ;;  %v10955_v46 = vcombine.high %v1279_v28, %v1283_v23  ;;  %v1290_v45 = vld [vmem:[#allocation7 + $0x3f0] sm:$0xff]  ;;  %v1303_v28 = vld [vmem:[#allocation7 + $0x458] sm:$0xff] }
 0x31b   :  { %7178 = vmatprep.subr.bf16.mxu0 %v10937_v13  ;;  %7904 = vmatprep.subr.bf16.mxu1 %v10939_v14  ;;  %v1287_v13 = vld [vmem:[#allocation7 + $0x3d8] sm:$0xff]  ;;  %v10961_v17 = vcombine.high %v1286_v20, %v1290_v45 }
 0x31c   :  { %6502 = vmatmul.mubr.bf16.gmra.mrb[56].mxu0 %v14616_v24  ;;  %7131 = vmatmul.mubr.bf16.gmra.mrb[64].mxu1 %v14616_v24  ;;  %v1291_v14 = vld [vmem:[#allocation7 + $0x3f8] sm:$0xff]  ;;  %v10952_v24 = vcombine.low %v1278_v21, %v1282_v33  ;;  %v10969_v21 = vcombine.high %v1294_v0, %v1298_v47 }
 0x31d   :  { %6511 = vmatprep.mubr.bf16.mxu0 %v14622_v54  ;;  %7138 = vmatprep.mubr.bf16.mxu1 %v14622_v54  ;;  %v10963_v43 = vcombine.high %v1287_v13, %v1291_v14  ;;  %v1307_v23 = vld [vmem:[#allocation7 + $0x478] sm:$0xff] }
 0x31e   :  { %7179 = vmatpush1.bf16.msra.mxu0 %v10936_v40  ;;  %7905 = vmatpush1.bf16.msra.mxu1 %v10938_v4  ;;  %v14631_v40 = vsel %vm1059_vm3, %v1116_v6, %v14627_v61  ;;  %v1295_v4 = vld [vmem:[#allocation7 + $0x418] sm:$0xff]  ;;  %v10960_v6 = vcombine.low %v1286_v20, %v1290_v45  ;;  %v1310_v20 = vld [vmem:[#allocation7 + $0x490] sm:$0xff] }
 0x31f   :  { %7180 = vmatprep.subr.bf16.mxu0 %v10945_v30  ;;  %7906 = vmatprep.subr.bf16.mxu1 %v10947_v25  ;;  %v1299_v30 = vld [vmem:[#allocation7 + $0x438] sm:$0xff]  ;;  %v10962_v25 = vcombine.low %v1287_v13, %v1291_v14  ;;  %v1314_v45 = vld [vmem:[#allocation7 + $0x4b0] sm:$0xff] }
 0x320   :  { %v10971_v33 = vcombine.high %v1295_v4, %v1299_v30  ;;  %v1311_v13 = vld [vmem:[#allocation7 + $0x498] sm:$0xff] }
 0x321   :  { %v1315_v14 = vld [vmem:[#allocation7 + $0x4b8] sm:$0xff] }
 0x322   :  { %7181 = vmatpush1.bf16.msra.mxu0 %v10944_v22  ;;  %7907 = vmatpush1.bf16.msra.mxu1 %v10946_v10  ;;  %v10968_v22 = vcombine.low %v1294_v0, %v1298_v47  ;;  %v10970_v10 = vcombine.low %v1295_v4, %v1299_v30  ;;  %v10987_v0 = vcombine.high %v1311_v13, %v1315_v14  ;;  %v1318_v47 = vld [vmem:[#allocation7 + $0x4d0] sm:$0xff]  ;;  %v1319_v30 = vld [vmem:[#allocation7 + $0x4d8] sm:$0xff] }
 0x323   :  { %7182 = vmatprep.subr.bf16.mxu0 %v10953_v1  ;;  %7908 = vmatprep.subr.bf16.mxu1 %v10955_v46  ;;  %v10979_v46 = vcombine.high %v1303_v28, %v1307_v23  ;;  %v1322_v4 = vld [vmem:[#allocation7 + $0x4f0] sm:$0xff] }
 0x324   :  { %6512 = vmatmul.mubr.bf16.gmra.mrb[60].mxu0 %v14631_v40  ;;  %7139 = vmatmul.mubr.bf16.gmra.mrb[68].mxu1 %v14631_v40 }
 0x325   :  { %6521 = vmatprep.mubr.bf16.mxu0 %v14613_v11  ;;  %7146 = vmatprep.mubr.bf16.mxu1 %v14613_v11 }
 0x326   :  { %7183 = vmatpush1.bf16.msra.mxu0 %v10952_v24  ;;  %7909 = vmatpush1.bf16.msra.mxu1 %v10954_v39  ;;  %v1302_v24 = vld [vmem:[#allocation7 + $0x450] sm:$0xff] }
 0x327   :  { %7184 = vmatprep.subr.bf16.mxu0 %v10961_v17  ;;  %7910 = vmatprep.subr.bf16.mxu1 %v10963_v43  ;;  %v1306_v39 = vld [vmem:[#allocation7 + $0x470] sm:$0xff]  ;;  %v10978_v17 = vcombine.low %v1303_v28, %v1307_v23  ;;  %v10985_v43 = vcombine.high %v1310_v20, %v1314_v45  ;;  %v1331_v28 = vld [vmem:[#allocation7 + $0x538] sm:$0xff]  ;;  %v10992_v23 = vcombine.low %v1318_v47, %v1322_v4 }
 0x328   :  { %v10977_v1 = vcombine.high %v1302_v24, %v1306_v39 }
 0x32a   :  { %7185 = vmatpush1.bf16.msra.mxu0 %v10960_v6  ;;  %7911 = vmatpush1.bf16.msra.mxu1 %v10962_v25  ;;  %v1323_v6 = vld [vmem:[#allocation7 + $0x4f8] sm:$0xff]  ;;  %v10986_v25 = vcombine.low %v1311_v13, %v1315_v14 }
 0x32b   :  { %7275 = vmatprep.subr.bf16.mxu0 %v10969_v21  ;;  %7984 = vmatprep.subr.bf16.mxu1 %v10971_v33  ;;  %v10993_v21 = vcombine.high %v1318_v47, %v1322_v4  ;;  %v1326_v33 = vld [vmem:[#allocation7 + $0x510] sm:$0xff]  ;;  %v1339_v13 = vld [vmem:[#allocation7 + $0x578] sm:$0xff] }
 0x32c   :  { %6522 = vmatmul.mubr.bf16.gmra.mrb[64].mxu0 %v14627_v61  ;;  %7147 = vmatmul.mubr.bf16.gmra.mrb[72].mxu1 %v14627_v61  ;;  %v1347_v47 = vld [vmem:[#allocation7 + $0x5b8] sm:$0xff] }
 0x32d   :  { %7186 = vmatprep.mubr.bf16.mxu0 %v13735_v16  ;;  %7912 = vmatprep.mubr.bf16.mxu1 %v13735_v16  ;;  %v10976_v16 = vcombine.low %v1302_v24, %v1306_v39  ;;  %v1330_v24 = vld [vmem:[#allocation7 + $0x530] sm:$0xff]  ;;  %v1327_v39 = vld [vmem:[#allocation7 + $0x518] sm:$0xff] }
 0x32e   :  { %v11002_v14 = vcombine.low %v1327_v39, %v1331_v28 }
 0x334   :  { %7187 = vmatmul.mubr.bf16.vlgmr.msra.gmra.mrb[68].mxu0 %v15811_v27  ;;  %7913 = vmatmul.mubr.bf16.vlgmr.msra.gmra.mrb[76].mxu1 %v15811_v27  ;;  %v10984_v27 = vcombine.low %v1310_v20, %v1314_v45  ;;  %v1338_v20 = vld [vmem:[#allocation7 + $0x570] sm:$0xff]  ;;  %v1335_v45 = vld [vmem:[#allocation7 + $0x558] sm:$0xff] }
 0x335   :  { %7196 = vmatprep.mubr.bf16.mxu0 %v13784_v55  ;;  %7920 = vmatprep.mubr.bf16.mxu1 %v13784_v55  ;;  %v10995_v55 = vcombine.high %v1319_v30, %v1323_v6 }
 0x336   :  { %7276 = vmatpush1.bf16.msra.mxu0 %v10968_v22  ;;  %7985 = vmatpush1.bf16.msra.mxu1 %v10970_v10  ;;  %v10994_v22 = vcombine.low %v1319_v30, %v1323_v6  ;;  %v11001_v10 = vcombine.high %v1326_v33, %v1330_v24  ;;  %v11010_v30 = vcombine.low %v1335_v45, %v1339_v13 }
 0x337   :  { %7277 = vmatprep.subr.bf16.mxu0 %v10977_v1  ;;  %7986 = vmatprep.subr.bf16.mxu1 %v10979_v46  ;;  %v11003_v1 = vcombine.high %v1327_v39, %v1331_v28  ;;  %v1334_v46 = vld [vmem:[#allocation7 + $0x550] sm:$0xff] }
 0x338   :  { %v11008_v4 = vcombine.low %v1334_v46, %v1338_v20  ;;  %v1358_v28 = vld [vmem:[#allocation7 + $0x610] sm:$0xff] }
 0x33a   :  { %7278 = vmatpush1.bf16.msra.mxu0 %v10976_v16  ;;  %7987 = vmatpush1.bf16.msra.mxu1 %v10978_v17  ;;  %v11009_v16 = vcombine.high %v1334_v46, %v1338_v20  ;;  %v1342_v17 = vld [vmem:[#allocation7 + $0x590] sm:$0xff] }
 0x33b   :  { %7279 = vmatprep.subr.bf16.mxu0 %v10985_v43  ;;  %7988 = vmatprep.subr.bf16.mxu1 %v10987_v0  ;;  %v1346_v43 = vld [vmem:[#allocation7 + $0x5b0] sm:$0xff]  ;;  %v1343_v0 = vld [vmem:[#allocation7 + $0x598] sm:$0xff] }
 0x33c   :  { %7197 = vmatmul.mubr.bf16.gmra.mrb[72].mxu0 %v13780_v53  ;;  %7921 = vmatmul.mubr.bf16.gmra.mrb[80].mxu1 %v13780_v53  ;;  %v11000_v53 = vcombine.low %v1326_v33, %v1330_v24  ;;  %v11017_v6 = vcombine.high %v1342_v17, %v1346_v43  ;;  %v1355_v33 = vld [vmem:[#allocation7 + $0x5f8] sm:$0xff]  ;;  %v11018_v24 = vcombine.low %v1343_v0, %v1347_v47 }
 0x33d   :  { %7206 = vmatprep.mubr.bf16.mxu0 %v13835_v52  ;;  %7928 = vmatprep.mubr.bf16.mxu1 %v13835_v52  ;;  %v11011_v52 = vcombine.high %v1335_v45, %v1339_v13  ;;  %v1366_v13 = vld [vmem:[#allocation7 + $0x650] sm:$0xff] }
 0x33e   :  { %7280 = vmatpush1.bf16.msra.mxu0 %v10984_v27  ;;  %7989 = vmatpush1.bf16.msra.mxu1 %v10986_v25  ;;  %v11019_v27 = vcombine.high %v1343_v0, %v1347_v47  ;;  %v1350_v25 = vld [vmem:[#allocation7 + $0x5d0] sm:$0xff]  ;;  %v1375_v47 = vld [vmem:[#allocation7 + $0x698] sm:$0xff] }
 0x33f   :  { %7281 = vmatprep.subr.bf16.mxu0 %v10993_v21  ;;  %7990 = vmatprep.subr.bf16.mxu1 %v10995_v55  ;;  %v1354_v21 = vld [vmem:[#allocation7 + $0x5f0] sm:$0xff]  ;;  %v1351_v55 = vld [vmem:[#allocation7 + $0x5d8] sm:$0xff] }
 0x340   :  { %v11025_v39 = vcombine.high %v1350_v25, %v1354_v21  ;;  %v11026_v46 = vcombine.low %v1351_v55, %v1355_v33  ;;  %v1378_v0 = vld [vmem:[#allocation7 + $0x6b0] sm:$0xff] }
 0x342   :  { %7282 = vmatpush1.bf16.msra.mxu0 %v10992_v23  ;;  %7991 = vmatpush1.bf16.msra.mxu1 %v10994_v22  ;;  %v1362_v23 = vld [vmem:[#allocation7 + $0x630] sm:$0xff]  ;;  %v1359_v22 = vld [vmem:[#allocation7 + $0x618] sm:$0xff] }
 0x343   :  { %7283 = vmatprep.subr.bf16.mxu0 %v11001_v10  ;;  %7992 = vmatprep.subr.bf16.mxu1 %v11003_v1  ;;  %v1363_v10 = vld [vmem:[#allocation7 + $0x638] sm:$0xff]  ;;  %v11024_v1 = vcombine.low %v1350_v25, %v1354_v21  ;;  %v11033_v20 = vcombine.high %v1358_v28, %v1362_v23  ;;  %v1382_v21 = vld [vmem:[#allocation7 + $0x6d0] sm:$0xff] }
 0x344   :  { %7207 = vmatmul.mubr.bf16.gmra.mrb[76].mxu0 %v13827_v48  ;;  %7929 = vmatmul.mubr.bf16.gmra.mrb[84].mxu1 %v13827_v48  ;;  %v11016_v48 = vcombine.low %v1342_v17, %v1346_v43  ;;  %v11035_v45 = vcombine.high %v1359_v22, %v1363_v10  ;;  %v1374_v43 = vld [vmem:[#allocation7 + $0x690] sm:$0xff] }
 0x345   :  { %7216 = vmatprep.mubr.bf16.mxu0 %v13887_v41  ;;  %7936 = vmatprep.mubr.bf16.mxu1 %v13887_v41  ;;  %v11027_v41 = vcombine.high %v1351_v55, %v1355_v33  ;;  %v1386_v55 = vld [vmem:[#allocation7 + $0x6f0] sm:$0xff]  ;;  %v1383_v33 = vld [vmem:[#allocation7 + $0x6d8] sm:$0xff] }
 0x346   :  { %7284 = vmatpush1.bf16.msra.mxu0 %v11000_v53  ;;  %7993 = vmatpush1.bf16.msra.mxu1 %v11002_v14  ;;  %v1370_v53 = vld [vmem:[#allocation7 + $0x670] sm:$0xff]  ;;  %v1367_v14 = vld [vmem:[#allocation7 + $0x658] sm:$0xff] }
 0x347   :  { %7285 = vmatprep.subr.bf16.mxu0 %v11009_v16  ;;  %7994 = vmatprep.subr.bf16.mxu1 %v11011_v52  ;;  %v1371_v16 = vld [vmem:[#allocation7 + $0x678] sm:$0xff]  ;;  %v11034_v52 = vcombine.low %v1359_v22, %v1363_v10  ;;  %v11041_v17 = vcombine.high %v1366_v13, %v1370_v53  ;;  %v11056_v10 = vcombine.low %v1382_v21, %v1386_v55 }
 0x348   :  { %v1395_v22 = vld [vmem:[#allocation7 + $0x738] sm:$0xff] }
 0x34a   :  { %7286 = vmatpush1.bf16.msra.mxu0 %v11008_v4  ;;  %7995 = vmatpush1.bf16.msra.mxu1 %v11010_v30  ;;  %v1379_v4 = vld [vmem:[#allocation7 + $0x6b8] sm:$0xff]  ;;  %v11040_v30 = vcombine.low %v1366_v13, %v1370_v53  ;;  %v1402_v13 = vld [vmem:[#allocation7 + $0x770] sm:$0xff] }
 0x34b   :  { %7287 = vmatprep.subr.bf16.mxu0 %v11017_v6  ;;  %7996 = vmatprep.subr.bf16.mxu1 %v11019_v27  ;;  %v11042_v6 = vcombine.low %v1367_v14, %v1371_v16  ;;  %v11049_v27 = vcombine.high %v1374_v43, %v1378_v0  ;;  %v11051_v25 = vcombine.high %v1375_v47, %v1379_v4  ;;  %v1399_v53 = vld [vmem:[#allocation7 + $0x758] sm:$0xff] }
 0x34c   :  { %7217 = vmatmul.mubr.bf16.gmra.mrb[80].mxu0 %v13879_v32  ;;  %7937 = vmatmul.mubr.bf16.gmra.mrb[88].mxu1 %v13879_v32  ;;  %v11032_v32 = vcombine.low %v1358_v28, %v1362_v23  ;;  %v1394_v28 = vld [vmem:[#allocation7 + $0x730] sm:$0xff]  ;;  %v1391_v23 = vld [vmem:[#allocation7 + $0x718] sm:$0xff] }
 0x34d   :  { %7226 = vmatprep.mubr.bf16.mxu0 %v13939_v50  ;;  %7944 = vmatprep.mubr.bf16.mxu1 %v13939_v50  ;;  %v11043_v50 = vcombine.high %v1367_v14, %v1371_v16  ;;  %v1403_v14 = vld [vmem:[#allocation7 + $0x778] sm:$0xff]  ;;  %v11066_v16 = vcombine.low %v1391_v23, %v1395_v22 }
 0x34e   :  { %7288 = vmatpush1.bf16.msra.mxu0 %v11016_v48  ;;  %7997 = vmatpush1.bf16.msra.mxu1 %v11018_v24  ;;  %v1387_v48 = vld [vmem:[#allocation7 + $0x6f8] sm:$0xff]  ;;  %v11050_v24 = vcombine.low %v1375_v47, %v1379_v4  ;;  %v11074_v47 = vcombine.low %v1399_v53, %v1403_v14 }
 0x34f   :  { %7289 = vmatprep.subr.bf16.mxu0 %v11025_v39  ;;  %7998 = vmatprep.subr.bf16.mxu1 %v11027_v41  ;;  %v11057_v39 = vcombine.high %v1382_v21, %v1386_v55  ;;  %v1390_v41 = vld [vmem:[#allocation7 + $0x710] sm:$0xff]  ;;  %v1419_v21 = vld [vmem:[#allocation7 + $0x7f8] sm:$0xff] }
 0x352   :  { %7290 = vmatpush1.bf16.msra.mxu0 %v11024_v1  ;;  %7999 = vmatpush1.bf16.msra.mxu1 %v11026_v46  ;;  %v11058_v1 = vcombine.low %v1383_v33, %v1387_v48  ;;  %v11065_v46 = vcombine.high %v1390_v41, %v1394_v28 }
 0x353   :  { %7291 = vmatprep.subr.bf16.mxu0 %v11033_v20  ;;  %8000 = vmatprep.subr.bf16.mxu1 %v11035_v45  ;;  %v11067_v20 = vcombine.high %v1391_v23, %v1395_v22  ;;  %v1398_v45 = vld [vmem:[#allocation7 + $0x750] sm:$0xff]  ;;  %v1431_v22 = vld [vmem:[#allocation7 + $0x858] sm:$0xff] }
 0x354   :  { %7227 = vmatmul.mubr.bf16.gmra.mrb[84].mxu0 %v13931_v31  ;;  %7945 = vmatmul.mubr.bf16.gmra.mrb[92].mxu1 %v13931_v31  ;;  %v11048_v31 = vcombine.low %v1374_v43, %v1378_v0  ;;  %v1411_v43 = vld [vmem:[#allocation7 + $0x7b8] sm:$0xff]  ;;  %v11072_v0 = vcombine.low %v1398_v45, %v1402_v13 }
 0x355   :  { %7236 = vmatprep.mubr.bf16.mxu0 %v13991_v57  ;;  %7952 = vmatprep.mubr.bf16.mxu1 %v13991_v57  ;;  %v11059_v57 = vcombine.high %v1383_v33, %v1387_v48  ;;  %v1422_v48 = vld [vmem:[#allocation7 + $0x810] sm:$0xff] }
 0x356   :  { %7292 = vmatpush1.bf16.msra.mxu0 %v11032_v32  ;;  %8001 = vmatpush1.bf16.msra.mxu1 %v11034_v52  ;;  %v11073_v32 = vcombine.high %v1398_v45, %v1402_v13  ;;  %v1406_v52 = vld [vmem:[#allocation7 + $0x790] sm:$0xff] }
 0x357   :  { %7293 = vmatprep.subr.bf16.mxu0 %v11041_v17  ;;  %8002 = vmatprep.subr.bf16.mxu1 %v11043_v50  ;;  %v1410_v17 = vld [vmem:[#allocation7 + $0x7b0] sm:$0xff]  ;;  %v1407_v50 = vld [vmem:[#allocation7 + $0x798] sm:$0xff] }
 0x358   :  { %v11081_v4 = vcombine.high %v1406_v52, %v1410_v17  ;;  %v11082_v55 = vcombine.low %v1407_v50, %v1411_v43  ;;  %v1438_v13 = vld [vmem:[#allocation7 + $0x890] sm:$0xff] }
 0x35a   :  { %7294 = vmatpush1.bf16.msra.mxu0 %v11040_v30  ;;  %8003 = vmatpush1.bf16.msra.mxu1 %v11042_v6  ;;  %v11083_v30 = vcombine.high %v1407_v50, %v1411_v43  ;;  %v1414_v6 = vld [vmem:[#allocation7 + $0x7d0] sm:$0xff]  ;;  %v1451_v50 = vld [vmem:[#allocation7 + $0x8f8] sm:$0xff] }
 0x35b   :  { %7295 = vmatprep.subr.bf16.mxu0 %v11049_v27  ;;  %8004 = vmatprep.subr.bf16.mxu1 %v11051_v25  ;;  %v1418_v27 = vld [vmem:[#allocation7 + $0x7f0] sm:$0xff]  ;;  %v1415_v25 = vld [vmem:[#allocation7 + $0x7d8] sm:$0xff] }
 0x35c   :  { %7237 = vmatmul.mubr.bf16.gmra.mrb[88].mxu0 %v13983_v56  ;;  %7953 = vmatmul.mubr.bf16.gmra.mrb[96].mxu1 %v13983_v56  ;;  %v11064_v56 = vcombine.low %v1390_v41, %v1394_v28  ;;  %v11089_v33 = vcombine.high %v1414_v6, %v1418_v27  ;;  %v11090_v41 = vcombine.low %v1415_v25, %v1419_v21 }
 0x35d   :  { %7246 = vmatprep.mubr.bf16.mxu0 %v14041_v12  ;;  %7960 = vmatprep.mubr.bf16.mxu1 %v14041_v12  ;;  %v11075_v12 = vcombine.high %v1399_v53, %v1403_v14  ;;  %v1442_v53 = vld [vmem:[#allocation7 + $0x8b0] sm:$0xff]  ;;  %v1439_v14 = vld [vmem:[#allocation7 + $0x898] sm:$0xff] }
 0x35e   :  { %7296 = vmatpush1.bf16.msra.mxu0 %v11048_v31  ;;  %8005 = vmatpush1.bf16.msra.mxu1 %v11050_v24  ;;  %v1426_v31 = vld [vmem:[#allocation7 + $0x830] sm:$0xff]  ;;  %v1423_v24 = vld [vmem:[#allocation7 + $0x818] sm:$0xff] }
 0x35f   :  { %7297 = vmatprep.subr.bf16.mxu0 %v11057_v39  ;;  %8006 = vmatprep.subr.bf16.mxu1 %v11059_v57  ;;  %v1427_v39 = vld [vmem:[#allocation7 + $0x838] sm:$0xff]  ;;  %v11088_v57 = vcombine.low %v1414_v6, %v1418_v27  ;;  %v11097_v28 = vcombine.high %v1422_v48, %v1426_v31 }
 0x360   :  { %v11099_v23 = vcombine.high %v1423_v24, %v1427_v39  ;;  %v1459_v6 = vld [vmem:[#allocation7 + $0x938] sm:$0xff] }
 0x362   :  { %7298 = vmatpush1.bf16.msra.mxu0 %v11056_v10  ;;  %8007 = vmatpush1.bf16.msra.mxu1 %v11058_v1  ;;  %v1435_v10 = vld [vmem:[#allocation7 + $0x878] sm:$0xff]  ;;  %v11096_v1 = vcombine.low %v1422_v48, %v1426_v31 }
 0x363   :  { %7299 = vmatprep.subr.bf16.mxu0 %v11065_v46  ;;  %8008 = vmatprep.subr.bf16.mxu1 %v11067_v20  ;;  %v11098_v46 = vcombine.low %v1423_v24, %v1427_v39  ;;  %v11107_v45 = vcombine.high %v1431_v22, %v1435_v10  ;;  %v1467_v48 = vld [vmem:[#allocation7 + $0x978] sm:$0xff]  ;;  %v1470_v39 = vld [vmem:[#allocation7 + $0x990] sm:$0xff] }
 0x364   :  { %7247 = vmatmul.mubr.bf16.gmra.mrb[92].mxu0 %v14033_v8  ;;  %7961 = vmatmul.mubr.bf16.gmra.mrb[100].mxu1 %v14033_v8  ;;  %v11080_v8 = vcombine.low %v1406_v52, %v1410_v17  ;;  %v1450_v52 = vld [vmem:[#allocation7 + $0x8f0] sm:$0xff]  ;;  %v1447_v17 = vld [vmem:[#allocation7 + $0x8d8] sm:$0xff] }
 0x365   :  { %7256 = vmatprep.mubr.bf16.mxu0 %v14079_v36  ;;  %7968 = vmatprep.mubr.bf16.mxu1 %v14079_v36  ;;  %v11091_v36 = vcombine.high %v1415_v25, %v1419_v21  ;;  %v11122_v25 = vcombine.low %v1447_v17, %v1451_v50 }
 0x366   :  { %7300 = vmatpush1.bf16.msra.mxu0 %v11064_v56  ;;  %8009 = vmatpush1.bf16.msra.mxu1 %v11066_v16  ;;  %v11106_v56 = vcombine.low %v1431_v22, %v1435_v10  ;;  %v11113_v16 = vcombine.high %v1438_v13, %v1442_v53  ;;  %v1478_v10 = vld [vmem:[#allocation7 + $0x9d0] sm:$0xff] }
 0x367   :  { %7301 = vmatprep.subr.bf16.mxu0 %v11073_v32  ;;  %8010 = vmatprep.subr.bf16.mxu1 %v11075_v12  ;;  %v1446_v12 = vld [vmem:[#allocation7 + $0x8d0] sm:$0xff] }
 0x368   :  { %v11120_v27 = vcombine.low %v1446_v12, %v1450_v52 }
 0x36a   :  { %7302 = vmatpush1.bf16.msra.mxu0 %v11072_v0  ;;  %8011 = vmatpush1.bf16.msra.mxu1 %v11074_v47  ;;  %v11121_v0 = vcombine.high %v1446_v12, %v1450_v52  ;;  %v1454_v47 = vld [vmem:[#allocation7 + $0x910] sm:$0xff] }
 0x36b   :  { %7303 = vmatprep.subr.bf16.mxu0 %v11081_v4  ;;  %8012 = vmatprep.subr.bf16.mxu1 %v11083_v30  ;;  %v1458_v4 = vld [vmem:[#allocation7 + $0x930] sm:$0xff]  ;;  %v1455_v30 = vld [vmem:[#allocation7 + $0x918] sm:$0xff] }
 0x36c   :  { %7257 = vmatmul.mubr.bf16.gmra.mrb[96].mxu0 %v14075_v62  ;;  %7969 = vmatmul.mubr.bf16.gmra.mrb[104].mxu1 %v14075_v62  ;;  %v1434_v62 = vld [vmem:[#allocation7 + $0x870] sm:$0xff]  ;;  %v11129_v21 = vcombine.high %v1454_v47, %v1458_v4  ;;  %v11130_v31 = vcombine.low %v1455_v30, %v1459_v6 }
 0x36d   :  { %7266 = vmatprep.mubr.bf16.mxu0 %v13737_v18  ;;  %7976 = vmatprep.mubr.bf16.mxu1 %v13737_v18  ;;  %v1430_v18 = vld [vmem:[#allocation7 + $0x850] sm:$0xff] }
 0x36e   :  { %7304 = vmatpush1.bf16.msra.mxu0 %v11080_v8  ;;  %8013 = vmatpush1.bf16.msra.mxu1 %v11082_v55  ;;  %v11105_v20 = vcombine.high %v1430_v18, %v1434_v62  ;;  %v11131_v8 = vcombine.high %v1455_v30, %v1459_v6  ;;  %v1462_v55 = vld [vmem:[#allocation7 + $0x950] sm:$0xff]  ;;  %v1507_v30 = vld [vmem:[#allocation7 + $0xab8] sm:$0xff] }
 0x36f   :  { %7305 = vmatprep.subr.bf16.mxu0 %v11089_v33  ;;  %8014 = vmatprep.subr.bf16.mxu1 %v11091_v36  ;;  %v1466_v33 = vld [vmem:[#allocation7 + $0x970] sm:$0xff]  ;;  %v1463_v36 = vld [vmem:[#allocation7 + $0x958] sm:$0xff] }
 0x370   :  { %v11137_v24 = vcombine.high %v1462_v55, %v1466_v33  ;;  %v1494_v52 = vld [vmem:[#allocation7 + $0xa50] sm:$0xff] }
 0x372   :  { %7306 = vmatpush1.bf16.msra.mxu0 %v11088_v57  ;;  %8015 = vmatpush1.bf16.msra.mxu1 %v11090_v41  ;;  %v1474_v57 = vld [vmem:[#allocation7 + $0x9b0] sm:$0xff]  ;;  %v1471_v41 = vld [vmem:[#allocation7 + $0x998] sm:$0xff] }
 0x373   :  { %7396 = vmatprep.subr.bf16.mxu0 %v11097_v28  ;;  %8088 = vmatprep.subr.bf16.mxu1 %v11099_v23  ;;  %v1475_v28 = vld [vmem:[#allocation7 + $0x9b8] sm:$0xff]  ;;  %v11136_v23 = vcombine.low %v1462_v55, %v1466_v33  ;;  %v1514_v55 = vld [vmem:[#allocation7 + $0xaf0] sm:$0xff] }
 0x374   :  { %7267 = vmatmul.mubr.bf16.gmra.mrb[100].mxu0 %v13733_v15  ;;  %7977 = vmatmul.mubr.bf16.gmra.mrb[108].mxu1 %v13733_v15  ;;  %v1443_v15 = vld [vmem:[#allocation7 + $0x8b8] sm:$0xff]  ;;  %v11147_v22 = vcombine.high %v1471_v41, %v1475_v28 }
 0x375   :  { %7307 = vmatprep.mubr.bf16.mxu0 %v13839_v37  ;;  %8016 = vmatprep.mubr.bf16.mxu1 %v13839_v37  ;;  %v11104_v37 = vcombine.low %v1430_v18, %v1434_v62  ;;  %v11115_v32 = vcombine.high %v1439_v14, %v1443_v15  ;;  %v11114_v43 = vcombine.low %v1439_v14, %v1443_v15  ;;  %v1490_v14 = vld [vmem:[#allocation7 + $0xa30] sm:$0xff]  ;;  %v1487_v15 = vld [vmem:[#allocation7 + $0xa18] sm:$0xff] }
 0x376   :  { %v11138_v18 = vcombine.low %v1463_v36, %v1467_v48  ;;  %v11145_v62 = vcombine.high %v1470_v39, %v1474_v57  ;;  %v1511_v33 = vld [vmem:[#allocation7 + $0xad8] sm:$0xff] }
 0x37c   :  { %7308 = vmatmul.mubr.bf16.vlgmr.msra.gmra.mrb[68].mxu0 %v15792_v3  ;;  %8017 = vmatmul.mubr.bf16.vlgmr.msra.gmra.mrb[76].mxu1 %v15792_v3  ;;  %v11112_v3 = vcombine.low %v1438_v13, %v1442_v53  ;;  %v1486_v53 = vld [vmem:[#allocation7 + $0xa10] sm:$0xff] }
 0x37d   :  { %7317 = vmatprep.mubr.bf16.mxu0 %v13891_v34  ;;  %8024 = vmatprep.mubr.bf16.mxu1 %v13891_v34  ;;  %v11123_v34 = vcombine.high %v1447_v17, %v1451_v50  ;;  %v1498_v17 = vld [vmem:[#allocation7 + $0xa70] sm:$0xff]  ;;  %v1495_v50 = vld [vmem:[#allocation7 + $0xa58] sm:$0xff] }
 0x37e   :  { %7397 = vmatpush1.bf16.msra.mxu0 %v11096_v1  ;;  %8089 = vmatpush1.bf16.msra.mxu1 %v11098_v46  ;;  %v1482_v1 = vld [vmem:[#allocation7 + $0x9f0] sm:$0xff]  ;;  %v1479_v46 = vld [vmem:[#allocation7 + $0x9d8] sm:$0xff]  ;;  %v11168_v6 = vcombine.low %v1494_v52, %v1498_v17 }
 0x37f   :  { %7398 = vmatprep.subr.bf16.mxu0 %v11105_v20  ;;  %8090 = vmatprep.subr.bf16.mxu1 %v11107_v45  ;;  %v1483_v20 = vld [vmem:[#allocation7 + $0x9f8] sm:$0xff]  ;;  %v11146_v45 = vcombine.low %v1471_v41, %v1475_v28  ;;  %v11153_v13 = vcombine.high %v1478_v10, %v1482_v1 }
 0x382   :  { %7399 = vmatpush1.bf16.msra.mxu0 %v11104_v37  ;;  %8091 = vmatpush1.bf16.msra.mxu1 %v11106_v56  ;;  %v1491_v37 = vld [vmem:[#allocation7 + $0xa38] sm:$0xff]  ;;  %v11152_v56 = vcombine.low %v1478_v10, %v1482_v1 }
 0x383   :  { %7400 = vmatprep.subr.bf16.mxu0 %v11113_v16  ;;  %8092 = vmatprep.subr.bf16.mxu1 %v11115_v32  ;;  %v11154_v16 = vcombine.low %v1479_v46, %v1483_v20  ;;  %v11161_v32 = vcombine.high %v1486_v53, %v1490_v14  ;;  %v11163_v12 = vcombine.high %v1487_v15, %v1491_v37  ;;  %v1531_v10 = vld [vmem:[#allocation7 + $0xb78] sm:$0xff] }
 0x384   :  { %7318 = vmatmul.mubr.bf16.gmra.mrb[72].mxu0 %v15830_v44  ;;  %8025 = vmatmul.mubr.bf16.gmra.mrb[80].mxu1 %v15830_v44  ;;  %v11128_v44 = vcombine.low %v1454_v47, %v1458_v4  ;;  %v1506_v47 = vld [vmem:[#allocation7 + $0xab0] sm:$0xff]  ;;  %v1503_v4 = vld [vmem:[#allocation7 + $0xa98] sm:$0xff] }
 0x385   :  { %7327 = vmatprep.mubr.bf16.mxu0 %v15831_v26  ;;  %8032 = vmatprep.mubr.bf16.mxu1 %v15831_v26  ;;  %v11139_v26 = vcombine.high %v1463_v36, %v1467_v48  ;;  %v1515_v36 = vld [vmem:[#allocation7 + $0xaf8] sm:$0xff]  ;;  %v11178_v48 = vcombine.low %v1503_v4, %v1507_v30 }
 0x386   :  { %7401 = vmatpush1.bf16.msra.mxu0 %v11112_v3  ;;  %8093 = vmatpush1.bf16.msra.mxu1 %v11114_v43  ;;  %v1499_v3 = vld [vmem:[#allocation7 + $0xa78] sm:$0xff]  ;;  %v11162_v43 = vcombine.low %v1487_v15, %v1491_v37  ;;  %v11186_v41 = vcombine.low %v1511_v33, %v1515_v36  ;;  %v1542_v37 = vld [vmem:[#allocation7 + $0xbd0] sm:$0xff] }
 0x387   :  { %7402 = vmatprep.subr.bf16.mxu0 %v11121_v0  ;;  %8094 = vmatprep.subr.bf16.mxu1 %v11123_v34  ;;  %v11169_v0 = vcombine.high %v1494_v52, %v1498_v17  ;;  %v1502_v34 = vld [vmem:[#allocation7 + $0xa90] sm:$0xff] }
 0x388   :  { %v1550_v17 = vld [vmem:[#allocation7 + $0xc10] sm:$0xff] }
 0x38a   :  { %7403 = vmatpush1.bf16.msra.mxu0 %v11120_v27  ;;  %8095 = vmatpush1.bf16.msra.mxu1 %v11122_v25  ;;  %v11170_v27 = vcombine.low %v1495_v50, %v1499_v3  ;;  %v11177_v25 = vcombine.high %v1502_v34, %v1506_v47 }
 0x38b   :  { %7404 = vmatprep.subr.bf16.mxu0 %v11129_v21  ;;  %8096 = vmatprep.subr.bf16.mxu1 %v11131_v8  ;;  %v11179_v21 = vcombine.high %v1503_v4, %v1507_v30  ;;  %v1510_v8 = vld [vmem:[#allocation7 + $0xad0] sm:$0xff] }
 0x38c   :  { %7328 = vmatmul.mubr.bf16.gmra.mrb[76].mxu0 %v13937_v49  ;;  %8033 = vmatmul.mubr.bf16.gmra.mrb[84].mxu1 %v13937_v49  ;;  %v11144_v49 = vcombine.low %v1470_v39, %v1474_v57  ;;  %v1523_v39 = vld [vmem:[#allocation7 + $0xb38] sm:$0xff]  ;;  %v11184_v57 = vcombine.low %v1510_v8, %v1514_v55 }
 0x38d   :  { %7337 = vmatprep.mubr.bf16.mxu0 %v13995_v63  ;;  %8040 = vmatprep.mubr.bf16.mxu1 %v13995_v63  ;;  %v11155_v63 = vcombine.high %v1479_v46, %v1483_v20  ;;  %v1534_v20 = vld [vmem:[#allocation7 + $0xb90] sm:$0xff] }
 0x38e   :  { %7405 = vmatpush1.bf16.msra.mxu0 %v11128_v44  ;;  %8097 = vmatpush1.bf16.msra.mxu1 %v11130_v31  ;;  %v11185_v44 = vcombine.high %v1510_v8, %v1514_v55  ;;  %v1518_v31 = vld [vmem:[#allocation7 + $0xb10] sm:$0xff] }
 0x38f   :  { %7406 = vmatprep.subr.bf16.mxu0 %v11137_v24  ;;  %8098 = vmatprep.subr.bf16.mxu1 %v11139_v26  ;;  %v1522_v24 = vld [vmem:[#allocation7 + $0xb30] sm:$0xff]  ;;  %v1519_v26 = vld [vmem:[#allocation7 + $0xb18] sm:$0xff] }
 0x390   :  { %v11193_v28 = vcombine.high %v1518_v31, %v1522_v24  ;;  %v11194_v1 = vcombine.low %v1519_v26, %v1523_v39 }
 0x392   :  { %7407 = vmatpush1.bf16.msra.mxu0 %v11136_v23  ;;  %8099 = vmatpush1.bf16.msra.mxu1 %v11138_v18  ;;  %v11195_v23 = vcombine.high %v1519_v26, %v1523_v39  ;;  %v1526_v18 = vld [vmem:[#allocation7 + $0xb50] sm:$0xff] }
 0x393   :  { %7408 = vmatprep.subr.bf16.mxu0 %v11145_v62  ;;  %8100 = vmatprep.subr.bf16.mxu1 %v11147_v22  ;;  %v1530_v62 = vld [vmem:[#allocation7 + $0xb70] sm:$0xff]  ;;  %v1527_v22 = vld [vmem:[#allocation7 + $0xb58] sm:$0xff] }
 0x394   :  { %7338 = vmatmul.mubr.bf16.gmra.mrb[80].mxu0 %v13989_v60  ;;  %8041 = vmatmul.mubr.bf16.gmra.mrb[88].mxu1 %v13989_v60  ;;  %v11160_v60 = vcombine.low %v1486_v53, %v1490_v14  ;;  %v11201_v46 = vcombine.high %v1526_v18, %v1530_v62  ;;  %v11202_v53 = vcombine.low %v1527_v22, %v1531_v10 }
 0x395   :  { %7347 = vmatprep.mubr.bf16.mxu0 %v14045_v19  ;;  %8048 = vmatprep.mubr.bf16.mxu1 %v14045_v19  ;;  %v11171_v19 = vcombine.high %v1495_v50, %v1499_v3  ;;  %v1554_v50 = vld [vmem:[#allocation7 + $0xc30] sm:$0xff]  ;;  %v1551_v3 = vld [vmem:[#allocation7 + $0xc18] sm:$0xff] }
 0x396   :  { %7409 = vmatpush1.bf16.msra.mxu0 %v11144_v49  ;;  %8101 = vmatpush1.bf16.msra.mxu1 %v11146_v45  ;;  %v1538_v49 = vld [vmem:[#allocation7 + $0xbb0] sm:$0xff]  ;;  %v1535_v45 = vld [vmem:[#allocation7 + $0xb98] sm:$0xff] }
 0x397   :  { %7410 = vmatprep.subr.bf16.mxu0 %v11153_v13  ;;  %8102 = vmatprep.subr.bf16.mxu1 %v11155_v63  ;;  %v1539_v13 = vld [vmem:[#allocation7 + $0xbb8] sm:$0xff]  ;;  %v11200_v63 = vcombine.low %v1526_v18, %v1530_v62  ;;  %v11209_v14 = vcombine.high %v1534_v20, %v1538_v49 }
 0x398   :  { %v11211_v15 = vcombine.high %v1535_v45, %v1539_v13 }
 0x39a   :  { %7411 = vmatpush1.bf16.msra.mxu0 %v11152_v56  ;;  %8103 = vmatpush1.bf16.msra.mxu1 %v11154_v16  ;;  %v1546_v56 = vld [vmem:[#allocation7 + $0xbf0] sm:$0xff]  ;;  %v1543_v16 = vld [vmem:[#allocation7 + $0xbd8] sm:$0xff] }
 0x39b   :  { %7412 = vmatprep.subr.bf16.mxu0 %v11161_v32  ;;  %8104 = vmatprep.subr.bf16.mxu1 %v11163_v12  ;;  %v1547_v32 = vld [vmem:[#allocation7 + $0xbf8] sm:$0xff]  ;;  %v11210_v12 = vcombine.low %v1535_v45, %v1539_v13  ;;  %v11217_v52 = vcombine.high %v1542_v37, %v1546_v56 }
 0x39c   :  { %7348 = vmatmul.mubr.bf16.gmra.mrb[84].mxu0 %v14039_v58  ;;  %8049 = vmatmul.mubr.bf16.gmra.mrb[92].mxu1 %v14039_v58  ;;  %v11176_v58 = vcombine.low %v1502_v34, %v1506_v47  ;;  %v1932_v47 = vld [vmem:[#allocation8] sm:$0xff]  ;;  %v1567_v45 = vld [vmem:[#allocation7 + $0xc98] sm:$0xff] }
 0x39d   :  { %7357 = vmatprep.mubr.bf16.mxu0 %v14081_v7  ;;  %8056 = vmatprep.mubr.bf16.mxu1 %v14081_v7  ;;  %v11187_v7 = vcombine.high %v1511_v33, %v1515_v36  ;;  %v1558_v33 = vld [vmem:[#allocation7 + $0xc50] sm:$0xff]  ;;  %v1571_v13 = vld [vmem:[#allocation7 + $0xcb8] sm:$0xff] }
 0x39e   :  { %7413 = vmatpush1.bf16.msra.mxu0 %v11160_v60  ;;  %8105 = vmatpush1.bf16.msra.mxu1 %v11162_v43  ;;  %v1555_v60 = vld [vmem:[#allocation7 + $0xc38] sm:$0xff]  ;;  %v11216_v43 = vcombine.low %v1542_v37, %v1546_v56  ;;  %v14753_v37 = vld [vmem:[#allocation7 + $0xcd0] sm:$0xff] }
 0x39f   :  { %7414 = vmatprep.subr.bf16.mxu0 %v11169_v0  ;;  %8106 = vmatprep.subr.bf16.mxu1 %v11171_v19  ;;  %v11218_v0 = vcombine.low %v1543_v16, %v1547_v32  ;;  %v11225_v19 = vcombine.high %v1550_v17, %v1554_v50  ;;  %v11227_v34 = vcombine.high %v1551_v3, %v1555_v60  ;;  %v14755_v56 = vld [vmem:[#allocation7 + $0xcf0] sm:$0xff] }
 0x3a0   :  { %v11226_v26 = vcombine.low %v1551_v3, %v1555_v60 }
 0x3a2   :  { %7415 = vmatpush1.bf16.msra.mxu0 %v11168_v6  ;;  %8107 = vmatpush1.bf16.msra.mxu1 %v11170_v27 }
 0x3a3   :  { %7416 = vmatprep.subr.bf16.mxu0 %v11177_v25  ;;  %8108 = vmatprep.subr.bf16.mxu1 %v11179_v21 }
 0x3a4   :  { %7358 = vmatmul.mubr.bf16.gmra.mrb[88].mxu0 %v14077_v29  ;;  %8057 = vmatmul.mubr.bf16.gmra.mrb[96].mxu1 %v14077_v29  ;;  %v11192_v29 = vcombine.low %v1518_v31, %v1522_v24  ;;  %v11224_v24 = vcombine.low %v1550_v17, %v1554_v50  ;;  %v1575_v17 = vld [vmem:[#allocation7 + $0xcd8] sm:$0xff] }
 0x3a5   :  { %7367 = vmatprep.mubr.bf16.mxu0 %v14111_v59  ;;  %8064 = vmatprep.mubr.bf16.mxu1 %v14111_v59  ;;  %v11203_v59 = vcombine.high %v1527_v22, %v1531_v10  ;;  %v1579_v50 = vld [vmem:[#allocation7 + $0xcf8] sm:$0xff] }
 0x3a6   :  { %7417 = vmatpush1.bf16.msra.mxu0 %v11176_v58  ;;  %8109 = vmatpush1.bf16.msra.mxu1 %v11178_v48  ;;  %v1562_v58 = vld [vmem:[#allocation7 + $0xc70] sm:$0xff]  ;;  %v1559_v48 = vld [vmem:[#allocation7 + $0xc58] sm:$0xff] }
 0x3a7   :  { %7418 = vmatprep.subr.bf16.mxu0 %v11185_v44  ;;  %8110 = vmatprep.subr.bf16.mxu1 %v11187_v7  ;;  %v1563_v44 = vld [vmem:[#allocation7 + $0xc78] sm:$0xff]  ;;  %v11233_v10 = vcombine.high %v1558_v33, %v1562_v58 }
 0x3aa   :  { %7419 = vmatpush1.bf16.msra.mxu0 %v11184_v57  ;;  %8111 = vmatpush1.bf16.msra.mxu1 %v11186_v41 }
 0x3ab   :  { %7420 = vmatprep.subr.bf16.mxu0 %v11193_v28  ;;  %8112 = vmatprep.subr.bf16.mxu1 %v11195_v23 }
 0x3ac   :  { %7368 = vmatmul.mubr.bf16.gmra.mrb[92].mxu0 %v14109_v35  ;;  %8065 = vmatmul.mubr.bf16.gmra.mrb[100].mxu1 %v14109_v35  ;;  %v11208_v35 = vcombine.low %v1534_v20, %v1538_v49  ;;  %v15850_v20 = vld [vmem:[#allocation29_spill] sm:$0xff]  ;;  %v1570_v49 = vld [vmem:[#allocation7 + $0xcb0] sm:$0xff] }
 0x3ad   :  { %7377 = vmatprep.mubr.bf16.mxu0 %v14123_v9  ;;  %8072 = vmatprep.mubr.bf16.mxu1 %v14123_v9  ;;  %v11219_v9 = vcombine.high %v1543_v16, %v1547_v32 }
 0x3ae   :  { %7421 = vmatpush1.bf16.msra.mxu0 %v11192_v29  ;;  %8113 = vmatpush1.bf16.msra.mxu1 %v11194_v1  ;;  %v11235_v29 = vcombine.high %v1559_v48, %v1563_v44  ;;  %v1566_v1 = vld [vmem:[#allocation7 + $0xc90] sm:$0xff] }
 0x3af   :  { %7422 = vmatprep.subr.bf16.mxu0 %v11201_v46  ;;  %8114 = vmatprep.subr.bf16.mxu1 %v11203_v59  ;;  %v1639_v46 = vld [vmem:[#allocation7 + $0xed8] sm:$0xff] }
 0x3b2   :  { %7423 = vmatpush1.bf16.msra.mxu0 %v11200_v63  ;;  %8115 = vmatpush1.bf16.msra.mxu1 %v11202_v53  ;;  %v15851_v53 = vld [vmem:[#allocation30_spill] sm:$0xff] }
 0x3b3   :  { %7424 = vmatprep.subr.bf16.mxu0 %v11209_v14  ;;  %8116 = vmatprep.subr.bf16.mxu1 %v11211_v15  ;;  %v11232_v14 = vcombine.low %v1558_v33, %v1562_v58  ;;  %v11234_v15 = vcombine.low %v1559_v48, %v1563_v44  ;;  %v11251_v33 = vcombine.high %v1575_v17, %v1579_v50  ;;  %v15852_v48 = vld [vmem:[#allocation31_spill] sm:$0xff] }
 0x3b4   :  { %7378 = vmatmul.mubr.bf16.gmra.mrb[96].mxu0 %v14121_v2  ;;  %8073 = vmatmul.mubr.bf16.gmra.mrb[104].mxu1 %v14121_v2  ;;  %v15845_v2 = vld [vmem:[#allocation28_spill] sm:$0xff] }
 0x3b5   :  { %7387 = vmatprep.mubr.bf16.mxu0 %v14139_v51  ;;  %8080 = vmatprep.mubr.bf16.mxu1 %v14139_v51  ;;  %v15846_v51 = vld [vmem:[#allocation23_spill] sm:$0xff] }
 0x3b6   :  { %7425 = vmatpush1.bf16.msra.mxu0 %v11208_v35  ;;  %8117 = vmatpush1.bf16.msra.mxu1 %v11210_v12  ;;  %v15847_v4 = vsub.s32 0, %v15846_v51  ;;  %v15848_v6 = vsub.s32 2, %v15846_v51  ;;  %v15849_v8 = vsub.s32 1, %v15846_v51  ;;  %v11241_v35 = vcombine.high %v1566_v1, %v1570_v49  ;;  %v1586_v44 = vld [vmem:[#allocation7 + $0xd30] sm:$0xff] }
 0x3b7   :  { %7426 = vmatprep.subr.bf16.mxu0 %v11217_v52  ;;  %8118 = vmatprep.subr.bf16.mxu1 %v11219_v9  ;;  %v11243_v12 = vcombine.high %v1567_v45, %v1571_v13 }
 0x3b8   :  { %v14715_v30 = vrot.slane %v1932_v47, %v15847_v4  ;;  %v14719_v27 = vrot.slane %v1932_v47, %v15848_v6  ;;  %v14723_v55 = vrot.slane %v1932_v47, %v15849_v8 }
 0x3ba   :  { %7427 = vmatpush1.bf16.msra.mxu0 %v11216_v43  ;;  %8119 = vmatpush1.bf16.msra.mxu1 %v11218_v0  ;;  %v11240_v0 = vcombine.low %v1566_v1, %v1570_v49 }
 0x3bb   :  { %7517 = vmatprep.subr.bf16.mxu0 %v11225_v19  ;;  %8192 = vmatprep.subr.bf16.mxu1 %v11227_v34  ;;  %v11242_v19 = vcombine.low %v1567_v45, %v1571_v13  ;;  %v11249_v34 = vcombine.high %v14753_v37, %v14755_v56 }
 0x3bc   :  { %7388 = vmatmul.mubr.bf16.gmra.mrb[100].mxu0 %v14137_v42  ;;  %8081 = vmatmul.mubr.bf16.gmra.mrb[108].mxu1 %v14137_v42 }
 0x3bd   :  { %7428 = vmatprep.mubr.bf16.mxu0 %v15845_v2  ;;  %8120 = vmatprep.mubr.bf16.mxu1 %v15845_v2 }
 0x3bf   :  { %v6443_v25 = vpop.f32.mrb[32].mxu0  ;;  %v7084_v21 = vpop.f32.mrb[40].mxu1 }
 0x3c0   :  { %v6445_v42 = vpop.f32.mrb[33].mxu0  ;;  %v7086_v36 = vpop.f32.mrb[41].mxu1  ;;  %v14726_v39 = vadd.f32 %v6443_v25, %v14715_v30  ;;  %v14729_v57 = vadd.f32 %v7084_v21, %v14719_v27 }
 0x3c1   :  { %v6447_v7 = vpop.f32.mrb[34].mxu0  ;;  %v7087_v31 = vpop.f32.mrb[42].mxu1  ;;  %v14738_v62 = vadd.f32 %v6445_v42, %v14723_v55  ;;  %v1582_v42 = vld [vmem:[#allocation7 + $0xd10] sm:$0xff] }
 0x3c2   :  { %v14732_v41 = vadd.f32 %v6447_v7, %v14715_v30  ;;  %v14735_v28 = vadd.f32 %v7087_v31, %v14719_v27  ;;  %v6449_v23 = vpop.f32.mrb[35].mxu0  ;;  %v7089_v18 = vpop.f32.mrb[43].mxu1  ;;  %v1583_v7 = vld [vmem:[#allocation7 + $0xd18] sm:$0xff]  ;;  %v11257_v49 = vcombine.high %v1582_v42, %v1586_v44 }
 0x3c3   :  { %v14741_v22 = vadd.f32 %v6449_v23, %v14723_v55  ;;  %v1587_v31 = vld [vmem:[#allocation7 + $0xd38] sm:$0xff]  ;;  %v11248_v23 = vcombine.low %v14753_v37, %v14755_v56  ;;  %v11250_v18 = vcombine.low %v1575_v17, %v1579_v50  ;;  %v11256_v56 = vcombine.low %v1582_v42, %v1586_v44  ;;  %v1602_v42 = vld [vmem:[#allocation7 + $0xdb0] sm:$0xff] }
 0x3c4   :  { %7429 = vmatmul.mubr.bf16.vlgmr.msra.gmra.mrb[68].mxu0 %v15850_v20  ;;  %8121 = vmatmul.mubr.bf16.vlgmr.msra.gmra.mrb[76].mxu1 %v15850_v20  ;;  %v11259_v45 = vcombine.high %v1583_v7, %v1587_v31  ;;  %v1603_v44 = vld [vmem:[#allocation7 + $0xdb8] sm:$0xff] }
 0x3c5   :  { %7438 = vmatprep.mubr.bf16.mxu0 %v15851_v53  ;;  %8128 = vmatprep.mubr.bf16.mxu1 %v15851_v53 }
 0x3c6   :  { %7518 = vmatpush1.bf16.msra.mxu0 %v11224_v24  ;;  %8193 = vmatpush1.bf16.msra.mxu1 %v11226_v26  ;;  %v15853_v26 = vld [vmem:[#allocation32_spill] sm:$0xff] }
 0x3c7   :  { %v6453_v16 = vpop.f32.mrb[36].mxu0  ;;  %v7092_v32 = vpop.f32.mrb[44].mxu1  ;;  %7519 = vmatprep.subr.bf16.mxu0 %v11233_v10  ;;  %8194 = vmatprep.subr.bf16.mxu1 %v11235_v29  ;;  %v14789_v10 = vld [vmem:[#allocation7 + $0xd50] sm:$0xff] }
 0x3c8   :  { %v6455_v52 = vpop.f32.mrb[37].mxu0  ;;  %v7094_v9 = vpop.f32.mrb[45].mxu1  ;;  %v14758_v3 = vadd.f32 %v6453_v16, %v14715_v30  ;;  %v14763_v47 = vadd.f32 %v7092_v32, %v14719_v27  ;;  %v14791_v29 = vld [vmem:[#allocation7 + $0xd70] sm:$0xff] }
 0x3c9   :  { %v6457_v60 = vpop.f32.mrb[38].mxu0  ;;  %v7095_v43 = vpop.f32.mrb[46].mxu1  ;;  %v14772_v21 = vadd.f32 %v6455_v52, %v14723_v55 }
 0x3ca   :  { %v14766_v2 = vadd.f32 %v6457_v60, %v14715_v30  ;;  %v14769_v4 = vadd.f32 %v7095_v43, %v14719_v27  ;;  %v6459_v6 = vpop.f32.mrb[39].mxu0  ;;  %v7097_v25 = vpop.f32.mrb[47].mxu1  ;;  %7520 = vmatpush1.bf16.msra.mxu0 %v11232_v14  ;;  %8195 = vmatpush1.bf16.msra.mxu1 %v11234_v15  ;;  %v1591_v14 = vld [vmem:[#allocation7 + $0xd58] sm:$0xff] }
 0x3cb   :  { %v14775_v8 = vadd.f32 %v6459_v6, %v14723_v55  ;;  %7521 = vmatprep.subr.bf16.mxu0 %v11241_v35  ;;  %8196 = vmatprep.subr.bf16.mxu1 %v11243_v12  ;;  %v1595_v15 = vld [vmem:[#allocation7 + $0xd78] sm:$0xff]  ;;  %v11258_v35 = vcombine.low %v1583_v7, %v1587_v31  ;;  %v11265_v12 = vcombine.high %v14789_v10, %v14791_v29  ;;  %v15855_v31 = vld [vmem:[#allocation34_spill] sm:$0xff] }
 0x3cc   :  { %7439 = vmatmul.mubr.bf16.gmra.mrb[72].mxu0 %v15852_v48  ;;  %8129 = vmatmul.mubr.bf16.gmra.mrb[80].mxu1 %v15852_v48  ;;  %v1599_v48 = vld [vmem:[#allocation7 + $0xd98] sm:$0xff] }
 0x3cd   :  { %7448 = vmatprep.mubr.bf16.mxu0 %v15853_v26  ;;  %8136 = vmatprep.mubr.bf16.mxu1 %v15853_v26  ;;  %v11264_v26 = vcombine.low %v14789_v10, %v14791_v29  ;;  %v1623_v6 = vld [vmem:[#allocation7 + $0xe58] sm:$0xff] }
 0x3ce   :  { %7522 = vmatpush1.bf16.msra.mxu0 %v11240_v0  ;;  %8197 = vmatpush1.bf16.msra.mxu1 %v11242_v19  ;;  %v11267_v19 = vcombine.high %v1591_v14, %v1595_v15 }
 0x3cf   :  { %v6463_v1 = vpop.f32.mrb[40].mxu0  ;;  %v7100_v20 = vpop.f32.mrb[48].mxu1  ;;  %7523 = vmatprep.subr.bf16.mxu0 %v11249_v34  ;;  %8198 = vmatprep.subr.bf16.mxu1 %v11251_v33  ;;  %v1598_v34 = vld [vmem:[#allocation7 + $0xd90] sm:$0xff]  ;;  %v15854_v33 = vld [vmem:[#allocation33_spill] sm:$0xff] }
 0x3d0   :  { %v6465_v13 = vpop.f32.mrb[41].mxu0  ;;  %v7102_v53 = vpop.f32.mrb[49].mxu1  ;;  %v14794_v16 = vadd.f32 %v6463_v1, %v14715_v30  ;;  %v14799_v52 = vadd.f32 %v7100_v20, %v14719_v27  ;;  %v14827_v1 = vld [vmem:[#allocation7 + $0xdf0] sm:$0xff]  ;;  %v11272_v29 = vcombine.low %v1598_v34, %v1602_v42 }
 0x3d1   :  { %v6467_v32 = vpop.f32.mrb[42].mxu0  ;;  %v7103_v37 = vpop.f32.mrb[50].mxu1  ;;  %v14808_v43 = vadd.f32 %v6465_v13, %v14723_v55  ;;  %v11275_v13 = vcombine.high %v1599_v48, %v1603_v44 }
 0x3d2   :  { %v14802_v9 = vadd.f32 %v6467_v32, %v14715_v30  ;;  %v14805_v17 = vadd.f32 %v7103_v37, %v14719_v27  ;;  %v6469_v50 = vpop.f32.mrb[43].mxu0  ;;  %v7105_v60 = vpop.f32.mrb[51].mxu1  ;;  %7524 = vmatpush1.bf16.msra.mxu0 %v11248_v23  ;;  %8199 = vmatpush1.bf16.msra.mxu1 %v11250_v18  ;;  %v11266_v23 = vcombine.low %v1591_v14, %v1595_v15  ;;  %v14825_v18 = vld [vmem:[#allocation7 + $0xdd0] sm:$0xff]  ;;  %v1607_v37 = vld [vmem:[#allocation7 + $0xdd8] sm:$0xff] }
 0x3d3   :  { %v14811_v0 = vadd.f32 %v6469_v50, %v14723_v55  ;;  %7525 = vmatprep.subr.bf16.mxu0 %v11257_v49  ;;  %8200 = vmatprep.subr.bf16.mxu1 %v11259_v45  ;;  %v11273_v45 = vcombine.high %v1598_v34, %v1602_v42  ;;  %v1611_v50 = vld [vmem:[#allocation7 + $0xdf8] sm:$0xff]  ;;  %v11274_v14 = vcombine.low %v1599_v48, %v1603_v44  ;;  %v1614_v48 = vld [vmem:[#allocation7 + $0xe10] sm:$0xff] }
 0x3d4   :  { %7449 = vmatmul.mubr.bf16.gmra.mrb[76].mxu0 %v15854_v33  ;;  %8137 = vmatmul.mubr.bf16.gmra.mrb[84].mxu1 %v15854_v33  ;;  %v11281_v15 = vcombine.high %v14825_v18, %v14827_v1  ;;  %v11283_v42 = vcombine.high %v1607_v37, %v1611_v50 }
 0x3d5   :  { %7458 = vmatprep.mubr.bf16.mxu0 %v15855_v31  ;;  %8144 = vmatprep.mubr.bf16.mxu1 %v15855_v31 }
 0x3d6   :  { %7526 = vmatpush1.bf16.msra.mxu0 %v11256_v56  ;;  %8201 = vmatpush1.bf16.msra.mxu1 %v11258_v35 }
 0x3d7   :  { %v6473_v20 = vpop.f32.mrb[44].mxu0  ;;  %v7108_v49 = vpop.f32.mrb[52].mxu1  ;;  %7527 = vmatprep.subr.bf16.mxu0 %v11265_v12  ;;  %8202 = vmatprep.subr.bf16.mxu1 %v11267_v19 }
 0x3d8   :  { %v6475_v53 = vpop.f32.mrb[45].mxu0  ;;  %v7110_v32 = vpop.f32.mrb[53].mxu1  ;;  %v14830_v56 = vadd.f32 %v6473_v20, %v14715_v30  ;;  %v14835_v60 = vadd.f32 %v7108_v49, %v14719_v27 }
 0x3d9   :  { %v6477_v35 = vpop.f32.mrb[46].mxu0  ;;  %v7111_v10 = vpop.f32.mrb[54].mxu1  ;;  %v14844_v20 = vadd.f32 %v6475_v53, %v14723_v55  ;;  %v15856_v32 = vld [vmem:[#allocation35_spill] sm:$0xff]  ;;  %v1619_v53 = vld [vmem:[#allocation7 + $0xe38] sm:$0xff] }
 0x3da   :  { %v14838_v12 = vadd.f32 %v6477_v35, %v14715_v30  ;;  %v14841_v19 = vadd.f32 %v7111_v10, %v14719_v27  ;;  %v6479_v33 = vpop.f32.mrb[47].mxu0  ;;  %v7113_v31 = vpop.f32.mrb[55].mxu1  ;;  %7528 = vmatpush1.bf16.msra.mxu0 %v11264_v26  ;;  %8203 = vmatpush1.bf16.msra.mxu1 %v11266_v23  ;;  %v1618_v26 = vld [vmem:[#allocation7 + $0xe30] sm:$0xff]  ;;  %v1615_v23 = vld [vmem:[#allocation7 + $0xe18] sm:$0xff]  ;;  %v11282_v10 = vcombine.low %v1607_v37, %v1611_v50 }
 0x3db   :  { %v14847_v34 = vadd.f32 %v6479_v33, %v14723_v55  ;;  %7529 = vmatprep.subr.bf16.mxu0 %v11273_v45  ;;  %8204 = vmatprep.subr.bf16.mxu1 %v11275_v13  ;;  %v15857_v45 = vld [vmem:[#allocation36_spill] sm:$0xff]  ;;  %v11280_v13 = vcombine.low %v14825_v18, %v14827_v1  ;;  %v11289_v44 = vcombine.high %v1614_v48, %v1618_v26 }
 0x3dc   :  { %7459 = vmatmul.mubr.bf16.gmra.mrb[80].mxu0 %v15856_v32  ;;  %8145 = vmatmul.mubr.bf16.gmra.mrb[88].mxu1 %v15856_v32  ;;  %v14861_v33 = vld [vmem:[#allocation7 + $0xe50] sm:$0xff]  ;;  %v11291_v35 = vcombine.high %v1615_v23, %v1619_v53  ;;  %v11288_v1 = vcombine.low %v1614_v48, %v1618_v26  ;;  %v11290_v37 = vcombine.low %v1615_v23, %v1619_v53 }
 0x3dd   :  { %7468 = vmatprep.mubr.bf16.mxu0 %v15857_v45  ;;  %8152 = vmatprep.mubr.bf16.mxu1 %v15857_v45  ;;  %v14863_v31 = vld [vmem:[#allocation7 + $0xe70] sm:$0xff]  ;;  %v1627_v45 = vld [vmem:[#allocation7 + $0xe78] sm:$0xff] }
 0x3de   :  { %7530 = vmatpush1.bf16.msra.mxu0 %v11272_v29  ;;  %8205 = vmatpush1.bf16.msra.mxu1 %v11274_v14  ;;  %v11297_v50 = vcombine.high %v14861_v33, %v14863_v31  ;;  %v1630_v26 = vld [vmem:[#allocation7 + $0xe90] sm:$0xff] }
 0x3df   :  { %v6483_v32 = vpop.f32.mrb[48].mxu0  ;;  %v7116_v49 = vpop.f32.mrb[56].mxu1  ;;  %7531 = vmatprep.subr.bf16.mxu0 %v11281_v15  ;;  %8206 = vmatprep.subr.bf16.mxu1 %v11283_v42  ;;  %v14899_v53 = vld [vmem:[#allocation7 + $0xef0] sm:$0xff] }
 0x3e0   :  { %v6485_v7 = vpop.f32.mrb[49].mxu0  ;;  %v7118_v25 = vpop.f32.mrb[57].mxu1  ;;  %v14866_v29 = vadd.f32 %v6483_v32, %v14715_v30  ;;  %v14871_v24 = vadd.f32 %v7116_v49, %v14719_v27  ;;  %v11299_v49 = vcombine.high %v1623_v6, %v1627_v45 }
 0x3e1   :  { %v6487_v14 = vpop.f32.mrb[50].mxu0  ;;  %v7119_v18 = vpop.f32.mrb[58].mxu1  ;;  %v14880_v32 = vadd.f32 %v6485_v7, %v14723_v55  ;;  %v1631_v7 = vld [vmem:[#allocation7 + $0xe98] sm:$0xff] }
 0x3e2   :  { %v14874_v15 = vadd.f32 %v6487_v14, %v14715_v30  ;;  %v14877_v25 = vadd.f32 %v7119_v18, %v14719_v27  ;;  %v6489_v42 = vpop.f32.mrb[51].mxu0  ;;  %v7121_v58 = vpop.f32.mrb[59].mxu1  ;;  %7532 = vmatpush1.bf16.msra.mxu0 %v11280_v13  ;;  %8207 = vmatpush1.bf16.msra.mxu1 %v11282_v10  ;;  %v15860_v14 = vld [vmem:[#allocation37_spill] sm:$0xff]  ;;  %v11298_v18 = vcombine.low %v1623_v6, %v1627_v45 }
 0x3e3   :  { %15858 = vst [vmem:[#allocation28_spill] sm:$0xff] %v14880_v32  ;;  %v14883_v48 = vadd.f32 %v6489_v42, %v14723_v55  ;;  %7533 = vmatprep.subr.bf16.mxu0 %v11289_v44  ;;  %8208 = vmatprep.subr.bf16.mxu1 %v11291_v35  ;;  %v1634_v58 = vld [vmem:[#allocation7 + $0xeb0] sm:$0xff]  ;;  %v1635_v13 = vld [vmem:[#allocation7 + $0xeb8] sm:$0xff]  ;;  %v15861_v44 = vld [vmem:[#allocation38_spill] sm:$0xff]  ;;  %v11296_v35 = vcombine.low %v14861_v33, %v14863_v31 }
 0x3e4   :  { %7469 = vmatmul.mubr.bf16.gmra.mrb[84].mxu0 %v15860_v14  ;;  %8153 = vmatmul.mubr.bf16.gmra.mrb[92].mxu1 %v15860_v14  ;;  %v14897_v42 = vld [vmem:[#allocation7 + $0xed0] sm:$0xff]  ;;  %v11305_v36 = vcombine.high %v1630_v26, %v1634_v58  ;;  %v11307_v10 = vcombine.high %v1631_v7, %v1635_v13  ;;  %v11304_v6 = vcombine.low %v1630_v26, %v1634_v58 }
 0x3e5   :  { %15859 = vst [vmem:[#allocation23_spill] sm:$0xff] %v14883_v48  ;;  %7478 = vmatprep.mubr.bf16.mxu0 %v15861_v44  ;;  %8160 = vmatprep.mubr.bf16.mxu1 %v15861_v44  ;;  %v1643_v44 = vld [vmem:[#allocation7 + $0xef8] sm:$0xff]  ;;  %v11306_v31 = vcombine.low %v1631_v7, %v1635_v13  ;;  %v11313_v45 = vcombine.high %v14897_v42, %v14899_v53  ;;  %v1646_v58 = vld [vmem:[#allocation7 + $0xf10] sm:$0xff] }
 0x3e6   :  { %7534 = vmatpush1.bf16.msra.mxu0 %v11288_v1  ;;  %8209 = vmatpush1.bf16.msra.mxu1 %v11290_v37  ;;  %v14935_v13 = vld [vmem:[#allocation7 + $0xf70] sm:$0xff] }
 0x3e7   :  { %v6493_v14 = vpop.f32.mrb[52].mxu0  ;;  %v7124_v23 = vpop.f32.mrb[60].mxu1  ;;  %7535 = vmatprep.subr.bf16.mxu0 %v11297_v50  ;;  %8210 = vmatprep.subr.bf16.mxu1 %v11299_v49 }
 0x3e8   :  { %v6495_v63 = vpop.f32.mrb[53].mxu0  ;;  %v7126_v59 = vpop.f32.mrb[61].mxu1  ;;  %v14902_v1 = vadd.f32 %v6493_v14, %v14715_v30  ;;  %v14907_v32 = vadd.f32 %v7124_v23, %v14719_v27  ;;  %v11315_v23 = vcombine.high %v1639_v46, %v1643_v44 }
 0x3e9   :  { %v6497_v37 = vpop.f32.mrb[54].mxu0  ;;  %v7127_v33 = vpop.f32.mrb[62].mxu1  ;;  %v14916_v14 = vadd.f32 %v6495_v63, %v14723_v55  ;;  %v1647_v63 = vld [vmem:[#allocation7 + $0xf18] sm:$0xff] }
 0x3ea   :  { %15862 = vst [vmem:[#allocation29_spill] sm:$0xff] %v14902_v1  ;;  %15863 = vst [vmem:[#allocation30_spill] sm:$0xff] %v14907_v32  ;;  %v14910_v50 = vadd.f32 %v6497_v37, %v14715_v30  ;;  %v14913_v59 = vadd.f32 %v7127_v33, %v14719_v27  ;;  %v6499_v49 = vpop.f32.mrb[55].mxu0  ;;  %v7129_v48 = vpop.f32.mrb[63].mxu1  ;;  %7536 = vmatpush1.bf16.msra.mxu0 %v11296_v35  ;;  %8211 = vmatpush1.bf16.msra.mxu1 %v11298_v18  ;;  %v15868_v37 = vld [vmem:[#allocation39_spill] sm:$0xff]  ;;  %v1651_v35 = vld [vmem:[#allocation7 + $0xf38] sm:$0xff] }
 0x3eb   :  { %15866 = vst [vmem:[#allocation33_spill] sm:$0xff] %v14916_v14  ;;  %v14919_v26 = vadd.f32 %v6499_v49, %v14723_v55  ;;  %7537 = vmatprep.subr.bf16.mxu0 %v11305_v36  ;;  %8212 = vmatprep.subr.bf16.mxu1 %v11307_v10  ;;  %v1650_v48 = vld [vmem:[#allocation7 + $0xf30] sm:$0xff]  ;;  %v11312_v10 = vcombine.low %v14897_v42, %v14899_v53 }
 0x3ec   :  { %15864 = vst [vmem:[#allocation31_spill] sm:$0xff] %v14910_v50  ;;  %15865 = vst [vmem:[#allocation32_spill] sm:$0xff] %v14913_v59  ;;  %7479 = vmatmul.mubr.bf16.gmra.mrb[88].mxu0 %v15868_v37  ;;  %8161 = vmatmul.mubr.bf16.gmra.mrb[96].mxu1 %v15868_v37  ;;  %v15869_v36 = vld [vmem:[#allocation40_spill] sm:$0xff]  ;;  %v11314_v33 = vcombine.low %v1639_v46, %v1643_v44  ;;  %v11321_v32 = vcombine.high %v1646_v58, %v1650_v48 }
 0x3ed   :  { %15867 = vst [vmem:[#allocation34_spill] sm:$0xff] %v14919_v26  ;;  %7488 = vmatprep.mubr.bf16.mxu0 %v15869_v36  ;;  %8168 = vmatprep.mubr.bf16.mxu1 %v15869_v36  ;;  %v14933_v49 = vld [vmem:[#allocation7 + $0xf50] sm:$0xff]  ;;  %v11323_v18 = vcombine.high %v1647_v63, %v1651_v35  ;;  %v1655_v59 = vld [vmem:[#allocation7 + $0xf58] sm:$0xff]  ;;  %v11320_v46 = vcombine.low %v1646_v58, %v1650_v48 }
 0x3ee   :  { %7538 = vmatpush1.bf16.msra.mxu0 %v11304_v6  ;;  %8213 = vmatpush1.bf16.msra.mxu1 %v11306_v31  ;;  %v1659_v36 = vld [vmem:[#allocation7 + $0xf78] sm:$0xff]  ;;  %v11322_v42 = vcombine.low %v1647_v63, %v1651_v35  ;;  %v11329_v44 = vcombine.high %v14933_v49, %v14935_v13  ;;  %v1662_v48 = vld [vmem:[#allocation7 + $0xf90] sm:$0xff] }
 0x3ef   :  { %v6503_v37 = vpop.f32.mrb[56].mxu0  ;;  %v7132_v7 = vpop.f32.mrb[64].mxu1  ;;  %7539 = vmatprep.subr.bf16.mxu0 %v11313_v45  ;;  %8214 = vmatprep.subr.bf16.mxu1 %v11315_v23  ;;  %v1674_v35 = vld [vmem:[#allocation7 + $0xff0] sm:$0xff] }
 0x3f0   :  { %v6505_v14 = vpop.f32.mrb[57].mxu0  ;;  %v7134_v26 = vpop.f32.mrb[65].mxu1  ;;  %v14938_v6 = vadd.f32 %v6503_v37, %v14715_v30  ;;  %v14943_v1 = vadd.f32 %v7132_v7, %v14719_v27  ;;  %v11331_v7 = vcombine.high %v1655_v59, %v1659_v36 }
 0x3f1   :  { %v6507_v31 = vpop.f32.mrb[58].mxu0  ;;  %v7135_v53 = vpop.f32.mrb[66].mxu1  ;;  %v14952_v37 = vadd.f32 %v6505_v14, %v14723_v55  ;;  %v1663_v14 = vld [vmem:[#allocation7 + $0xf98] sm:$0xff] }
 0x3f2   :  { %15870 = vst [vmem:[#allocation35_spill] sm:$0xff] %v14938_v6  ;;  %15871 = vst [vmem:[#allocation36_spill] sm:$0xff] %v14943_v1  ;;  %v14946_v45 = vadd.f32 %v6507_v31, %v14715_v30  ;;  %v14949_v26 = vadd.f32 %v7135_v53, %v14719_v27  ;;  %v6509_v23 = vpop.f32.mrb[59].mxu0  ;;  %v7137_v50 = vpop.f32.mrb[67].mxu1  ;;  %7540 = vmatpush1.bf16.msra.mxu0 %v11312_v10  ;;  %8215 = vmatpush1.bf16.msra.mxu1 %v11314_v33  ;;  %v15876_v31 = vld [vmem:[#allocation41_spill] sm:$0xff] }
 0x3f3   :  { %15874 = vst [vmem:[#allocation39_spill] sm:$0xff] %v14952_v37  ;;  %v14955_v58 = vadd.f32 %v6509_v23, %v14723_v55  ;;  %7541 = vmatprep.subr.bf16.mxu0 %v11321_v32  ;;  %8216 = vmatprep.subr.bf16.mxu1 %v11323_v18  ;;  %v1666_v50 = vld [vmem:[#allocation7 + $0xfb0] sm:$0xff]  ;;  %v1667_v10 = vld [vmem:[#allocation7 + $0xfb8] sm:$0xff]  ;;  %v15877_v32 = vld [vmem:[#allocation42_spill] sm:$0xff]  ;;  %v11328_v18 = vcombine.low %v14933_v49, %v14935_v13 }
 0x3f4   :  { %15872 = vst [vmem:[#allocation37_spill] sm:$0xff] %v14946_v45  ;;  %15873 = vst [vmem:[#allocation38_spill] sm:$0xff] %v14949_v26  ;;  %7489 = vmatmul.mubr.bf16.gmra.mrb[92].mxu0 %v15876_v31  ;;  %8169 = vmatmul.mubr.bf16.gmra.mrb[100].mxu1 %v15876_v31  ;;  %v11330_v53 = vcombine.low %v1655_v59, %v1659_v36  ;;  %v1670_v23 = vld [vmem:[#allocation7 + $0xfd0] sm:$0xff]  ;;  %v11337_v1 = vcombine.high %v1662_v48, %v1666_v50  ;;  %v1671_v37 = vld [vmem:[#allocation7 + $0xfd8] sm:$0xff] }
 0x3f5   :  { %15875 = vst [vmem:[#allocation40_spill] sm:$0xff] %v14955_v58  ;;  %7498 = vmatprep.mubr.bf16.mxu0 %v15877_v32  ;;  %8176 = vmatprep.mubr.bf16.mxu1 %v15877_v32  ;;  %v11339_v26 = vcombine.high %v1663_v14, %v1667_v10  ;;  %v1675_v58 = vld [vmem:[#allocation7 + $0xff8] sm:$0xff]  ;;  %v11336_v45 = vcombine.low %v1662_v48, %v1666_v50 }
 0x3f6   :  { %7542 = vmatpush1.bf16.msra.mxu0 %v11320_v46  ;;  %8217 = vmatpush1.bf16.msra.mxu1 %v11322_v42  ;;  %v11338_v13 = vcombine.low %v1663_v14, %v1667_v10  ;;  %v11345_v59 = vcombine.high %v1670_v23, %v1674_v35  ;;  %v11347_v50 = vcombine.high %v1671_v37, %v1675_v58  ;;  %v1678_v14 = vld [vmem:[#allocation7 + $0x1010] sm:$0xff] }
 0x3f7   :  { %v6513_v63 = vpop.f32.mrb[60].mxu0  ;;  %v7140_v31 = vpop.f32.mrb[68].mxu1  ;;  %7543 = vmatprep.subr.bf16.mxu0 %v11329_v44  ;;  %8218 = vmatprep.subr.bf16.mxu1 %v11331_v7 }
 0x3f8   :  { %v6515_v6 = vpop.f32.mrb[61].mxu0  ;;  %v7142_v33 = vpop.f32.mrb[69].mxu1  ;;  %v14970_v32 = vadd.f32 %v6513_v63, %v14715_v30  ;;  %v14973_v49 = vadd.f32 %v7140_v31, %v14719_v27 }
 0x3f9   :  { %v6517_v46 = vpop.f32.mrb[62].mxu0  ;;  %v7143_v42 = vpop.f32.mrb[70].mxu1  ;;  %v14982_v63 = vadd.f32 %v6515_v6, %v14723_v55  ;;  %v1679_v6 = vld [vmem:[#allocation7 + $0x1018] sm:$0xff] }
 0x3fa   :  { %15878 = vst [vmem:[#allocation41_spill] sm:$0xff] %v14970_v32  ;;  %15879 = vst [vmem:[#allocation42_spill] sm:$0xff] %v14973_v49  ;;  %v14976_v36 = vadd.f32 %v6517_v46, %v14715_v30  ;;  %v14979_v44 = vadd.f32 %v7143_v42, %v14719_v27  ;;  %v6519_v7 = vpop.f32.mrb[63].mxu0  ;;  %v7145_v33 = vpop.f32.mrb[71].mxu1  ;;  %7544 = vmatpush1.bf16.msra.mxu0 %v11328_v18  ;;  %8219 = vmatpush1.bf16.msra.mxu1 %v11330_v53  ;;  %v15884_v46 = vld [vmem:[#allocation44_spill] sm:$0xff] }
 0x3fb   :  { %15882 = vst [vmem:[#allocation92_spill] sm:$0xff] %v14982_v63  ;;  %v14985_v48 = vadd.f32 %v6519_v7, %v14723_v55  ;;  %7545 = vmatprep.subr.bf16.mxu0 %v11337_v1  ;;  %8220 = vmatprep.subr.bf16.mxu1 %v11339_v26  ;;  %v1682_v18 = vld [vmem:[#allocation7 + $0x1030] sm:$0xff]  ;;  %v1683_v53 = vld [vmem:[#allocation7 + $0x1038] sm:$0xff]  ;;  %v11344_v26 = vcombine.low %v1670_v23, %v1674_v35 }
 0x3fc   :  { %15880 = vst [vmem:[#allocation90_spill] sm:$0xff] %v14976_v36  ;;  %15881 = vst [vmem:[#allocation91_spill] sm:$0xff] %v14979_v44  ;;  %7499 = vmatmul.mubr.bf16.gmra.mrb[96].mxu0 %v15884_v46  ;;  %8177 = vmatmul.mubr.bf16.gmra.mrb[104].mxu1 %v15884_v46  ;;  %v15885_v1 = vld [vmem:[#allocation43_spill] sm:$0xff]  ;;  %v11346_v7 = vcombine.low %v1671_v37, %v1675_v58  ;;  %v11353_v46 = vcombine.high %v1678_v14, %v1682_v18  ;;  %v15888_v37 = vld [vmem:[#allocation45_spill] sm:$0xff] }
 0x3fd   :  { %15883 = vst [vmem:[#allocation93_spill] sm:$0xff] %v14985_v48  ;;  %7508 = vmatprep.mubr.bf16.mxu0 %v15885_v1  ;;  %8184 = vmatprep.mubr.bf16.mxu1 %v15885_v1  ;;  %v11355_v10 = vcombine.high %v1679_v6, %v1683_v53  ;;  %v1686_v58 = vld [vmem:[#allocation7 + $0x1050] sm:$0xff]  ;;  %v1687_v23 = vld [vmem:[#allocation7 + $0x1058] sm:$0xff] }
 0x3fe   :  { %7546 = vmatpush1.bf16.msra.mxu0 %v11336_v45  ;;  %8221 = vmatpush1.bf16.msra.mxu1 %v11338_v13  ;;  %v15887_v45 = vld [vmem:[#allocation25_spill] sm:$0xff]  ;;  %v1690_v35 = vld [vmem:[#allocation7 + $0x1070] sm:$0xff] }
 0x3ff   :  { %v14997_v33 = vpop.f32.mrb[64].mxu0  ;;  %v14999_v31 = vpop.f32.mrb[72].mxu1  ;;  %7547 = vmatprep.subr.bf16.mxu0 %v11345_v59  ;;  %8222 = vmatprep.subr.bf16.mxu1 %v11347_v50  ;;  %v1691_v13 = vld [vmem:[#allocation7 + $0x1078] sm:$0xff]  ;;  %v11352_v59 = vcombine.low %v1678_v14, %v1682_v18  ;;  %v15889_v50 = vld [vmem:[#allocation46_spill] sm:$0xff] }
 0x400   :  { %v15001_v49 = vpop.f32.mrb[65].mxu0  ;;  %v7150_v44 = vpop.f32.mrb[73].mxu1  ;;  %v1699_v1 = vld [vmem:[#allocation7 + $0x10b8] sm:$0xff] }
 0x401   :  { %15886 = vst [vmem:[#allocation44_spill] sm:$0xff] %v15001_v49  ;;  %v6527_v42 = vpop.f32.mrb[66].mxu0  ;;  %v7151_v63 = vpop.f32.mrb[74].mxu1  ;;  %v11354_v44 = vcombine.low %v1679_v6, %v1683_v53  ;;  %v1702_v6 = vld [vmem:[#allocation7 + $0x10d0] sm:$0xff] }
 0x402   :  { %v6528_v48 = vpop.f32.mrb[67].mxu0  ;;  %v7152_v32 = vpop.f32.mrb[75].mxu1  ;;  %7548 = vmatpush1.bf16.msra.mxu0 %v11344_v26  ;;  %8223 = vmatpush1.bf16.msra.mxu1 %v11346_v7  ;;  %v11361_v63 = vcombine.high %v1686_v58, %v1690_v35  ;;  %v1695_v42 = vld [vmem:[#allocation7 + $0x1098] sm:$0xff]  ;;  %v15890_v26 = vld [vmem:[#allocation47_spill] sm:$0xff]  ;;  %v11360_v7 = vcombine.low %v1686_v58, %v1690_v35 }
 0x403   :  { %7638 = vmatprep.subr.bf16.mxu0 %v11353_v46  ;;  %8296 = vmatprep.subr.bf16.mxu1 %v11355_v10  ;;  %v11363_v32 = vcombine.high %v1687_v23, %v1691_v13  ;;  %v1694_v48 = vld [vmem:[#allocation7 + $0x1090] sm:$0xff]  ;;  %v11362_v46 = vcombine.low %v1687_v23, %v1691_v13  ;;  %v11371_v18 = vcombine.high %v1695_v42, %v1699_v1  ;;  %v1711_v35 = vld [vmem:[#allocation7 + $0x1118] sm:$0xff] }
 0x404   :  { %7509 = vmatmul.mubr.bf16.gmra.mrb[100].mxu0 %v15887_v45  ;;  %8185 = vmatmul.mubr.bf16.gmra.mrb[108].mxu1 %v15887_v45  ;;  %v1698_v10 = vld [vmem:[#allocation7 + $0x10b0] sm:$0xff]  ;;  %v1703_v45 = vld [vmem:[#allocation7 + $0x10d8] sm:$0xff]  ;;  %v11370_v36 = vcombine.low %v1695_v42, %v1699_v1 }
 0x405   :  { %7549 = vmatprep.mubr.bf16.mxu0 %v15888_v37  ;;  %8224 = vmatprep.mubr.bf16.mxu1 %v15888_v37  ;;  %v11369_v14 = vcombine.high %v1694_v48, %v1698_v10  ;;  %v1706_v53 = vld [vmem:[#allocation7 + $0x10f0] sm:$0xff]  ;;  %v1707_v37 = vld [vmem:[#allocation7 + $0x10f8] sm:$0xff] }
 0x406   :  { %v11377_v49 = vcombine.high %v1702_v6, %v1706_v53  ;;  %v1714_v58 = vld [vmem:[#allocation7 + $0x1130] sm:$0xff]  ;;  %v1715_v23 = vld [vmem:[#allocation7 + $0x1138] sm:$0xff] }
 0x407   :  { %v15892_v13 = vld [vmem:[#allocation49_spill] sm:$0xff]  ;;  %v1718_v42 = vld [vmem:[#allocation7 + $0x1150] sm:$0xff] }
 0x408   :  { %v1722_v1 = vld [vmem:[#allocation7 + $0x1170] sm:$0xff] }
 0x40c   :  { %7550 = vmatmul.mubr.bf16.vlgmr.msra.gmra.mrb[68].mxu0 %v15889_v50  ;;  %8225 = vmatmul.mubr.bf16.vlgmr.msra.gmra.mrb[76].mxu1 %v15889_v50  ;;  %v11368_v50 = vcombine.low %v1694_v48, %v1698_v10  ;;  %v11387_v10 = vcombine.high %v1711_v35, %v1715_v23 }
 0x40d   :  { %7559 = vmatprep.mubr.bf16.mxu0 %v15890_v26  ;;  %8232 = vmatprep.mubr.bf16.mxu1 %v15890_v26  ;;  %v11379_v26 = vcombine.high %v1703_v45, %v1707_v37 }
 0x40e   :  { %7639 = vmatpush1.bf16.msra.mxu0 %v11352_v59  ;;  %8297 = vmatpush1.bf16.msra.mxu1 %v11354_v44  ;;  %v1710_v59 = vld [vmem:[#allocation7 + $0x1110] sm:$0xff] }
 0x40f   :  { %7640 = vmatprep.subr.bf16.mxu0 %v11361_v63  ;;  %8298 = vmatprep.subr.bf16.mxu1 %v11363_v32  ;;  %v15891_v44 = vld [vmem:[#allocation48_spill] sm:$0xff]  ;;  %v11376_v63 = vcombine.low %v1702_v6, %v1706_v53  ;;  %v11378_v32 = vcombine.low %v1703_v45, %v1707_v37  ;;  %v11385_v48 = vcombine.high %v1710_v59, %v1714_v58  ;;  %v15894_v45 = vld [vmem:[#allocation51_spill] sm:$0xff] }
 0x410   :  { %v1727_v6 = vld [vmem:[#allocation7 + $0x1198] sm:$0xff]  ;;  %v11392_v37 = vcombine.low %v1718_v42, %v1722_v1 }
 0x411   :  { %v1731_v53 = vld [vmem:[#allocation7 + $0x11b8] sm:$0xff] }
 0x412   :  { %7641 = vmatpush1.bf16.msra.mxu0 %v11360_v7  ;;  %8299 = vmatpush1.bf16.msra.mxu1 %v11362_v46  ;;  %v1719_v7 = vld [vmem:[#allocation7 + $0x1158] sm:$0xff] }
 0x413   :  { %7642 = vmatprep.subr.bf16.mxu0 %v11369_v14  ;;  %8300 = vmatprep.subr.bf16.mxu1 %v11371_v18  ;;  %v1723_v46 = vld [vmem:[#allocation7 + $0x1178] sm:$0xff]  ;;  %v11384_v14 = vcombine.low %v1710_v59, %v1714_v58  ;;  %v11386_v18 = vcombine.low %v1711_v35, %v1715_v23  ;;  %v11403_v58 = vcombine.high %v1727_v6, %v1731_v53  ;;  %v1734_v35 = vld [vmem:[#allocation7 + $0x11d0] sm:$0xff] }
 0x414   :  { %7560 = vmatmul.mubr.bf16.gmra.mrb[72].mxu0 %v15891_v44  ;;  %8233 = vmatmul.mubr.bf16.gmra.mrb[80].mxu1 %v15891_v44  ;;  %v11393_v44 = vcombine.high %v1718_v42, %v1722_v1  ;;  %v1738_v23 = vld [vmem:[#allocation7 + $0x11f0] sm:$0xff]  ;;  %v1743_v1 = vld [vmem:[#allocation7 + $0x1218] sm:$0xff] }
 0x415   :  { %7569 = vmatprep.mubr.bf16.mxu0 %v15892_v13  ;;  %8240 = vmatprep.mubr.bf16.mxu1 %v15892_v13  ;;  %v11395_v13 = vcombine.high %v1719_v7, %v1723_v46  ;;  %v1746_v42 = vld [vmem:[#allocation7 + $0x1230] sm:$0xff] }
 0x416   :  { %7643 = vmatpush1.bf16.msra.mxu0 %v11368_v50  ;;  %8301 = vmatpush1.bf16.msra.mxu1 %v11370_v36  ;;  %v1726_v50 = vld [vmem:[#allocation7 + $0x1190] sm:$0xff]  ;;  %v15893_v36 = vld [vmem:[#allocation50_spill] sm:$0xff] }
 0x417   :  { %7644 = vmatprep.subr.bf16.mxu0 %v11377_v49  ;;  %8302 = vmatprep.subr.bf16.mxu1 %v11379_v26  ;;  %v1730_v49 = vld [vmem:[#allocation7 + $0x11b0] sm:$0xff]  ;;  %v11394_v26 = vcombine.low %v1719_v7, %v1723_v46  ;;  %v1747_v7 = vld [vmem:[#allocation7 + $0x1238] sm:$0xff] }
 0x418   :  { %v11401_v59 = vcombine.high %v1726_v50, %v1730_v49  ;;  %v15896_v46 = vld [vmem:[#allocation53_spill] sm:$0xff] }
 0x41a   :  { %7645 = vmatpush1.bf16.msra.mxu0 %v11376_v63  ;;  %8303 = vmatpush1.bf16.msra.mxu1 %v11378_v32  ;;  %v1735_v63 = vld [vmem:[#allocation7 + $0x11d8] sm:$0xff] }
 0x41b   :  { %7646 = vmatprep.subr.bf16.mxu0 %v11385_v48  ;;  %8304 = vmatprep.subr.bf16.mxu1 %v11387_v10  ;;  %v1739_v32 = vld [vmem:[#allocation7 + $0x11f8] sm:$0xff]  ;;  %v11400_v48 = vcombine.low %v1726_v50, %v1730_v49  ;;  %v11402_v10 = vcombine.low %v1727_v6, %v1731_v53  ;;  %v11419_v49 = vcombine.high %v1743_v1, %v1747_v7  ;;  %v1750_v6 = vld [vmem:[#allocation7 + $0x1250] sm:$0xff] }
 0x41c   :  { %7570 = vmatmul.mubr.bf16.gmra.mrb[76].mxu0 %v15893_v36  ;;  %8241 = vmatmul.mubr.bf16.gmra.mrb[84].mxu1 %v15893_v36  ;;  %v11409_v36 = vcombine.high %v1734_v35, %v1738_v23  ;;  %v1754_v53 = vld [vmem:[#allocation7 + $0x1270] sm:$0xff] }
 0x41d   :  { %7579 = vmatprep.mubr.bf16.mxu0 %v15894_v45  ;;  %8248 = vmatprep.mubr.bf16.mxu1 %v15894_v45  ;;  %v11411_v45 = vcombine.high %v1735_v63, %v1739_v32 }
 0x41e   :  { %7647 = vmatpush1.bf16.msra.mxu0 %v11384_v14  ;;  %8305 = vmatpush1.bf16.msra.mxu1 %v11386_v18  ;;  %v1742_v14 = vld [vmem:[#allocation7 + $0x1210] sm:$0xff] }
 0x41f   :  { %7648 = vmatprep.subr.bf16.mxu0 %v11393_v44  ;;  %8306 = vmatprep.subr.bf16.mxu1 %v11395_v13  ;;  %v15895_v18 = vld [vmem:[#allocation52_spill] sm:$0xff]  ;;  %v11408_v44 = vcombine.low %v1734_v35, %v1738_v23  ;;  %v11410_v13 = vcombine.low %v1735_v63, %v1739_v32  ;;  %v11417_v50 = vcombine.high %v1742_v14, %v1746_v42  ;;  %v15898_v32 = vld [vmem:[#allocation55_spill] sm:$0xff] }
 0x420   :  { %v1762_v35 = vld [vmem:[#allocation7 + $0x12b0] sm:$0xff]  ;;  %v1759_v23 = vld [vmem:[#allocation7 + $0x1298] sm:$0xff] }
 0x421   :  { %v1763_v63 = vld [vmem:[#allocation7 + $0x12b8] sm:$0xff] }
 0x422   :  { %7649 = vmatpush1.bf16.msra.mxu0 %v11392_v37  ;;  %8307 = vmatpush1.bf16.msra.mxu1 %v11394_v26  ;;  %v1751_v37 = vld [vmem:[#allocation7 + $0x1258] sm:$0xff] }
 0x423   :  { %7650 = vmatprep.subr.bf16.mxu0 %v11401_v59  ;;  %8308 = vmatprep.subr.bf16.mxu1 %v11403_v58  ;;  %v1755_v26 = vld [vmem:[#allocation7 + $0x1278] sm:$0xff]  ;;  %v11416_v59 = vcombine.low %v1742_v14, %v1746_v42  ;;  %v11418_v58 = vcombine.low %v1743_v1, %v1747_v7  ;;  %v11435_v42 = vcombine.high %v1759_v23, %v1763_v63  ;;  %v1766_v1 = vld [vmem:[#allocation7 + $0x12d0] sm:$0xff] }
 0x424   :  { %7580 = vmatmul.mubr.bf16.gmra.mrb[80].mxu0 %v15895_v18  ;;  %8249 = vmatmul.mubr.bf16.gmra.mrb[88].mxu1 %v15895_v18  ;;  %v11425_v18 = vcombine.high %v1750_v6, %v1754_v53  ;;  %v1770_v7 = vld [vmem:[#allocation7 + $0x12f0] sm:$0xff] }
 0x425   :  { %7589 = vmatprep.mubr.bf16.mxu0 %v15896_v46  ;;  %8256 = vmatprep.mubr.bf16.mxu1 %v15896_v46  ;;  %v11427_v46 = vcombine.high %v1751_v37, %v1755_v26 }
 0x426   :  { %7651 = vmatpush1.bf16.msra.mxu0 %v11400_v48  ;;  %8309 = vmatpush1.bf16.msra.mxu1 %v11402_v10  ;;  %v1758_v48 = vld [vmem:[#allocation7 + $0x1290] sm:$0xff]  ;;  %v15897_v10 = vld [vmem:[#allocation54_spill] sm:$0xff] }
 0x427   :  { %7652 = vmatprep.subr.bf16.mxu0 %v11409_v36  ;;  %8310 = vmatprep.subr.bf16.mxu1 %v11411_v45  ;;  %v11424_v36 = vcombine.low %v1750_v6, %v1754_v53  ;;  %v11426_v45 = vcombine.low %v1751_v37, %v1755_v26  ;;  %v11433_v14 = vcombine.high %v1758_v48, %v1762_v35  ;;  %v1778_v6 = vld [vmem:[#allocation7 + $0x1330] sm:$0xff]  ;;  %v1775_v53 = vld [vmem:[#allocation7 + $0x1318] sm:$0xff] }
 0x428   :  { %v1779_v37 = vld [vmem:[#allocation7 + $0x1338] sm:$0xff] }
 0x429   :  { %v15900_v26 = vld [vmem:[#allocation57_spill] sm:$0xff] }
 0x42a   :  { %7653 = vmatpush1.bf16.msra.mxu0 %v11408_v44  ;;  %8311 = vmatpush1.bf16.msra.mxu1 %v11410_v13  ;;  %v1767_v44 = vld [vmem:[#allocation7 + $0x12d8] sm:$0xff] }
 0x42b   :  { %7654 = vmatprep.subr.bf16.mxu0 %v11417_v50  ;;  %8312 = vmatprep.subr.bf16.mxu1 %v11419_v49  ;;  %v1771_v13 = vld [vmem:[#allocation7 + $0x12f8] sm:$0xff]  ;;  %v11432_v50 = vcombine.low %v1758_v48, %v1762_v35  ;;  %v11434_v49 = vcombine.low %v1759_v23, %v1763_v63  ;;  %v11451_v35 = vcombine.high %v1775_v53, %v1779_v37  ;;  %v1782_v23 = vld [vmem:[#allocation7 + $0x1350] sm:$0xff] }
 0x42c   :  { %7590 = vmatmul.mubr.bf16.gmra.mrb[84].mxu0 %v15897_v10  ;;  %8257 = vmatmul.mubr.bf16.gmra.mrb[92].mxu1 %v15897_v10  ;;  %v11441_v10 = vcombine.high %v1766_v1, %v1770_v7  ;;  %v1786_v63 = vld [vmem:[#allocation7 + $0x1370] sm:$0xff] }
 0x42d   :  { %7599 = vmatprep.mubr.bf16.mxu0 %v15898_v32  ;;  %8264 = vmatprep.mubr.bf16.mxu1 %v15898_v32  ;;  %v11443_v32 = vcombine.high %v1767_v44, %v1771_v13 }
 0x42e   :  { %7655 = vmatpush1.bf16.msra.mxu0 %v11416_v59  ;;  %8313 = vmatpush1.bf16.msra.mxu1 %v11418_v58  ;;  %v1774_v59 = vld [vmem:[#allocation7 + $0x1310] sm:$0xff] }
 0x42f   :  { %7656 = vmatprep.subr.bf16.mxu0 %v11425_v18  ;;  %8314 = vmatprep.subr.bf16.mxu1 %v11427_v46  ;;  %v15899_v58 = vld [vmem:[#allocation56_spill] sm:$0xff]  ;;  %v11440_v18 = vcombine.low %v1766_v1, %v1770_v7  ;;  %v11442_v46 = vcombine.low %v1767_v44, %v1771_v13  ;;  %v11449_v48 = vcombine.high %v1774_v59, %v1778_v6 }
 0x430   :  { %v1794_v1 = vld [vmem:[#allocation7 + $0x13b0] sm:$0xff]  ;;  %v1791_v7 = vld [vmem:[#allocation7 + $0x1398] sm:$0xff]  ;;  %v11456_v13 = vcombine.low %v1782_v23, %v1786_v63 }
 0x431   :  { %v1795_v44 = vld [vmem:[#allocation7 + $0x13b8] sm:$0xff] }
 0x432   :  { %7657 = vmatpush1.bf16.msra.mxu0 %v11424_v36  ;;  %8315 = vmatpush1.bf16.msra.mxu1 %v11426_v45  ;;  %v1783_v36 = vld [vmem:[#allocation7 + $0x1358] sm:$0xff] }
 0x433   :  { %7658 = vmatprep.subr.bf16.mxu0 %v11433_v14  ;;  %8316 = vmatprep.subr.bf16.mxu1 %v11435_v42  ;;  %v1787_v45 = vld [vmem:[#allocation7 + $0x1378] sm:$0xff]  ;;  %v11448_v14 = vcombine.low %v1774_v59, %v1778_v6  ;;  %v11450_v42 = vcombine.low %v1775_v53, %v1779_v37  ;;  %v1798_v59 = vld [vmem:[#allocation7 + $0x13d0] sm:$0xff] }
 0x434   :  { %7600 = vmatmul.mubr.bf16.gmra.mrb[88].mxu0 %v15899_v58  ;;  %8265 = vmatmul.mubr.bf16.gmra.mrb[96].mxu1 %v15899_v58  ;;  %v11457_v58 = vcombine.high %v1782_v23, %v1786_v63  ;;  %v1802_v6 = vld [vmem:[#allocation7 + $0x13f0] sm:$0xff]  ;;  %v1799_v53 = vld [vmem:[#allocation7 + $0x13d8] sm:$0xff] }
 0x435   :  { %7609 = vmatprep.mubr.bf16.mxu0 %v15900_v26  ;;  %8272 = vmatprep.mubr.bf16.mxu1 %v15900_v26  ;;  %v11459_v26 = vcombine.high %v1783_v36, %v1787_v45  ;;  %v1803_v37 = vld [vmem:[#allocation7 + $0x13f8] sm:$0xff]  ;;  %v1810_v23 = vld [vmem:[#allocation7 + $0x1430] sm:$0xff] }
 0x436   :  { %7659 = vmatpush1.bf16.msra.mxu0 %v11432_v50  ;;  %8317 = vmatpush1.bf16.msra.mxu1 %v11434_v49  ;;  %v1790_v50 = vld [vmem:[#allocation7 + $0x1390] sm:$0xff]  ;;  %v11458_v49 = vcombine.low %v1783_v36, %v1787_v45  ;;  %v1807_v63 = vld [vmem:[#allocation7 + $0x1418] sm:$0xff] }
 0x437   :  { %7660 = vmatprep.subr.bf16.mxu0 %v11441_v10  ;;  %8318 = vmatprep.subr.bf16.mxu1 %v11443_v32  ;;  %v11465_v10 = vcombine.high %v1790_v50, %v1794_v1  ;;  %v11467_v32 = vcombine.high %v1791_v7, %v1795_v44  ;;  %v1811_v36 = vld [vmem:[#allocation7 + $0x1438] sm:$0xff]  ;;  %v15902_v45 = vld [vmem:[#allocation59_spill] sm:$0xff] }
 0x43a   :  { %7661 = vmatpush1.bf16.msra.mxu0 %v11440_v18  ;;  %8319 = vmatpush1.bf16.msra.mxu1 %v11442_v46  ;;  %v11466_v18 = vcombine.low %v1791_v7, %v1795_v44  ;;  %v11473_v46 = vcombine.high %v1798_v59, %v1802_v6  ;;  %v1814_v7 = vld [vmem:[#allocation7 + $0x1450] sm:$0xff] }
 0x43b   :  { %7662 = vmatprep.subr.bf16.mxu0 %v11449_v48  ;;  %8320 = vmatprep.subr.bf16.mxu1 %v11451_v35  ;;  %v1806_v48 = vld [vmem:[#allocation7 + $0x1410] sm:$0xff]  ;;  %v15901_v35 = vld [vmem:[#allocation58_spill] sm:$0xff] }
 0x43c   :  { %7610 = vmatmul.mubr.bf16.gmra.mrb[92].mxu0 %v14399_v5  ;;  %8273 = vmatmul.mubr.bf16.gmra.mrb[100].mxu1 %v14399_v5  ;;  %v11464_v5 = vcombine.low %v1790_v50, %v1794_v1  ;;  %v15903_v50 = vld [vmem:[#allocation60_spill] sm:$0xff]  ;;  %v15904_v1 = vld [vmem:[#allocation61_spill] sm:$0xff] }
 0x43d   :  { %7619 = vmatprep.mubr.bf16.mxu0 %v14404_v38  ;;  %8280 = vmatprep.mubr.bf16.mxu1 %v14404_v38  ;;  %v11475_v38 = vcombine.high %v1799_v53, %v1803_v37  ;;  %v1818_v44 = vld [vmem:[#allocation7 + $0x1470] sm:$0xff] }
 0x43e   :  { %7663 = vmatpush1.bf16.msra.mxu0 %v11448_v14  ;;  %8321 = vmatpush1.bf16.msra.mxu1 %v11450_v42  ;;  %v11472_v14 = vcombine.low %v1798_v59, %v1802_v6  ;;  %v11474_v42 = vcombine.low %v1799_v53, %v1803_v37  ;;  %v11489_v59 = vcombine.high %v1814_v7, %v1818_v44  ;;  %v1822_v53 = vld [vmem:[#allocation7 + $0x1490] sm:$0xff] }
 0x43f   :  { %7664 = vmatprep.subr.bf16.mxu0 %v11457_v58  ;;  %8322 = vmatprep.subr.bf16.mxu1 %v11459_v26  ;;  %v11481_v58 = vcombine.high %v1806_v48, %v1810_v23  ;;  %v11483_v26 = vcombine.high %v1807_v63, %v1811_v36  ;;  %v15905_v37 = vld [vmem:[#allocation24_spill] sm:$0xff] }
 0x442   :  { %7665 = vmatpush1.bf16.msra.mxu0 %v11456_v13  ;;  %8323 = vmatpush1.bf16.msra.mxu1 %v11458_v49  ;;  %v1815_v13 = vld [vmem:[#allocation7 + $0x1458] sm:$0xff] }
 0x443   :  { %7666 = vmatprep.subr.bf16.mxu0 %v11465_v10  ;;  %8324 = vmatprep.subr.bf16.mxu1 %v11467_v32  ;;  %v1819_v49 = vld [vmem:[#allocation7 + $0x1478] sm:$0xff]  ;;  %v11480_v10 = vcombine.low %v1806_v48, %v1810_v23  ;;  %v11482_v32 = vcombine.low %v1807_v63, %v1811_v36  ;;  %v1830_v63 = vld [vmem:[#allocation7 + $0x14d0] sm:$0xff] }
 0x444   :  { %7620 = vmatmul.mubr.bf16.gmra.mrb[96].mxu0 %v15901_v35  ;;  %8281 = vmatmul.mubr.bf16.gmra.mrb[104].mxu1 %v15901_v35  ;;  %v11491_v6 = vcombine.high %v1815_v13, %v1819_v49  ;;  %v11488_v35 = vcombine.low %v1814_v7, %v1818_v44  ;;  %v1834_v36 = vld [vmem:[#allocation7 + $0x14f0] sm:$0xff]  ;;  %v1839_v44 = vld [vmem:[#allocation7 + $0x1518] sm:$0xff] }
 0x445   :  { %7629 = vmatprep.mubr.bf16.mxu0 %v15902_v45  ;;  %8288 = vmatprep.mubr.bf16.mxu1 %v15902_v45  ;;  %v11490_v45 = vcombine.low %v1815_v13, %v1819_v49  ;;  %v1842_v7 = vld [vmem:[#allocation7 + $0x1530] sm:$0xff]  ;;  %v1843_v13 = vld [vmem:[#allocation7 + $0x1538] sm:$0xff] }
 0x446   :  { %7667 = vmatpush1.bf16.msra.mxu0 %v11464_v5  ;;  %8325 = vmatpush1.bf16.msra.mxu1 %v11466_v18  ;;  %v1826_v5 = vld [vmem:[#allocation7 + $0x14b0] sm:$0xff]  ;;  %v1823_v18 = vld [vmem:[#allocation7 + $0x1498] sm:$0xff] }
 0x447   :  { %7668 = vmatprep.subr.bf16.mxu0 %v11473_v46  ;;  %8326 = vmatprep.subr.bf16.mxu1 %v11475_v38  ;;  %v1827_v46 = vld [vmem:[#allocation7 + $0x14b8] sm:$0xff]  ;;  %v15906_v38 = vld [vmem:[#allocation62_spill] sm:$0xff]  ;;  %v11497_v48 = vcombine.high %v1822_v53, %v1826_v5 }
 0x448   :  { %v11499_v23 = vcombine.high %v1823_v18, %v1827_v46  ;;  %v15908_v49 = vld [vmem:[#allocation64_spill] sm:$0xff] }
 0x44a   :  { %7669 = vmatpush1.bf16.msra.mxu0 %v11472_v14  ;;  %8327 = vmatpush1.bf16.msra.mxu1 %v11474_v42  ;;  %v1831_v14 = vld [vmem:[#allocation7 + $0x14d8] sm:$0xff] }
 0x44b   :  { %7759 = vmatprep.subr.bf16.mxu0 %v11481_v58  ;;  %8400 = vmatprep.subr.bf16.mxu1 %v11483_v26  ;;  %v1835_v42 = vld [vmem:[#allocation7 + $0x14f8] sm:$0xff]  ;;  %v11496_v58 = vcombine.low %v1822_v53, %v1826_v5  ;;  %v11498_v26 = vcombine.low %v1823_v18, %v1827_v46  ;;  %v1846_v5 = vld [vmem:[#allocation7 + $0x1550] sm:$0xff] }
 0x44c   :  { %7630 = vmatmul.mubr.bf16.gmra.mrb[100].mxu0 %v15903_v50  ;;  %8289 = vmatmul.mubr.bf16.gmra.mrb[108].mxu1 %v15903_v50  ;;  %v11505_v50 = vcombine.high %v1830_v63, %v1834_v36  ;;  %v1850_v18 = vld [vmem:[#allocation7 + $0x1570] sm:$0xff]  ;;  %v1847_v46 = vld [vmem:[#allocation7 + $0x1558] sm:$0xff] }
 0x44d   :  { %7670 = vmatprep.mubr.bf16.mxu0 %v15904_v1  ;;  %8328 = vmatprep.mubr.bf16.mxu1 %v15904_v1  ;;  %v11507_v1 = vcombine.high %v1831_v14, %v1835_v42 }
 0x454   :  { %7671 = vmatmul.mubr.bf16.vlgmr.msra.gmra.mrb[68].mxu0 %v15905_v37  ;;  %8329 = vmatmul.mubr.bf16.vlgmr.msra.gmra.mrb[76].mxu1 %v15905_v37  ;;  %v11515_v37 = vcombine.high %v1839_v44, %v1843_v13 }
 0x455   :  { %7680 = vmatprep.mubr.bf16.mxu0 %v15906_v38  ;;  %8336 = vmatprep.mubr.bf16.mxu1 %v15906_v38  ;;  %v1851_v38 = vld [vmem:[#allocation7 + $0x1578] sm:$0xff] }
 0x456   :  { %7760 = vmatpush1.bf16.msra.mxu0 %v11480_v10  ;;  %8401 = vmatpush1.bf16.msra.mxu1 %v11482_v32  ;;  %v1838_v10 = vld [vmem:[#allocation7 + $0x1510] sm:$0xff] }
 0x457   :  { %7761 = vmatprep.subr.bf16.mxu0 %v11489_v59  ;;  %8402 = vmatprep.subr.bf16.mxu1 %v11491_v6  ;;  %v15907_v32 = vld [vmem:[#allocation63_spill] sm:$0xff]  ;;  %v11504_v59 = vcombine.low %v1830_v63, %v1834_v36  ;;  %v11506_v6 = vcombine.low %v1831_v14, %v1835_v42  ;;  %v11513_v53 = vcombine.high %v1838_v10, %v1842_v7  ;;  %v1855_v36 = vld [vmem:[#allocation7 + $0x1598] sm:$0xff]  ;;  %v15910_v42 = vld [vmem:[#allocation66_spill] sm:$0xff] }
 0x458   :  { %v1858_v63 = vld [vmem:[#allocation7 + $0x15b0] sm:$0xff]  ;;  %v1859_v14 = vld [vmem:[#allocation7 + $0x15b8] sm:$0xff] }
 0x45a   :  { %7762 = vmatpush1.bf16.msra.mxu0 %v11488_v35  ;;  %8403 = vmatpush1.bf16.msra.mxu1 %v11490_v45  ;;  %v11512_v35 = vcombine.low %v1838_v10, %v1842_v7  ;;  %v11514_v45 = vcombine.low %v1839_v44, %v1843_v13  ;;  %v1862_v7 = vld [vmem:[#allocation7 + $0x15d0] sm:$0xff]  ;;  %v1863_v13 = vld [vmem:[#allocation7 + $0x15d8] sm:$0xff] }
 0x45b   :  { %7763 = vmatprep.subr.bf16.mxu0 %v11497_v48  ;;  %8404 = vmatprep.subr.bf16.mxu1 %v11499_v23  ;;  %v11521_v48 = vcombine.high %v1846_v5, %v1850_v18  ;;  %v11523_v23 = vcombine.high %v1847_v46, %v1851_v38  ;;  %v1866_v44 = vld [vmem:[#allocation7 + $0x15f0] sm:$0xff] }
 0x45c   :  { %7681 = vmatmul.mubr.bf16.gmra.mrb[72].mxu0 %v15907_v32  ;;  %8337 = vmatmul.mubr.bf16.gmra.mrb[80].mxu1 %v15907_v32  ;;  %v11531_v32 = vcombine.high %v1855_v36, %v1859_v14 }
 0x45d   :  { %7690 = vmatprep.mubr.bf16.mxu0 %v15908_v49  ;;  %8344 = vmatprep.mubr.bf16.mxu1 %v15908_v49  ;;  %v1867_v49 = vld [vmem:[#allocation7 + $0x15f8] sm:$0xff] }
 0x45e   :  { %7764 = vmatpush1.bf16.msra.mxu0 %v11496_v58  ;;  %8405 = vmatpush1.bf16.msra.mxu1 %v11498_v26  ;;  %v1854_v58 = vld [vmem:[#allocation7 + $0x1590] sm:$0xff]  ;;  %v15909_v26 = vld [vmem:[#allocation65_spill] sm:$0xff] }
 0x45f   :  { %7765 = vmatprep.subr.bf16.mxu0 %v11505_v50  ;;  %8406 = vmatprep.subr.bf16.mxu1 %v11507_v1  ;;  %v11520_v50 = vcombine.low %v1846_v5, %v1850_v18  ;;  %v11522_v1 = vcombine.low %v1847_v46, %v1851_v38  ;;  %v11529_v10 = vcombine.high %v1854_v58, %v1858_v63  ;;  %v1874_v5 = vld [vmem:[#allocation7 + $0x1630] sm:$0xff]  ;;  %v1871_v18 = vld [vmem:[#allocation7 + $0x1618] sm:$0xff] }
 0x460   :  { %v1875_v46 = vld [vmem:[#allocation7 + $0x1638] sm:$0xff] }
 0x461   :  { %v15912_v38 = vld [vmem:[#allocation68_spill] sm:$0xff] }
 0x462   :  { %7766 = vmatpush1.bf16.msra.mxu0 %v11504_v59  ;;  %8407 = vmatpush1.bf16.msra.mxu1 %v11506_v6  ;;  %v11528_v59 = vcombine.low %v1854_v58, %v1858_v63  ;;  %v11530_v6 = vcombine.low %v1855_v36, %v1859_v14  ;;  %v1878_v63 = vld [vmem:[#allocation7 + $0x1650] sm:$0xff]  ;;  %v1879_v14 = vld [vmem:[#allocation7 + $0x1658] sm:$0xff] }
 0x463   :  { %7767 = vmatprep.subr.bf16.mxu0 %v11513_v53  ;;  %8408 = vmatprep.subr.bf16.mxu1 %v11515_v37  ;;  %v11537_v53 = vcombine.high %v1862_v7, %v1866_v44  ;;  %v11539_v37 = vcombine.high %v1863_v13, %v1867_v49  ;;  %v1882_v36 = vld [vmem:[#allocation7 + $0x1670] sm:$0xff] }
 0x464   :  { %7691 = vmatmul.mubr.bf16.gmra.mrb[76].mxu0 %v15909_v26  ;;  %8345 = vmatmul.mubr.bf16.gmra.mrb[84].mxu1 %v15909_v26  ;;  %v11547_v26 = vcombine.high %v1871_v18, %v1875_v46 }
 0x465   :  { %7700 = vmatprep.mubr.bf16.mxu0 %v15910_v42  ;;  %8352 = vmatprep.mubr.bf16.mxu1 %v15910_v42  ;;  %v1883_v42 = vld [vmem:[#allocation7 + $0x1678] sm:$0xff] }
 0x466   :  { %7768 = vmatpush1.bf16.msra.mxu0 %v11512_v35  ;;  %8409 = vmatpush1.bf16.msra.mxu1 %v11514_v45  ;;  %v1870_v35 = vld [vmem:[#allocation7 + $0x1610] sm:$0xff] }
 0x467   :  { %7769 = vmatprep.subr.bf16.mxu0 %v11521_v48  ;;  %8410 = vmatprep.subr.bf16.mxu1 %v11523_v23  ;;  %v15911_v45 = vld [vmem:[#allocation67_spill] sm:$0xff]  ;;  %v11536_v48 = vcombine.low %v1862_v7, %v1866_v44  ;;  %v11538_v23 = vcombine.low %v1863_v13, %v1867_v49  ;;  %v11545_v58 = vcombine.high %v1870_v35, %v1874_v5  ;;  %v1887_v44 = vld [vmem:[#allocation7 + $0x1698] sm:$0xff]  ;;  %v15914_v49 = vld [vmem:[#allocation70_spill] sm:$0xff] }
 0x468   :  { %v1890_v7 = vld [vmem:[#allocation7 + $0x16b0] sm:$0xff]  ;;  %v1891_v13 = vld [vmem:[#allocation7 + $0x16b8] sm:$0xff] }
 0x46a   :  { %7770 = vmatpush1.bf16.msra.mxu0 %v11520_v50  ;;  %8411 = vmatpush1.bf16.msra.mxu1 %v11522_v1  ;;  %v11544_v50 = vcombine.low %v1870_v35, %v1874_v5  ;;  %v11546_v1 = vcombine.low %v1871_v18, %v1875_v46  ;;  %v1894_v5 = vld [vmem:[#allocation7 + $0x16d0] sm:$0xff]  ;;  %v1895_v46 = vld [vmem:[#allocation7 + $0x16d8] sm:$0xff] }
 0x46b   :  { %7771 = vmatprep.subr.bf16.mxu0 %v11529_v10  ;;  %8412 = vmatprep.subr.bf16.mxu1 %v11531_v32  ;;  %v11553_v10 = vcombine.high %v1878_v63, %v1882_v36  ;;  %v11555_v32 = vcombine.high %v1879_v14, %v1883_v42  ;;  %v1898_v18 = vld [vmem:[#allocation7 + $0x16f0] sm:$0xff] }
 0x46c   :  { %7701 = vmatmul.mubr.bf16.gmra.mrb[80].mxu0 %v15911_v45  ;;  %8353 = vmatmul.mubr.bf16.gmra.mrb[88].mxu1 %v15911_v45  ;;  %v11563_v45 = vcombine.high %v1887_v44, %v1891_v13 }
 0x46d   :  { %7710 = vmatprep.mubr.bf16.mxu0 %v15912_v38  ;;  %8360 = vmatprep.mubr.bf16.mxu1 %v15912_v38  ;;  %v1899_v38 = vld [vmem:[#allocation7 + $0x16f8] sm:$0xff] }
 0x46e   :  { %7772 = vmatpush1.bf16.msra.mxu0 %v11528_v59  ;;  %8413 = vmatpush1.bf16.msra.mxu1 %v11530_v6  ;;  %v1886_v59 = vld [vmem:[#allocation7 + $0x1690] sm:$0xff]  ;;  %v15913_v6 = vld [vmem:[#allocation69_spill] sm:$0xff] }
 0x46f   :  { %7773 = vmatprep.subr.bf16.mxu0 %v11537_v53  ;;  %8414 = vmatprep.subr.bf16.mxu1 %v11539_v37  ;;  %v11552_v53 = vcombine.low %v1878_v63, %v1882_v36  ;;  %v11554_v37 = vcombine.low %v1879_v14, %v1883_v42  ;;  %v11561_v35 = vcombine.high %v1886_v59, %v1890_v7  ;;  %v1906_v63 = vld [vmem:[#allocation7 + $0x1730] sm:$0xff]  ;;  %v1903_v36 = vld [vmem:[#allocation7 + $0x1718] sm:$0xff] }
 0x470   :  { %v1907_v14 = vld [vmem:[#allocation7 + $0x1738] sm:$0xff] }
 0x471   :  { %v15916_v42 = vld [vmem:[#allocation72_spill] sm:$0xff] }
 0x472   :  { %7774 = vmatpush1.bf16.msra.mxu0 %v11536_v48  ;;  %8415 = vmatpush1.bf16.msra.mxu1 %v11538_v23  ;;  %v11560_v48 = vcombine.low %v1886_v59, %v1890_v7  ;;  %v11562_v23 = vcombine.low %v1887_v44, %v1891_v13  ;;  %v1910_v7 = vld [vmem:[#allocation7 + $0x1750] sm:$0xff]  ;;  %v1911_v13 = vld [vmem:[#allocation7 + $0x1758] sm:$0xff] }
 0x473   :  { %7775 = vmatprep.subr.bf16.mxu0 %v11545_v58  ;;  %8416 = vmatprep.subr.bf16.mxu1 %v11547_v26  ;;  %v11569_v58 = vcombine.high %v1894_v5, %v1898_v18  ;;  %v11571_v26 = vcombine.high %v1895_v46, %v1899_v38  ;;  %v1914_v44 = vld [vmem:[#allocation7 + $0x1770] sm:$0xff] }
 0x474   :  { %7711 = vmatmul.mubr.bf16.gmra.mrb[84].mxu0 %v15913_v6  ;;  %8361 = vmatmul.mubr.bf16.gmra.mrb[92].mxu1 %v15913_v6  ;;  %v11579_v6 = vcombine.high %v1903_v36, %v1907_v14 }
 0x475   :  { %7720 = vmatprep.mubr.bf16.mxu0 %v15914_v49  ;;  %8368 = vmatprep.mubr.bf16.mxu1 %v15914_v49  ;;  %v1915_v49 = vld [vmem:[#allocation7 + $0x1778] sm:$0xff] }
 0x476   :  { %7776 = vmatpush1.bf16.msra.mxu0 %v11544_v50  ;;  %8417 = vmatpush1.bf16.msra.mxu1 %v11546_v1  ;;  %v1902_v50 = vld [vmem:[#allocation7 + $0x1710] sm:$0xff] }
 0x477   :  { %7777 = vmatprep.subr.bf16.mxu0 %v11553_v10  ;;  %8418 = vmatprep.subr.bf16.mxu1 %v11555_v32  ;;  %v15915_v1 = vld [vmem:[#allocation71_spill] sm:$0xff]  ;;  %v11568_v10 = vcombine.low %v1894_v5, %v1898_v18  ;;  %v11570_v32 = vcombine.low %v1895_v46, %v1899_v38  ;;  %v11577_v59 = vcombine.high %v1902_v50, %v1906_v63  ;;  %v1919_v18 = vld [vmem:[#allocation7 + $0x1798] sm:$0xff] }
 0x478   :  { %v1922_v5 = vld [vmem:[#allocation7 + $0x17b0] sm:$0xff]  ;;  %v1923_v46 = vld [vmem:[#allocation7 + $0x17b8] sm:$0xff] }
 0x479   :  { %v15918_v38 = vld [vmem:[#allocation75_spill] sm:$0xff] }
 0x47a   :  { %7778 = vmatpush1.bf16.msra.mxu0 %v11552_v53  ;;  %8419 = vmatpush1.bf16.msra.mxu1 %v11554_v37  ;;  %v11576_v53 = vcombine.low %v1902_v50, %v1906_v63  ;;  %v11578_v37 = vcombine.low %v1903_v36, %v1907_v14  ;;  %v1926_v63 = vld [vmem:[#allocation7 + $0x17d0] sm:$0xff]  ;;  %v1927_v14 = vld [vmem:[#allocation7 + $0x17d8] sm:$0xff] }
 0x47b   :  { %7779 = vmatprep.subr.bf16.mxu0 %v11561_v35  ;;  %8420 = vmatprep.subr.bf16.mxu1 %v11563_v45  ;;  %v11585_v35 = vcombine.high %v1910_v7, %v1914_v44  ;;  %v11587_v45 = vcombine.high %v1911_v13, %v1915_v49  ;;  %v1930_v36 = vld [vmem:[#allocation7 + $0x17f0] sm:$0xff] }
 0x47c   :  { %7721 = vmatmul.mubr.bf16.gmra.mrb[88].mxu0 %v15915_v1  ;;  %8369 = vmatmul.mubr.bf16.gmra.mrb[96].mxu1 %v15915_v1  ;;  %v11595_v1 = vcombine.high %v1919_v18, %v1923_v46 }
 0x47d   :  { %7730 = vmatprep.mubr.bf16.mxu0 %v15916_v42  ;;  %8376 = vmatprep.mubr.bf16.mxu1 %v15916_v42  ;;  %v1931_v42 = vld [vmem:[#allocation7 + $0x17f8] sm:$0xff] }
 0x47e   :  { %7780 = vmatpush1.bf16.msra.mxu0 %v11560_v48  ;;  %8421 = vmatpush1.bf16.msra.mxu1 %v11562_v23  ;;  %v1918_v48 = vld [vmem:[#allocation7 + $0x1790] sm:$0xff]  ;;  %v15917_v23 = vld [vmem:[#allocation74_spill] sm:$0xff] }
 0x47f   :  { %7781 = vmatprep.subr.bf16.mxu0 %v11569_v58  ;;  %8422 = vmatprep.subr.bf16.mxu1 %v11571_v26  ;;  %v11584_v58 = vcombine.low %v1910_v7, %v1914_v44  ;;  %v11586_v26 = vcombine.low %v1911_v13, %v1915_v49  ;;  %v11593_v50 = vcombine.high %v1918_v48, %v1922_v5  ;;  %v15920_v7 = vld [vmem:[#allocation73_spill] sm:$0xff]  ;;  %v15921_v49 = vld [vmem:[#allocation76_spill] sm:$0xff] }
 0x480   :  { %v11600_v44 = vcombine.low %v1926_v63, %v1930_v36  ;;  %v11602_v13 = vcombine.low %v1927_v14, %v1931_v42 }
 0x482   :  { %7782 = vmatpush1.bf16.msra.mxu0 %v11568_v10  ;;  %8423 = vmatpush1.bf16.msra.mxu1 %v11570_v32  ;;  %v11592_v10 = vcombine.low %v1918_v48, %v1922_v5  ;;  %v11594_v32 = vcombine.low %v1919_v18, %v1923_v46  ;;  %v15925_v48 = vld [vmem:[#allocation79_spill] sm:$0xff]  ;;  %v15927_v5 = vld [vmem:[#allocation81_spill] sm:$0xff]  ;;  %v15928_v18 = vld [vmem:[#allocation82_spill] sm:$0xff] }
 0x483   :  { %7783 = vmatprep.subr.bf16.mxu0 %v11577_v59  ;;  %8424 = vmatprep.subr.bf16.mxu1 %v11579_v6  ;;  %v11601_v59 = vcombine.high %v1926_v63, %v1930_v36  ;;  %v11603_v6 = vcombine.high %v1927_v14, %v1931_v42  ;;  %v15929_v46 = vld [vmem:[#allocation83_spill] sm:$0xff]  ;;  %v15935_v63 = vld [vmem:[#allocation89_spill] sm:$0xff]  ;;  %v15936_v36 = vmov 0   ;;  %v13430_v14 = vmov 0.0  }
 0x484   :  { %7731 = vmatmul.mubr.bf16.gmra.mrb[92].mxu0 %v15917_v23  ;;  %8377 = vmatmul.mubr.bf16.gmra.mrb[100].mxu1 %v15917_v23  ;;  %v15926_v23 = vld [vmem:[#allocation80_spill] sm:$0xff]  ;;  %v1952_v42 = vsub.s32 5, %v15846_v51 }
 0x485   :  { %7740 = vmatprep.mubr.bf16.mxu0 %v15918_v38  ;;  %8384 = vmatprep.mubr.bf16.mxu1 %v15918_v38  ;;  %v15930_v38 = vld [vmem:[#allocation84_spill] sm:$0xff] }
 0x486   :  { %7784 = vmatpush1.bf16.msra.mxu0 %v11576_v53  ;;  %8425 = vmatpush1.bf16.msra.mxu1 %v11578_v37  ;;  %v15919_v53 = vld [vmem:[#allocation77_spill] sm:$0xff]  ;;  %v15922_v37 = vld [vmem:[#allocation78_spill] sm:$0xff] }
 0x487   :  { %7785 = vmatprep.subr.bf16.mxu0 %v11585_v35  ;;  %8426 = vmatprep.subr.bf16.mxu1 %v11587_v45  ;;  %v15923_v35 = vld [vmem:[#allocation26_spill] sm:$0xff]  ;;  %v15924_v45 = vld [vmem:[#allocation27_spill] sm:$0xff] }
 0x48a   :  { %7786 = vmatpush1.bf16.msra.mxu0 %v11584_v58  ;;  %8427 = vmatpush1.bf16.msra.mxu1 %v11586_v26  ;;  %v15931_v58 = vld [vmem:[#allocation85_spill] sm:$0xff]  ;;  %v15932_v26 = vld [vmem:[#allocation86_spill] sm:$0xff] }
 0x48b   :  { %7787 = vmatprep.subr.bf16.mxu0 %v11593_v50  ;;  %8428 = vmatprep.subr.bf16.mxu1 %v11595_v1  ;;  %v15933_v50 = vld [vmem:[#allocation87_spill] sm:$0xff]  ;;  %v15934_v1 = vld [vmem:[#allocation88_spill] sm:$0xff] }
 0x48c   :  { %7741 = vmatmul.mubr.bf16.gmra.mrb[96].mxu0 %v15919_v53  ;;  %8385 = vmatmul.mubr.bf16.gmra.mrb[104].mxu1 %v15919_v53 }
 0x48d   :  { %7750 = vmatprep.mubr.bf16.mxu0 %v15920_v7  ;;  %8392 = vmatprep.mubr.bf16.mxu1 %v15920_v7 }
 0x48e   :  { %7788 = vmatpush1.bf16.msra.mxu0 %v11592_v10  ;;  %8429 = vmatpush1.bf16.msra.mxu1 %v11594_v32 }
 0x48f   :  { %7789 = vmatprep.subr.bf16.mxu0 %v11601_v59  ;;  %8430 = vmatprep.subr.bf16.mxu1 %v11603_v6 }
 0x492   :  { %7790 = vmatpush1.bf16.msra.mxu0 %v11600_v44  ;;  %8431 = vmatpush1.bf16.msra.mxu1 %v11602_v13 }
 0x493   :  { %11967 = vmatprep.subr.bf16.mxu1 %v13430_v14 }
 0x494   :  { %7751 = vmatmul.mubr.bf16.gmra.mrb[100].mxu0 %v15921_v49  ;;  %8393 = vmatmul.mubr.bf16.gmra.mrb[108].mxu1 %v15921_v49 }
 0x495   :  { %7791 = vmatprep.mubr.bf16.mxu0 %v15922_v37  ;;  %8432 = vmatprep.mubr.bf16.mxu1 %v15922_v37 }
 0x49c   :  { %7792 = vmatmul.mubr.bf16.vlgmr.msra.gmra.mrb[68].mxu0 %v15923_v35  ;;  %8433 = vmatmul.mubr.bf16.vlgmr.msra.gmra.mrb[76].mxu1 %v15923_v35 }
 0x49d   :  { %7801 = vmatprep.mubr.bf16.mxu0 %v15924_v45  ;;  %8440 = vmatprep.mubr.bf16.mxu1 %v15924_v45 }
 0x4a4   :  { %7802 = vmatmul.mubr.bf16.gmra.mrb[72].mxu0 %v15925_v48  ;;  %8441 = vmatmul.mubr.bf16.gmra.mrb[80].mxu1 %v15925_v48 }
 0x4a5   :  { %7811 = vmatprep.mubr.bf16.mxu0 %v15926_v23  ;;  %8448 = vmatprep.mubr.bf16.mxu1 %v15926_v23 }
 0x4ac   :  { %7812 = vmatmul.mubr.bf16.gmra.mrb[76].mxu0 %v15927_v5  ;;  %8449 = vmatmul.mubr.bf16.gmra.mrb[84].mxu1 %v15927_v5 }
 0x4ad   :  { %7821 = vmatprep.mubr.bf16.mxu0 %v15928_v18  ;;  %8456 = vmatprep.mubr.bf16.mxu1 %v15928_v18 }
 0x4b4   :  { %7822 = vmatmul.mubr.bf16.gmra.mrb[80].mxu0 %v15929_v46  ;;  %8457 = vmatmul.mubr.bf16.gmra.mrb[88].mxu1 %v15929_v46 }
 0x4b5   :  { %7831 = vmatprep.mubr.bf16.mxu0 %v15930_v38  ;;  %8464 = vmatprep.mubr.bf16.mxu1 %v15930_v38 }
 0x4bc   :  { %7832 = vmatmul.mubr.bf16.gmra.mrb[84].mxu0 %v15931_v58  ;;  %8465 = vmatmul.mubr.bf16.gmra.mrb[92].mxu1 %v15931_v58  ;;  %v15937_v58 = vpack.c.bf16 %v14732_v41, %v14726_v39 }
 0x4bd   :  { %7841 = vmatprep.mubr.bf16.mxu0 %v15932_v26  ;;  %8472 = vmatprep.mubr.bf16.mxu1 %v15932_v26 }
 0x4c4   :  { %7842 = vmatmul.mubr.bf16.gmra.mrb[88].mxu0 %v15933_v50  ;;  %8473 = vmatmul.mubr.bf16.gmra.mrb[96].mxu1 %v15933_v50  ;;  %v15938_v50 = vpack.c.bf16 %v14735_v28, %v14729_v57 }
 0x4c5   :  { %7851 = vmatprep.mubr.bf16.mxu0 %v15934_v1  ;;  %8480 = vmatprep.mubr.bf16.mxu1 %v15934_v1 }
 0x4cc   :  { %7852 = vmatmul.mubr.bf16.gmra.mrb[92].mxu0 %v15935_v63  ;;  %8481 = vmatmul.mubr.bf16.gmra.mrb[100].mxu1 %v15935_v63  ;;  %v15939_v63 = vpack.c.bf16 %v14741_v22, %v14738_v62 }
 0x4cd   :  { %7861 = vmatprep.mubr.bf16.mxu0 %v14622_v54  ;;  %8488 = vmatprep.mubr.bf16.mxu1 %v14622_v54  ;;  %v1948_v54 = vsub.s32 4, %v15846_v51 }
 0x4d4   :  { %7862 = vmatmul.mubr.bf16.gmra.mrb[96].mxu0 %v14631_v40  ;;  %8489 = vmatmul.mubr.bf16.gmra.mrb[104].mxu1 %v14631_v40  ;;  %v1956_v40 = vsub.s32 6, %v15846_v51 }
 0x4d5   :  { %7871 = vmatprep.mubr.bf16.mxu0 %v14613_v11  ;;  %8496 = vmatprep.mubr.bf16.mxu1 %v14613_v11  ;;  %v13202_v11 = vld [vmem:[#allocation8] sm:$0xff] }
 0x4d6   :  { %v15120_v10 = vrot.slane %v13202_v11, %v1948_v54  ;;  %v15122_v32 = vrot.slane %v13202_v11, %v1956_v40  ;;  %v15124_v6 = vrot.slane %v13202_v11, %v1952_v42 }
 0x4dc   :  { %7872 = vmatmul.mubr.bf16.gmra.mrb[100].mxu0 %v14627_v61  ;;  %8497 = vmatmul.mubr.bf16.gmra.mrb[108].mxu1 %v14627_v61 }
 0x4dd   :  { %8893 = vmatprep.mubr.bf16.mxu0 %v15936_v36  ;;  %11983 = vmatprep.mubr.msk.bf16.mxu1 %vm13431_vm4, %v13430_v14 }
 0x56f   :  { %v7793_v61 = vpop.f32.mrb[68].mxu0  ;;  %v8434_v59 = vpop.f32.mrb[76].mxu1 }
 0x570   :  { %v7795_v53 = vpop.f32.mrb[69].mxu0  ;;  %v8436_v7 = vpop.f32.mrb[77].mxu1  ;;  %v12194_v49 = vadd.f32 %v7793_v61, %v15120_v10  ;;  %v12228_v37 = vadd.f32 %v8434_v59, %v15122_v32 }
 0x571   :  { %v7797_v44 = vpop.f32.mrb[70].mxu0  ;;  %v8437_v13 = vpop.f32.mrb[78].mxu1  ;;  %v12195_v23 = vadd.f32 %v7795_v53, %v15124_v6 }
 0x572   :  { %v12196_v35 = vadd.f32 %v7797_v44, %v15120_v10  ;;  %v12229_v51 = vadd.f32 %v8437_v13, %v15122_v32  ;;  %v7799_v45 = vpop.f32.mrb[71].mxu0  ;;  %v8439_v48 = vpop.f32.mrb[79].mxu1 }
 0x573   :  { %v12197_v5 = vadd.f32 %v7799_v45, %v15124_v6 }
 0x574   :  { %v8507_v18 = vpack.c.bf16 %v12196_v35, %v12194_v49  ;;  %v8509_v46 = vpack.c.bf16 %v12229_v51, %v12228_v37 }
 0x575   :  { %v8508_v38 = vpack.c.bf16 %v12197_v5, %v12195_v23 }
 0x576   :  { %v15135_v26 = vmax.bf16 %v8507_v18, %v15937_v58  ;;  %v15140_v1 = vmax.bf16 %v8509_v46, %v15938_v50 }
 0x577   :  { %v15145_v54 = vmax.bf16 %v8508_v38, %v15939_v63  ;;  %v7803_v40 = vpop.f32.mrb[72].mxu0  ;;  %v8442_v42 = vpop.f32.mrb[80].mxu1  ;;  %v15940_v38 = vpack.c.bf16 %v14766_v2, %v14758_v3  ;;  %v15941_v63 = vpack.c.bf16 %v14769_v4, %v14763_v47 }
 0x578   :  { %v8588_v11 = vshll.u32 %v15135_v26, 16  ;;  %v8612_v61 = vshll.u32 %v15140_v1, 16  ;;  %v7805_v59 = vpop.f32.mrb[73].mxu0  ;;  %v8444_v39 = vpop.f32.mrb[81].mxu1  ;;  %v12198_v57 = vadd.f32 %v7803_v40, %v15120_v10  ;;  %v12230_v22 = vadd.f32 %v8442_v42, %v15122_v32 }
 0x579   :  { %v8600_v41 = vshll.u32 %v15145_v54, 16  ;;  %v7807_v53 = vpop.f32.mrb[74].mxu0  ;;  %v8445_v7 = vpop.f32.mrb[82].mxu1  ;;  %v12199_v13 = vadd.f32 %v7805_v59, %v15124_v6  ;;  %v8586_v18 = vshrl.u32 %v15135_v26, 16  ;;  %v8610_v46 = vshrl.u32 %v15140_v1, 16 }
 0x57a   :  { %v12200_v28 = vadd.f32 %v7807_v53, %v15120_v10  ;;  %v7809_v44 = vpop.f32.mrb[75].mxu0  ;;  %v8447_v62 = vpop.f32.mrb[83].mxu1  ;;  %v12231_v49 = vadd.f32 %v8445_v7, %v15122_v32  ;;  %v8590_v35 = vrot.slane %v8588_v11, 1  ;;  %v8614_v51 = vrot.slane %v8612_v61, 1 }
 0x57b   :  { %v12201_v37 = vadd.f32 %v7809_v44, %v15124_v6  ;;  %v8602_v48 = vrot.slane %v8600_v41, 1  ;;  %v8598_v50 = vshrl.u32 %v15145_v54, 16  ;;  %v15942_v42 = vpack.c.bf16 %v14775_v8, %v14772_v21 }
 0x57c   :  { %v8513_v45 = vpack.c.bf16 %v12200_v28, %v12198_v57  ;;  %v8515_v23 = vpack.c.bf16 %v12231_v49, %v12230_v22  ;;  %v8591_v39 = vor.u32 %v8590_v35, %v8586_v18  ;;  %v8615_v41 = vor.u32 %v8614_v51, %v8610_v46 }
 0x57d   :  { %v8514_v5 = vpack.c.bf16 %v12201_v37, %v12199_v13  ;;  %v8603_v44 = vor.u32 %v8602_v48, %v8598_v50  ;;  %v15943_v50 = vpack.c.bf16 %v14802_v9, %v14794_v16 }
 0x57e   :  { %v15161_v58 = vmax.bf16 %v8513_v45, %v15940_v38  ;;  %v15167_v40 = vmax.bf16 %v8515_v23, %v15941_v63 }
 0x57f   :  { %v15172_v11 = vmax.bf16 %v8514_v5, %v15942_v42  ;;  %v7813_v61 = vpop.f32.mrb[76].mxu0  ;;  %v8450_v59 = vpop.f32.mrb[84].mxu1  ;;  %v15944_v42 = vpack.c.bf16 %v14805_v17, %v14799_v52 }
 0x580   :  { %v8593_v3 = vshll.u32 %v15161_v58, 16  ;;  %v7815_v2 = vpop.f32.mrb[77].mxu0  ;;  %v8452_v53 = vpop.f32.mrb[85].mxu1  ;;  %v8617_v7 = vshll.u32 %v15167_v40, 16  ;;  %v12202_v47 = vadd.f32 %v7813_v61, %v15120_v10  ;;  %v12232_v8 = vadd.f32 %v8450_v59, %v15122_v32 }
 0x581   :  { %v8605_v57 = vshll.u32 %v15172_v11, 16  ;;  %v7817_v4 = vpop.f32.mrb[78].mxu0  ;;  %v8453_v28 = vpop.f32.mrb[86].mxu1  ;;  %v12203_v35 = vadd.f32 %v7815_v2, %v15124_v6  ;;  %v15945_v2 = vpack.c.bf16 %v14811_v0, %v14808_v43  ;;  %v8621_v52 = vshrl.u32 %v15161_v58, 16 }
 0x582   :  { %v8595_v21 = vrot.slane %v8593_v3, 1  ;;  %v12204_v62 = vadd.f32 %v7817_v4, %v15120_v10  ;;  %v12233_v22 = vadd.f32 %v8453_v28, %v15122_v32  ;;  %v7819_v13 = vpop.f32.mrb[79].mxu0  ;;  %v8455_v49 = vpop.f32.mrb[87].mxu1  ;;  %v8619_v37 = vrot.slane %v8617_v7, 1 }
 0x583   :  { %v12205_v51 = vadd.f32 %v7819_v13, %v15124_v6  ;;  %v8607_v45 = vrot.slane %v8605_v57, 1 }
 0x584   :  { %v8519_v23 = vpack.c.bf16 %v12204_v62, %v12202_v47  ;;  %v8521_v5 = vpack.c.bf16 %v12233_v22, %v12232_v8  ;;  %v8596_v18 = vsel %vm702_vm2, %v8591_v39, %v8595_v21  ;;  %v8620_v46 = vsel %vm702_vm2, %v8615_v41, %v8619_v37 }
 0x585   :  { %v8520_v48 = vpack.c.bf16 %v12205_v51, %v12203_v35  ;;  %v8608_v38 = vsel %vm702_vm2, %v8603_v44, %v8607_v45  ;;  %v8815_v59 = vmax.bf16 %v8620_v46, %v15140_v1  ;;  %v8637_v39 = vshrl.u32 %v15167_v40, 16 }
 0x586   :  { %v15189_v63 = vmax.bf16 %v8519_v23, %v15943_v50  ;;  %v15194_v61 = vmax.bf16 %v8521_v5, %v15944_v42  ;;  %v8814_v3 = vmax.bf16 %v8608_v38, %v15145_v54  ;;  %v8629_v41 = vshrl.u32 %v15172_v11, 16 }
 0x587   :  { %v15203_v53 = vmax.bf16 %v8520_v48, %v15945_v2  ;;  %v7823_v16 = vpop.f32.mrb[80].mxu0  ;;  %v8458_v9 = vpop.f32.mrb[88].mxu1  ;;  %v8813_v7 = vmax.bf16 %v8596_v18, %v15135_v26  ;;  %11968 = vmatpush3.bf16.msra.mxu1 %v8815_v59  ;;  %v8639_v47 = vor.u32 %v8637_v39, %v8619_v37  ;;  %v8623_v5 = vor.u32 %v8621_v52, %v8595_v21 }
 0x588   :  { %v8625_v17 = vshll.u32 %v15189_v63, 16  ;;  %v8641_v1 = vshll.u32 %v15194_v61, 16  ;;  %v7825_v54 = vpop.f32.mrb[81].mxu0  ;;  %v8460_v57 = vpop.f32.mrb[89].mxu1  ;;  %8861 = vmatprep.subr.bf16.mxu0 %v8814_v3  ;;  %v12206_v43 = vadd.f32 %v7823_v16, %v15120_v10  ;;  %11969 = vmatprep.subr.bf16.mxu1 %v13430_v14  ;;  %v8631_v26 = vor.u32 %v8629_v41, %v8607_v45 }
 0x589   :  { %v8633_v4 = vshll.u32 %v15203_v53, 16  ;;  %v7827_v0 = vpop.f32.mrb[82].mxu0  ;;  %v8461_v28 = vpop.f32.mrb[90].mxu1  ;;  %8862 = vmatpush1.bf16.msra.mxu0 %v8813_v7  ;;  %v12234_v62 = vadd.f32 %v8458_v9, %v15122_v32  ;;  %v12207_v37 = vadd.f32 %v7825_v54, %v15124_v6  ;;  %v8645_v18 = vshrl.u32 %v15189_v63, 16 }
 0x58a   :  { %v8627_v44 = vrot.slane %v8625_v17, 1  ;;  %v8643_v8 = vrot.slane %v8641_v1, 1  ;;  %v12208_v22 = vadd.f32 %v7827_v0, %v15120_v10  ;;  %v7829_v13 = vpop.f32.mrb[83].mxu0  ;;  %v8463_v49 = vpop.f32.mrb[91].mxu1  ;;  %v12235_v35 = vadd.f32 %v8461_v28, %v15122_v32 }
 0x58b   :  { %v12209_v51 = vadd.f32 %v7829_v13, %v15124_v6  ;;  %v8635_v23 = vrot.slane %v8633_v4, 1  ;;  %v8661_v59 = vshrl.u32 %v15194_v61, 16  ;;  %v15946_v3 = vpack.c.bf16 %v14838_v12, %v14830_v56 }
 0x58c   :  { %v8525_v48 = vpack.c.bf16 %v12208_v22, %v12206_v43  ;;  %v8644_v45 = vsel %vm702_vm2, %v8639_v47, %v8643_v8  ;;  %v8527_v46 = vpack.c.bf16 %v12235_v35, %v12234_v62  ;;  %v8628_v41 = vsel %vm702_vm2, %v8623_v5, %v8627_v44 }
 0x58d   :  { %v8526_v38 = vpack.c.bf16 %v12209_v51, %v12207_v37  ;;  %v8818_v50 = vmax.bf16 %v8644_v45, %v15167_v40  ;;  %v8636_v42 = vsel %vm702_vm2, %v8631_v26, %v8635_v23  ;;  %v8653_v2 = vshrl.u32 %v15203_v53, 16 }
 0x58e   :  { %v15225_v39 = vmax.bf16 %v8525_v48, %v15946_v3  ;;  %v8817_v21 = vmax.bf16 %v8636_v42, %v15172_v11  ;;  %v15947_v16 = vpack.c.bf16 %v14841_v19, %v14835_v60  ;;  %v15948_v40 = vpack.c.bf16 %v14847_v34, %v14844_v20  ;;  %v15951_v3 = vld [vmem:[#allocation23_spill] sm:$0xff] }
 0x58f   :  { %v7833_v52 = vpop.f32.mrb[84].mxu0  ;;  %v8466_v56 = vpop.f32.mrb[92].mxu1  ;;  %11970 = vmatpush3.bf16.msra.mxu1 %v8818_v50  ;;  %v8816_v12 = vmax.bf16 %v8628_v41, %v15161_v58  ;;  %v8647_v11 = vor.u32 %v8645_v18, %v8627_v44  ;;  %v8663_v17 = vor.u32 %v8661_v59, %v8643_v8  ;;  %v8655_v4 = vor.u32 %v8653_v2, %v8635_v23 }
 0x590   :  { %v15233_v9 = vmax.bf16 %v8527_v46, %v15947_v16  ;;  %v15238_v7 = vmax.bf16 %v8526_v38, %v15948_v40  ;;  %v8649_v1 = vshll.u32 %v15225_v39, 16  ;;  %v7835_v54 = vpop.f32.mrb[85].mxu0  ;;  %v8468_v57 = vpop.f32.mrb[93].mxu1  ;;  %8863 = vmatprep.subr.bf16.mxu0 %v8817_v21  ;;  %11971 = vmatprep.subr.bf16.mxu1 %v13430_v14  ;;  %v12210_v20 = vadd.f32 %v7833_v52, %v15120_v10  ;;  %v15952_v21 = vld [vmem:[#allocation28_spill] sm:$0xff] }
 0x591   :  { %v7837_v34 = vpop.f32.mrb[86].mxu0  ;;  %v8469_v47 = vpop.f32.mrb[94].mxu1  ;;  %8864 = vmatpush1.bf16.msra.mxu0 %v8816_v12  ;;  %v12236_v43 = vadd.f32 %v8466_v56, %v15122_v32  ;;  %v12211_v62 = vadd.f32 %v7835_v54, %v15124_v6  ;;  %v15949_v18 = vpack.c.bf16 %v14874_v15, %v14866_v29  ;;  %v15950_v45 = vpack.c.bf16 %v14877_v25, %v14871_v24 }
 0x592   :  { %v8665_v60 = vshll.u32 %v15233_v9, 16  ;;  %v8657_v19 = vshll.u32 %v15238_v7, 16  ;;  %v8651_v58 = vrot.slane %v8649_v1, 1  ;;  %v12212_v0 = vadd.f32 %v7837_v34, %v15120_v10  ;;  %v7839_v26 = vpop.f32.mrb[87].mxu0  ;;  %v8471_v44 = vpop.f32.mrb[95].mxu1 }
 0x593   :  { %v12237_v28 = vadd.f32 %v8469_v47, %v15122_v32  ;;  %v12213_v22 = vadd.f32 %v7839_v26, %v15124_v6  ;;  %v8685_v42 = vshrl.u32 %v15233_v9, 16  ;;  %v8677_v59 = vshrl.u32 %v15238_v7, 16 }
 0x594   :  { %v8667_v8 = vrot.slane %v8665_v60, 1  ;;  %v8659_v13 = vrot.slane %v8657_v19, 1  ;;  %v8531_v49 = vpack.c.bf16 %v12212_v0, %v12210_v20  ;;  %v8652_v35 = vsel %vm702_vm2, %v8647_v11, %v8651_v58 }
 0x595   :  { %v8533_v37 = vpack.c.bf16 %v12237_v28, %v12236_v43  ;;  %v8532_v51 = vpack.c.bf16 %v12213_v22, %v12211_v62  ;;  %v15953_v41 = vpack.c.bf16 %v15951_v3, %v15952_v21  ;;  %v8819_v16 = vmax.bf16 %v8652_v35, %v15189_v63  ;;  %v15955_v35 = vld [vmem:[#allocation29_spill] sm:$0xff] }
 0x596   :  { %v8668_v23 = vsel %vm702_vm2, %v8663_v17, %v8667_v8  ;;  %v8660_v5 = vsel %vm702_vm2, %v8655_v4, %v8659_v13  ;;  %v15257_v48 = vmax.bf16 %v8531_v49, %v15949_v18  ;;  %v8669_v24 = vshrl.u32 %v15225_v39, 16 }
 0x597   :  { %v15262_v46 = vmax.bf16 %v8533_v37, %v15950_v45  ;;  %v8821_v38 = vmax.bf16 %v8668_v23, %v15194_v61  ;;  %v8820_v50 = vmax.bf16 %v8660_v5, %v15203_v53  ;;  %v15271_v2 = vmax.bf16 %v8532_v51, %v15953_v41  ;;  %v7843_v29 = vpop.f32.mrb[88].mxu0  ;;  %v8474_v15 = vpop.f32.mrb[96].mxu1  ;;  %v15954_v37 = vld [vmem:[#allocation31_spill] sm:$0xff]  ;;  %v15957_v45 = vld [vmem:[#allocation32_spill] sm:$0xff] }
 0x598   :  { %v8673_v25 = vshll.u32 %v15257_v48, 16  ;;  %v7845_v53 = vpop.f32.mrb[89].mxu0  ;;  %v8476_v40 = vpop.f32.mrb[97].mxu1  ;;  %v8687_v52 = vor.u32 %v8685_v42, %v8667_v8  ;;  %v12214_v12 = vadd.f32 %v7843_v29, %v15120_v10  ;;  %v8679_v63 = vor.u32 %v8677_v59, %v8659_v13  ;;  %v15961_v59 = vld [vmem:[#allocation33_spill] sm:$0xff] }
 0x599   :  { %v8689_v61 = vshll.u32 %v15262_v46, 16  ;;  %11972 = vmatpush3.bf16.msra.mxu1 %v8821_v38  ;;  %8865 = vmatprep.subr.bf16.mxu0 %v8820_v50  ;;  %v8681_v56 = vshll.u32 %v15271_v2, 16  ;;  %v7847_v11 = vpop.f32.mrb[90].mxu0  ;;  %v8477_v17 = vpop.f32.mrb[98].mxu1  ;;  %v12238_v57 = vadd.f32 %v8474_v15, %v15122_v32  ;;  %v12215_v34 = vadd.f32 %v7845_v53, %v15124_v6  ;;  %v15958_v38 = vld [vmem:[#allocation30_spill] sm:$0xff] }
 0x59a   :  { %8866 = vmatpush1.bf16.msra.mxu0 %v8819_v16  ;;  %11973 = vmatprep.subr.bf16.mxu1 %v13430_v14  ;;  %v8675_v1 = vrot.slane %v8673_v25, 1  ;;  %v12216_v60 = vadd.f32 %v7847_v11, %v15120_v10  ;;  %v7849_v19 = vpop.f32.mrb[91].mxu0  ;;  %v8479_v20 = vpop.f32.mrb[99].mxu1  ;;  %v12239_v47 = vadd.f32 %v8477_v17, %v15122_v32  ;;  %v8671_v0 = vor.u32 %v8669_v24, %v8651_v58 }
 0x59b   :  { %v8691_v54 = vrot.slane %v8689_v61, 1  ;;  %v12217_v4 = vadd.f32 %v7849_v19, %v15124_v6  ;;  %v8683_v43 = vrot.slane %v8681_v56, 1  ;;  %v8693_v28 = vshrl.u32 %v15257_v48, 16 }
 0x59c   :  { %v8537_v26 = vpack.c.bf16 %v12216_v60, %v12214_v12  ;;  %v8539_v8 = vpack.c.bf16 %v12239_v47, %v12238_v57  ;;  %v8709_v49 = vshrl.u32 %v15262_v46, 16  ;;  %v15956_v51 = vpack.c.bf16 %v15954_v37, %v15955_v35 }
 0x59d   :  { %v8692_v44 = vsel %vm702_vm2, %v8687_v52, %v8691_v54  ;;  %v8538_v62 = vpack.c.bf16 %v12217_v4, %v12215_v34  ;;  %v8684_v13 = vsel %vm702_vm2, %v8679_v63, %v8683_v43  ;;  %v8676_v5 = vsel %vm702_vm2, %v8671_v0, %v8675_v1  ;;  %v15963_v0 = vld [vmem:[#allocation44_spill] sm:$0xff] }
 0x59e   :  { %v8824_v22 = vmax.bf16 %v8692_v44, %v15233_v9  ;;  %v15293_v23 = vmax.bf16 %v8537_v26, %v15956_v51  ;;  %v8823_v58 = vmax.bf16 %v8684_v13, %v15238_v7  ;;  %v8701_v18 = vshrl.u32 %v15271_v2, 16  ;;  %v15960_v9 = vld [vmem:[#allocation34_spill] sm:$0xff] }
 0x59f   :  { %v15959_v50 = vpack.c.bf16 %v15957_v45, %v15958_v38  ;;  %v15962_v3 = vpack.c.bf16 %v15960_v9, %v15961_v59  ;;  %v7853_v41 = vpop.f32.mrb[92].mxu0  ;;  %v8482_v29 = vpop.f32.mrb[100].mxu1  ;;  %v8822_v15 = vmax.bf16 %v8676_v5, %v15225_v39  ;;  %v15311_v7 = vadd.f32 %v14997_v33, %v14715_v30  ;;  %v15971_v45 = vld [vmem:[#allocation39_spill] sm:$0xff] }
 0x5a0   :  { %11974 = vmatpush3.bf16.msra.mxu1 %v8824_v22  ;;  %v8695_v16 = vor.u32 %v8693_v28, %v8675_v1  ;;  %v8711_v24 = vor.u32 %v8709_v49, %v8691_v54  ;;  %v8697_v25 = vshll.u32 %v15293_v23, 16  ;;  %v7855_v61 = vpop.f32.mrb[93].mxu0  ;;  %v8484_v53 = vpop.f32.mrb[101].mxu1  ;;  %8867 = vmatprep.subr.bf16.mxu0 %v8823_v58  ;;  %v12218_v56 = vadd.f32 %v7853_v41, %v15120_v10  ;;  %v15965_v22 = vld [vmem:[#allocation35_spill] sm:$0xff] }
 0x5a1   :  { %v15301_v42 = vmax.bf16 %v8539_v8, %v15959_v50  ;;  %v15306_v21 = vmax.bf16 %v8538_v62, %v15962_v3  ;;  %11975 = vmatprep.subr.bf16.mxu1 %v13430_v14  ;;  %v7857_v39 = vpop.f32.mrb[94].mxu0  ;;  %v8485_v12 = vpop.f32.mrb[102].mxu1  ;;  %8868 = vmatpush1.bf16.msra.mxu0 %v8822_v15  ;;  %v8703_v30 = vor.u32 %v8701_v18, %v8683_v43  ;;  %v15964_v62 = vld [vmem:[#allocation37_spill] sm:$0xff]  ;;  %v15970_v18 = vld [vmem:[#allocation40_spill] sm:$0xff] }
 0x5a2   :  { %v8699_v33 = vrot.slane %v8697_v25, 1  ;;  %v12240_v11 = vadd.f32 %v8482_v29, %v15122_v32  ;;  %v12220_v17 = vadd.f32 %v7857_v39, %v15120_v10  ;;  %v12241_v63 = vadd.f32 %v8485_v12, %v15122_v32  ;;  %v7859_v1 = vpop.f32.mrb[95].mxu0  ;;  %v8487_v54 = vpop.f32.mrb[103].mxu1 }
 0x5a3   :  { %v8713_v40 = vshll.u32 %v15301_v42, 16  ;;  %v8705_v52 = vshll.u32 %v15306_v21, 16  ;;  %v12219_v60 = vadd.f32 %v7855_v61, %v15124_v6  ;;  %v12221_v19 = vadd.f32 %v7859_v1, %v15124_v6 }
 0x5a4   :  { %v15325_v34 = vadd.f32 %v14999_v31, %v14719_v27  ;;  %v8543_v47 = vpack.c.bf16 %v12220_v17, %v12218_v56  ;;  %v8545_v4 = vpack.c.bf16 %v12241_v63, %v12240_v11  ;;  %v8700_v43 = vsel %vm702_vm2, %v8695_v16, %v8699_v33  ;;  %v15967_v27 = vld [vmem:[#allocation38_spill] sm:$0xff]  ;;  %v15968_v31 = vld [vmem:[#allocation36_spill] sm:$0xff] }
 0x5a5   :  { %v8715_v57 = vrot.slane %v8713_v40, 1  ;;  %v8707_v20 = vrot.slane %v8705_v52, 1  ;;  %v15330_v28 = vadd.f32 %v15963_v0, %v14723_v55  ;;  %v8544_v26 = vpack.c.bf16 %v12221_v19, %v12219_v60 }
 0x5a6   :  { %v15966_v13 = vpack.c.bf16 %v15964_v62, %v15965_v22  ;;  %v15969_v37 = vpack.c.bf16 %v15967_v27, %v15968_v31  ;;  %v8733_v58 = vshrl.u32 %v15301_v42, 16  ;;  %v8725_v5 = vshrl.u32 %v15306_v21, 16  ;;  %v15976_v27 = vld [vmem:[#allocation91_spill] sm:$0xff]  ;;  %v15977_v31 = vld [vmem:[#allocation42_spill] sm:$0xff] }
 0x5a7   :  { %v8716_v44 = vsel %vm702_vm2, %v8711_v24, %v8715_v57  ;;  %v8708_v8 = vsel %vm702_vm2, %v8703_v30, %v8707_v20  ;;  %v15972_v38 = vpack.c.bf16 %v15970_v18, %v15971_v45  ;;  %v7863_v9 = vpop.f32.mrb[96].mxu0  ;;  %v8490_v59 = vpop.f32.mrb[104].mxu1  ;;  %v8825_v3 = vmax.bf16 %v8700_v43, %v15257_v48 }
 0x5a8   :  { %v15337_v49 = vmax.bf16 %v8543_v47, %v15966_v13  ;;  %v15342_v35 = vmax.bf16 %v8545_v4, %v15969_v37  ;;  %v8827_v51 = vmax.bf16 %v8716_v44, %v15262_v46  ;;  %v8826_v55 = vmax.bf16 %v8708_v8, %v15271_v2  ;;  %v7865_v15 = vpop.f32.mrb[97].mxu0  ;;  %v8492_v16 = vpop.f32.mrb[105].mxu1  ;;  %v15973_v44 = vld [vmem:[#allocation90_spill] sm:$0xff]  ;;  %v15974_v8 = vld [vmem:[#allocation41_spill] sm:$0xff] }
 0x5a9   :  { %v15351_v50 = vmax.bf16 %v8544_v26, %v15972_v38  ;;  %v8552_v41 = vpack.c.bf16 %v15311_v7, %v15311_v7  ;;  %v8717_v46 = vshrl.u32 %v15293_v23, 16  ;;  %v8735_v24 = vor.u32 %v8733_v58, %v8715_v57  ;;  %v7867_v53 = vpop.f32.mrb[98].mxu0  ;;  %v8493_v48 = vpop.f32.mrb[106].mxu1 }
 0x5aa   :  { %v8721_v2 = vshll.u32 %v15337_v49, 16  ;;  %v8737_v29 = vshll.u32 %v15342_v35, 16  ;;  %11976 = vmatpush3.bf16.msra.mxu1 %v8827_v51  ;;  %8869 = vmatprep.subr.bf16.mxu0 %v8826_v55  ;;  %v12222_v61 = vadd.f32 %v7863_v9, %v15120_v10  ;;  %v8727_v40 = vor.u32 %v8725_v5, %v8707_v20  ;;  %v7869_v30 = vpop.f32.mrb[99].mxu0  ;;  %v8495_v11 = vpop.f32.mrb[107].mxu1  ;;  %v15979_v51 = vld [vmem:[#allocation93_spill] sm:$0xff]  ;;  %v15980_v55 = vld [vmem:[#allocation92_spill] sm:$0xff] }
 0x5ab   :  { %v8729_v25 = vshll.u32 %v15351_v50, 16  ;;  %8870 = vmatpush1.bf16.msra.mxu0 %v8825_v3  ;;  %11977 = vmatprep.subr.bf16.mxu1 %v13430_v14  ;;  %v12242_v39 = vadd.f32 %v8490_v59, %v15122_v32  ;;  %v12224_v12 = vadd.f32 %v7867_v53, %v15120_v10  ;;  %v12223_v17 = vadd.f32 %v7865_v15, %v15124_v6 }
 0x5ac   :  { %v8723_v52 = vrot.slane %v8721_v2, 1  ;;  %v8739_v56 = vrot.slane %v8737_v29, 1  ;;  %v12243_v63 = vadd.f32 %v8493_v48, %v15122_v32  ;;  %v12225_v1 = vadd.f32 %v7869_v30, %v15124_v6 }
 0x5ad   :  { %v8731_v54 = vrot.slane %v8729_v25, 1  ;;  %v8554_v57 = vpack.c.bf16 %v15325_v34, %v15325_v34  ;;  %v8719_v60 = vor.u32 %v8717_v46, %v8699_v33  ;;  %v8549_v19 = vpack.c.bf16 %v12224_v12, %v12222_v61 }
 0x5ae   :  { %v8740_v20 = vsel %vm702_vm2, %v8735_v24, %v8739_v56  ;;  %v8551_v47 = vpack.c.bf16 %v12243_v63, %v12242_v39  ;;  %v8550_v4 = vpack.c.bf16 %v12225_v1, %v12223_v17  ;;  %v8553_v26 = vpack.c.bf16 %v15330_v28, %v15330_v28 }
 0x5af   :  { %v8830_v43 = vmax.bf16 %v8740_v20, %v15301_v42  ;;  %v8732_v0 = vsel %vm702_vm2, %v8727_v40, %v8731_v54  ;;  %v15975_v62 = vpack.c.bf16 %v15973_v44, %v15974_v8  ;;  %v8724_v33 = vsel %vm702_vm2, %v8719_v60, %v8723_v52  ;;  %v7873_v5 = vpop.f32.mrb[100].mxu0  ;;  %v8498_v18 = vpop.f32.mrb[108].mxu1 }
 0x5b0   :  { %v8829_v34 = vmax.bf16 %v8732_v0, %v15306_v21  ;;  %v8741_v13 = vshrl.u32 %v15337_v49, 16  ;;  %v15978_v37 = vpack.c.bf16 %v15976_v27, %v15977_v31  ;;  %v15981_v58 = vpack.c.bf16 %v15979_v51, %v15980_v55  ;;  %v7875_v3 = vpop.f32.mrb[101].mxu0  ;;  %v8500_v46 = vpop.f32.mrb[109].mxu1  ;;  %v13046_v31 = vld [vmem:[#allocation10 + $0x300] ss:$24 sps:$4 sm:$0xff]   ;;  %v13044_v55 = vld [vmem:[#allocation13 + $0x8] sm:$0xff]  }
 0x5b1   :  { %v15377_v22 = vmax.bf16 %v8549_v19, %v15975_v62  ;;  %11978 = vmatpush3.bf16.msra.mxu1 %v8830_v43  ;;  %v8828_v45 = vmax.bf16 %v8724_v33, %v15293_v23  ;;  %v8757_v21 = vshrl.u32 %v15342_v35, 16  ;;  %v12226_v9 = vadd.f32 %v7873_v5, %v15120_v10  ;;  %v7877_v16 = vpop.f32.mrb[102].mxu0  ;;  %v8501_v24 = vpop.f32.mrb[110].mxu1  ;;  %v13048_v51 = vld [vmem:[#allocation10] ss:$24 sps:$4 sm:$0xff]  }
 0x5b2   :  { %v15385_v42 = vmax.bf16 %v8551_v47, %v15978_v37  ;;  %v15390_v28 = vmax.bf16 %v8550_v4, %v15981_v58  ;;  %v12244_v59 = vadd.f32 %v8498_v18, %v15122_v32  ;;  %8871 = vmatprep.subr.bf16.mxu0 %v8829_v34  ;;  %11979 = vmatprep.subr.bf16.mxu1 %v13430_v14  ;;  %v8749_v29 = vshrl.u32 %v15351_v50, 16  ;;  %v7878_v53 = vpop.f32.mrb[103].mxu0  ;;  %v8502_v48 = vpop.f32.mrb[111].mxu1  ;;  %v13047_v37 = vld [vmem:[#allocation10 + $0x180] ss:$24 sps:$4 sm:$0xff]  }
 0x5b3   :  { %v8745_v38 = vshll.u32 %v15377_v22, 16  ;;  %v8743_v2 = vor.u32 %v8741_v13, %v8723_v52  ;;  %8872 = vmatpush1.bf16.msra.mxu0 %v8828_v45  ;;  %v8555_v61 = vpack.c.bf16 %v12226_v9, %v12226_v9  ;;  %v12227_v32 = vadd.f32 %v7875_v3, %v15124_v6  ;;  %v13043_v13 = vld [vmem:[#allocation13] sm:$0xff]  }
 0x5b4   :  { %v8761_v15 = vshll.u32 %v15385_v42, 16  ;;  %v8753_v23 = vshll.u32 %v15390_v28, 16  ;;  %v8557_v10 = vpack.c.bf16 %v12244_v59, %v12244_v59  ;;  %v8759_v40 = vor.u32 %v8757_v21, %v8739_v56  ;;  %v13051_v58 = vld [vmem:[#allocation10 + $0x30] ss:$24 sps:$4 sm:$0xff]   ;;  %v13053_v5 = vld [vmem:[#allocation10 + $0x1e0] ss:$24 sps:$4 sm:$0xff]  }
 0x5b5   :  { %v8747_v25 = vrot.slane %v8745_v38, 1  ;;  %v8751_v12 = vor.u32 %v8749_v29, %v8731_v54  ;;  %v8765_v30 = vshrl.u32 %v15377_v22, 16  ;;  %v8582_v11 = vmax.bf16 %v8555_v61, %v8552_v41  ;;  %v13054_v18 = vld [vmem:[#allocation10 + $0x60] ss:$24 sps:$4 sm:$0xff]   ;;  %v13055_v45 = vld [vmem:[#allocation10 + $0x390] ss:$24 sps:$4 sm:$0xff]  }
 0x5b6   :  { %v8763_v39 = vrot.slane %v8761_v15, 1  ;;  %v8755_v52 = vrot.slane %v8753_v23, 1  ;;  %v8584_v17 = vmax.bf16 %v8557_v10, %v8554_v57  ;;  %v8556_v63 = vpack.c.bf16 %v12227_v32, %v12227_v32  ;;  %v13056_v21 = vld [vmem:[#allocation10 + $0x210] ss:$24 sps:$4 sm:$0xff]   ;;  %v13058_v59 = vld [vmem:[#allocation10 + $0x3c0] ss:$24 sps:$4 sm:$0xff]  }
 0x5b7   :  { %v8781_v1 = vshrl.u32 %v15385_v42, 16  ;;  %v8748_v19 = vsel %vm702_vm2, %v8743_v2, %v8747_v25  ;;  %v8769_v56 = vshll.u32 %v8582_v11, 16  ;;  %v8767_v4 = vor.u32 %v8765_v30, %v8747_v25  ;;  %v13045_v38 = vld [vmem:[#allocation13 + $0x10] sm:$0xff]   ;;  %v13071_v10 = vld [vmem:[#allocation10 + $0x184] ss:$24 sps:$4 sm:$0xff]  }
 0x5b8   :  { %v8764_v60 = vsel %vm702_vm2, %v8759_v40, %v8763_v39  ;;  %v8756_v6 = vsel %vm702_vm2, %v8751_v12, %v8755_v52  ;;  %v8785_v20 = vshll.u32 %v8584_v17, 16  ;;  %v8583_v54 = vmax.bf16 %v8556_v63, %v8553_v26  ;;  %v13057_v9 = vld [vmem:[#allocation10 + $0x90] ss:$24 sps:$4 sm:$0xff]   ;;  %v13059_v3 = vld [vmem:[#allocation10 + $0x240] ss:$24 sps:$4 sm:$0xff]  }
 0x5b9   :  { %v8833_v47 = vmax.bf16 %v8764_v60, %v15342_v35  ;;  %v8773_v43 = vshrl.u32 %v15390_v28, 16  ;;  %v8832_v7 = vmax.bf16 %v8756_v6, %v15351_v50  ;;  %v8831_v41 = vmax.bf16 %v8748_v19, %v15337_v49  ;;  %v13060_v46 = vld [vmem:[#allocation10 + $0xc0] ss:$24 sps:$4 sm:$0xff]   ;;  %v13061_v2 = vld [vmem:[#allocation10 + $0x3f0] ss:$24 sps:$4 sm:$0xff]  }
 0x5ba   :  { %v8783_v57 = vor.u32 %v8781_v1, %v8763_v39  ;;  %v8771_v0 = vrot.slane %v8769_v56, 1  ;;  %v8787_v44 = vrot.slane %v8785_v20, 1  ;;  %v8777_v8 = vshll.u32 %v8583_v54, 16  ;;  %v13062_v29 = vld [vmem:[#allocation10 + $0x270] ss:$24 sps:$4 sm:$0xff]  }
 0x5bb   :  { %11980 = vmatpush3.bf16.msra.mxu1 %v8833_v47  ;;  %8873 = vmatprep.subr.bf16.mxu0 %v8832_v7  ;;  %v8775_v35 = vor.u32 %v8773_v43, %v8755_v52  ;;  %v13064_v15 = vld [vmem:[#allocation10 + $0x420] ss:$24 sps:$4 sm:$0xff]   ;;  %v13067_v24 = vld [vmem:[#allocation10 + $0x450] ss:$24 sps:$4 sm:$0xff]   ;;  %v13070_v53 = vld [vmem:[#allocation10 + $0x304] ss:$24 sps:$4 sm:$0xff]  }
 0x5bc   :  { %11981 = vmatprep.subr.bf16.mxu1 %v13430_v14  ;;  %v8779_v62 = vrot.slane %v8777_v8, 1  ;;  %8874 = vmatpush1.bf16.msra.mxu0 %v8831_v41  ;;  %v8788_v26 = vsel %vm702_vm2, %v8783_v57, %v8787_v44  ;;  %v8772_v34 = vsel %vm702_vm2, %v8767_v4, %v8771_v0  ;;  %v13065_v23 = vld [vmem:[#allocation10 + $0x2a0] ss:$24 sps:$4 sm:$0xff]   ;;  %v13068_v25 = vld [vmem:[#allocation10 + $0x2d0] ss:$24 sps:$4 sm:$0xff]  }
 0x5bd   :  { %v8836_v33 = vmax.bf16 %v8788_v26, %v15385_v42  ;;  %v8834_v50 = vmax.bf16 %v8772_v34, %v15377_v22  ;;  %v13049_v42 = vld [vmem:[#allocation10 + $0x330] ss:$24 sps:$4 sm:$0xff]   ;;  %v13066_v16 = vld [vmem:[#allocation10 + $0x120] ss:$24 sps:$4 sm:$0xff]   ;;  %v13073_v11 = vld [vmem:[#allocation10 + $0x334] ss:$24 sps:$4 sm:$0xff]  }
 0x5be   :  { %v8780_v49 = vsel %vm702_vm2, %v8775_v35, %v8779_v62  ;;  %v13050_v22 = vld [vmem:[#allocation10 + $0x1b0] ss:$24 sps:$4 sm:$0xff]   ;;  %v13072_v63 = vld [vmem:[#allocation10 + $0x4] ss:$24 sps:$4 sm:$0xff]   ;;  %v13074_v6 = vld [vmem:[#allocation10 + $0x1b4] ss:$24 sps:$4 sm:$0xff]  }
 0x5bf   :  { %11982 = vmatpush3.bf16.msra.mxu1 %v8836_v33  ;;  %v8835_v27 = vmax.bf16 %v8780_v49, %v15390_v28  ;;  %v13052_v28 = vld [vmem:[#allocation10 + $0x360] ss:$24 sps:$4 sm:$0xff]   ;;  %v13069_v61 = vld [vmem:[#allocation10 + $0x150] ss:$24 sps:$4 sm:$0xff]   ;;  %v13076_v20 = vld [vmem:[#allocation10 + $0x364] ss:$24 sps:$4 sm:$0xff]  }
 0x5c0   :  { %11995 = vmatprep.subr.bf16.mxu1 %v13430_v14  ;;  %v13075_v47 = vld [vmem:[#allocation10 + $0x34] ss:$24 sps:$4 sm:$0xff]   ;;  %v13077_v43 = vld [vmem:[#allocation10 + $0x1e4] ss:$24 sps:$4 sm:$0xff]  }
 0x5c1   :  { %8875 = vmatprep.subr.bf16.mxu0 %v8835_v27  ;;  %v13079_v0 = vld [vmem:[#allocation10 + $0x394] ss:$24 sps:$4 sm:$0xff]   ;;  %v13078_v8 = vld [vmem:[#allocation10 + $0x64] ss:$24 sps:$4 sm:$0xff]  }
 0x5c2   :  { %8876 = vmatpush1.bf16.msra.mxu0 %v8834_v50  ;;  %11984 = vmatmul.mubr.bf16.vlgmr.msra.gmra.mrb[112].mxu1 %v13043_v13  ;;  %v13080_v26 = vld [vmem:[#allocation10 + $0x214] ss:$24 sps:$4 sm:$0xff]   ;;  %v13082_v34 = vld [vmem:[#allocation10 + $0x3c4] ss:$24 sps:$4 sm:$0xff]  }
 0x5c3   :  { %11987 = vmatprep.mubr.msk.bf16.mxu1 %vm13431_vm4, %v13430_v14  ;;  %11996 = vmatpush3.bf16.msra.mxu1 %v13046_v31  ;;  %v13081_v50 = vld [vmem:[#allocation10 + $0x94] ss:$24 sps:$4 sm:$0xff]  }
 0x5c4   :  { %11772 = vmatprep.subr.bf16.mxu0 %v13047_v37  ;;  %11997 = vmatprep.subr.bf16.mxu1 %v13430_v14  ;;  %v13085_v31 = vld [vmem:[#allocation10 + $0x3f4] ss:$24 sps:$4 sm:$0xff]  }
 0x5c5   :  { %8894 = vmatmul.mubr.bf16.vlgmr.msra.gmra.mrb[104].mxu0 %v13043_v13  ;;  %v13083_v13 = vld [vmem:[#allocation10 + $0x244] ss:$24 sps:$4 sm:$0xff]  }
 0x5c6   :  { %8903 = vmatprep.mubr.bf16.mxu0 %v15936_v36  ;;  %11773 = vmatpush3.bf16.msra.mxu0 %v13048_v51  ;;  %v13084_v51 = vld [vmem:[#allocation10 + $0xc4] ss:$24 sps:$4 sm:$0xff]  }
 0x5c7   :  { %11998 = vmatpush3.bf16.msra.mxu1 %v13049_v42  ;;  %11774 = vmatprep.subr.bf16.mxu0 %v13050_v22  ;;  %v13086_v22 = vld [vmem:[#allocation10 + $0x274] ss:$24 sps:$4 sm:$0xff]  }
 0x5c8   :  { %11999 = vmatprep.subr.bf16.mxu1 %v13430_v14 }
 0x5ca   :  { %11988 = vmatmul.mubr.bf16.gmra.mrb[116].mxu1 %v13044_v55  ;;  %11775 = vmatpush3.bf16.msra.mxu0 %v13051_v58 }
 0x5cb   :  { %11991 = vmatprep.mubr.msk.bf16.mxu1 %vm13431_vm4, %v13430_v14  ;;  %12000 = vmatpush3.bf16.msra.mxu1 %v13052_v28 }
 0x5cc   :  { %11776 = vmatprep.subr.bf16.mxu0 %v13053_v5  ;;  %12001 = vmatprep.subr.bf16.mxu1 %v13430_v14  ;;  %v13088_v5 = vld [vmem:[#allocation10 + $0x424] ss:$24 sps:$4 sm:$0xff]  }
 0x5cd   :  { %8904 = vmatmul.mubr.bf16.gmra.mrb[108].mxu0 %v13044_v55 }
 0x5ce   :  { %8913 = vmatprep.mubr.bf16.mxu0 %v15936_v36  ;;  %11777 = vmatpush3.bf16.msra.mxu0 %v13054_v18  ;;  %v13063_v36 = vld [vmem:[#allocation10 + $0xf0] ss:$24 sps:$4 sm:$0xff]   ;;  %v13087_v18 = vld [vmem:[#allocation10 + $0xf4] ss:$24 sps:$4 sm:$0xff]  }
 0x5cf   :  { %12002 = vmatpush3.bf16.msra.mxu1 %v13055_v45  ;;  %11778 = vmatprep.subr.bf16.mxu0 %v13056_v21  ;;  %v13089_v45 = vld [vmem:[#allocation10 + $0x2a4] ss:$24 sps:$4 sm:$0xff]   ;;  %v13091_v21 = vld [vmem:[#allocation10 + $0x454] ss:$24 sps:$4 sm:$0xff]  }
 0x5d0   :  { %12003 = vmatprep.subr.bf16.mxu1 %v13430_v14 }
 0x5d2   :  { %11992 = vmatmul.mubr.bf16.gmra.mrb[120].mxu1 %v13045_v38  ;;  %11779 = vmatpush3.bf16.msra.mxu0 %v13057_v9  ;;  %v13092_v9 = vld [vmem:[#allocation10 + $0x2d4] ss:$24 sps:$4 sm:$0xff]  }
 0x5d3   :  { %12004 = vmatpush3.bf16.msra.mxu1 %v13058_v59  ;;  %11780 = vmatprep.subr.bf16.mxu0 %v13059_v3  ;;  %v13094_v59 = vld [vmem:[#allocation10 + $0x308] ss:$24 sps:$4 sm:$0xff]  }
 0x5d4   :  { %12005 = vmatprep.subr.bf16.mxu1 %v13430_v14  ;;  %12011 = vmatprep.mubr.msk.bf16.mxu1 %vm13431_vm4, %v13430_v14 }
 0x5d5   :  { %8914 = vmatmul.mubr.bf16.gmra.mrb[112].mxu0 %v13045_v38  ;;  %v13090_v38 = vld [vmem:[#allocation10 + $0x124] ss:$24 sps:$4 sm:$0xff]  }
 0x5d6   :  { %11781 = vmatpush3.bf16.msra.mxu0 %v13060_v46  ;;  %v13093_v46 = vld [vmem:[#allocation10 + $0x154] ss:$24 sps:$4 sm:$0xff]  }
 0x5d7   :  { %12006 = vmatpush3.bf16.msra.mxu1 %v13061_v2  ;;  %11782 = vmatprep.subr.bf16.mxu0 %v13062_v29  ;;  %v13095_v2 = vld [vmem:[#allocation10 + $0x188] ss:$24 sps:$4 sm:$0xff]   ;;  %v13097_v29 = vld [vmem:[#allocation10 + $0x338] ss:$24 sps:$4 sm:$0xff]  }
 0x5d8   :  { %12007 = vmatprep.subr.bf16.mxu1 %v13430_v14 }
 0x5da   :  { %11783 = vmatpush3.bf16.msra.mxu0 %v13063_v36  ;;  %v13096_v36 = vld [vmem:[#allocation10 + $0x8] ss:$24 sps:$4 sm:$0xff]  }
 0x5db   :  { %12008 = vmatpush3.bf16.msra.mxu1 %v13064_v15  ;;  %11784 = vmatprep.subr.bf16.mxu0 %v13065_v23  ;;  %v13098_v23 = vld [vmem:[#allocation10 + $0x1b8] ss:$24 sps:$4 sm:$0xff]  }
 0x5dc   :  { %12009 = vmatprep.subr.bf16.mxu1 %v13430_v14 }
 0x5de   :  { %11785 = vmatpush3.bf16.msra.mxu0 %v13066_v16 }
 0x5df   :  { %12010 = vmatpush3.bf16.msra.mxu1 %v13067_v24  ;;  %11786 = vmatprep.subr.bf16.mxu0 %v13068_v25  ;;  %v13100_v24 = vld [vmem:[#allocation10 + $0x368] ss:$24 sps:$4 sm:$0xff]   ;;  %v13099_v25 = vld [vmem:[#allocation10 + $0x38] ss:$24 sps:$4 sm:$0xff]  }
 0x5e0   :  { %12015 = vmatprep.subr.bf16.mxu1 %v13430_v14 }
 0x5e2   :  { %11787 = vmatpush3.bf16.msra.mxu0 %v13069_v61  ;;  %v13101_v61 = vld [vmem:[#allocation10 + $0x1e8] ss:$24 sps:$4 sm:$0xff]  }
 0x5e3   :  { %11803 = vmatprep.subr.bf16.mxu0 %v13071_v10  ;;  %v13103_v10 = vld [vmem:[#allocation10 + $0x398] ss:$24 sps:$4 sm:$0xff]  }
 0x695   :  { %v8958_v32 = vpop.f32.mrb[112].mxu1 }
 0x696   :  { %v8991_v48 = vpack.c.bf16 %v8958_v32, %v8958_v32  ;;  %v11985_v40 = vpop.f32.mrb[113].mxu1  ;;  %v13102_v32 = vld [vmem:[#allocation10 + $0x68] ss:$24 sps:$4 sm:$0xff]  }
 0x697   :  { %v15438_v39 = vpop.f32.mrb[114].mxu1  ;;  %v13105_v40 = vld [vmem:[#allocation10 + $0x98] ss:$24 sps:$4 sm:$0xff]  }
 0x698   :  { %v8895_v12 = vpop.f32.mrb[104].mxu0  ;;  %12012 = vmatmul.mubr.bf16.vlgmr.msra.gmra.mrb[124].mxu1 %v8991_v48  ;;  %v11986_v52 = vpop.f32.mrb[115].mxu1  ;;  %v9267_v3 = vpack.c.bf16 %v15438_v39, %v15438_v39  ;;  %v13106_v48 = vld [vmem:[#allocation10 + $0x3c8] ss:$24 sps:$4 sm:$0xff]  }
 0x699   :  { %v8897_v30 = vpop.f32.mrb[105].mxu0  ;;  %12016 = vmatpush3.bf16.msra.mxu1 %v13070_v53  ;;  %12031 = vmatprep.mubr.msk.bf16.mxu1 %vm13431_vm4, %v13430_v14  ;;  %v8989_v60 = vpack.c.bf16 %v8895_v12, %v8895_v12  ;;  %v13104_v53 = vld [vmem:[#allocation10 + $0x218] ss:$24 sps:$4 sm:$0xff]   ;;  %v13107_v39 = vld [vmem:[#allocation10 + $0x248] ss:$24 sps:$4 sm:$0xff]  }
 0x69a   :  { %v8990_v17 = vpack.c.bf16 %v8897_v30, %v8897_v30  ;;  %12017 = vmatprep.subr.bf16.mxu1 %v13430_v14  ;;  %v15443_v1 = vpop.f32.mrb[106].mxu0  ;;  %v13109_v12 = vld [vmem:[#allocation10 + $0x3f8] ss:$24 sps:$4 sm:$0xff]   ;;  %v13108_v52 = vld [vmem:[#allocation10 + $0xc8] ss:$24 sps:$4 sm:$0xff]  }
 0x69b   :  { %v8901_v19 = vpop.f32.mrb[107].mxu0  ;;  %v9265_v15 = vpack.c.bf16 %v15443_v1, %v15443_v1  ;;  %v13110_v30 = vld [vmem:[#allocation10 + $0x278] ss:$24 sps:$4 sm:$0xff]  }
 0x69c   :  { %9216 = vmatprep.mubr.bf16.mxu0 %v8990_v17  ;;  %v9266_v56 = vpack.c.bf16 %v8901_v19, %v8901_v19  ;;  %v13111_v17 = vld [vmem:[#allocation10 + $0xf8] ss:$24 sps:$4 sm:$0xff]  }
 0x69d   :  { %9217 = vmatmul.mubr.bf16.vlgmr.msra.gmra.mrb[116].mxu0 %v8989_v60  ;;  %12018 = vmatpush3.bf16.msra.mxu1 %v13073_v11  ;;  %v15445_v54 = vpop.f32.mrb[116].mxu1  ;;  %v13112_v11 = vld [vmem:[#allocation10 + $0x428] ss:$24 sps:$4 sm:$0xff]   ;;  %v13115_v1 = vld [vmem:[#allocation10 + $0x458] ss:$24 sps:$4 sm:$0xff]  }
 0x69e   :  { %11804 = vmatpush3.bf16.msra.mxu0 %v13072_v63  ;;  %12019 = vmatprep.subr.bf16.mxu1 %v13430_v14  ;;  %v11989_v4 = vpop.f32.mrb[117].mxu1  ;;  %v13113_v63 = vld [vmem:[#allocation10 + $0x2a8] ss:$24 sps:$4 sm:$0xff]   ;;  %v9543_v19 = vpack.c.bf16 %v15445_v54, %v15445_v54  ;;  %v13120_v54 = vld [vmem:[#allocation10 + $0xc] ss:$24 sps:$4 sm:$0xff]  }
 0x69f   :  { %11805 = vmatprep.subr.bf16.mxu0 %v13074_v6  ;;  %9492 = vmatprep.mubr.bf16.mxu0 %v9266_v56  ;;  %v15448_v7 = vpop.f32.mrb[118].mxu1  ;;  %v13114_v60 = vld [vmem:[#allocation10 + $0x128] ss:$24 sps:$4 sm:$0xff]   ;;  %v13116_v6 = vld [vmem:[#allocation10 + $0x2d8] ss:$24 sps:$4 sm:$0xff]  }
 0x6a0   :  { %v15450_v41 = vpop.f32.mrb[108].mxu0  ;;  %v11990_v57 = vpop.f32.mrb[119].mxu1  ;;  %v13118_v56 = vld [vmem:[#allocation10 + $0x30c] ss:$24 sps:$4 sm:$0xff]  }
 0x6a1   :  { %12020 = vmatpush3.bf16.msra.mxu1 %v13076_v20  ;;  %v15452_v44 = vpop.f32.mrb[109].mxu0  ;;  %v13117_v20 = vld [vmem:[#allocation10 + $0x158] ss:$24 sps:$4 sm:$0xff]   ;;  %v9541_v4 = vpack.c.bf16 %v15450_v41, %v15450_v41  ;;  %v13122_v57 = vld [vmem:[#allocation10 + $0x1bc] ss:$24 sps:$4 sm:$0xff]  }
 0x6a2   :  { %11806 = vmatpush3.bf16.msra.mxu0 %v13075_v47  ;;  %12021 = vmatprep.subr.bf16.mxu1 %v13430_v14  ;;  %v15455_v62 = vpop.f32.mrb[110].mxu0  ;;  %v9542_v16 = vpack.c.bf16 %v15452_v44, %v15452_v44  ;;  %v13119_v47 = vld [vmem:[#allocation10 + $0x18c] ss:$24 sps:$4 sm:$0xff]   ;;  %v13123_v41 = vld [vmem:[#allocation10 + $0x3c] ss:$24 sps:$4 sm:$0xff]  }
 0x6a3   :  { %11807 = vmatprep.subr.bf16.mxu0 %v13077_v43  ;;  %v15457_v35 = vpop.f32.mrb[111].mxu0  ;;  %v13121_v43 = vld [vmem:[#allocation10 + $0x33c] ss:$24 sps:$4 sm:$0xff]  }
 0x6a4   :  { %v9818_v44 = vpack.c.bf16 %v15457_v35, %v15457_v35  ;;  %v13129_v35 = vld [vmem:[#allocation10 + $0x9c] ss:$24 sps:$4 sm:$0xff]  }
 0x6a5   :  { %12022 = vmatpush3.bf16.msra.mxu1 %v13079_v0  ;;  %v15459_v33 = vpop.f32.mrb[120].mxu1  ;;  %v13124_v0 = vld [vmem:[#allocation10 + $0x36c] ss:$24 sps:$4 sm:$0xff]  }
 0x6a6   :  { %11808 = vmatpush3.bf16.msra.mxu0 %v13078_v8  ;;  %12023 = vmatprep.subr.bf16.mxu1 %v13430_v14  ;;  %v11993_v49 = vpop.f32.mrb[121].mxu1  ;;  %v13125_v8 = vld [vmem:[#allocation10 + $0x1ec] ss:$24 sps:$4 sm:$0xff]  }
 0x6a7   :  { %11809 = vmatprep.subr.bf16.mxu0 %v13080_v26  ;;  %v15471_v58 = vpop.f32.mrb[122].mxu1  ;;  %v13127_v26 = vld [vmem:[#allocation10 + $0x39c] ss:$24 sps:$4 sm:$0xff]   ;;  %v13130_v49 = vld [vmem:[#allocation10 + $0x3cc] ss:$24 sps:$4 sm:$0xff]  }
 0x6a8   :  { %v15462_v27 = vpop.f32.mrb[112].mxu0  ;;  %v11994_v28 = vpop.f32.mrb[123].mxu1 }
 0x6a9   :  { %12024 = vmatpush3.bf16.msra.mxu1 %v13082_v34  ;;  %v15464_v37 = vpop.f32.mrb[113].mxu0  ;;  %v13126_v34 = vld [vmem:[#allocation10 + $0x6c] ss:$24 sps:$4 sm:$0xff]  }
 0x6aa   :  { %11810 = vmatpush3.bf16.msra.mxu0 %v13081_v50  ;;  %12025 = vmatprep.subr.bf16.mxu1 %v13430_v14  ;;  %v15467_v42 = vpop.f32.mrb[114].mxu0  ;;  %v13128_v50 = vld [vmem:[#allocation10 + $0x21c] ss:$24 sps:$4 sm:$0xff]   ;;  %v13136_v28 = vld [vmem:[#allocation10 + $0x42c] ss:$24 sps:$4 sm:$0xff]  }
 0x6ab   :  { %11811 = vmatprep.subr.bf16.mxu0 %v13083_v13  ;;  %v15469_v55 = vpop.f32.mrb[115].mxu0  ;;  %v13131_v13 = vld [vmem:[#allocation10 + $0x24c] ss:$24 sps:$4 sm:$0xff]  }
 0x6ad   :  { %12026 = vmatpush3.bf16.msra.mxu1 %v13085_v31  ;;  %v13133_v31 = vld [vmem:[#allocation10 + $0x3fc] ss:$24 sps:$4 sm:$0xff]  }
 0x6ae   :  { %11812 = vmatpush3.bf16.msra.mxu0 %v13084_v51  ;;  %12027 = vmatprep.subr.bf16.mxu1 %v13430_v14  ;;  %v13132_v51 = vld [vmem:[#allocation10 + $0xcc] ss:$24 sps:$4 sm:$0xff]  }
 0x6af   :  { %11813 = vmatprep.subr.bf16.mxu0 %v13086_v22  ;;  %v13134_v22 = vld [vmem:[#allocation10 + $0x27c] ss:$24 sps:$4 sm:$0xff]  }
 0x6b1   :  { %12028 = vmatpush3.bf16.msra.mxu1 %v13088_v5  ;;  %v13135_v5 = vld [vmem:[#allocation10 + $0xfc] ss:$24 sps:$4 sm:$0xff]  }
 0x6b2   :  { %11814 = vmatpush3.bf16.msra.mxu0 %v13087_v18  ;;  %12029 = vmatprep.subr.bf16.mxu1 %v13430_v14  ;;  %v13137_v18 = vld [vmem:[#allocation10 + $0x2ac] ss:$24 sps:$4 sm:$0xff]  }
 0x6b3   :  { %11815 = vmatprep.subr.bf16.mxu0 %v13089_v45  ;;  %v13139_v45 = vld [vmem:[#allocation10 + $0x45c] ss:$24 sps:$4 sm:$0xff]  }
 0x6b5   :  { %12030 = vmatpush3.bf16.msra.mxu1 %v13091_v21  ;;  %v13138_v21 = vld [vmem:[#allocation10 + $0x12c] ss:$24 sps:$4 sm:$0xff]  }
 0x6b6   :  { %11816 = vmatpush3.bf16.msra.mxu0 %v13090_v38  ;;  %12035 = vmatprep.subr.bf16.mxu1 %v13430_v14  ;;  %v13140_v38 = vld [vmem:[#allocation10 + $0x2dc] ss:$24 sps:$4 sm:$0xff]  }
 0x6b7   :  { %11817 = vmatprep.subr.bf16.mxu0 %v13092_v9  ;;  %v13142_v9 = vld [vmem:[#allocation10 + $0x310] ss:$24 sps:$4 sm:$0xff]  }
 0x6b8   :  { %12032 = vmatmul.mubr.bf16.vlgmr.msra.gmra.mrb[124].mxu1 %v9267_v3  ;;  %v13141_v3 = vld [vmem:[#allocation10 + $0x15c] ss:$24 sps:$4 sm:$0xff]  }
 0x6b9   :  { %12036 = vmatpush3.bf16.msra.mxu1 %v13094_v59  ;;  %12051 = vmatprep.mubr.msk.bf16.mxu1 %vm13431_vm4, %v13430_v14  ;;  %v9819_v59 = vpack.c.bf16 %v15448_v7, %v15448_v7  ;;  %v13146_v7 = vld [vmem:[#allocation10 + $0x1c0] ss:$24 sps:$4 sm:$0xff]  }
 0x6ba   :  { %11818 = vmatpush3.bf16.msra.mxu0 %v13093_v46  ;;  %12037 = vmatprep.subr.bf16.mxu1 %v13430_v14  ;;  %v13143_v46 = vld [vmem:[#allocation10 + $0x190] ss:$24 sps:$4 sm:$0xff]  }
 0x6bb   :  { %11834 = vmatprep.subr.bf16.mxu0 %v13095_v2  ;;  %v13145_v2 = vld [vmem:[#allocation10 + $0x340] ss:$24 sps:$4 sm:$0xff]  }
 0x6bd   :  { %9493 = vmatmul.mubr.bf16.vlgmr.msra.gmra.mrb[120].mxu0 %v9265_v15  ;;  %12038 = vmatpush3.bf16.msra.mxu1 %v13097_v29  ;;  %v13144_v29 = vld [vmem:[#allocation10 + $0x10] ss:$24 sps:$4 sm:$0xff]   ;;  %v10094_v15 = vpack.c.bf16 %v15464_v37, %v15464_v37 }
 0x6be   :  { %11835 = vmatpush3.bf16.msra.mxu0 %v13096_v36  ;;  %12039 = vmatprep.subr.bf16.mxu1 %v13430_v14  ;;  %v9817_v36 = vpack.c.bf16 %v15455_v62, %v15455_v62  ;;  %v13150_v62 = vld [vmem:[#allocation10 + $0x70] ss:$24 sps:$4 sm:$0xff]  }
 0x6bf   :  { %11836 = vmatprep.subr.bf16.mxu0 %v13098_v23  ;;  %9768 = vmatprep.mubr.bf16.mxu0 %v9542_v16  ;;  %v13148_v23 = vld [vmem:[#allocation10 + $0x370] ss:$24 sps:$4 sm:$0xff]   ;;  %v13147_v16 = vld [vmem:[#allocation10 + $0x40] ss:$24 sps:$4 sm:$0xff]  }
 0x6c0   :  { %v13154_v37 = vld [vmem:[#allocation10 + $0x3d0] ss:$24 sps:$4 sm:$0xff]  }
 0x6c1   :  { %12040 = vmatpush3.bf16.msra.mxu1 %v13100_v24  ;;  %v13149_v24 = vld [vmem:[#allocation10 + $0x1f0] ss:$24 sps:$4 sm:$0xff]  }
 0x6c2   :  { %11837 = vmatpush3.bf16.msra.mxu0 %v13099_v25  ;;  %12041 = vmatprep.subr.bf16.mxu1 %v13430_v14  ;;  %v13151_v25 = vld [vmem:[#allocation10 + $0x3a0] ss:$24 sps:$4 sm:$0xff]  }
 0x6c3   :  { %11838 = vmatprep.subr.bf16.mxu0 %v13101_v61  ;;  %v13152_v61 = vld [vmem:[#allocation10 + $0x220] ss:$24 sps:$4 sm:$0xff]  }
 0x6c5   :  { %12042 = vmatpush3.bf16.msra.mxu1 %v13103_v10  ;;  %v13153_v10 = vld [vmem:[#allocation10 + $0xa0] ss:$24 sps:$4 sm:$0xff]  }
 0x6c6   :  { %11839 = vmatpush3.bf16.msra.mxu0 %v13102_v32  ;;  %12043 = vmatprep.subr.bf16.mxu1 %v13430_v14  ;;  %v13155_v32 = vld [vmem:[#allocation10 + $0x250] ss:$24 sps:$4 sm:$0xff]  }
 0x6c7   :  { %11840 = vmatprep.subr.bf16.mxu0 %v13104_v53  ;;  %v13157_v53 = vld [vmem:[#allocation10 + $0x400] ss:$24 sps:$4 sm:$0xff]  }
 0x6c9   :  { %12044 = vmatpush3.bf16.msra.mxu1 %v13106_v48  ;;  %v13156_v48 = vld [vmem:[#allocation10 + $0xd0] ss:$24 sps:$4 sm:$0xff]  }
 0x6ca   :  { %11841 = vmatpush3.bf16.msra.mxu0 %v13105_v40  ;;  %12045 = vmatprep.subr.bf16.mxu1 %v13430_v14  ;;  %v13158_v40 = vld [vmem:[#allocation10 + $0x280] ss:$24 sps:$4 sm:$0xff]  }
 0x6cb   :  { %11842 = vmatprep.subr.bf16.mxu0 %v13107_v39  ;;  %v13160_v39 = vld [vmem:[#allocation10 + $0x430] ss:$24 sps:$4 sm:$0xff]  }
 0x6cd   :  { %12046 = vmatpush3.bf16.msra.mxu1 %v13109_v12  ;;  %v13159_v12 = vld [vmem:[#allocation10 + $0x100] ss:$24 sps:$4 sm:$0xff]  }
 0x6ce   :  { %11843 = vmatpush3.bf16.msra.mxu0 %v13108_v52  ;;  %12047 = vmatprep.subr.bf16.mxu1 %v13430_v14  ;;  %v13161_v52 = vld [vmem:[#allocation10 + $0x2b0] ss:$24 sps:$4 sm:$0xff]  }
 0x6cf   :  { %11844 = vmatprep.subr.bf16.mxu0 %v13110_v30  ;;  %v13163_v30 = vld [vmem:[#allocation10 + $0x460] ss:$24 sps:$4 sm:$0xff]  }
 0x6d1   :  { %12048 = vmatpush3.bf16.msra.mxu1 %v13112_v11  ;;  %v13162_v11 = vld [vmem:[#allocation10 + $0x130] ss:$24 sps:$4 sm:$0xff]  }
 0x6d2   :  { %11845 = vmatpush3.bf16.msra.mxu0 %v13111_v17  ;;  %12049 = vmatprep.subr.bf16.mxu1 %v13430_v14  ;;  %v13164_v17 = vld [vmem:[#allocation10 + $0x2e0] ss:$24 sps:$4 sm:$0xff]  }
 0x6d3   :  { %11846 = vmatprep.subr.bf16.mxu0 %v13113_v63  ;;  %v10095_v63 = vpack.c.bf16 %v15459_v33, %v15459_v33  ;;  %v13168_v33 = vld [vmem:[#allocation10 + $0x14] ss:$24 sps:$4 sm:$0xff]  }
 0x6d5   :  { %12050 = vmatpush3.bf16.msra.mxu1 %v13115_v1  ;;  %v13166_v1 = vld [vmem:[#allocation10 + $0x314] ss:$24 sps:$4 sm:$0xff]  }
 0x6d6   :  { %11847 = vmatpush3.bf16.msra.mxu0 %v13114_v60  ;;  %12055 = vmatprep.subr.bf16.mxu1 %v13430_v14  ;;  %v13165_v60 = vld [vmem:[#allocation10 + $0x160] ss:$24 sps:$4 sm:$0xff]  }
 0x6d7   :  { %11848 = vmatprep.subr.bf16.mxu0 %v13116_v6  ;;  %v13167_v6 = vld [vmem:[#allocation10 + $0x194] ss:$24 sps:$4 sm:$0xff]  }
 0x6d8   :  { %12052 = vmatmul.mubr.bf16.vlgmr.msra.gmra.mrb[124].mxu1 %v9543_v19  ;;  %v10093_v19 = vpack.c.bf16 %v15462_v27, %v15462_v27  ;;  %v13171_v27 = vld [vmem:[#allocation10 + $0x44] ss:$24 sps:$4 sm:$0xff]  }
 0x6d9   :  { %12056 = vmatpush3.bf16.msra.mxu1 %v13118_v56  ;;  %12071 = vmatprep.mubr.msk.bf16.mxu1 %vm13431_vm4, %v13430_v14  ;;  %v13169_v56 = vld [vmem:[#allocation10 + $0x344] ss:$24 sps:$4 sm:$0xff]  }
 0x6da   :  { %11849 = vmatpush3.bf16.msra.mxu0 %v13117_v20  ;;  %12057 = vmatprep.subr.bf16.mxu1 %v13430_v14  ;;  %v13170_v20 = vld [vmem:[#allocation10 + $0x1c4] ss:$24 sps:$4 sm:$0xff]  }
 0x6db   :  { %11865 = vmatprep.subr.bf16.mxu0 %v13119_v47  ;;  %v13172_v47 = vld [vmem:[#allocation10 + $0x374] ss:$24 sps:$4 sm:$0xff]  }
 0x6dd   :  { %9769 = vmatmul.mubr.bf16.vlgmr.msra.gmra.mrb[124].mxu0 %v9541_v4  ;;  %12058 = vmatpush3.bf16.msra.mxu1 %v13121_v43  ;;  %v10370_v4 = vpack.c.bf16 %v15469_v55, %v15469_v55  ;;  %v13173_v43 = vld [vmem:[#allocation10 + $0x1f4] ss:$24 sps:$4 sm:$0xff]   ;;  %v13177_v55 = vld [vmem:[#allocation10 + $0xa4] ss:$24 sps:$4 sm:$0xff]  }
 0x6de   :  { %11866 = vmatpush3.bf16.msra.mxu0 %v13120_v54  ;;  %12059 = vmatprep.subr.bf16.mxu1 %v13430_v14  ;;  %v13175_v54 = vld [vmem:[#allocation10 + $0x3a4] ss:$24 sps:$4 sm:$0xff]  }
 0x6df   :  { %11867 = vmatprep.subr.bf16.mxu0 %v13122_v57  ;;  %10044 = vmatprep.mubr.bf16.mxu0 %v9818_v44  ;;  %v13174_v57 = vld [vmem:[#allocation10 + $0x74] ss:$24 sps:$4 sm:$0xff]  }
 0x6e0   :  { %v13178_v44 = vld [vmem:[#allocation10 + $0x3d4] ss:$24 sps:$4 sm:$0xff]  }
 0x6e1   :  { %12060 = vmatpush3.bf16.msra.mxu1 %v13124_v0  ;;  %v13176_v0 = vld [vmem:[#allocation10 + $0x224] ss:$24 sps:$4 sm:$0xff]  }
 0x6e2   :  { %11868 = vmatpush3.bf16.msra.mxu0 %v13123_v41  ;;  %12061 = vmatprep.subr.bf16.mxu1 %v13430_v14  ;;  %v13179_v41 = vld [vmem:[#allocation10 + $0x254] ss:$24 sps:$4 sm:$0xff]  }
 0x6e3   :  { %11869 = vmatprep.subr.bf16.mxu0 %v13125_v8  ;;  %v13181_v8 = vld [vmem:[#allocation10 + $0x404] ss:$24 sps:$4 sm:$0xff]  }
 0x6e5   :  { %12062 = vmatpush3.bf16.msra.mxu1 %v13127_v26  ;;  %v13180_v26 = vld [vmem:[#allocation10 + $0xd4] ss:$24 sps:$4 sm:$0xff]  }
 0x6e6   :  { %11870 = vmatpush3.bf16.msra.mxu0 %v13126_v34  ;;  %12063 = vmatprep.subr.bf16.mxu1 %v13430_v14  ;;  %v13182_v34 = vld [vmem:[#allocation10 + $0x284] ss:$24 sps:$4 sm:$0xff]  }
 0x6e7   :  { %11871 = vmatprep.subr.bf16.mxu0 %v13128_v50  ;;  %v13184_v50 = vld [vmem:[#allocation10 + $0x434] ss:$24 sps:$4 sm:$0xff]  }
 0x6e9   :  { %12064 = vmatpush3.bf16.msra.mxu1 %v13130_v49  ;;  %v13183_v49 = vld [vmem:[#allocation10 + $0x104] ss:$24 sps:$4 sm:$0xff]  }
 0x6ea   :  { %11872 = vmatpush3.bf16.msra.mxu0 %v13129_v35  ;;  %12065 = vmatprep.subr.bf16.mxu1 %v13430_v14  ;;  %v13185_v35 = vld [vmem:[#allocation10 + $0x2b4] ss:$24 sps:$4 sm:$0xff]  }
 0x6eb   :  { %11873 = vmatprep.subr.bf16.mxu0 %v13131_v13  ;;  %v13187_v13 = vld [vmem:[#allocation10 + $0x464] ss:$24 sps:$4 sm:$0xff]  }
 0x6ed   :  { %12066 = vmatpush3.bf16.msra.mxu1 %v13133_v31  ;;  %v13186_v31 = vld [vmem:[#allocation10 + $0x134] ss:$24 sps:$4 sm:$0xff]  }
 0x6ee   :  { %11874 = vmatpush3.bf16.msra.mxu0 %v13132_v51  ;;  %12067 = vmatprep.subr.bf16.mxu1 %v13430_v14  ;;  %v13188_v51 = vld [vmem:[#allocation10 + $0x2e4] ss:$24 sps:$4 sm:$0xff]  }
 0x6ef   :  { %11875 = vmatprep.subr.bf16.mxu0 %v13134_v22  ;;  %v10371_v22 = vpack.c.bf16 %v15471_v58, %v15471_v58  ;;  %v13190_v58 = vld [vmem:[%s15600_s8] sm:$0xff]  }
 0x6f1   :  { %12068 = vmatpush3.bf16.msra.mxu1 %v13136_v28  ;;  %v13189_v28 = vld [vmem:[#allocation10 + $0x164] ss:$24 sps:$4 sm:$0xff]  }
 0x6f2   :  { %11876 = vmatpush3.bf16.msra.mxu0 %v13135_v5  ;;  %12069 = vmatprep.subr.bf16.mxu1 %v13430_v14  ;;  %v10369_v5 = vpack.c.bf16 %v15467_v42, %v15467_v42  ;;  %v13191_v42 = vld [vmem:[%s15600_s8 + $0x8] sm:$0xff]  }
 0x6f3   :  { %11877 = vmatprep.subr.bf16.mxu0 %v13137_v18 }
 0x6f5   :  { %12070 = vmatpush3.bf16.msra.mxu1 %v13139_v45 }
 0x6f6   :  { %11878 = vmatpush3.bf16.msra.mxu0 %v13138_v21  ;;  %12075 = vmatprep.subr.bf16.mxu1 %v13430_v14 }
 0x6f7   :  { %11879 = vmatprep.subr.bf16.mxu0 %v13140_v38 }
 0x6f8   :  { %12072 = vmatmul.mubr.bf16.vlgmr.msra.gmra.mrb[124].mxu1 %v9819_v59  ;;  %v13192_v59 = vld [vmem:[%s15600_s8 + $0x10] sm:$0xff]  }
 0x6f9   :  { %12076 = vmatpush3.bf16.msra.mxu1 %v13142_v9  ;;  %12091 = vmatprep.mubr.msk.bf16.mxu1 %vm13431_vm4, %v13430_v14 }
 0x6fa   :  { %11880 = vmatpush3.bf16.msra.mxu0 %v13141_v3  ;;  %12077 = vmatprep.subr.bf16.mxu1 %v13430_v14  ;;  %v13193_v3 = vld [vmem:[%s15600_s8 + $0x18] sm:$0xff]  }
 0x6fb   :  { %11896 = vmatprep.subr.bf16.mxu0 %v13143_v46  ;;  %v13194_v46 = vld [vmem:[%s15600_s8 + $0x20] sm:$0xff]  }
 0x6fd   :  { %10045 = vmatmul.mubr.bf16.vlgmr.msra.gmra.mrb[128].mxu0 %v9817_v36  ;;  %12078 = vmatpush3.bf16.msra.mxu1 %v13145_v2  ;;  %v11607_v2 = vld [vmem:[#allocation11] ss:$0 sm:$0xff] }
 0x6fe   :  { %11897 = vmatpush3.bf16.msra.mxu0 %v13144_v29  ;;  %12079 = vmatprep.subr.bf16.mxu1 %v13430_v14 }
 0x6ff   :  { %11898 = vmatprep.subr.bf16.mxu0 %v13146_v7  ;;  %10320 = vmatprep.mubr.bf16.mxu0 %v10094_v15 }
 0x701   :  { %12080 = vmatpush3.bf16.msra.mxu1 %v13148_v23 }
 0x702   :  { %11899 = vmatpush3.bf16.msra.mxu0 %v13147_v16  ;;  %12081 = vmatprep.subr.bf16.mxu1 %v13430_v14 }
 0x703   :  { %11900 = vmatprep.subr.bf16.mxu0 %v13149_v24 }
 0x705   :  { %12082 = vmatpush3.bf16.msra.mxu1 %v13151_v25  ;;  %v13195_v25 = vld [vmem:[%s15600_s8 + $0x28] sm:$0xff]  }
 0x706   :  { %11901 = vmatpush3.bf16.msra.mxu0 %v13150_v62  ;;  %12083 = vmatprep.subr.bf16.mxu1 %v13430_v14  ;;  %v13196_v62 = vld [vmem:[%s15600_s8 + $0x30] sm:$0xff]  }
 0x707   :  { %11902 = vmatprep.subr.bf16.mxu0 %v13152_v61  ;;  %v13197_v61 = vld [vmem:[%s15600_s8 + $0x38] sm:$0xff]   ;;  %s13432_s8 = smov [#allocation16]  }
 0x708   :  { %s10778_s16 = sshll.u32 %s13432_s8, 4  ;;  %s10779_s16 = int_to_ptr.vmem [resolvable:$true] %s10778_s16 }
 0x709   :  { %12084 = vmatpush3.bf16.msra.mxu1 %v13154_v37  ;;  %s13379_s28 = scalar_lea.vmem %s10779_s16, 128  ;;  %p13384_p9 = scmp.lt.s32.totalorder %s10779_s16, %s10779_s16 }
 0x70a   :  { %11903 = vmatpush3.bf16.msra.mxu0 %v13153_v10  ;;  %12085 = vmatprep.subr.bf16.mxu1 %v13430_v14  ;;  %p13380_p8 = scmp.ne.s32.totalorder %s10779_s16, %s13379_s28  ;;  %p13385_p10 = scmp.lt.s32.totalorder %s13379_s28, %s13379_s28 }
 0x70b   :  { %11904 = vmatprep.subr.bf16.mxu0 %v13155_v32 }
 0x70c   :  { %p13386_p11 = por %p13385_p10, %p13384_p9 }
 0x70d   :  { %12086 = vmatpush3.bf16.msra.mxu1 %v13157_v53 }
 0x70e   :  { %11905 = vmatpush3.bf16.msra.mxu0 %v13156_v48  ;;  %12087 = vmatprep.subr.bf16.mxu1 %v13430_v14  ;;  %p13387_p12 = pnand %p13386_p11, %p13380_p8 }
 0x70f   :  { %11906 = vmatprep.subr.bf16.mxu0 %v13158_v40 }
 0x711   :  { %12088 = vmatpush3.bf16.msra.mxu1 %v13160_v39 }
 0x712   :  { %11907 = vmatpush3.bf16.msra.mxu0 %v13159_v12  ;;  %12089 = vmatprep.subr.bf16.mxu1 %v13430_v14 }
 0x713   :  { %11908 = vmatprep.subr.bf16.mxu0 %v13161_v52 }
 0x715   :  { %12090 = vmatpush3.bf16.msra.mxu1 %v13163_v30 }
 0x716   :  { %11909 = vmatpush3.bf16.msra.mxu0 %v13162_v11  ;;  %12095 = vmatprep.subr.bf16.mxu1 %v13430_v14 }
 0x717   :  { %11910 = vmatprep.subr.bf16.mxu0 %v13164_v17 }
 0x718   :  { %12092 = vmatmul.mubr.bf16.vlgmr.msra.gmra.mrb[124].mxu1 %v10095_v63 }
 0x719   :  { %12096 = vmatpush3.bf16.msra.mxu1 %v13166_v1  ;;  %12111 = vmatprep.mubr.msk.bf16.mxu1 %vm13431_vm4, %v13430_v14 }
 0x71a   :  { %11911 = vmatpush3.bf16.msra.mxu0 %v13165_v60  ;;  %12097 = vmatprep.subr.bf16.mxu1 %v13430_v14 }
 0x71b   :  { %11927 = vmatprep.subr.bf16.mxu0 %v13167_v6 }
 0x71d   :  { %10321 = vmatmul.mubr.bf16.vlgmr.msra.gmra.mrb[132].mxu0 %v10093_v19  ;;  %12098 = vmatpush3.bf16.msra.mxu1 %v13169_v56 }
 0x71e   :  { %11928 = vmatpush3.bf16.msra.mxu0 %v13168_v33  ;;  %12099 = vmatprep.subr.bf16.mxu1 %v13430_v14 }
 0x71f   :  { %11929 = vmatprep.subr.bf16.mxu0 %v13170_v20  ;;  %10596 = vmatprep.mubr.bf16.mxu0 %v10370_v4 }
 0x721   :  { %12100 = vmatpush3.bf16.msra.mxu1 %v13172_v47 }
 0x722   :  { %11930 = vmatpush3.bf16.msra.mxu0 %v13171_v27  ;;  %12101 = vmatprep.subr.bf16.mxu1 %v13430_v14 }
 0x723   :  { %11931 = vmatprep.subr.bf16.mxu0 %v13173_v43 }
 0x725   :  { %12102 = vmatpush3.bf16.msra.mxu1 %v13175_v54 }
 0x726   :  { %11932 = vmatpush3.bf16.msra.mxu0 %v13174_v57  ;;  %12103 = vmatprep.subr.bf16.mxu1 %v13430_v14 }
 0x727   :  { %11933 = vmatprep.subr.bf16.mxu0 %v13176_v0 }
 0x729   :  { %12104 = vmatpush3.bf16.msra.mxu1 %v13178_v44 }
 0x72a   :  { %11934 = vmatpush3.bf16.msra.mxu0 %v13177_v55  ;;  %12105 = vmatprep.subr.bf16.mxu1 %v13430_v14 }
 0x72b   :  { %11935 = vmatprep.subr.bf16.mxu0 %v13179_v41 }
 0x72d   :  { %12106 = vmatpush3.bf16.msra.mxu1 %v13181_v8  ;;  %v11752_v8 = vld [vmem:[#allocation14] ss:$0 sm:$0xff] }
 0x72e   :  { %11936 = vmatpush3.bf16.msra.mxu0 %v13180_v26  ;;  %12107 = vmatprep.subr.bf16.mxu1 %v13430_v14 }
 0x72f   :  { %11937 = vmatprep.subr.bf16.mxu0 %v13182_v34 }
 0x731   :  { %12108 = vmatpush3.bf16.msra.mxu1 %v13184_v50 }
 0x732   :  { %11938 = vmatpush3.bf16.msra.mxu0 %v13183_v49  ;;  %12109 = vmatprep.subr.bf16.mxu1 %v13430_v14 }
 0x733   :  { %11939 = vmatprep.subr.bf16.mxu0 %v13185_v35 }
 0x735   :  { %12110 = vmatpush3.bf16.msra.mxu1 %v13187_v13 }
 0x736   :  { %11940 = vmatpush3.bf16.msra.mxu0 %v13186_v31 }
 0x737   :  { %11941 = vmatprep.subr.bf16.mxu0 %v13188_v51 }
 0x738   :  { %12112 = vmatmul.mubr.bf16.vlgmr.msra.gmra.mrb[124].mxu1 %v10371_v22 }
 0x73a   :  { %11942 = vmatpush3.bf16.msra.mxu0 %v13189_v28 }
 0x73b   :  { %12115 = vmatprep.subr.bf16.mxu0 %v13430_v14 }
 0x73d   :  { %10597 = vmatmul.mubr.bf16.vlgmr.msra.gmra.mrb[136].mxu0 %v10369_v5 }
 0x73e   :  { %12131 = vmatprep.mubr.msk.bf16.mxu0 %vm13431_vm4, %v13430_v14  ;;  %12116 = vmatpush3.bf16.msra.mxu0 %v13190_v58 }
 0x73f   :  { %12117 = vmatprep.subr.bf16.mxu0 %v13430_v14 }
 0x742   :  { %12118 = vmatpush3.bf16.msra.mxu0 %v13191_v42 }
 0x743   :  { %12119 = vmatprep.subr.bf16.mxu0 %v13430_v14 }
 0x746   :  { %12120 = vmatpush3.bf16.msra.mxu0 %v13192_v59 }
 0x747   :  { %12121 = vmatprep.subr.bf16.mxu0 %v13430_v14 }
 0x74a   :  { %12122 = vmatpush3.bf16.msra.mxu0 %v13193_v3 }
 0x74b   :  { %12123 = vmatprep.subr.bf16.mxu0 %v13430_v14 }
 0x74e   :  { %12124 = vmatpush3.bf16.msra.mxu0 %v13194_v46 }
 0x74f   :  { %12125 = vmatprep.subr.bf16.mxu0 %v13430_v14 }
 0x752   :  { %12126 = vmatpush3.bf16.msra.mxu0 %v13195_v25 }
 0x753   :  { %12127 = vmatprep.subr.bf16.mxu0 %v13430_v14 }
 0x756   :  { %12128 = vmatpush3.bf16.msra.mxu0 %v13196_v62 }
 0x757   :  { %12129 = vmatprep.subr.bf16.mxu0 %v13430_v14 }
 0x75a   :  { %12130 = vmatpush3.bf16.msra.mxu0 %v13197_v61 }
 0x770   :  { %v11788_v18 = vpop.f32.mrb[116].mxu0 }
 0x771   :  { %v11789_v45 = vpop.f32.mrb[117].mxu0 }
 0x772   :  { %v11790_v21 = vadd.f32 %v11789_v45, %v11788_v18  ;;  %v11791_v38 = vpop.f32.mrb[118].mxu0 }
 0x773   :  { %v11792_v9 = vpop.f32.mrb[119].mxu0 }
 0x774   :  { %v12245_v7 = vadd.f32 %v11790_v21, %v11607_v2 }
 0x790   :  { %v11819_v29 = vpop.f32.mrb[120].mxu0 }
 0x791   :  { %v11820_v36 = vpop.f32.mrb[121].mxu0 }
 0x792   :  { %v11821_v15 = vadd.f32 %v11820_v36, %v11819_v29  ;;  %v11822_v23 = vpop.f32.mrb[122].mxu0 }
 0x793   :  { %v11823_v16 = vpop.f32.mrb[123].mxu0 }
 0x794   :  { %v12246_v24 = vadd.f32 %v12245_v7, %v11821_v15 }
 0x7b0   :  { %v11850_v37 = vpop.f32.mrb[124].mxu0 }
 0x7b1   :  { %v11851_v10 = vpop.f32.mrb[125].mxu0 }
 0x7b2   :  { %v11852_v32 = vadd.f32 %v11851_v10, %v11850_v37  ;;  %v11853_v53 = vpop.f32.mrb[126].mxu0 }
 0x7b3   :  { %v11854_v48 = vpop.f32.mrb[127].mxu0 }
 0x7b4   :  { %v12247_v40 = vadd.f32 %v12246_v24, %v11852_v32 }
 0x7d0   :  { %v11881_v39 = vpop.f32.mrb[128].mxu0 }
 0x7d1   :  { %v11882_v12 = vpop.f32.mrb[129].mxu0 }
 0x7d2   :  { %v11883_v52 = vadd.f32 %v11882_v12, %v11881_v39  ;;  %v11884_v30 = vpop.f32.mrb[130].mxu0 }
 0x7d3   :  { %v11885_v11 = vpop.f32.mrb[131].mxu0 }
 0x7d4   :  { %v12248_v17 = vadd.f32 %v12247_v40, %v11883_v52 }
 0x7f0   :  { %v11912_v63 = vpop.f32.mrb[132].mxu0 }
 0x7f1   :  { %v11913_v1 = vpop.f32.mrb[133].mxu0 }
 0x7f2   :  { %v11914_v60 = vadd.f32 %v11913_v1, %v11912_v63  ;;  %v11915_v6 = vpop.f32.mrb[134].mxu0 }
 0x7f3   :  { %v11916_v19 = vpop.f32.mrb[135].mxu0 }
 0x7f4   :  { %v12249_v56 = vadd.f32 %v12248_v17, %v11914_v60 }
 0x80b   :  { %v10638_v14 = vpop.f32.mrb[124].mxu1 }
 0x80c   :  { %v12113_v33 = vpop.f32.mrb[125].mxu1 }
 0x80d   :  { %v10641_v20 = vpop.f32.mrb[126].mxu1 }
 0x80e   :  { %v12114_v47 = vpop.f32.mrb[127].mxu1 }
 0x810   :  { %v11943_v4 = vpop.f32.mrb[136].mxu0 }
 0x811   :  { %v11944_v27 = vpop.f32.mrb[137].mxu0 }
 0x812   :  { %v11945_v43 = vadd.f32 %v11944_v27, %v11943_v4  ;;  %v11946_v54 = vpop.f32.mrb[138].mxu0 }
 0x813   :  { %v11947_v57 = vpop.f32.mrb[139].mxu0 }
 0x814   :  { %v12250_v0 = vadd.f32 %v12249_v56, %v11945_v43 }
 0x816   :  { %v12251_v44 = vadd.f32 %v12250_v0, %v10638_v14 }
 0x818   :  { %v10645_v55 = vmax.f32 %v12251_v44, 0.0 }
 0x81a   :  { %v10646_v41 = vpack.c.bf16 %v10645_v55, %v10645_v55 }
 0x81c   :  { %12132 = vmatmul.mubr.bf16.vlgmr.msra.gmra.mrb[140].mxu0 %v10646_v41 }
 0x8ef   :  { %v10752_v26 = vpop.f32.mrb[140].mxu0 }
 0x8f0   :  { %v10753_v34 = vadd.f32 %v11752_v8, %v10752_v26  ;;  %v12133_v50 = vpop.f32.mrb[141].mxu0 }
 0x8f1   :  { %v10755_v49 = vpop.f32.mrb[142].mxu0 }
 0x8f2   :  { %v12134_v35 = vpop.f32.mrb[143].mxu0  ;;  %v10759_v13 = vsel %vm10758_vm5, %v10753_v34, -inf }
 0x8f3   :  { %10760 = vmax.xlane.f32.xlu0 %v10759_v13 }
 0x980   :  { %v10761_v31 = vpop.xlane.xlu0 %10760 }
 0x981   :  { %v10762_v51 = vsub.f32 %v10753_v34, %v10761_v31 }
 0x983   :  { %v10763_v22 = vmul.f32 1.442695, %v10762_v51 }
 0x985   :  { %13198 = vpow2.f32 %v10763_v22 }
 0x98f   :  { %v13199_v28 = vpop.eup %13198 }
 0x990   :  { %v10765_v5 = vsel %vm10758_vm5, %v13199_v28, 0.0 }
 0x991   :  { %10766 = vadd.xlane.f32.xlu0 %v10765_v5 }
 0xa1e   :  { %v10767_v18 = vpop.xlane.xlu0 %10766 }
 0xa1f   :  { %13200 = vlog2.f32 %v10767_v18 }
 0xa29   :  { %v13201_v45 = vpop.eup %13200 }
 0xa2a   :  { %v10769_v21 = vmul.f32 0.6931472, %v13201_v45 }
 0xa2c   :  { %v10770_v38 = vsub.f32 %v10762_v51, %v10769_v21 }
 0xa2e   :  { %10771 = vst.msk [vmem:[#allocation16] sm:$0xff] %vm10758_vm5, %v10770_v38 }
 0xa2f   :  { %13390 = shalt.err (!%p13387_p12)
}
 0xa30   :  { %s13391_s20 = scalar_lea.hbm %s15602_s10, 128 }
 0xa31   :  { %p13392_p13 = scmp.ne.s32.totalorder %s15602_s10, %s13391_s20  ;;  %p13395_p0 = scmp.lt.u32.totalorder %s13391_s20, %s15602_s10 }
 0xa33   :  { %p13397_p1 = pnand %p13395_p0, %p13392_p13 }
 0xa35   :  { %13400 = shalt.err (!%p13397_p1)
}
 0xa36   :  { %10781 = dma.vmem_to_hbm [thread:$0]  %s10779_s16, 128, %s15602_s10, [#allocation4]  }
 0xa37   :  { %13411 = dma.done.wait [#allocation4], 128  }
 0xa38   :  { %13412 = vsyncadd [#allocation4], 4294967168 }
 0xa39   :  { %10785 = vsyncpa [#allocation3], 1 }
 0xa3a   :  { %10786 = vsyncpa [#allocation6], 1 }
 0xa3b   :  { %10787 = vsyncpa [#allocation9], 1 }
 0xa3c   :  { %10788 = vsyncpa [#allocation12], 1 }
 0xa3d   :  { %10789 = vsyncpa [#allocation15], 1 }
 0xa3e   :  { %10790 = vsyncpa [#allocation4], 1 }

</bundles_post_ra>
